<compile_context>
chip_gen: v5e
topology: v5e:2x2
jax: 0.10.0
libtpu: 0.0.40
codegen_flags: <defaults>
</compile_context>

<pallas_src>
import math

import jax
import jax.numpy as jnp
from jax.experimental import pallas as pl
from jax.experimental.pallas import tpu as pltpu

# ----- small synthetic configuration (consistent with the module) -------------
J = 17                     # num_joint
D = 64                     # embed_dim (small synthetic)
H = 4                      # num_heads
HD = D // H                # head dim
DEPTH = 2                  # number of GAT blocks
MLP_HIDDEN = int(D * 4.0)
NUM_SPATIAL = 10
OUT = 3 * J                # lifter output = 3 * num_joint
OUTP = 128                 # lane-padded lifter output
NG = 64 // 16              # GroupNorm groups
EPS = 1e-5
NEG = -1e9                 # cross-sample attention mask value


# ------------------------------ in-kernel math --------------------------------
def _gelu(x):
    # exact (erf) GELU, matching torch.nn.GELU default
    return 0.5 * x * (1.0 + jax.lax.erf(x * 0.7071067811865476))


def _layernorm(x, g, b):
    m = jnp.mean(x, axis=-1, keepdims=True)
    v = jnp.mean((x - m) ** 2, axis=-1, keepdims=True)
    return (x - m) * jax.lax.rsqrt(v + EPS) * g + b


# ------------------------------ fused Pallas kernel ----------------------------
def gat_fused_kernel(pose_ref,
                     w1_ref, b1_ref, gmat_ref, gmatt_ref, sseg_ref, ssegt_ref,
                     gng_ref, gnb_ref, w2_ref, b2_ref, pos_ref,
                     bias_ref, adjn_ref,
                     n1g_ref, n1b_ref, wq_ref, wk_ref, wv_ref,
                     bq_ref, bk_ref, bv_ref, wproj_ref, bproj_ref,
                     wgcn_ref, bgcn_ref, wxf_ref, bxf_ref,
                     n2g_ref, n2b_ref, wfc1_ref, bfc1_ref, wfc2_ref, bfc2_ref,
                     ng_ref, nb_ref, wlift_ref, blift_ref,
                     out_ref, feat_ref):
    tb = out_ref.shape[1]                       # samples in this batch tile
    p2d = pose_ref[0]                           # (R, 2) rows, joint-major r = j*tb + b

    # ---- frontend: GraphLinear(2,64) + GroupNorm(4,64) + GELU + GraphLinear(64,D) ----
    y = jnp.dot(p2d, w1_ref[...], preferred_element_type=jnp.float32) + b1_ref[...]
    gm, gmt = gmat_ref[...], gmatt_ref[...]     # (64, NG), (NG, 64) one-hot group matrices
    ss, sst = sseg_ref[...], ssegt_ref[...]     # (R, tb), (tb, R) one-hot sample matrices
    inv_cnt = 1.0 / float(J * (64 // NG))
    gsum = jnp.dot(sst, jnp.dot(y, gm, preferred_element_type=jnp.float32),
                   preferred_element_type=jnp.float32)                    # (tb, NG)
    gsq = jnp.dot(sst, jnp.dot(y * y, gm, preferred_element_type=jnp.float32),
                  preferred_element_type=jnp.float32)
    mean = gsum * inv_cnt
    var = gsq * inv_cnt - mean * mean
    inv = jax.lax.rsqrt(var + EPS)
    mean_r = jnp.dot(ss, jnp.dot(mean, gmt, preferred_element_type=jnp.float32),
                     preferred_element_type=jnp.float32)                  # (R, 64)
    inv_r = jnp.dot(ss, jnp.dot(inv, gmt, preferred_element_type=jnp.float32),
                    preferred_element_type=jnp.float32)
    y = (y - mean_r) * inv_r * gng_ref[...] + gnb_ref[...]
    y = _gelu(y)
    x = jnp.dot(y, w2_ref[...], preferred_element_type=jnp.float32) + b2_ref[...] \
        + pos_ref[...]                                                     # (R, D)

    scale = 1.0 / math.sqrt(HD)
    adjn = adjn_ref[...]                        # block-diagonal normalized adjacency

    # ---- GAT blocks ----
    for l in range(DEPTH):
        res = x
        xn = _layernorm(x, n1g_ref[l], n1b_ref[l])

        q = jnp.dot(xn, wq_ref[l], preferred_element_type=jnp.float32) + bq_ref[l]
        k = jnp.dot(xn, wk_ref[l], preferred_element_type=jnp.float32) + bk_ref[l]
        v = jnp.dot(xn, wv_ref[l], preferred_element_type=jnp.float32) + bv_ref[l]

        att = jnp.zeros_like(xn)
        for h in range(H):                      # static unroll over heads
            qh = q[:, h * HD:(h + 1) * HD]
            kh = k[:, h * HD:(h + 1) * HD]
            vh = v[:, h * HD:(h + 1) * HD]
            # bias_ref[h] is block-diagonal: hop-path bias within a sample, -1e9 across.
            s = jnp.einsum('rd,sd->rs', qh, kh,
                           preferred_element_type=jnp.float32) * scale + bias_ref[h]
            s = s - jnp.max(s, axis=-1, keepdims=True)
            e = jnp.exp(s)
            p = e * pl.reciprocal(jnp.sum(e, axis=-1, keepdims=True), approx=True)
            hv = jnp.dot(p, vh, preferred_element_type=jnp.float32)       # (R, HD)
            att = att + jnp.dot(hv, wproj_ref[l, h],
                                preferred_element_type=jnp.float32)       # (R, D)
        att = att + bproj_ref[l]

        # TODO(synk): MGCN source not provided; implemented as vanilla GCN A_hat @ X @ W + b.
        gcn = jnp.dot(adjn, jnp.dot(xn, wgcn_ref[l], preferred_element_type=jnp.float32),
                      preferred_element_type=jnp.float32) + bgcn_ref[l]

        x2 = att + gcn                          # DropPath == identity (eval)
        # TODO(synk): X_Feat source not provided; implemented as a per-node linear map.
        xf = jnp.dot(x2, wxf_ref[l], preferred_element_type=jnp.float32) + bxf_ref[l]
        x = res + xf

        xn2 = _layernorm(x, n2g_ref[l], n2b_ref[l])
        hmid = _gelu(jnp.dot(xn2, wfc1_ref[l], preferred_element_type=jnp.float32)
                     + bfc1_ref[l])
        x = x + jnp.dot(hmid, wfc2_ref[l], preferred_element_type=jnp.float32) + bfc2_ref[l]

    # ---- head: LayerNorm + GELU + lifter ----
    xg = _gelu(_layernorm(x, ng_ref[...], nb_ref[...]))
    feat_ref[0] = xg

    lifted = blift_ref[...]                     # (1, OUTP), broadcasts on first add
    for j in range(J):                          # static unroll; contiguous-row slices
        rows = xg[j * tb:(j + 1) * tb, :]       # (tb, D) — joint j across the tile
        lifted = lifted + jnp.dot(rows, wlift_ref[j],
                                  preferred_element_type=jnp.float32)
    out_ref[0] = lifted                         # (tb, OUTP), lane-dense store


# ------------------------------ pallas_call glue -------------------------------
def _resident(arr):
    nd = arr.ndim
    return pl.BlockSpec(arr.shape, lambda t, _nd=nd: (0,) * _nd)


@jax.jit
def gat_forward(pose2d, params):
    B = pose2d.shape[0]
    TB = B if B <= 8 else 8                    # samples per grid step
    nt = -(-B // TB)
    Bp = nt * TB
    R = J * TB

    pose_p = pose2d.astype(jnp.float32)
    if Bp != B:
        pose_p = jnp.concatenate(
            [pose_p, jnp.zeros((Bp - B, J, 2), jnp.float32)], axis=0)
    # joint-major rows per tile: (nt, TB, J, 2) -> (nt, J, TB, 2) -> (nt, R, 2)
    pose_rows = pose_p.reshape(nt, TB, J, 2).transpose(0, 2, 1, 3).reshape(nt, R, 2)

    # ----- tile-layout constants (all matmul-friendly, built outside the kernel) -----
    eye_tb = jnp.eye(TB, dtype=jnp.float32)
    sseg = jnp.tile(eye_tb, (J, 1))                                   # (R, TB)
    sseg_t = sseg.T                                                   # (TB, R)
    gmat = (jnp.arange(64)[:, None] // (64 // NG)
            == jnp.arange(NG)[None, :]).astype(jnp.float32)           # (64, NG)
    gmat_t = gmat.T                                                   # (NG, 64)
    pos_rows = jnp.repeat(params['pos_add'], TB, axis=0)              # (R, D)

    same = jnp.einsum('ij,ab->iajb', jnp.ones((J, J), jnp.float32),
                      eye_tb).reshape(R, R)
    hop_full = jnp.einsum('hij,ab->hiajb', params['hop_bias'],
                          eye_tb).reshape(H, R, R)
    attn_bias = hop_full + (1.0 - same) * NEG                         # (H, R, R)
    adjn_full = jnp.einsum('ij,ab->iajb', params['adjn'], eye_tb).reshape(R, R)

    weights = [params['w1'], params['b1'], gmat, gmat_t, sseg, sseg_t,
               params['gn_g'], params['gn_b'], params['w2'], params['b2'], pos_rows,
               attn_bias, adjn_full,
               params['n1g'], params['n1b'],
               params['wq'], params['wk'], params['wv'],
               params['bq'], params['bk'], params['bv'],
               params['wproj'], params['bproj'],
               params['wgcn'], params['bgcn'],
               params['wxf'], params['bxf'],
               params['n2g'], params['n2b'],
               params['wfc1'], params['bfc1'], params['wfc2'], params['bfc2'],
               params['norm_g'], params['norm_b'], params['wlift'], params['blift']]

    in_specs = [pl.BlockSpec((1, R, 2), lambda t: (t, 0, 0))] + \
               [_resident(w) for w in weights]
    out_specs = (pl.BlockSpec((1, TB, OUTP), lambda t: (t, 0, 0)),
                 pl.BlockSpec((1, R, D), lambda t: (t, 0, 0)))
    out_shape = (jax.ShapeDtypeStruct((nt, TB, OUTP), jnp.float32),
                 jax.ShapeDtypeStruct((nt, R, D), jnp.float32))

    # advisory cost hint for the XLA scheduler
    rows = nt * R
    mm_flops = 2 * rows * (2 * 64 + 64 * 64 + 64 * D
                           + DEPTH * (6 * D * D + 2 * D * MLP_HIDDEN))
    mm_flops += nt * DEPTH * (4 * R * R * D + 2 * R * R * D)          # attn + gcn
    mm_flops += nt * 2 * J * TB * D * OUTP                            # lifter
    transc = rows * (64 + DEPTH * MLP_HIDDEN + D) + nt * DEPTH * H * R * R
    bytes_acc = 4 * (Bp * J * 2
                     + sum(math.prod(w.shape) for w in weights)
                     + nt * (TB * OUTP + R * D))
    cost = pl.CostEstimate(flops=int(mm_flops), transcendentals=int(transc),
                           bytes_accessed=int(bytes_acc))

    out, feat = pl.pallas_call(
        gat_fused_kernel,
        out_shape=out_shape,
        grid=(nt,),
        in_specs=in_specs,
        out_specs=out_specs,
        compiler_params=pltpu.CompilerParams(dimension_semantics=("parallel",)),
        cost_estimate=cost,
    )(pose_rows, *weights)

    x_out = out.reshape(Bp, OUTP)[:B, :OUT]                           # (B, 3*J)
    x_feat = feat.reshape(nt, J, TB, D).transpose(0, 2, 1, 3).reshape(Bp, J, D)[:B]
    return x_out, x_feat


# ------------------------------ parameters ------------------------------------
def init_params(key):
    ks = iter(jax.random.split(key, 64))

    def nrm(shape, scale=0.02):
        return jax.random.normal(next(ks), shape, jnp.float32) * scale

    def stack(make):
        return jnp.stack([make() for _ in range(DEPTH)], axis=0)

    # skeleton graph adjacency (synthetic chain over 17 joints)
    adj = jnp.zeros((J, J), jnp.float32)
    idx = jnp.arange(J - 1)
    adj = adj.at[idx, idx + 1].set(1.0)
    adj = adj.at[idx + 1, idx].set(1.0)
    # the PyTorch ctor zeroes these cross-limb pairs (no-op for a chain, kept for fidelity)
    for (a, b) in [(1, 4), (2, 5), (3, 6), (11, 14), (12, 15), (13, 16)]:
        adj = adj.at[a, b].set(0.0)
        adj = adj.at[b, a].set(0.0)
    deg = adj.sum(axis=1).astype(jnp.int32)

    # symmetric-normalized adjacency with self loops for the GCN branch
    a_hat = adj + jnp.eye(J, dtype=jnp.float32)
    dinv = 1.0 / jnp.sqrt(a_hat.sum(axis=1))
    adjn = a_hat * dinv[:, None] * dinv[None, :]

    # positional embeddings: pos_id_embed[1..J] + pos_num_embed[degree]
    pos_id_tbl = nrm((J + 1, D)).at[0].set(0.0)       # padding_idx=0
    pos_num_tbl = nrm((J, D)).at[0].set(0.0)          # padding_idx=0
    pos_add = pos_id_tbl[jnp.arange(1, J + 1)] + pos_num_tbl[deg]

    # HopPathEncoding -> per-head attention bias (H, J, J)
    # TODO(synk): the edge/path-distance term needs SMPL mean vertices + J_regressor
    # (.npy file I/O in the original); only the spatial-position embedding is used.
    ii = jnp.arange(J)
    spatial_pos = jnp.clip(jnp.abs(ii[:, None] - ii[None, :]), 0, NUM_SPATIAL - 1)
    sp_tbl = nrm((NUM_SPATIAL, H))
    hop_bias = jnp.transpose(sp_tbl[spatial_pos], (2, 0, 1))

    # lifter: weight stored joint-major (J, D, OUT) then lane-padded to 128
    wlift = jnp.pad(nrm((J, D, OUT)), ((0, 0), (0, 0), (0, OUTP - OUT)))

    params = dict(
        w1=nrm((2, 64)), b1=jnp.zeros((1, 64), jnp.float32),
        gn_g=jnp.ones((1, 64), jnp.float32), gn_b=jnp.zeros((1, 64), jnp.float32),
        w2=nrm((64, D)), b2=jnp.zeros((1, D), jnp.float32),
        pos_add=pos_add, hop_bias=hop_bias, adjn=adjn,
        norm_g=jnp.ones((1, D), jnp.float32), norm_b=jnp.zeros((1, D), jnp.float32),
        wlift=wlift, blift=jnp.zeros((1, OUTP), jnp.float32),
        # per-block weights, stacked on a leading depth axis
        n1g=jnp.ones((DEPTH, 1, D), jnp.float32), n1b=jnp.zeros((DEPTH, 1, D), jnp.float32),
        wq=stack(lambda: nrm((D, D))), wk=stack(lambda: nrm((D, D))),
        wv=stack(lambda: nrm((D, D))),
        bq=jnp.zeros((DEPTH, 1, D), jnp.float32), bk=jnp.zeros((DEPTH, 1, D), jnp.float32),
        bv=jnp.zeros((DEPTH, 1, D), jnp.float32),
        wproj=stack(lambda: nrm((H, HD, D))),     # output proj pre-split by head
        bproj=jnp.zeros((DEPTH, 1, D), jnp.float32),
        wgcn=stack(lambda: nrm((D, D))), bgcn=jnp.zeros((DEPTH, 1, D), jnp.float32),
        wxf=stack(lambda: nrm((D, D))), bxf=jnp.zeros((DEPTH, 1, D), jnp.float32),
        n2g=jnp.ones((DEPTH, 1, D), jnp.float32), n2b=jnp.zeros((DEPTH, 1, D), jnp.float32),
        wfc1=stack(lambda: nrm((D, MLP_HIDDEN))),
        bfc1=jnp.zeros((DEPTH, 1, MLP_HIDDEN), jnp.float32),
        wfc2=stack(lambda: nrm((MLP_HIDDEN, D))),
        bfc2=jnp.zeros((DEPTH, 1, D), jnp.float32),
    )
    return params


if __name__ == "__main__":
    key = jax.random.PRNGKey(0)
    kp, kx = jax.random.split(key)
    params = init_params(kp)
    pose2d = jax.random.normal(kx, (2, J, 2), jnp.float32)   # (B, num_joint, 2)
    x_out, x_feat = gat_forward(pose2d, params)
    jax.block_until_ready((x_out, x_feat))
    assert x_out.shape == (2, OUT) and x_feat.shape == (2, J, D)
    assert bool(jnp.all(jnp.isfinite(x_out))) and bool(jnp.all(jnp.isfinite(x_feat)))
    print("KERNEL_OK")
</pallas_src>

<mosaic_0001>
module attributes {stable_mosaic.version = 11 : i64} {
  func.func @gat_fused_kernel(%arg0: i32, %arg1: memref<1x34x2xf32, #tpu.memory_space<vmem>>, %arg2: memref<2x64xf32, #tpu.memory_space<vmem>>, %arg3: memref<1x64xf32, #tpu.memory_space<vmem>>, %arg4: memref<64x4xf32, #tpu.memory_space<vmem>>, %arg5: memref<4x64xf32, #tpu.memory_space<vmem>>, %arg6: memref<34x2xf32, #tpu.memory_space<vmem>>, %arg7: memref<2x34xf32, #tpu.memory_space<vmem>>, %arg8: memref<1x64xf32, #tpu.memory_space<vmem>>, %arg9: memref<1x64xf32, #tpu.memory_space<vmem>>, %arg10: memref<64x64xf32, #tpu.memory_space<vmem>>, %arg11: memref<1x64xf32, #tpu.memory_space<vmem>>, %arg12: memref<34x64xf32, #tpu.memory_space<vmem>>, %arg13: memref<4x34x34xf32, #tpu.memory_space<vmem>>, %arg14: memref<34x34xf32, #tpu.memory_space<vmem>>, %arg15: memref<2x1x64xf32, #tpu.memory_space<vmem>>, %arg16: memref<2x1x64xf32, #tpu.memory_space<vmem>>, %arg17: memref<2x64x64xf32, #tpu.memory_space<vmem>>, %arg18: memref<2x64x64xf32, #tpu.memory_space<vmem>>, %arg19: memref<2x64x64xf32, #tpu.memory_space<vmem>>, %arg20: memref<2x1x64xf32, #tpu.memory_space<vmem>>, %arg21: memref<2x1x64xf32, #tpu.memory_space<vmem>>, %arg22: memref<2x1x64xf32, #tpu.memory_space<vmem>>, %arg23: memref<2x4x16x64xf32, #tpu.memory_space<vmem>>, %arg24: memref<2x1x64xf32, #tpu.memory_space<vmem>>, %arg25: memref<2x64x64xf32, #tpu.memory_space<vmem>>, %arg26: memref<2x1x64xf32, #tpu.memory_space<vmem>>, %arg27: memref<2x64x64xf32, #tpu.memory_space<vmem>>, %arg28: memref<2x1x64xf32, #tpu.memory_space<vmem>>, %arg29: memref<2x1x64xf32, #tpu.memory_space<vmem>>, %arg30: memref<2x1x64xf32, #tpu.memory_space<vmem>>, %arg31: memref<2x64x256xf32, #tpu.memory_space<vmem>>, %arg32: memref<2x1x256xf32, #tpu.memory_space<vmem>>, %arg33: memref<2x256x64xf32, #tpu.memory_space<vmem>>, %arg34: memref<2x1x64xf32, #tpu.memory_space<vmem>>, %arg35: memref<1x64xf32, #tpu.memory_space<vmem>>, %arg36: memref<1x64xf32, #tpu.memory_space<vmem>>, %arg37: memref<17x64x128xf32, #tpu.memory_space<vmem>>, %arg38: memref<1x128xf32, #tpu.memory_space<vmem>>, %arg39: memref<1x2x128xf32, #tpu.memory_space<vmem>>, %arg40: memref<1x34x64xf32, #tpu.memory_space<vmem>>) attributes {dimension_semantics = [#tpu.dimension_semantics<parallel>], iteration_bounds = array<i64: 1>, scalar_prefetch = 0 : i64, scratch_operands = 0 : i64, tpu.core_type = #tpu.core_type<tc>, window_params = [{transform_indices = @transform_0, window_bounds = array<i64: 1, 34, 2>}, {pipeline_mode = #tpu.pipeline_mode<synchronous>, transform_indices = @transform_1, window_bounds = array<i64: 2, 64>}, {pipeline_mode = #tpu.pipeline_mode<synchronous>, transform_indices = @transform_2, window_bounds = array<i64: 1, 64>}, {pipeline_mode = #tpu.pipeline_mode<synchronous>, transform_indices = @transform_3, window_bounds = array<i64: 64, 4>}, {pipeline_mode = #tpu.pipeline_mode<synchronous>, transform_indices = @transform_4, window_bounds = array<i64: 4, 64>}, {pipeline_mode = #tpu.pipeline_mode<synchronous>, transform_indices = @transform_5, window_bounds = array<i64: 34, 2>}, {pipeline_mode = #tpu.pipeline_mode<synchronous>, transform_indices = @transform_6, window_bounds = array<i64: 2, 34>}, {pipeline_mode = #tpu.pipeline_mode<synchronous>, transform_indices = @transform_7, window_bounds = array<i64: 1, 64>}, {pipeline_mode = #tpu.pipeline_mode<synchronous>, transform_indices = @transform_8, window_bounds = array<i64: 1, 64>}, {pipeline_mode = #tpu.pipeline_mode<synchronous>, transform_indices = @transform_9, window_bounds = array<i64: 64, 64>}, {pipeline_mode = #tpu.pipeline_mode<synchronous>, transform_indices = @transform_10, window_bounds = array<i64: 1, 64>}, {pipeline_mode = #tpu.pipeline_mode<synchronous>, transform_indices = @transform_11, window_bounds = array<i64: 34, 64>}, {pipeline_mode = #tpu.pipeline_mode<synchronous>, transform_indices = @transform_12, window_bounds = array<i64: 4, 34, 34>}, {pipeline_mode = #tpu.pipeline_mode<synchronous>, transform_indices = @transform_13, window_bounds = array<i64: 34, 34>}, {pipeline_mode = #tpu.pipeline_mode<synchronous>, transform_indices = @transform_14, window_bounds = array<i64: 2, 1, 64>}, {pipeline_mode = #tpu.pipeline_mode<synchronous>, transform_indices = @transform_15, window_bounds = array<i64: 2, 1, 64>}, {pipeline_mode = #tpu.pipeline_mode<synchronous>, transform_indices = @transform_16, window_bounds = array<i64: 2, 64, 64>}, {pipeline_mode = #tpu.pipeline_mode<synchronous>, transform_indices = @transform_17, window_bounds = array<i64: 2, 64, 64>}, {pipeline_mode = #tpu.pipeline_mode<synchronous>, transform_indices = @transform_18, window_bounds = array<i64: 2, 64, 64>}, {pipeline_mode = #tpu.pipeline_mode<synchronous>, transform_indices = @transform_19, window_bounds = array<i64: 2, 1, 64>}, {pipeline_mode = #tpu.pipeline_mode<synchronous>, transform_indices = @transform_20, window_bounds = array<i64: 2, 1, 64>}, {pipeline_mode = #tpu.pipeline_mode<synchronous>, transform_indices = @transform_21, window_bounds = array<i64: 2, 1, 64>}, {pipeline_mode = #tpu.pipeline_mode<synchronous>, transform_indices = @transform_22, window_bounds = array<i64: 2, 4, 16, 64>}, {pipeline_mode = #tpu.pipeline_mode<synchronous>, transform_indices = @transform_23, window_bounds = array<i64: 2, 1, 64>}, {pipeline_mode = #tpu.pipeline_mode<synchronous>, transform_indices = @transform_24, window_bounds = array<i64: 2, 64, 64>}, {pipeline_mode = #tpu.pipeline_mode<synchronous>, transform_indices = @transform_25, window_bounds = array<i64: 2, 1, 64>}, {pipeline_mode = #tpu.pipeline_mode<synchronous>, transform_indices = @transform_26, window_bounds = array<i64: 2, 64, 64>}, {pipeline_mode = #tpu.pipeline_mode<synchronous>, transform_indices = @transform_27, window_bounds = array<i64: 2, 1, 64>}, {pipeline_mode = #tpu.pipeline_mode<synchronous>, transform_indices = @transform_28, window_bounds = array<i64: 2, 1, 64>}, {pipeline_mode = #tpu.pipeline_mode<synchronous>, transform_indices = @transform_29, window_bounds = array<i64: 2, 1, 64>}, {pipeline_mode = #tpu.pipeline_mode<synchronous>, transform_indices = @transform_30, window_bounds = array<i64: 2, 64, 256>}, {pipeline_mode = #tpu.pipeline_mode<synchronous>, transform_indices = @transform_31, window_bounds = array<i64: 2, 1, 256>}, {pipeline_mode = #tpu.pipeline_mode<synchronous>, transform_indices = @transform_32, window_bounds = array<i64: 2, 256, 64>}, {pipeline_mode = #tpu.pipeline_mode<synchronous>, transform_indices = @transform_33, window_bounds = array<i64: 2, 1, 64>}, {pipeline_mode = #tpu.pipeline_mode<synchronous>, transform_indices = @transform_34, window_bounds = array<i64: 1, 64>}, {pipeline_mode = #tpu.pipeline_mode<synchronous>, transform_indices = @transform_35, window_bounds = array<i64: 1, 64>}, {pipeline_mode = #tpu.pipeline_mode<synchronous>, transform_indices = @transform_36, window_bounds = array<i64: 17, 64, 128>}, {pipeline_mode = #tpu.pipeline_mode<synchronous>, transform_indices = @transform_37, window_bounds = array<i64: 1, 128>}, {transform_indices = @transform_38, window_bounds = array<i64: 1, 2, 128>}, {transform_indices = @transform_39, window_bounds = array<i64: 1, 34, 64>}]} {
    %c0 = arith.constant 0 : index
    %c0_0 = arith.constant 0 : index
    %c0_1 = arith.constant 0 : index
    %0 = vector.load %arg1[%c0, %c0_0, %c0_1] : memref<1x34x2xf32, #tpu.memory_space<vmem>>, vector<1x34x2xf32>
    %1 = vector.shape_cast %0 : vector<1x34x2xf32> to vector<34x2xf32>
    %c0_2 = arith.constant 0 : index
    %c0_3 = arith.constant 0 : index
    %2 = vector.load %arg2[%c0_2, %c0_3] : memref<2x64xf32, #tpu.memory_space<vmem>>, vector<2x64xf32>
    %cst = arith.constant dense<0.000000e+00> : vector<34x64xf32>
    %3 = tpu.matmul %1, %2, %cst {dimension_numbers = #tpu.dot_dimension_numbers<[1], [0], [0], [1], [0, 0, 1, 1], [], []>} : vector<34x2xf32>, vector<2x64xf32>, vector<34x64xf32> -> vector<34x64xf32>
    %c0_4 = arith.constant 0 : index
    %c0_5 = arith.constant 0 : index
    %4 = vector.load %arg3[%c0_4, %c0_5] : memref<1x64xf32, #tpu.memory_space<vmem>>, vector<1x64xf32>
    %5 = vector.broadcast %4 : vector<1x64xf32> to vector<34x64xf32>
    %6 = arith.addf %3, %5 : vector<34x64xf32>
    %c0_6 = arith.constant 0 : index
    %c0_7 = arith.constant 0 : index
    %7 = vector.load %arg4[%c0_6, %c0_7] : memref<64x4xf32, #tpu.memory_space<vmem>>, vector<64x4xf32>
    %c0_8 = arith.constant 0 : index
    %c0_9 = arith.constant 0 : index
    %8 = vector.load %arg5[%c0_8, %c0_9] : memref<4x64xf32, #tpu.memory_space<vmem>>, vector<4x64xf32>
    %c0_10 = arith.constant 0 : index
    %c0_11 = arith.constant 0 : index
    %9 = vector.load %arg6[%c0_10, %c0_11] : memref<34x2xf32, #tpu.memory_space<vmem>>, vector<34x2xf32>
    %c0_12 = arith.constant 0 : index
    %c0_13 = arith.constant 0 : index
    %10 = vector.load %arg7[%c0_12, %c0_13] : memref<2x34xf32, #tpu.memory_space<vmem>>, vector<2x34xf32>
    %cst_14 = arith.constant dense<0.000000e+00> : vector<34x4xf32>
    %11 = tpu.matmul %6, %7, %cst_14 {dimension_numbers = #tpu.dot_dimension_numbers<[1], [0], [0], [1], [0, 0, 1, 1], [], []>} : vector<34x64xf32>, vector<64x4xf32>, vector<34x4xf32> -> vector<34x4xf32>
    %cst_15 = arith.constant dense<0.000000e+00> : vector<2x4xf32>
    %12 = tpu.matmul %10, %11, %cst_15 {dimension_numbers = #tpu.dot_dimension_numbers<[1], [0], [0], [1], [0, 0, 1, 1], [], []>} : vector<2x34xf32>, vector<34x4xf32>, vector<2x4xf32> -> vector<2x4xf32>
    %13 = arith.mulf %6, %6 : vector<34x64xf32>
    %cst_16 = arith.constant dense<0.000000e+00> : vector<34x4xf32>
    %14 = tpu.matmul %13, %7, %cst_16 {dimension_numbers = #tpu.dot_dimension_numbers<[1], [0], [0], [1], [0, 0, 1, 1], [], []>} : vector<34x64xf32>, vector<64x4xf32>, vector<34x4xf32> -> vector<34x4xf32>
    %cst_17 = arith.constant dense<0.000000e+00> : vector<2x4xf32>
    %15 = tpu.matmul %10, %14, %cst_17 {dimension_numbers = #tpu.dot_dimension_numbers<[1], [0], [0], [1], [0, 0, 1, 1], [], []>} : vector<2x34xf32>, vector<34x4xf32>, vector<2x4xf32> -> vector<2x4xf32>
    %cst_18 = arith.constant 0.0036764706 : f32
    %16 = vector.broadcast %cst_18 : f32 to vector<2x4xf32>
    %17 = arith.mulf %12, %16 : vector<2x4xf32>
    %cst_19 = arith.constant 0.0036764706 : f32
    %18 = vector.broadcast %cst_19 : f32 to vector<2x4xf32>
    %19 = arith.mulf %15, %18 : vector<2x4xf32>
    %20 = arith.mulf %17, %17 : vector<2x4xf32>
    %21 = arith.subf %19, %20 : vector<2x4xf32>
    %cst_20 = arith.constant 9.99999974E-6 : f32
    %22 = vector.broadcast %cst_20 : f32 to vector<2x4xf32>
    %23 = arith.addf %21, %22 : vector<2x4xf32>
    %24 = math.rsqrt %23 : vector<2x4xf32>
    %cst_21 = arith.constant dense<0.000000e+00> : vector<2x64xf32>
    %25 = tpu.matmul %17, %8, %cst_21 {dimension_numbers = #tpu.dot_dimension_numbers<[1], [0], [0], [1], [0, 0, 1, 1], [], []>} : vector<2x4xf32>, vector<4x64xf32>, vector<2x64xf32> -> vector<2x64xf32>
    %cst_22 = arith.constant dense<0.000000e+00> : vector<34x64xf32>
    %26 = tpu.matmul %9, %25, %cst_22 {dimension_numbers = #tpu.dot_dimension_numbers<[1], [0], [0], [1], [0, 0, 1, 1], [], []>} : vector<34x2xf32>, vector<2x64xf32>, vector<34x64xf32> -> vector<34x64xf32>
    %cst_23 = arith.constant dense<0.000000e+00> : vector<2x64xf32>
    %27 = tpu.matmul %24, %8, %cst_23 {dimension_numbers = #tpu.dot_dimension_numbers<[1], [0], [0], [1], [0, 0, 1, 1], [], []>} : vector<2x4xf32>, vector<4x64xf32>, vector<2x64xf32> -> vector<2x64xf32>
    %cst_24 = arith.constant dense<0.000000e+00> : vector<34x64xf32>
    %28 = tpu.matmul %9, %27, %cst_24 {dimension_numbers = #tpu.dot_dimension_numbers<[1], [0], [0], [1], [0, 0, 1, 1], [], []>} : vector<34x2xf32>, vector<2x64xf32>, vector<34x64xf32> -> vector<34x64xf32>
    %29 = arith.subf %6, %26 : vector<34x64xf32>
    %30 = arith.mulf %29, %28 : vector<34x64xf32>
    %c0_25 = arith.constant 0 : index
    %c0_26 = arith.constant 0 : index
    %31 = vector.load %arg8[%c0_25, %c0_26] : memref<1x64xf32, #tpu.memory_space<vmem>>, vector<1x64xf32>
    %32 = vector.broadcast %31 : vector<1x64xf32> to vector<34x64xf32>
    %33 = arith.mulf %30, %32 : vector<34x64xf32>
    %c0_27 = arith.constant 0 : index
    %c0_28 = arith.constant 0 : index
    %34 = vector.load %arg9[%c0_27, %c0_28] : memref<1x64xf32, #tpu.memory_space<vmem>>, vector<1x64xf32>
    %35 = vector.broadcast %34 : vector<1x64xf32> to vector<34x64xf32>
    %36 = arith.addf %33, %35 : vector<34x64xf32>
    %cst_29 = arith.constant 5.000000e-01 : f32
    %37 = vector.broadcast %cst_29 : f32 to vector<34x64xf32>
    %38 = arith.mulf %37, %36 : vector<34x64xf32>
    %cst_30 = arith.constant 0.707106769 : f32
    %39 = vector.broadcast %cst_30 : f32 to vector<34x64xf32>
    %40 = arith.mulf %36, %39 : vector<34x64xf32>
    %41 = math.erf %40 : vector<34x64xf32>
    %cst_31 = arith.constant 1.000000e+00 : f32
    %42 = vector.broadcast %cst_31 : f32 to vector<34x64xf32>
    %43 = arith.addf %42, %41 : vector<34x64xf32>
    %44 = arith.mulf %38, %43 : vector<34x64xf32>
    %c0_32 = arith.constant 0 : index
    %c0_33 = arith.constant 0 : index
    %45 = vector.load %arg10[%c0_32, %c0_33] : memref<64x64xf32, #tpu.memory_space<vmem>>, vector<64x64xf32>
    %cst_34 = arith.constant dense<0.000000e+00> : vector<34x64xf32>
    %46 = tpu.matmul %44, %45, %cst_34 {dimension_numbers = #tpu.dot_dimension_numbers<[1], [0], [0], [1], [0, 0, 1, 1], [], []>} : vector<34x64xf32>, vector<64x64xf32>, vector<34x64xf32> -> vector<34x64xf32>
    %c0_35 = arith.constant 0 : index
    %c0_36 = arith.constant 0 : index
    %47 = vector.load %arg11[%c0_35, %c0_36] : memref<1x64xf32, #tpu.memory_space<vmem>>, vector<1x64xf32>
    %48 = vector.broadcast %47 : vector<1x64xf32> to vector<34x64xf32>
    %49 = arith.addf %46, %48 : vector<34x64xf32>
    %c0_37 = arith.constant 0 : index
    %c0_38 = arith.constant 0 : index
    %50 = vector.load %arg12[%c0_37, %c0_38] : memref<34x64xf32, #tpu.memory_space<vmem>>, vector<34x64xf32>
    %51 = arith.addf %49, %50 : vector<34x64xf32>
    %c0_39 = arith.constant 0 : index
    %c0_40 = arith.constant 0 : index
    %52 = vector.load %arg14[%c0_39, %c0_40] : memref<34x34xf32, #tpu.memory_space<vmem>>, vector<34x34xf32>
    %c0_41 = arith.constant 0 : index
    %c0_42 = arith.constant 0 : index
    %c0_43 = arith.constant 0 : index
    %53 = vector.load %arg15[%c0_41, %c0_42, %c0_43] : memref<2x1x64xf32, #tpu.memory_space<vmem>>, vector<1x1x64xf32>
    %54 = vector.shape_cast %53 : vector<1x1x64xf32> to vector<1x64xf32>
    %c0_44 = arith.constant 0 : index
    %c0_45 = arith.constant 0 : index
    %c0_46 = arith.constant 0 : index
    %55 = vector.load %arg16[%c0_44, %c0_45, %c0_46] : memref<2x1x64xf32, #tpu.memory_space<vmem>>, vector<1x1x64xf32>
    %56 = vector.shape_cast %55 : vector<1x1x64xf32> to vector<1x64xf32>
    %cst_47 = arith.constant dense<0.000000e+00> : vector<34xf32>
    %57 = vector.multi_reduction <add>, %51, %cst_47 [1] : vector<34x64xf32> to vector<34xf32>
    %58 = vector.shape_cast %57 : vector<34xf32> to vector<34x1xf32>
    %cst_48 = arith.constant 6.400000e+01 : f32
    %59 = vector.broadcast %cst_48 : f32 to vector<34x1xf32>
    %60 = arith.divf %58, %59 : vector<34x1xf32>
    %61 = vector.broadcast %60 : vector<34x1xf32> to vector<34x64xf32>
    %62 = arith.subf %51, %61 : vector<34x64xf32>
    %63 = arith.mulf %62, %62 : vector<34x64xf32>
    %cst_49 = arith.constant dense<0.000000e+00> : vector<34xf32>
    %64 = vector.multi_reduction <add>, %63, %cst_49 [1] : vector<34x64xf32> to vector<34xf32>
    %65 = vector.shape_cast %64 : vector<34xf32> to vector<34x1xf32>
    %cst_50 = arith.constant 6.400000e+01 : f32
    %66 = vector.broadcast %cst_50 : f32 to vector<34x1xf32>
    %67 = arith.divf %65, %66 : vector<34x1xf32>
    %68 = vector.broadcast %60 : vector<34x1xf32> to vector<34x64xf32>
    %69 = arith.subf %51, %68 : vector<34x64xf32>
    %cst_51 = arith.constant 9.99999974E-6 : f32
    %70 = vector.broadcast %cst_51 : f32 to vector<34x1xf32>
    %71 = arith.addf %67, %70 : vector<34x1xf32>
    %72 = math.rsqrt %71 : vector<34x1xf32>
    %73 = vector.broadcast %72 : vector<34x1xf32> to vector<34x64xf32>
    %74 = arith.mulf %69, %73 : vector<34x64xf32>
    %75 = vector.broadcast %54 : vector<1x64xf32> to vector<34x64xf32>
    %76 = arith.mulf %74, %75 : vector<34x64xf32>
    %77 = vector.broadcast %56 : vector<1x64xf32> to vector<34x64xf32>
    %78 = arith.addf %76, %77 : vector<34x64xf32>
    %c0_52 = arith.constant 0 : index
    %c0_53 = arith.constant 0 : index
    %c0_54 = arith.constant 0 : index
    %79 = vector.load %arg17[%c0_52, %c0_53, %c0_54] : memref<2x64x64xf32, #tpu.memory_space<vmem>>, vector<1x64x64xf32>
    %80 = vector.shape_cast %79 : vector<1x64x64xf32> to vector<64x64xf32>
    %cst_55 = arith.constant dense<0.000000e+00> : vector<34x64xf32>
    %81 = tpu.matmul %78, %80, %cst_55 {dimension_numbers = #tpu.dot_dimension_numbers<[1], [0], [0], [1], [0, 0, 1, 1], [], []>} : vector<34x64xf32>, vector<64x64xf32>, vector<34x64xf32> -> vector<34x64xf32>
    %c0_56 = arith.constant 0 : index
    %c0_57 = arith.constant 0 : index
    %c0_58 = arith.constant 0 : index
    %82 = vector.load %arg20[%c0_56, %c0_57, %c0_58] : memref<2x1x64xf32, #tpu.memory_space<vmem>>, vector<1x1x64xf32>
    %83 = vector.shape_cast %82 : vector<1x1x64xf32> to vector<1x64xf32>
    %84 = vector.broadcast %83 : vector<1x64xf32> to vector<34x64xf32>
    %85 = arith.addf %81, %84 : vector<34x64xf32>
    %c0_59 = arith.constant 0 : index
    %c0_60 = arith.constant 0 : index
    %c0_61 = arith.constant 0 : index
    %86 = vector.load %arg18[%c0_59, %c0_60, %c0_61] : memref<2x64x64xf32, #tpu.memory_space<vmem>>, vector<1x64x64xf32>
    %87 = vector.shape_cast %86 : vector<1x64x64xf32> to vector<64x64xf32>
    %cst_62 = arith.constant dense<0.000000e+00> : vector<34x64xf32>
    %88 = tpu.matmul %78, %87, %cst_62 {dimension_numbers = #tpu.dot_dimension_numbers<[1], [0], [0], [1], [0, 0, 1, 1], [], []>} : vector<34x64xf32>, vector<64x64xf32>, vector<34x64xf32> -> vector<34x64xf32>
    %c0_63 = arith.constant 0 : index
    %c0_64 = arith.constant 0 : index
    %c0_65 = arith.constant 0 : index
    %89 = vector.load %arg21[%c0_63, %c0_64, %c0_65] : memref<2x1x64xf32, #tpu.memory_space<vmem>>, vector<1x1x64xf32>
    %90 = vector.shape_cast %89 : vector<1x1x64xf32> to vector<1x64xf32>
    %91 = vector.broadcast %90 : vector<1x64xf32> to vector<34x64xf32>
    %92 = arith.addf %88, %91 : vector<34x64xf32>
    %c0_66 = arith.constant 0 : index
    %c0_67 = arith.constant 0 : index
    %c0_68 = arith.constant 0 : index
    %93 = vector.load %arg19[%c0_66, %c0_67, %c0_68] : memref<2x64x64xf32, #tpu.memory_space<vmem>>, vector<1x64x64xf32>
    %94 = vector.shape_cast %93 : vector<1x64x64xf32> to vector<64x64xf32>
    %cst_69 = arith.constant dense<0.000000e+00> : vector<34x64xf32>
    %95 = tpu.matmul %78, %94, %cst_69 {dimension_numbers = #tpu.dot_dimension_numbers<[1], [0], [0], [1], [0, 0, 1, 1], [], []>} : vector<34x64xf32>, vector<64x64xf32>, vector<34x64xf32> -> vector<34x64xf32>
    %c0_70 = arith.constant 0 : index
    %c0_71 = arith.constant 0 : index
    %c0_72 = arith.constant 0 : index
    %96 = vector.load %arg22[%c0_70, %c0_71, %c0_72] : memref<2x1x64xf32, #tpu.memory_space<vmem>>, vector<1x1x64xf32>
    %97 = vector.shape_cast %96 : vector<1x1x64xf32> to vector<1x64xf32>
    %98 = vector.broadcast %97 : vector<1x64xf32> to vector<34x64xf32>
    %99 = arith.addf %95, %98 : vector<34x64xf32>
    %cst_73 = arith.constant 0.000000e+00 : f32
    %100 = vector.broadcast %cst_73 : f32 to vector<34x64xf32>
    %101 = vector.extract_strided_slice %85 {offsets = [0, 0], sizes = [34, 16], strides = [1, 1]} : vector<34x64xf32> to vector<34x16xf32>
    %102 = vector.extract_strided_slice %92 {offsets = [0, 0], sizes = [34, 16], strides = [1, 1]} : vector<34x64xf32> to vector<34x16xf32>
    %103 = vector.extract_strided_slice %99 {offsets = [0, 0], sizes = [34, 16], strides = [1, 1]} : vector<34x64xf32> to vector<34x16xf32>
    "tpu.trace_start"() <{level = 10 : i32, message = "rd,sd->rs"}> : () -> ()
    %cst_74 = arith.constant dense<0.000000e+00> : vector<34x34xf32>
    %104 = tpu.matmul %101, %102, %cst_74 {dimension_numbers = #tpu.dot_dimension_numbers<[1], [1], [0], [0], [0, 0, 1, 0], [], []>} : vector<34x16xf32>, vector<34x16xf32>, vector<34x34xf32> -> vector<34x34xf32>
    "tpu.trace_stop"() : () -> ()
    %cst_75 = arith.constant 2.500000e-01 : f32
    %105 = vector.broadcast %cst_75 : f32 to vector<34x34xf32>
    %106 = arith.mulf %104, %105 : vector<34x34xf32>
    %c0_76 = arith.constant 0 : index
    %c0_77 = arith.constant 0 : index
    %c0_78 = arith.constant 0 : index
    %107 = vector.load %arg13[%c0_76, %c0_77, %c0_78] : memref<4x34x34xf32, #tpu.memory_space<vmem>>, vector<1x34x34xf32>
    %108 = vector.shape_cast %107 : vector<1x34x34xf32> to vector<34x34xf32>
    %109 = arith.addf %106, %108 : vector<34x34xf32>
    %cst_79 = arith.constant dense<0xFF800000> : vector<34xf32>
    %110 = vector.multi_reduction <maximumf>, %109, %cst_79 [1] : vector<34x34xf32> to vector<34xf32>
    %111 = vector.shape_cast %110 : vector<34xf32> to vector<34x1xf32>
    %112 = vector.broadcast %111 : vector<34x1xf32> to vector<34x34xf32>
    %113 = arith.subf %109, %112 : vector<34x34xf32>
    %114 = math.exp %113 : vector<34x34xf32>
    %cst_80 = arith.constant dense<0.000000e+00> : vector<34xf32>
    %115 = vector.multi_reduction <add>, %114, %cst_80 [1] : vector<34x34xf32> to vector<34xf32>
    %116 = vector.shape_cast %115 : vector<34xf32> to vector<34x1xf32>
    %117 = tpu.reciprocal %116 {approx = true} : vector<34x1xf32> -> vector<34x1xf32>
    %118 = vector.broadcast %117 : vector<34x1xf32> to vector<34x34xf32>
    %119 = arith.mulf %114, %118 : vector<34x34xf32>
    %cst_81 = arith.constant dense<0.000000e+00> : vector<34x16xf32>
    %120 = tpu.matmul %119, %103, %cst_81 {dimension_numbers = #tpu.dot_dimension_numbers<[1], [0], [0], [1], [0, 0, 1, 1], [], []>} : vector<34x34xf32>, vector<34x16xf32>, vector<34x16xf32> -> vector<34x16xf32>
    %c0_82 = arith.constant 0 : index
    %c0_83 = arith.constant 0 : index
    %c0_84 = arith.constant 0 : index
    %c0_85 = arith.constant 0 : index
    %121 = vector.load %arg23[%c0_82, %c0_83, %c0_84, %c0_85] : memref<2x4x16x64xf32, #tpu.memory_space<vmem>>, vector<1x1x16x64xf32>
    %122 = vector.shape_cast %121 : vector<1x1x16x64xf32> to vector<16x64xf32>
    %cst_86 = arith.constant dense<0.000000e+00> : vector<34x64xf32>
    %123 = tpu.matmul %120, %122, %cst_86 {dimension_numbers = #tpu.dot_dimension_numbers<[1], [0], [0], [1], [0, 0, 1, 1], [], []>} : vector<34x16xf32>, vector<16x64xf32>, vector<34x64xf32> -> vector<34x64xf32>
    %124 = arith.addf %100, %123 : vector<34x64xf32>
    %125 = vector.extract_strided_slice %85 {offsets = [0, 16], sizes = [34, 16], strides = [1, 1]} : vector<34x64xf32> to vector<34x16xf32>
    %126 = vector.extract_strided_slice %92 {offsets = [0, 16], sizes = [34, 16], strides = [1, 1]} : vector<34x64xf32> to vector<34x16xf32>
    %127 = vector.extract_strided_slice %99 {offsets = [0, 16], sizes = [34, 16], strides = [1, 1]} : vector<34x64xf32> to vector<34x16xf32>
    "tpu.trace_start"() <{level = 10 : i32, message = "rd,sd->rs"}> : () -> ()
    %cst_87 = arith.constant dense<0.000000e+00> : vector<34x34xf32>
    %128 = tpu.matmul %125, %126, %cst_87 {dimension_numbers = #tpu.dot_dimension_numbers<[1], [1], [0], [0], [0, 0, 1, 0], [], []>} : vector<34x16xf32>, vector<34x16xf32>, vector<34x34xf32> -> vector<34x34xf32>
    "tpu.trace_stop"() : () -> ()
    %cst_88 = arith.constant 2.500000e-01 : f32
    %129 = vector.broadcast %cst_88 : f32 to vector<34x34xf32>
    %130 = arith.mulf %128, %129 : vector<34x34xf32>
    %c1 = arith.constant 1 : index
    %c0_89 = arith.constant 0 : index
    %c0_90 = arith.constant 0 : index
    %131 = vector.load %arg13[%c1, %c0_89, %c0_90] : memref<4x34x34xf32, #tpu.memory_space<vmem>>, vector<1x34x34xf32>
    %132 = vector.shape_cast %131 : vector<1x34x34xf32> to vector<34x34xf32>
    %133 = arith.addf %130, %132 : vector<34x34xf32>
    %cst_91 = arith.constant dense<0xFF800000> : vector<34xf32>
    %134 = vector.multi_reduction <maximumf>, %133, %cst_91 [1] : vector<34x34xf32> to vector<34xf32>
    %135 = vector.shape_cast %134 : vector<34xf32> to vector<34x1xf32>
    %136 = vector.broadcast %135 : vector<34x1xf32> to vector<34x34xf32>
    %137 = arith.subf %133, %136 : vector<34x34xf32>
    %138 = math.exp %137 : vector<34x34xf32>
    %cst_92 = arith.constant dense<0.000000e+00> : vector<34xf32>
    %139 = vector.multi_reduction <add>, %138, %cst_92 [1] : vector<34x34xf32> to vector<34xf32>
    %140 = vector.shape_cast %139 : vector<34xf32> to vector<34x1xf32>
    %141 = tpu.reciprocal %140 {approx = true} : vector<34x1xf32> -> vector<34x1xf32>
    %142 = vector.broadcast %141 : vector<34x1xf32> to vector<34x34xf32>
    %143 = arith.mulf %138, %142 : vector<34x34xf32>
    %cst_93 = arith.constant dense<0.000000e+00> : vector<34x16xf32>
    %144 = tpu.matmul %143, %127, %cst_93 {dimension_numbers = #tpu.dot_dimension_numbers<[1], [0], [0], [1], [0, 0, 1, 1], [], []>} : vector<34x34xf32>, vector<34x16xf32>, vector<34x16xf32> -> vector<34x16xf32>
    %c0_94 = arith.constant 0 : index
    %c1_95 = arith.constant 1 : index
    %c0_96 = arith.constant 0 : index
    %c0_97 = arith.constant 0 : index
    %145 = vector.load %arg23[%c0_94, %c1_95, %c0_96, %c0_97] : memref<2x4x16x64xf32, #tpu.memory_space<vmem>>, vector<1x1x16x64xf32>
    %146 = vector.shape_cast %145 : vector<1x1x16x64xf32> to vector<16x64xf32>
    %cst_98 = arith.constant dense<0.000000e+00> : vector<34x64xf32>
    %147 = tpu.matmul %144, %146, %cst_98 {dimension_numbers = #tpu.dot_dimension_numbers<[1], [0], [0], [1], [0, 0, 1, 1], [], []>} : vector<34x16xf32>, vector<16x64xf32>, vector<34x64xf32> -> vector<34x64xf32>
    %148 = arith.addf %124, %147 : vector<34x64xf32>
    %149 = vector.extract_strided_slice %85 {offsets = [0, 32], sizes = [34, 16], strides = [1, 1]} : vector<34x64xf32> to vector<34x16xf32>
    %150 = vector.extract_strided_slice %92 {offsets = [0, 32], sizes = [34, 16], strides = [1, 1]} : vector<34x64xf32> to vector<34x16xf32>
    %151 = vector.extract_strided_slice %99 {offsets = [0, 32], sizes = [34, 16], strides = [1, 1]} : vector<34x64xf32> to vector<34x16xf32>
    "tpu.trace_start"() <{level = 10 : i32, message = "rd,sd->rs"}> : () -> ()
    %cst_99 = arith.constant dense<0.000000e+00> : vector<34x34xf32>
    %152 = tpu.matmul %149, %150, %cst_99 {dimension_numbers = #tpu.dot_dimension_numbers<[1], [1], [0], [0], [0, 0, 1, 0], [], []>} : vector<34x16xf32>, vector<34x16xf32>, vector<34x34xf32> -> vector<34x34xf32>
    "tpu.trace_stop"() : () -> ()
    %cst_100 = arith.constant 2.500000e-01 : f32
    %153 = vector.broadcast %cst_100 : f32 to vector<34x34xf32>
    %154 = arith.mulf %152, %153 : vector<34x34xf32>
    %c2 = arith.constant 2 : index
    %c0_101 = arith.constant 0 : index
    %c0_102 = arith.constant 0 : index
    %155 = vector.load %arg13[%c2, %c0_101, %c0_102] : memref<4x34x34xf32, #tpu.memory_space<vmem>>, vector<1x34x34xf32>
    %156 = vector.shape_cast %155 : vector<1x34x34xf32> to vector<34x34xf32>
    %157 = arith.addf %154, %156 : vector<34x34xf32>
    %cst_103 = arith.constant dense<0xFF800000> : vector<34xf32>
    %158 = vector.multi_reduction <maximumf>, %157, %cst_103 [1] : vector<34x34xf32> to vector<34xf32>
    %159 = vector.shape_cast %158 : vector<34xf32> to vector<34x1xf32>
    %160 = vector.broadcast %159 : vector<34x1xf32> to vector<34x34xf32>
    %161 = arith.subf %157, %160 : vector<34x34xf32>
    %162 = math.exp %161 : vector<34x34xf32>
    %cst_104 = arith.constant dense<0.000000e+00> : vector<34xf32>
    %163 = vector.multi_reduction <add>, %162, %cst_104 [1] : vector<34x34xf32> to vector<34xf32>
    %164 = vector.shape_cast %163 : vector<34xf32> to vector<34x1xf32>
    %165 = tpu.reciprocal %164 {approx = true} : vector<34x1xf32> -> vector<34x1xf32>
    %166 = vector.broadcast %165 : vector<34x1xf32> to vector<34x34xf32>
    %167 = arith.mulf %162, %166 : vector<34x34xf32>
    %cst_105 = arith.constant dense<0.000000e+00> : vector<34x16xf32>
    %168 = tpu.matmul %167, %151, %cst_105 {dimension_numbers = #tpu.dot_dimension_numbers<[1], [0], [0], [1], [0, 0, 1, 1], [], []>} : vector<34x34xf32>, vector<34x16xf32>, vector<34x16xf32> -> vector<34x16xf32>
    %c0_106 = arith.constant 0 : index
    %c2_107 = arith.constant 2 : index
    %c0_108 = arith.constant 0 : index
    %c0_109 = arith.constant 0 : index
    %169 = vector.load %arg23[%c0_106, %c2_107, %c0_108, %c0_109] : memref<2x4x16x64xf32, #tpu.memory_space<vmem>>, vector<1x1x16x64xf32>
    %170 = vector.shape_cast %169 : vector<1x1x16x64xf32> to vector<16x64xf32>
    %cst_110 = arith.constant dense<0.000000e+00> : vector<34x64xf32>
    %171 = tpu.matmul %168, %170, %cst_110 {dimension_numbers = #tpu.dot_dimension_numbers<[1], [0], [0], [1], [0, 0, 1, 1], [], []>} : vector<34x16xf32>, vector<16x64xf32>, vector<34x64xf32> -> vector<34x64xf32>
    %172 = arith.addf %148, %171 : vector<34x64xf32>
    %173 = vector.extract_strided_slice %85 {offsets = [0, 48], sizes = [34, 16], strides = [1, 1]} : vector<34x64xf32> to vector<34x16xf32>
    %174 = vector.extract_strided_slice %92 {offsets = [0, 48], sizes = [34, 16], strides = [1, 1]} : vector<34x64xf32> to vector<34x16xf32>
    %175 = vector.extract_strided_slice %99 {offsets = [0, 48], sizes = [34, 16], strides = [1, 1]} : vector<34x64xf32> to vector<34x16xf32>
    "tpu.trace_start"() <{level = 10 : i32, message = "rd,sd->rs"}> : () -> ()
    %cst_111 = arith.constant dense<0.000000e+00> : vector<34x34xf32>
    %176 = tpu.matmul %173, %174, %cst_111 {dimension_numbers = #tpu.dot_dimension_numbers<[1], [1], [0], [0], [0, 0, 1, 0], [], []>} : vector<34x16xf32>, vector<34x16xf32>, vector<34x34xf32> -> vector<34x34xf32>
    "tpu.trace_stop"() : () -> ()
    %cst_112 = arith.constant 2.500000e-01 : f32
    %177 = vector.broadcast %cst_112 : f32 to vector<34x34xf32>
    %178 = arith.mulf %176, %177 : vector<34x34xf32>
    %c3 = arith.constant 3 : index
    %c0_113 = arith.constant 0 : index
    %c0_114 = arith.constant 0 : index
    %179 = vector.load %arg13[%c3, %c0_113, %c0_114] : memref<4x34x34xf32, #tpu.memory_space<vmem>>, vector<1x34x34xf32>
    %180 = vector.shape_cast %179 : vector<1x34x34xf32> to vector<34x34xf32>
    %181 = arith.addf %178, %180 : vector<34x34xf32>
    %cst_115 = arith.constant dense<0xFF800000> : vector<34xf32>
    %182 = vector.multi_reduction <maximumf>, %181, %cst_115 [1] : vector<34x34xf32> to vector<34xf32>
    %183 = vector.shape_cast %182 : vector<34xf32> to vector<34x1xf32>
    %184 = vector.broadcast %183 : vector<34x1xf32> to vector<34x34xf32>
    %185 = arith.subf %181, %184 : vector<34x34xf32>
    %186 = math.exp %185 : vector<34x34xf32>
    %cst_116 = arith.constant dense<0.000000e+00> : vector<34xf32>
    %187 = vector.multi_reduction <add>, %186, %cst_116 [1] : vector<34x34xf32> to vector<34xf32>
    %188 = vector.shape_cast %187 : vector<34xf32> to vector<34x1xf32>
    %189 = tpu.reciprocal %188 {approx = true} : vector<34x1xf32> -> vector<34x1xf32>
    %190 = vector.broadcast %189 : vector<34x1xf32> to vector<34x34xf32>
    %191 = arith.mulf %186, %190 : vector<34x34xf32>
    %cst_117 = arith.constant dense<0.000000e+00> : vector<34x16xf32>
    %192 = tpu.matmul %191, %175, %cst_117 {dimension_numbers = #tpu.dot_dimension_numbers<[1], [0], [0], [1], [0, 0, 1, 1], [], []>} : vector<34x34xf32>, vector<34x16xf32>, vector<34x16xf32> -> vector<34x16xf32>
    %c0_118 = arith.constant 0 : index
    %c3_119 = arith.constant 3 : index
    %c0_120 = arith.constant 0 : index
    %c0_121 = arith.constant 0 : index
    %193 = vector.load %arg23[%c0_118, %c3_119, %c0_120, %c0_121] : memref<2x4x16x64xf32, #tpu.memory_space<vmem>>, vector<1x1x16x64xf32>
    %194 = vector.shape_cast %193 : vector<1x1x16x64xf32> to vector<16x64xf32>
    %cst_122 = arith.constant dense<0.000000e+00> : vector<34x64xf32>
    %195 = tpu.matmul %192, %194, %cst_122 {dimension_numbers = #tpu.dot_dimension_numbers<[1], [0], [0], [1], [0, 0, 1, 1], [], []>} : vector<34x16xf32>, vector<16x64xf32>, vector<34x64xf32> -> vector<34x64xf32>
    %196 = arith.addf %172, %195 : vector<34x64xf32>
    %c0_123 = arith.constant 0 : index
    %c0_124 = arith.constant 0 : index
    %c0_125 = arith.constant 0 : index
    %197 = vector.load %arg24[%c0_123, %c0_124, %c0_125] : memref<2x1x64xf32, #tpu.memory_space<vmem>>, vector<1x1x64xf32>
    %198 = vector.shape_cast %197 : vector<1x1x64xf32> to vector<1x64xf32>
    %199 = vector.broadcast %198 : vector<1x64xf32> to vector<34x64xf32>
    %200 = arith.addf %196, %199 : vector<34x64xf32>
    %c0_126 = arith.constant 0 : index
    %c0_127 = arith.constant 0 : index
    %c0_128 = arith.constant 0 : index
    %201 = vector.load %arg25[%c0_126, %c0_127, %c0_128] : memref<2x64x64xf32, #tpu.memory_space<vmem>>, vector<1x64x64xf32>
    %202 = vector.shape_cast %201 : vector<1x64x64xf32> to vector<64x64xf32>
    %cst_129 = arith.constant dense<0.000000e+00> : vector<34x64xf32>
    %203 = tpu.matmul %78, %202, %cst_129 {dimension_numbers = #tpu.dot_dimension_numbers<[1], [0], [0], [1], [0, 0, 1, 1], [], []>} : vector<34x64xf32>, vector<64x64xf32>, vector<34x64xf32> -> vector<34x64xf32>
    %cst_130 = arith.constant dense<0.000000e+00> : vector<34x64xf32>
    %204 = tpu.matmul %52, %203, %cst_130 {dimension_numbers = #tpu.dot_dimension_numbers<[1], [0], [0], [1], [0, 0, 1, 1], [], []>} : vector<34x34xf32>, vector<34x64xf32>, vector<34x64xf32> -> vector<34x64xf32>
    %c0_131 = arith.constant 0 : index
    %c0_132 = arith.constant 0 : index
    %c0_133 = arith.constant 0 : index
    %205 = vector.load %arg26[%c0_131, %c0_132, %c0_133] : memref<2x1x64xf32, #tpu.memory_space<vmem>>, vector<1x1x64xf32>
    %206 = vector.shape_cast %205 : vector<1x1x64xf32> to vector<1x64xf32>
    %207 = vector.broadcast %206 : vector<1x64xf32> to vector<34x64xf32>
    %208 = arith.addf %204, %207 : vector<34x64xf32>
    %209 = arith.addf %200, %208 : vector<34x64xf32>
    %c0_134 = arith.constant 0 : index
    %c0_135 = arith.constant 0 : index
    %c0_136 = arith.constant 0 : index
    %210 = vector.load %arg27[%c0_134, %c0_135, %c0_136] : memref<2x64x64xf32, #tpu.memory_space<vmem>>, vector<1x64x64xf32>
    %211 = vector.shape_cast %210 : vector<1x64x64xf32> to vector<64x64xf32>
    %cst_137 = arith.constant dense<0.000000e+00> : vector<34x64xf32>
    %212 = tpu.matmul %209, %211, %cst_137 {dimension_numbers = #tpu.dot_dimension_numbers<[1], [0], [0], [1], [0, 0, 1, 1], [], []>} : vector<34x64xf32>, vector<64x64xf32>, vector<34x64xf32> -> vector<34x64xf32>
    %c0_138 = arith.constant 0 : index
    %c0_139 = arith.constant 0 : index
    %c0_140 = arith.constant 0 : index
    %213 = vector.load %arg28[%c0_138, %c0_139, %c0_140] : memref<2x1x64xf32, #tpu.memory_space<vmem>>, vector<1x1x64xf32>
    %214 = vector.shape_cast %213 : vector<1x1x64xf32> to vector<1x64xf32>
    %215 = vector.broadcast %214 : vector<1x64xf32> to vector<34x64xf32>
    %216 = arith.addf %212, %215 : vector<34x64xf32>
    %217 = arith.addf %51, %216 : vector<34x64xf32>
    %c0_141 = arith.constant 0 : index
    %c0_142 = arith.constant 0 : index
    %c0_143 = arith.constant 0 : index
    %218 = vector.load %arg29[%c0_141, %c0_142, %c0_143] : memref<2x1x64xf32, #tpu.memory_space<vmem>>, vector<1x1x64xf32>
    %219 = vector.shape_cast %218 : vector<1x1x64xf32> to vector<1x64xf32>
    %c0_144 = arith.constant 0 : index
    %c0_145 = arith.constant 0 : index
    %c0_146 = arith.constant 0 : index
    %220 = vector.load %arg30[%c0_144, %c0_145, %c0_146] : memref<2x1x64xf32, #tpu.memory_space<vmem>>, vector<1x1x64xf32>
    %221 = vector.shape_cast %220 : vector<1x1x64xf32> to vector<1x64xf32>
    %cst_147 = arith.constant dense<0.000000e+00> : vector<34xf32>
    %222 = vector.multi_reduction <add>, %217, %cst_147 [1] : vector<34x64xf32> to vector<34xf32>
    %223 = vector.shape_cast %222 : vector<34xf32> to vector<34x1xf32>
    %cst_148 = arith.constant 6.400000e+01 : f32
    %224 = vector.broadcast %cst_148 : f32 to vector<34x1xf32>
    %225 = arith.divf %223, %224 : vector<34x1xf32>
    %226 = vector.broadcast %225 : vector<34x1xf32> to vector<34x64xf32>
    %227 = arith.subf %217, %226 : vector<34x64xf32>
    %228 = arith.mulf %227, %227 : vector<34x64xf32>
    %cst_149 = arith.constant dense<0.000000e+00> : vector<34xf32>
    %229 = vector.multi_reduction <add>, %228, %cst_149 [1] : vector<34x64xf32> to vector<34xf32>
    %230 = vector.shape_cast %229 : vector<34xf32> to vector<34x1xf32>
    %cst_150 = arith.constant 6.400000e+01 : f32
    %231 = vector.broadcast %cst_150 : f32 to vector<34x1xf32>
    %232 = arith.divf %230, %231 : vector<34x1xf32>
    %233 = vector.broadcast %225 : vector<34x1xf32> to vector<34x64xf32>
    %234 = arith.subf %217, %233 : vector<34x64xf32>
    %cst_151 = arith.constant 9.99999974E-6 : f32
    %235 = vector.broadcast %cst_151 : f32 to vector<34x1xf32>
    %236 = arith.addf %232, %235 : vector<34x1xf32>
    %237 = math.rsqrt %236 : vector<34x1xf32>
    %238 = vector.broadcast %237 : vector<34x1xf32> to vector<34x64xf32>
    %239 = arith.mulf %234, %238 : vector<34x64xf32>
    %240 = vector.broadcast %219 : vector<1x64xf32> to vector<34x64xf32>
    %241 = arith.mulf %239, %240 : vector<34x64xf32>
    %242 = vector.broadcast %221 : vector<1x64xf32> to vector<34x64xf32>
    %243 = arith.addf %241, %242 : vector<34x64xf32>
    %c0_152 = arith.constant 0 : index
    %c0_153 = arith.constant 0 : index
    %c0_154 = arith.constant 0 : index
    %244 = vector.load %arg31[%c0_152, %c0_153, %c0_154] : memref<2x64x256xf32, #tpu.memory_space<vmem>>, vector<1x64x256xf32>
    %245 = vector.shape_cast %244 : vector<1x64x256xf32> to vector<64x256xf32>
    %cst_155 = arith.constant dense<0.000000e+00> : vector<34x256xf32>
    %246 = tpu.matmul %243, %245, %cst_155 {dimension_numbers = #tpu.dot_dimension_numbers<[1], [0], [0], [1], [0, 0, 1, 1], [], []>} : vector<34x64xf32>, vector<64x256xf32>, vector<34x256xf32> -> vector<34x256xf32>
    %c0_156 = arith.constant 0 : index
    %c0_157 = arith.constant 0 : index
    %c0_158 = arith.constant 0 : index
    %247 = vector.load %arg32[%c0_156, %c0_157, %c0_158] : memref<2x1x256xf32, #tpu.memory_space<vmem>>, vector<1x1x256xf32>
    %248 = vector.shape_cast %247 : vector<1x1x256xf32> to vector<1x256xf32>
    %249 = vector.broadcast %248 : vector<1x256xf32> to vector<34x256xf32>
    %250 = arith.addf %246, %249 : vector<34x256xf32>
    %cst_159 = arith.constant 5.000000e-01 : f32
    %251 = vector.broadcast %cst_159 : f32 to vector<34x256xf32>
    %252 = arith.mulf %251, %250 : vector<34x256xf32>
    %cst_160 = arith.constant 0.707106769 : f32
    %253 = vector.broadcast %cst_160 : f32 to vector<34x256xf32>
    %254 = arith.mulf %250, %253 : vector<34x256xf32>
    %255 = math.erf %254 : vector<34x256xf32>
    %cst_161 = arith.constant 1.000000e+00 : f32
    %256 = vector.broadcast %cst_161 : f32 to vector<34x256xf32>
    %257 = arith.addf %256, %255 : vector<34x256xf32>
    %258 = arith.mulf %252, %257 : vector<34x256xf32>
    %c0_162 = arith.constant 0 : index
    %c0_163 = arith.constant 0 : index
    %c0_164 = arith.constant 0 : index
    %259 = vector.load %arg33[%c0_162, %c0_163, %c0_164] : memref<2x256x64xf32, #tpu.memory_space<vmem>>, vector<1x256x64xf32>
    %260 = vector.shape_cast %259 : vector<1x256x64xf32> to vector<256x64xf32>
    %cst_165 = arith.constant dense<0.000000e+00> : vector<34x64xf32>
    %261 = tpu.matmul %258, %260, %cst_165 {dimension_numbers = #tpu.dot_dimension_numbers<[1], [0], [0], [1], [0, 0, 1, 1], [], []>} : vector<34x256xf32>, vector<256x64xf32>, vector<34x64xf32> -> vector<34x64xf32>
    %262 = arith.addf %217, %261 : vector<34x64xf32>
    %c0_166 = arith.constant 0 : index
    %c0_167 = arith.constant 0 : index
    %c0_168 = arith.constant 0 : index
    %263 = vector.load %arg34[%c0_166, %c0_167, %c0_168] : memref<2x1x64xf32, #tpu.memory_space<vmem>>, vector<1x1x64xf32>
    %264 = vector.shape_cast %263 : vector<1x1x64xf32> to vector<1x64xf32>
    %265 = vector.broadcast %264 : vector<1x64xf32> to vector<34x64xf32>
    %266 = arith.addf %262, %265 : vector<34x64xf32>
    %c1_169 = arith.constant 1 : index
    %c0_170 = arith.constant 0 : index
    %c0_171 = arith.constant 0 : index
    %267 = vector.load %arg15[%c1_169, %c0_170, %c0_171] : memref<2x1x64xf32, #tpu.memory_space<vmem>>, vector<1x1x64xf32>
    %268 = vector.shape_cast %267 : vector<1x1x64xf32> to vector<1x64xf32>
    %c1_172 = arith.constant 1 : index
    %c0_173 = arith.constant 0 : index
    %c0_174 = arith.constant 0 : index
    %269 = vector.load %arg16[%c1_172, %c0_173, %c0_174] : memref<2x1x64xf32, #tpu.memory_space<vmem>>, vector<1x1x64xf32>
    %270 = vector.shape_cast %269 : vector<1x1x64xf32> to vector<1x64xf32>
    %cst_175 = arith.constant dense<0.000000e+00> : vector<34xf32>
    %271 = vector.multi_reduction <add>, %266, %cst_175 [1] : vector<34x64xf32> to vector<34xf32>
    %272 = vector.shape_cast %271 : vector<34xf32> to vector<34x1xf32>
    %cst_176 = arith.constant 6.400000e+01 : f32
    %273 = vector.broadcast %cst_176 : f32 to vector<34x1xf32>
    %274 = arith.divf %272, %273 : vector<34x1xf32>
    %275 = vector.broadcast %274 : vector<34x1xf32> to vector<34x64xf32>
    %276 = arith.subf %266, %275 : vector<34x64xf32>
    %277 = arith.mulf %276, %276 : vector<34x64xf32>
    %cst_177 = arith.constant dense<0.000000e+00> : vector<34xf32>
    %278 = vector.multi_reduction <add>, %277, %cst_177 [1] : vector<34x64xf32> to vector<34xf32>
    %279 = vector.shape_cast %278 : vector<34xf32> to vector<34x1xf32>
    %cst_178 = arith.constant 6.400000e+01 : f32
    %280 = vector.broadcast %cst_178 : f32 to vector<34x1xf32>
    %281 = arith.divf %279, %280 : vector<34x1xf32>
    %282 = vector.broadcast %274 : vector<34x1xf32> to vector<34x64xf32>
    %283 = arith.subf %266, %282 : vector<34x64xf32>
    %cst_179 = arith.constant 9.99999974E-6 : f32
    %284 = vector.broadcast %cst_179 : f32 to vector<34x1xf32>
    %285 = arith.addf %281, %284 : vector<34x1xf32>
    %286 = math.rsqrt %285 : vector<34x1xf32>
    %287 = vector.broadcast %286 : vector<34x1xf32> to vector<34x64xf32>
    %288 = arith.mulf %283, %287 : vector<34x64xf32>
    %289 = vector.broadcast %268 : vector<1x64xf32> to vector<34x64xf32>
    %290 = arith.mulf %288, %289 : vector<34x64xf32>
    %291 = vector.broadcast %270 : vector<1x64xf32> to vector<34x64xf32>
    %292 = arith.addf %290, %291 : vector<34x64xf32>
    %c1_180 = arith.constant 1 : index
    %c0_181 = arith.constant 0 : index
    %c0_182 = arith.constant 0 : index
    %293 = vector.load %arg17[%c1_180, %c0_181, %c0_182] : memref<2x64x64xf32, #tpu.memory_space<vmem>>, vector<1x64x64xf32>
    %294 = vector.shape_cast %293 : vector<1x64x64xf32> to vector<64x64xf32>
    %cst_183 = arith.constant dense<0.000000e+00> : vector<34x64xf32>
    %295 = tpu.matmul %292, %294, %cst_183 {dimension_numbers = #tpu.dot_dimension_numbers<[1], [0], [0], [1], [0, 0, 1, 1], [], []>} : vector<34x64xf32>, vector<64x64xf32>, vector<34x64xf32> -> vector<34x64xf32>
    %c1_184 = arith.constant 1 : index
    %c0_185 = arith.constant 0 : index
    %c0_186 = arith.constant 0 : index
    %296 = vector.load %arg20[%c1_184, %c0_185, %c0_186] : memref<2x1x64xf32, #tpu.memory_space<vmem>>, vector<1x1x64xf32>
    %297 = vector.shape_cast %296 : vector<1x1x64xf32> to vector<1x64xf32>
    %298 = vector.broadcast %297 : vector<1x64xf32> to vector<34x64xf32>
    %299 = arith.addf %295, %298 : vector<34x64xf32>
    %c1_187 = arith.constant 1 : index
    %c0_188 = arith.constant 0 : index
    %c0_189 = arith.constant 0 : index
    %300 = vector.load %arg18[%c1_187, %c0_188, %c0_189] : memref<2x64x64xf32, #tpu.memory_space<vmem>>, vector<1x64x64xf32>
    %301 = vector.shape_cast %300 : vector<1x64x64xf32> to vector<64x64xf32>
    %cst_190 = arith.constant dense<0.000000e+00> : vector<34x64xf32>
    %302 = tpu.matmul %292, %301, %cst_190 {dimension_numbers = #tpu.dot_dimension_numbers<[1], [0], [0], [1], [0, 0, 1, 1], [], []>} : vector<34x64xf32>, vector<64x64xf32>, vector<34x64xf32> -> vector<34x64xf32>
    %c1_191 = arith.constant 1 : index
    %c0_192 = arith.constant 0 : index
    %c0_193 = arith.constant 0 : index
    %303 = vector.load %arg21[%c1_191, %c0_192, %c0_193] : memref<2x1x64xf32, #tpu.memory_space<vmem>>, vector<1x1x64xf32>
    %304 = vector.shape_cast %303 : vector<1x1x64xf32> to vector<1x64xf32>
    %305 = vector.broadcast %304 : vector<1x64xf32> to vector<34x64xf32>
    %306 = arith.addf %302, %305 : vector<34x64xf32>
    %c1_194 = arith.constant 1 : index
    %c0_195 = arith.constant 0 : index
    %c0_196 = arith.constant 0 : index
    %307 = vector.load %arg19[%c1_194, %c0_195, %c0_196] : memref<2x64x64xf32, #tpu.memory_space<vmem>>, vector<1x64x64xf32>
    %308 = vector.shape_cast %307 : vector<1x64x64xf32> to vector<64x64xf32>
    %cst_197 = arith.constant dense<0.000000e+00> : vector<34x64xf32>
    %309 = tpu.matmul %292, %308, %cst_197 {dimension_numbers = #tpu.dot_dimension_numbers<[1], [0], [0], [1], [0, 0, 1, 1], [], []>} : vector<34x64xf32>, vector<64x64xf32>, vector<34x64xf32> -> vector<34x64xf32>
    %c1_198 = arith.constant 1 : index
    %c0_199 = arith.constant 0 : index
    %c0_200 = arith.constant 0 : index
    %310 = vector.load %arg22[%c1_198, %c0_199, %c0_200] : memref<2x1x64xf32, #tpu.memory_space<vmem>>, vector<1x1x64xf32>
    %311 = vector.shape_cast %310 : vector<1x1x64xf32> to vector<1x64xf32>
    %312 = vector.broadcast %311 : vector<1x64xf32> to vector<34x64xf32>
    %313 = arith.addf %309, %312 : vector<34x64xf32>
    %cst_201 = arith.constant 0.000000e+00 : f32
    %314 = vector.broadcast %cst_201 : f32 to vector<34x64xf32>
    %315 = vector.extract_strided_slice %299 {offsets = [0, 0], sizes = [34, 16], strides = [1, 1]} : vector<34x64xf32> to vector<34x16xf32>
    %316 = vector.extract_strided_slice %306 {offsets = [0, 0], sizes = [34, 16], strides = [1, 1]} : vector<34x64xf32> to vector<34x16xf32>
    %317 = vector.extract_strided_slice %313 {offsets = [0, 0], sizes = [34, 16], strides = [1, 1]} : vector<34x64xf32> to vector<34x16xf32>
    "tpu.trace_start"() <{level = 10 : i32, message = "rd,sd->rs"}> : () -> ()
    %cst_202 = arith.constant dense<0.000000e+00> : vector<34x34xf32>
    %318 = tpu.matmul %315, %316, %cst_202 {dimension_numbers = #tpu.dot_dimension_numbers<[1], [1], [0], [0], [0, 0, 1, 0], [], []>} : vector<34x16xf32>, vector<34x16xf32>, vector<34x34xf32> -> vector<34x34xf32>
    "tpu.trace_stop"() : () -> ()
    %cst_203 = arith.constant 2.500000e-01 : f32
    %319 = vector.broadcast %cst_203 : f32 to vector<34x34xf32>
    %320 = arith.mulf %318, %319 : vector<34x34xf32>
    %c0_204 = arith.constant 0 : index
    %c0_205 = arith.constant 0 : index
    %c0_206 = arith.constant 0 : index
    %321 = vector.load %arg13[%c0_204, %c0_205, %c0_206] : memref<4x34x34xf32, #tpu.memory_space<vmem>>, vector<1x34x34xf32>
    %322 = vector.shape_cast %321 : vector<1x34x34xf32> to vector<34x34xf32>
    %323 = arith.addf %320, %322 : vector<34x34xf32>
    %cst_207 = arith.constant dense<0xFF800000> : vector<34xf32>
    %324 = vector.multi_reduction <maximumf>, %323, %cst_207 [1] : vector<34x34xf32> to vector<34xf32>
    %325 = vector.shape_cast %324 : vector<34xf32> to vector<34x1xf32>
    %326 = vector.broadcast %325 : vector<34x1xf32> to vector<34x34xf32>
    %327 = arith.subf %323, %326 : vector<34x34xf32>
    %328 = math.exp %327 : vector<34x34xf32>
    %cst_208 = arith.constant dense<0.000000e+00> : vector<34xf32>
    %329 = vector.multi_reduction <add>, %328, %cst_208 [1] : vector<34x34xf32> to vector<34xf32>
    %330 = vector.shape_cast %329 : vector<34xf32> to vector<34x1xf32>
    %331 = tpu.reciprocal %330 {approx = true} : vector<34x1xf32> -> vector<34x1xf32>
    %332 = vector.broadcast %331 : vector<34x1xf32> to vector<34x34xf32>
    %333 = arith.mulf %328, %332 : vector<34x34xf32>
    %cst_209 = arith.constant dense<0.000000e+00> : vector<34x16xf32>
    %334 = tpu.matmul %333, %317, %cst_209 {dimension_numbers = #tpu.dot_dimension_numbers<[1], [0], [0], [1], [0, 0, 1, 1], [], []>} : vector<34x34xf32>, vector<34x16xf32>, vector<34x16xf32> -> vector<34x16xf32>
    %c1_210 = arith.constant 1 : index
    %c0_211 = arith.constant 0 : index
    %c0_212 = arith.constant 0 : index
    %c0_213 = arith.constant 0 : index
    %335 = vector.load %arg23[%c1_210, %c0_211, %c0_212, %c0_213] : memref<2x4x16x64xf32, #tpu.memory_space<vmem>>, vector<1x1x16x64xf32>
    %336 = vector.shape_cast %335 : vector<1x1x16x64xf32> to vector<16x64xf32>
    %cst_214 = arith.constant dense<0.000000e+00> : vector<34x64xf32>
    %337 = tpu.matmul %334, %336, %cst_214 {dimension_numbers = #tpu.dot_dimension_numbers<[1], [0], [0], [1], [0, 0, 1, 1], [], []>} : vector<34x16xf32>, vector<16x64xf32>, vector<34x64xf32> -> vector<34x64xf32>
    %338 = arith.addf %314, %337 : vector<34x64xf32>
    %339 = vector.extract_strided_slice %299 {offsets = [0, 16], sizes = [34, 16], strides = [1, 1]} : vector<34x64xf32> to vector<34x16xf32>
    %340 = vector.extract_strided_slice %306 {offsets = [0, 16], sizes = [34, 16], strides = [1, 1]} : vector<34x64xf32> to vector<34x16xf32>
    %341 = vector.extract_strided_slice %313 {offsets = [0, 16], sizes = [34, 16], strides = [1, 1]} : vector<34x64xf32> to vector<34x16xf32>
    "tpu.trace_start"() <{level = 10 : i32, message = "rd,sd->rs"}> : () -> ()
    %cst_215 = arith.constant dense<0.000000e+00> : vector<34x34xf32>
    %342 = tpu.matmul %339, %340, %cst_215 {dimension_numbers = #tpu.dot_dimension_numbers<[1], [1], [0], [0], [0, 0, 1, 0], [], []>} : vector<34x16xf32>, vector<34x16xf32>, vector<34x34xf32> -> vector<34x34xf32>
    "tpu.trace_stop"() : () -> ()
    %cst_216 = arith.constant 2.500000e-01 : f32
    %343 = vector.broadcast %cst_216 : f32 to vector<34x34xf32>
    %344 = arith.mulf %342, %343 : vector<34x34xf32>
    %c1_217 = arith.constant 1 : index
    %c0_218 = arith.constant 0 : index
    %c0_219 = arith.constant 0 : index
    %345 = vector.load %arg13[%c1_217, %c0_218, %c0_219] : memref<4x34x34xf32, #tpu.memory_space<vmem>>, vector<1x34x34xf32>
    %346 = vector.shape_cast %345 : vector<1x34x34xf32> to vector<34x34xf32>
    %347 = arith.addf %344, %346 : vector<34x34xf32>
    %cst_220 = arith.constant dense<0xFF800000> : vector<34xf32>
    %348 = vector.multi_reduction <maximumf>, %347, %cst_220 [1] : vector<34x34xf32> to vector<34xf32>
    %349 = vector.shape_cast %348 : vector<34xf32> to vector<34x1xf32>
    %350 = vector.broadcast %349 : vector<34x1xf32> to vector<34x34xf32>
    %351 = arith.subf %347, %350 : vector<34x34xf32>
    %352 = math.exp %351 : vector<34x34xf32>
    %cst_221 = arith.constant dense<0.000000e+00> : vector<34xf32>
    %353 = vector.multi_reduction <add>, %352, %cst_221 [1] : vector<34x34xf32> to vector<34xf32>
    %354 = vector.shape_cast %353 : vector<34xf32> to vector<34x1xf32>
    %355 = tpu.reciprocal %354 {approx = true} : vector<34x1xf32> -> vector<34x1xf32>
    %356 = vector.broadcast %355 : vector<34x1xf32> to vector<34x34xf32>
    %357 = arith.mulf %352, %356 : vector<34x34xf32>
    %cst_222 = arith.constant dense<0.000000e+00> : vector<34x16xf32>
    %358 = tpu.matmul %357, %341, %cst_222 {dimension_numbers = #tpu.dot_dimension_numbers<[1], [0], [0], [1], [0, 0, 1, 1], [], []>} : vector<34x34xf32>, vector<34x16xf32>, vector<34x16xf32> -> vector<34x16xf32>
    %c1_223 = arith.constant 1 : index
    %c1_224 = arith.constant 1 : index
    %c0_225 = arith.constant 0 : index
    %c0_226 = arith.constant 0 : index
    %359 = vector.load %arg23[%c1_223, %c1_224, %c0_225, %c0_226] : memref<2x4x16x64xf32, #tpu.memory_space<vmem>>, vector<1x1x16x64xf32>
    %360 = vector.shape_cast %359 : vector<1x1x16x64xf32> to vector<16x64xf32>
    %cst_227 = arith.constant dense<0.000000e+00> : vector<34x64xf32>
    %361 = tpu.matmul %358, %360, %cst_227 {dimension_numbers = #tpu.dot_dimension_numbers<[1], [0], [0], [1], [0, 0, 1, 1], [], []>} : vector<34x16xf32>, vector<16x64xf32>, vector<34x64xf32> -> vector<34x64xf32>
    %362 = arith.addf %338, %361 : vector<34x64xf32>
    %363 = vector.extract_strided_slice %299 {offsets = [0, 32], sizes = [34, 16], strides = [1, 1]} : vector<34x64xf32> to vector<34x16xf32>
    %364 = vector.extract_strided_slice %306 {offsets = [0, 32], sizes = [34, 16], strides = [1, 1]} : vector<34x64xf32> to vector<34x16xf32>
    %365 = vector.extract_strided_slice %313 {offsets = [0, 32], sizes = [34, 16], strides = [1, 1]} : vector<34x64xf32> to vector<34x16xf32>
    "tpu.trace_start"() <{level = 10 : i32, message = "rd,sd->rs"}> : () -> ()
    %cst_228 = arith.constant dense<0.000000e+00> : vector<34x34xf32>
    %366 = tpu.matmul %363, %364, %cst_228 {dimension_numbers = #tpu.dot_dimension_numbers<[1], [1], [0], [0], [0, 0, 1, 0], [], []>} : vector<34x16xf32>, vector<34x16xf32>, vector<34x34xf32> -> vector<34x34xf32>
    "tpu.trace_stop"() : () -> ()
    %cst_229 = arith.constant 2.500000e-01 : f32
    %367 = vector.broadcast %cst_229 : f32 to vector<34x34xf32>
    %368 = arith.mulf %366, %367 : vector<34x34xf32>
    %c2_230 = arith.constant 2 : index
    %c0_231 = arith.constant 0 : index
    %c0_232 = arith.constant 0 : index
    %369 = vector.load %arg13[%c2_230, %c0_231, %c0_232] : memref<4x34x34xf32, #tpu.memory_space<vmem>>, vector<1x34x34xf32>
    %370 = vector.shape_cast %369 : vector<1x34x34xf32> to vector<34x34xf32>
    %371 = arith.addf %368, %370 : vector<34x34xf32>
    %cst_233 = arith.constant dense<0xFF800000> : vector<34xf32>
    %372 = vector.multi_reduction <maximumf>, %371, %cst_233 [1] : vector<34x34xf32> to vector<34xf32>
    %373 = vector.shape_cast %372 : vector<34xf32> to vector<34x1xf32>
    %374 = vector.broadcast %373 : vector<34x1xf32> to vector<34x34xf32>
    %375 = arith.subf %371, %374 : vector<34x34xf32>
    %376 = math.exp %375 : vector<34x34xf32>
    %cst_234 = arith.constant dense<0.000000e+00> : vector<34xf32>
    %377 = vector.multi_reduction <add>, %376, %cst_234 [1] : vector<34x34xf32> to vector<34xf32>
    %378 = vector.shape_cast %377 : vector<34xf32> to vector<34x1xf32>
    %379 = tpu.reciprocal %378 {approx = true} : vector<34x1xf32> -> vector<34x1xf32>
    %380 = vector.broadcast %379 : vector<34x1xf32> to vector<34x34xf32>
    %381 = arith.mulf %376, %380 : vector<34x34xf32>
    %cst_235 = arith.constant dense<0.000000e+00> : vector<34x16xf32>
    %382 = tpu.matmul %381, %365, %cst_235 {dimension_numbers = #tpu.dot_dimension_numbers<[1], [0], [0], [1], [0, 0, 1, 1], [], []>} : vector<34x34xf32>, vector<34x16xf32>, vector<34x16xf32> -> vector<34x16xf32>
    %c1_236 = arith.constant 1 : index
    %c2_237 = arith.constant 2 : index
    %c0_238 = arith.constant 0 : index
    %c0_239 = arith.constant 0 : index
    %383 = vector.load %arg23[%c1_236, %c2_237, %c0_238, %c0_239] : memref<2x4x16x64xf32, #tpu.memory_space<vmem>>, vector<1x1x16x64xf32>
    %384 = vector.shape_cast %383 : vector<1x1x16x64xf32> to vector<16x64xf32>
    %cst_240 = arith.constant dense<0.000000e+00> : vector<34x64xf32>
    %385 = tpu.matmul %382, %384, %cst_240 {dimension_numbers = #tpu.dot_dimension_numbers<[1], [0], [0], [1], [0, 0, 1, 1], [], []>} : vector<34x16xf32>, vector<16x64xf32>, vector<34x64xf32> -> vector<34x64xf32>
    %386 = arith.addf %362, %385 : vector<34x64xf32>
    %387 = vector.extract_strided_slice %299 {offsets = [0, 48], sizes = [34, 16], strides = [1, 1]} : vector<34x64xf32> to vector<34x16xf32>
    %388 = vector.extract_strided_slice %306 {offsets = [0, 48], sizes = [34, 16], strides = [1, 1]} : vector<34x64xf32> to vector<34x16xf32>
    %389 = vector.extract_strided_slice %313 {offsets = [0, 48], sizes = [34, 16], strides = [1, 1]} : vector<34x64xf32> to vector<34x16xf32>
    "tpu.trace_start"() <{level = 10 : i32, message = "rd,sd->rs"}> : () -> ()
    %cst_241 = arith.constant dense<0.000000e+00> : vector<34x34xf32>
    %390 = tpu.matmul %387, %388, %cst_241 {dimension_numbers = #tpu.dot_dimension_numbers<[1], [1], [0], [0], [0, 0, 1, 0], [], []>} : vector<34x16xf32>, vector<34x16xf32>, vector<34x34xf32> -> vector<34x34xf32>
    "tpu.trace_stop"() : () -> ()
    %cst_242 = arith.constant 2.500000e-01 : f32
    %391 = vector.broadcast %cst_242 : f32 to vector<34x34xf32>
    %392 = arith.mulf %390, %391 : vector<34x34xf32>
    %c3_243 = arith.constant 3 : index
    %c0_244 = arith.constant 0 : index
    %c0_245 = arith.constant 0 : index
    %393 = vector.load %arg13[%c3_243, %c0_244, %c0_245] : memref<4x34x34xf32, #tpu.memory_space<vmem>>, vector<1x34x34xf32>
    %394 = vector.shape_cast %393 : vector<1x34x34xf32> to vector<34x34xf32>
    %395 = arith.addf %392, %394 : vector<34x34xf32>
    %cst_246 = arith.constant dense<0xFF800000> : vector<34xf32>
    %396 = vector.multi_reduction <maximumf>, %395, %cst_246 [1] : vector<34x34xf32> to vector<34xf32>
    %397 = vector.shape_cast %396 : vector<34xf32> to vector<34x1xf32>
    %398 = vector.broadcast %397 : vector<34x1xf32> to vector<34x34xf32>
    %399 = arith.subf %395, %398 : vector<34x34xf32>
    %400 = math.exp %399 : vector<34x34xf32>
    %cst_247 = arith.constant dense<0.000000e+00> : vector<34xf32>
    %401 = vector.multi_reduction <add>, %400, %cst_247 [1] : vector<34x34xf32> to vector<34xf32>
    %402 = vector.shape_cast %401 : vector<34xf32> to vector<34x1xf32>
    %403 = tpu.reciprocal %402 {approx = true} : vector<34x1xf32> -> vector<34x1xf32>
    %404 = vector.broadcast %403 : vector<34x1xf32> to vector<34x34xf32>
    %405 = arith.mulf %400, %404 : vector<34x34xf32>
    %cst_248 = arith.constant dense<0.000000e+00> : vector<34x16xf32>
    %406 = tpu.matmul %405, %389, %cst_248 {dimension_numbers = #tpu.dot_dimension_numbers<[1], [0], [0], [1], [0, 0, 1, 1], [], []>} : vector<34x34xf32>, vector<34x16xf32>, vector<34x16xf32> -> vector<34x16xf32>
    %c1_249 = arith.constant 1 : index
    %c3_250 = arith.constant 3 : index
    %c0_251 = arith.constant 0 : index
    %c0_252 = arith.constant 0 : index
    %407 = vector.load %arg23[%c1_249, %c3_250, %c0_251, %c0_252] : memref<2x4x16x64xf32, #tpu.memory_space<vmem>>, vector<1x1x16x64xf32>
    %408 = vector.shape_cast %407 : vector<1x1x16x64xf32> to vector<16x64xf32>
    %cst_253 = arith.constant dense<0.000000e+00> : vector<34x64xf32>
    %409 = tpu.matmul %406, %408, %cst_253 {dimension_numbers = #tpu.dot_dimension_numbers<[1], [0], [0], [1], [0, 0, 1, 1], [], []>} : vector<34x16xf32>, vector<16x64xf32>, vector<34x64xf32> -> vector<34x64xf32>
    %410 = arith.addf %386, %409 : vector<34x64xf32>
    %c1_254 = arith.constant 1 : index
    %c0_255 = arith.constant 0 : index
    %c0_256 = arith.constant 0 : index
    %411 = vector.load %arg24[%c1_254, %c0_255, %c0_256] : memref<2x1x64xf32, #tpu.memory_space<vmem>>, vector<1x1x64xf32>
    %412 = vector.shape_cast %411 : vector<1x1x64xf32> to vector<1x64xf32>
    %413 = vector.broadcast %412 : vector<1x64xf32> to vector<34x64xf32>
    %414 = arith.addf %410, %413 : vector<34x64xf32>
    %c1_257 = arith.constant 1 : index
    %c0_258 = arith.constant 0 : index
    %c0_259 = arith.constant 0 : index
    %415 = vector.load %arg25[%c1_257, %c0_258, %c0_259] : memref<2x64x64xf32, #tpu.memory_space<vmem>>, vector<1x64x64xf32>
    %416 = vector.shape_cast %415 : vector<1x64x64xf32> to vector<64x64xf32>
    %cst_260 = arith.constant dense<0.000000e+00> : vector<34x64xf32>
    %417 = tpu.matmul %292, %416, %cst_260 {dimension_numbers = #tpu.dot_dimension_numbers<[1], [0], [0], [1], [0, 0, 1, 1], [], []>} : vector<34x64xf32>, vector<64x64xf32>, vector<34x64xf32> -> vector<34x64xf32>
    %cst_261 = arith.constant dense<0.000000e+00> : vector<34x64xf32>
    %418 = tpu.matmul %52, %417, %cst_261 {dimension_numbers = #tpu.dot_dimension_numbers<[1], [0], [0], [1], [0, 0, 1, 1], [], []>} : vector<34x34xf32>, vector<34x64xf32>, vector<34x64xf32> -> vector<34x64xf32>
    %c1_262 = arith.constant 1 : index
    %c0_263 = arith.constant 0 : index
    %c0_264 = arith.constant 0 : index
    %419 = vector.load %arg26[%c1_262, %c0_263, %c0_264] : memref<2x1x64xf32, #tpu.memory_space<vmem>>, vector<1x1x64xf32>
    %420 = vector.shape_cast %419 : vector<1x1x64xf32> to vector<1x64xf32>
    %421 = vector.broadcast %420 : vector<1x64xf32> to vector<34x64xf32>
    %422 = arith.addf %418, %421 : vector<34x64xf32>
    %423 = arith.addf %414, %422 : vector<34x64xf32>
    %c1_265 = arith.constant 1 : index
    %c0_266 = arith.constant 0 : index
    %c0_267 = arith.constant 0 : index
    %424 = vector.load %arg27[%c1_265, %c0_266, %c0_267] : memref<2x64x64xf32, #tpu.memory_space<vmem>>, vector<1x64x64xf32>
    %425 = vector.shape_cast %424 : vector<1x64x64xf32> to vector<64x64xf32>
    %cst_268 = arith.constant dense<0.000000e+00> : vector<34x64xf32>
    %426 = tpu.matmul %423, %425, %cst_268 {dimension_numbers = #tpu.dot_dimension_numbers<[1], [0], [0], [1], [0, 0, 1, 1], [], []>} : vector<34x64xf32>, vector<64x64xf32>, vector<34x64xf32> -> vector<34x64xf32>
    %c1_269 = arith.constant 1 : index
    %c0_270 = arith.constant 0 : index
    %c0_271 = arith.constant 0 : index
    %427 = vector.load %arg28[%c1_269, %c0_270, %c0_271] : memref<2x1x64xf32, #tpu.memory_space<vmem>>, vector<1x1x64xf32>
    %428 = vector.shape_cast %427 : vector<1x1x64xf32> to vector<1x64xf32>
    %429 = vector.broadcast %428 : vector<1x64xf32> to vector<34x64xf32>
    %430 = arith.addf %426, %429 : vector<34x64xf32>
    %431 = arith.addf %266, %430 : vector<34x64xf32>
    %c1_272 = arith.constant 1 : index
    %c0_273 = arith.constant 0 : index
    %c0_274 = arith.constant 0 : index
    %432 = vector.load %arg29[%c1_272, %c0_273, %c0_274] : memref<2x1x64xf32, #tpu.memory_space<vmem>>, vector<1x1x64xf32>
    %433 = vector.shape_cast %432 : vector<1x1x64xf32> to vector<1x64xf32>
    %c1_275 = arith.constant 1 : index
    %c0_276 = arith.constant 0 : index
    %c0_277 = arith.constant 0 : index
    %434 = vector.load %arg30[%c1_275, %c0_276, %c0_277] : memref<2x1x64xf32, #tpu.memory_space<vmem>>, vector<1x1x64xf32>
    %435 = vector.shape_cast %434 : vector<1x1x64xf32> to vector<1x64xf32>
    %cst_278 = arith.constant dense<0.000000e+00> : vector<34xf32>
    %436 = vector.multi_reduction <add>, %431, %cst_278 [1] : vector<34x64xf32> to vector<34xf32>
    %437 = vector.shape_cast %436 : vector<34xf32> to vector<34x1xf32>
    %cst_279 = arith.constant 6.400000e+01 : f32
    %438 = vector.broadcast %cst_279 : f32 to vector<34x1xf32>
    %439 = arith.divf %437, %438 : vector<34x1xf32>
    %440 = vector.broadcast %439 : vector<34x1xf32> to vector<34x64xf32>
    %441 = arith.subf %431, %440 : vector<34x64xf32>
    %442 = arith.mulf %441, %441 : vector<34x64xf32>
    %cst_280 = arith.constant dense<0.000000e+00> : vector<34xf32>
    %443 = vector.multi_reduction <add>, %442, %cst_280 [1] : vector<34x64xf32> to vector<34xf32>
    %444 = vector.shape_cast %443 : vector<34xf32> to vector<34x1xf32>
    %cst_281 = arith.constant 6.400000e+01 : f32
    %445 = vector.broadcast %cst_281 : f32 to vector<34x1xf32>
    %446 = arith.divf %444, %445 : vector<34x1xf32>
    %447 = vector.broadcast %439 : vector<34x1xf32> to vector<34x64xf32>
    %448 = arith.subf %431, %447 : vector<34x64xf32>
    %cst_282 = arith.constant 9.99999974E-6 : f32
    %449 = vector.broadcast %cst_282 : f32 to vector<34x1xf32>
    %450 = arith.addf %446, %449 : vector<34x1xf32>
    %451 = math.rsqrt %450 : vector<34x1xf32>
    %452 = vector.broadcast %451 : vector<34x1xf32> to vector<34x64xf32>
    %453 = arith.mulf %448, %452 : vector<34x64xf32>
    %454 = vector.broadcast %433 : vector<1x64xf32> to vector<34x64xf32>
    %455 = arith.mulf %453, %454 : vector<34x64xf32>
    %456 = vector.broadcast %435 : vector<1x64xf32> to vector<34x64xf32>
    %457 = arith.addf %455, %456 : vector<34x64xf32>
    %c1_283 = arith.constant 1 : index
    %c0_284 = arith.constant 0 : index
    %c0_285 = arith.constant 0 : index
    %458 = vector.load %arg31[%c1_283, %c0_284, %c0_285] : memref<2x64x256xf32, #tpu.memory_space<vmem>>, vector<1x64x256xf32>
    %459 = vector.shape_cast %458 : vector<1x64x256xf32> to vector<64x256xf32>
    %cst_286 = arith.constant dense<0.000000e+00> : vector<34x256xf32>
    %460 = tpu.matmul %457, %459, %cst_286 {dimension_numbers = #tpu.dot_dimension_numbers<[1], [0], [0], [1], [0, 0, 1, 1], [], []>} : vector<34x64xf32>, vector<64x256xf32>, vector<34x256xf32> -> vector<34x256xf32>
    %c1_287 = arith.constant 1 : index
    %c0_288 = arith.constant 0 : index
    %c0_289 = arith.constant 0 : index
    %461 = vector.load %arg32[%c1_287, %c0_288, %c0_289] : memref<2x1x256xf32, #tpu.memory_space<vmem>>, vector<1x1x256xf32>
    %462 = vector.shape_cast %461 : vector<1x1x256xf32> to vector<1x256xf32>
    %463 = vector.broadcast %462 : vector<1x256xf32> to vector<34x256xf32>
    %464 = arith.addf %460, %463 : vector<34x256xf32>
    %cst_290 = arith.constant 5.000000e-01 : f32
    %465 = vector.broadcast %cst_290 : f32 to vector<34x256xf32>
    %466 = arith.mulf %465, %464 : vector<34x256xf32>
    %cst_291 = arith.constant 0.707106769 : f32
    %467 = vector.broadcast %cst_291 : f32 to vector<34x256xf32>
    %468 = arith.mulf %464, %467 : vector<34x256xf32>
    %469 = math.erf %468 : vector<34x256xf32>
    %cst_292 = arith.constant 1.000000e+00 : f32
    %470 = vector.broadcast %cst_292 : f32 to vector<34x256xf32>
    %471 = arith.addf %470, %469 : vector<34x256xf32>
    %472 = arith.mulf %466, %471 : vector<34x256xf32>
    %c1_293 = arith.constant 1 : index
    %c0_294 = arith.constant 0 : index
    %c0_295 = arith.constant 0 : index
    %473 = vector.load %arg33[%c1_293, %c0_294, %c0_295] : memref<2x256x64xf32, #tpu.memory_space<vmem>>, vector<1x256x64xf32>
    %474 = vector.shape_cast %473 : vector<1x256x64xf32> to vector<256x64xf32>
    %cst_296 = arith.constant dense<0.000000e+00> : vector<34x64xf32>
    %475 = tpu.matmul %472, %474, %cst_296 {dimension_numbers = #tpu.dot_dimension_numbers<[1], [0], [0], [1], [0, 0, 1, 1], [], []>} : vector<34x256xf32>, vector<256x64xf32>, vector<34x64xf32> -> vector<34x64xf32>
    %476 = arith.addf %431, %475 : vector<34x64xf32>
    %c1_297 = arith.constant 1 : index
    %c0_298 = arith.constant 0 : index
    %c0_299 = arith.constant 0 : index
    %477 = vector.load %arg34[%c1_297, %c0_298, %c0_299] : memref<2x1x64xf32, #tpu.memory_space<vmem>>, vector<1x1x64xf32>
    %478 = vector.shape_cast %477 : vector<1x1x64xf32> to vector<1x64xf32>
    %479 = vector.broadcast %478 : vector<1x64xf32> to vector<34x64xf32>
    %480 = arith.addf %476, %479 : vector<34x64xf32>
    %c0_300 = arith.constant 0 : index
    %c0_301 = arith.constant 0 : index
    %481 = vector.load %arg35[%c0_300, %c0_301] : memref<1x64xf32, #tpu.memory_space<vmem>>, vector<1x64xf32>
    %c0_302 = arith.constant 0 : index
    %c0_303 = arith.constant 0 : index
    %482 = vector.load %arg36[%c0_302, %c0_303] : memref<1x64xf32, #tpu.memory_space<vmem>>, vector<1x64xf32>
    %cst_304 = arith.constant dense<0.000000e+00> : vector<34xf32>
    %483 = vector.multi_reduction <add>, %480, %cst_304 [1] : vector<34x64xf32> to vector<34xf32>
    %484 = vector.shape_cast %483 : vector<34xf32> to vector<34x1xf32>
    %cst_305 = arith.constant 6.400000e+01 : f32
    %485 = vector.broadcast %cst_305 : f32 to vector<34x1xf32>
    %486 = arith.divf %484, %485 : vector<34x1xf32>
    %487 = vector.broadcast %486 : vector<34x1xf32> to vector<34x64xf32>
    %488 = arith.subf %480, %487 : vector<34x64xf32>
    %489 = arith.mulf %488, %488 : vector<34x64xf32>
    %cst_306 = arith.constant dense<0.000000e+00> : vector<34xf32>
    %490 = vector.multi_reduction <add>, %489, %cst_306 [1] : vector<34x64xf32> to vector<34xf32>
    %491 = vector.shape_cast %490 : vector<34xf32> to vector<34x1xf32>
    %cst_307 = arith.constant 6.400000e+01 : f32
    %492 = vector.broadcast %cst_307 : f32 to vector<34x1xf32>
    %493 = arith.divf %491, %492 : vector<34x1xf32>
    %494 = vector.broadcast %486 : vector<34x1xf32> to vector<34x64xf32>
    %495 = arith.subf %480, %494 : vector<34x64xf32>
    %cst_308 = arith.constant 9.99999974E-6 : f32
    %496 = vector.broadcast %cst_308 : f32 to vector<34x1xf32>
    %497 = arith.addf %493, %496 : vector<34x1xf32>
    %498 = math.rsqrt %497 : vector<34x1xf32>
    %499 = vector.broadcast %498 : vector<34x1xf32> to vector<34x64xf32>
    %500 = arith.mulf %495, %499 : vector<34x64xf32>
    %501 = vector.broadcast %481 : vector<1x64xf32> to vector<34x64xf32>
    %502 = arith.mulf %500, %501 : vector<34x64xf32>
    %503 = vector.broadcast %482 : vector<1x64xf32> to vector<34x64xf32>
    %504 = arith.addf %502, %503 : vector<34x64xf32>
    %cst_309 = arith.constant 5.000000e-01 : f32
    %505 = vector.broadcast %cst_309 : f32 to vector<34x64xf32>
    %506 = arith.mulf %505, %504 : vector<34x64xf32>
    %cst_310 = arith.constant 0.707106769 : f32
    %507 = vector.broadcast %cst_310 : f32 to vector<34x64xf32>
    %508 = arith.mulf %504, %507 : vector<34x64xf32>
    %509 = math.erf %508 : vector<34x64xf32>
    %cst_311 = arith.constant 1.000000e+00 : f32
    %510 = vector.broadcast %cst_311 : f32 to vector<34x64xf32>
    %511 = arith.addf %510, %509 : vector<34x64xf32>
    %512 = arith.mulf %506, %511 : vector<34x64xf32>
    %c0_312 = arith.constant 0 : index
    %c0_313 = arith.constant 0 : index
    %c0_314 = arith.constant 0 : index
    %513 = vector.load %arg40[%c0_312, %c0_313, %c0_314] : memref<1x34x64xf32, #tpu.memory_space<vmem>>, vector<1x34x64xf32>
    %514 = vector.shape_cast %513 : vector<1x34x64xf32> to vector<34x64xf32>
    %515 = vector.shape_cast %512 : vector<34x64xf32> to vector<1x34x64xf32>
    tpu.vector_store %arg40[%c0_312, %c0_313, %c0_314], %515 {strides = array<i32>} : memref<1x34x64xf32, #tpu.memory_space<vmem>>, vector<1x34x64xf32>,
    %c0_315 = arith.constant 0 : index
    %c0_316 = arith.constant 0 : index
    %516 = vector.load %arg38[%c0_315, %c0_316] : memref<1x128xf32, #tpu.memory_space<vmem>>, vector<1x128xf32>
    %517 = vector.extract_strided_slice %512 {offsets = [0, 0], sizes = [2, 64], strides = [1, 1]} : vector<34x64xf32> to vector<2x64xf32>
    %c0_317 = arith.constant 0 : index
    %c0_318 = arith.constant 0 : index
    %c0_319 = arith.constant 0 : index
    %518 = vector.load %arg37[%c0_317, %c0_318, %c0_319] : memref<17x64x128xf32, #tpu.memory_space<vmem>>, vector<1x64x128xf32>
    %519 = vector.shape_cast %518 : vector<1x64x128xf32> to vector<64x128xf32>
    %cst_320 = arith.constant dense<0.000000e+00> : vector<2x128xf32>
    %520 = tpu.matmul %517, %519, %cst_320 {dimension_numbers = #tpu.dot_dimension_numbers<[1], [0], [0], [1], [0, 0, 1, 1], [], []>} : vector<2x64xf32>, vector<64x128xf32>, vector<2x128xf32> -> vector<2x128xf32>
    %521 = vector.broadcast %516 : vector<1x128xf32> to vector<2x128xf32>
    %522 = arith.addf %521, %520 : vector<2x128xf32>
    %523 = vector.extract_strided_slice %512 {offsets = [2, 0], sizes = [2, 64], strides = [1, 1]} : vector<34x64xf32> to vector<2x64xf32>
    %c1_321 = arith.constant 1 : index
    %c0_322 = arith.constant 0 : index
    %c0_323 = arith.constant 0 : index
    %524 = vector.load %arg37[%c1_321, %c0_322, %c0_323] : memref<17x64x128xf32, #tpu.memory_space<vmem>>, vector<1x64x128xf32>
    %525 = vector.shape_cast %524 : vector<1x64x128xf32> to vector<64x128xf32>
    %cst_324 = arith.constant dense<0.000000e+00> : vector<2x128xf32>
    %526 = tpu.matmul %523, %525, %cst_324 {dimension_numbers = #tpu.dot_dimension_numbers<[1], [0], [0], [1], [0, 0, 1, 1], [], []>} : vector<2x64xf32>, vector<64x128xf32>, vector<2x128xf32> -> vector<2x128xf32>
    %527 = arith.addf %522, %526 : vector<2x128xf32>
    %528 = vector.extract_strided_slice %512 {offsets = [4, 0], sizes = [2, 64], strides = [1, 1]} : vector<34x64xf32> to vector<2x64xf32>
    %c2_325 = arith.constant 2 : index
    %c0_326 = arith.constant 0 : index
    %c0_327 = arith.constant 0 : index
    %529 = vector.load %arg37[%c2_325, %c0_326, %c0_327] : memref<17x64x128xf32, #tpu.memory_space<vmem>>, vector<1x64x128xf32>
    %530 = vector.shape_cast %529 : vector<1x64x128xf32> to vector<64x128xf32>
    %cst_328 = arith.constant dense<0.000000e+00> : vector<2x128xf32>
    %531 = tpu.matmul %528, %530, %cst_328 {dimension_numbers = #tpu.dot_dimension_numbers<[1], [0], [0], [1], [0, 0, 1, 1], [], []>} : vector<2x64xf32>, vector<64x128xf32>, vector<2x128xf32> -> vector<2x128xf32>
    %532 = arith.addf %527, %531 : vector<2x128xf32>
    %533 = vector.extract_strided_slice %512 {offsets = [6, 0], sizes = [2, 64], strides = [1, 1]} : vector<34x64xf32> to vector<2x64xf32>
    %c3_329 = arith.constant 3 : index
    %c0_330 = arith.constant 0 : index
    %c0_331 = arith.constant 0 : index
    %534 = vector.load %arg37[%c3_329, %c0_330, %c0_331] : memref<17x64x128xf32, #tpu.memory_space<vmem>>, vector<1x64x128xf32>
    %535 = vector.shape_cast %534 : vector<1x64x128xf32> to vector<64x128xf32>
    %cst_332 = arith.constant dense<0.000000e+00> : vector<2x128xf32>
    %536 = tpu.matmul %533, %535, %cst_332 {dimension_numbers = #tpu.dot_dimension_numbers<[1], [0], [0], [1], [0, 0, 1, 1], [], []>} : vector<2x64xf32>, vector<64x128xf32>, vector<2x128xf32> -> vector<2x128xf32>
    %537 = arith.addf %532, %536 : vector<2x128xf32>
    %538 = vector.extract_strided_slice %512 {offsets = [8, 0], sizes = [2, 64], strides = [1, 1]} : vector<34x64xf32> to vector<2x64xf32>
    %c4 = arith.constant 4 : index
    %c0_333 = arith.constant 0 : index
    %c0_334 = arith.constant 0 : index
    %539 = vector.load %arg37[%c4, %c0_333, %c0_334] : memref<17x64x128xf32, #tpu.memory_space<vmem>>, vector<1x64x128xf32>
    %540 = vector.shape_cast %539 : vector<1x64x128xf32> to vector<64x128xf32>
    %cst_335 = arith.constant dense<0.000000e+00> : vector<2x128xf32>
    %541 = tpu.matmul %538, %540, %cst_335 {dimension_numbers = #tpu.dot_dimension_numbers<[1], [0], [0], [1], [0, 0, 1, 1], [], []>} : vector<2x64xf32>, vector<64x128xf32>, vector<2x128xf32> -> vector<2x128xf32>
    %542 = arith.addf %537, %541 : vector<2x128xf32>
    %543 = vector.extract_strided_slice %512 {offsets = [10, 0], sizes = [2, 64], strides = [1, 1]} : vector<34x64xf32> to vector<2x64xf32>
    %c5 = arith.constant 5 : index
    %c0_336 = arith.constant 0 : index
    %c0_337 = arith.constant 0 : index
    %544 = vector.load %arg37[%c5, %c0_336, %c0_337] : memref<17x64x128xf32, #tpu.memory_space<vmem>>, vector<1x64x128xf32>
    %545 = vector.shape_cast %544 : vector<1x64x128xf32> to vector<64x128xf32>
    %cst_338 = arith.constant dense<0.000000e+00> : vector<2x128xf32>
    %546 = tpu.matmul %543, %545, %cst_338 {dimension_numbers = #tpu.dot_dimension_numbers<[1], [0], [0], [1], [0, 0, 1, 1], [], []>} : vector<2x64xf32>, vector<64x128xf32>, vector<2x128xf32> -> vector<2x128xf32>
    %547 = arith.addf %542, %546 : vector<2x128xf32>
    %548 = vector.extract_strided_slice %512 {offsets = [12, 0], sizes = [2, 64], strides = [1, 1]} : vector<34x64xf32> to vector<2x64xf32>
    %c6 = arith.constant 6 : index
    %c0_339 = arith.constant 0 : index
    %c0_340 = arith.constant 0 : index
    %549 = vector.load %arg37[%c6, %c0_339, %c0_340] : memref<17x64x128xf32, #tpu.memory_space<vmem>>, vector<1x64x128xf32>
    %550 = vector.shape_cast %549 : vector<1x64x128xf32> to vector<64x128xf32>
    %cst_341 = arith.constant dense<0.000000e+00> : vector<2x128xf32>
    %551 = tpu.matmul %548, %550, %cst_341 {dimension_numbers = #tpu.dot_dimension_numbers<[1], [0], [0], [1], [0, 0, 1, 1], [], []>} : vector<2x64xf32>, vector<64x128xf32>, vector<2x128xf32> -> vector<2x128xf32>
    %552 = arith.addf %547, %551 : vector<2x128xf32>
    %553 = vector.extract_strided_slice %512 {offsets = [14, 0], sizes = [2, 64], strides = [1, 1]} : vector<34x64xf32> to vector<2x64xf32>
    %c7 = arith.constant 7 : index
    %c0_342 = arith.constant 0 : index
    %c0_343 = arith.constant 0 : index
    %554 = vector.load %arg37[%c7, %c0_342, %c0_343] : memref<17x64x128xf32, #tpu.memory_space<vmem>>, vector<1x64x128xf32>
    %555 = vector.shape_cast %554 : vector<1x64x128xf32> to vector<64x128xf32>
    %cst_344 = arith.constant dense<0.000000e+00> : vector<2x128xf32>
    %556 = tpu.matmul %553, %555, %cst_344 {dimension_numbers = #tpu.dot_dimension_numbers<[1], [0], [0], [1], [0, 0, 1, 1], [], []>} : vector<2x64xf32>, vector<64x128xf32>, vector<2x128xf32> -> vector<2x128xf32>
    %557 = arith.addf %552, %556 : vector<2x128xf32>
    %558 = vector.extract_strided_slice %512 {offsets = [16, 0], sizes = [2, 64], strides = [1, 1]} : vector<34x64xf32> to vector<2x64xf32>
    %c8 = arith.constant 8 : index
    %c0_345 = arith.constant 0 : index
    %c0_346 = arith.constant 0 : index
    %559 = vector.load %arg37[%c8, %c0_345, %c0_346] : memref<17x64x128xf32, #tpu.memory_space<vmem>>, vector<1x64x128xf32>
    %560 = vector.shape_cast %559 : vector<1x64x128xf32> to vector<64x128xf32>
    %cst_347 = arith.constant dense<0.000000e+00> : vector<2x128xf32>
    %561 = tpu.matmul %558, %560, %cst_347 {dimension_numbers = #tpu.dot_dimension_numbers<[1], [0], [0], [1], [0, 0, 1, 1], [], []>} : vector<2x64xf32>, vector<64x128xf32>, vector<2x128xf32> -> vector<2x128xf32>
    %562 = arith.addf %557, %561 : vector<2x128xf32>
    %563 = vector.extract_strided_slice %512 {offsets = [18, 0], sizes = [2, 64], strides = [1, 1]} : vector<34x64xf32> to vector<2x64xf32>
    %c9 = arith.constant 9 : index
    %c0_348 = arith.constant 0 : index
    %c0_349 = arith.constant 0 : index
    %564 = vector.load %arg37[%c9, %c0_348, %c0_349] : memref<17x64x128xf32, #tpu.memory_space<vmem>>, vector<1x64x128xf32>
    %565 = vector.shape_cast %564 : vector<1x64x128xf32> to vector<64x128xf32>
    %cst_350 = arith.constant dense<0.000000e+00> : vector<2x128xf32>
    %566 = tpu.matmul %563, %565, %cst_350 {dimension_numbers = #tpu.dot_dimension_numbers<[1], [0], [0], [1], [0, 0, 1, 1], [], []>} : vector<2x64xf32>, vector<64x128xf32>, vector<2x128xf32> -> vector<2x128xf32>
    %567 = arith.addf %562, %566 : vector<2x128xf32>
    %568 = vector.extract_strided_slice %512 {offsets = [20, 0], sizes = [2, 64], strides = [1, 1]} : vector<34x64xf32> to vector<2x64xf32>
    %c10 = arith.constant 10 : index
    %c0_351 = arith.constant 0 : index
    %c0_352 = arith.constant 0 : index
    %569 = vector.load %arg37[%c10, %c0_351, %c0_352] : memref<17x64x128xf32, #tpu.memory_space<vmem>>, vector<1x64x128xf32>
    %570 = vector.shape_cast %569 : vector<1x64x128xf32> to vector<64x128xf32>
    %cst_353 = arith.constant dense<0.000000e+00> : vector<2x128xf32>
    %571 = tpu.matmul %568, %570, %cst_353 {dimension_numbers = #tpu.dot_dimension_numbers<[1], [0], [0], [1], [0, 0, 1, 1], [], []>} : vector<2x64xf32>, vector<64x128xf32>, vector<2x128xf32> -> vector<2x128xf32>
    %572 = arith.addf %567, %571 : vector<2x128xf32>
    %573 = vector.extract_strided_slice %512 {offsets = [22, 0], sizes = [2, 64], strides = [1, 1]} : vector<34x64xf32> to vector<2x64xf32>
    %c11 = arith.constant 11 : index
    %c0_354 = arith.constant 0 : index
    %c0_355 = arith.constant 0 : index
    %574 = vector.load %arg37[%c11, %c0_354, %c0_355] : memref<17x64x128xf32, #tpu.memory_space<vmem>>, vector<1x64x128xf32>
    %575 = vector.shape_cast %574 : vector<1x64x128xf32> to vector<64x128xf32>
    %cst_356 = arith.constant dense<0.000000e+00> : vector<2x128xf32>
    %576 = tpu.matmul %573, %575, %cst_356 {dimension_numbers = #tpu.dot_dimension_numbers<[1], [0], [0], [1], [0, 0, 1, 1], [], []>} : vector<2x64xf32>, vector<64x128xf32>, vector<2x128xf32> -> vector<2x128xf32>
    %577 = arith.addf %572, %576 : vector<2x128xf32>
    %578 = vector.extract_strided_slice %512 {offsets = [24, 0], sizes = [2, 64], strides = [1, 1]} : vector<34x64xf32> to vector<2x64xf32>
    %c12 = arith.constant 12 : index
    %c0_357 = arith.constant 0 : index
    %c0_358 = arith.constant 0 : index
    %579 = vector.load %arg37[%c12, %c0_357, %c0_358] : memref<17x64x128xf32, #tpu.memory_space<vmem>>, vector<1x64x128xf32>
    %580 = vector.shape_cast %579 : vector<1x64x128xf32> to vector<64x128xf32>
    %cst_359 = arith.constant dense<0.000000e+00> : vector<2x128xf32>
    %581 = tpu.matmul %578, %580, %cst_359 {dimension_numbers = #tpu.dot_dimension_numbers<[1], [0], [0], [1], [0, 0, 1, 1], [], []>} : vector<2x64xf32>, vector<64x128xf32>, vector<2x128xf32> -> vector<2x128xf32>
    %582 = arith.addf %577, %581 : vector<2x128xf32>
    %583 = vector.extract_strided_slice %512 {offsets = [26, 0], sizes = [2, 64], strides = [1, 1]} : vector<34x64xf32> to vector<2x64xf32>
    %c13 = arith.constant 13 : index
    %c0_360 = arith.constant 0 : index
    %c0_361 = arith.constant 0 : index
    %584 = vector.load %arg37[%c13, %c0_360, %c0_361] : memref<17x64x128xf32, #tpu.memory_space<vmem>>, vector<1x64x128xf32>
    %585 = vector.shape_cast %584 : vector<1x64x128xf32> to vector<64x128xf32>
    %cst_362 = arith.constant dense<0.000000e+00> : vector<2x128xf32>
    %586 = tpu.matmul %583, %585, %cst_362 {dimension_numbers = #tpu.dot_dimension_numbers<[1], [0], [0], [1], [0, 0, 1, 1], [], []>} : vector<2x64xf32>, vector<64x128xf32>, vector<2x128xf32> -> vector<2x128xf32>
    %587 = arith.addf %582, %586 : vector<2x128xf32>
    %588 = vector.extract_strided_slice %512 {offsets = [28, 0], sizes = [2, 64], strides = [1, 1]} : vector<34x64xf32> to vector<2x64xf32>
    %c14 = arith.constant 14 : index
    %c0_363 = arith.constant 0 : index
    %c0_364 = arith.constant 0 : index
    %589 = vector.load %arg37[%c14, %c0_363, %c0_364] : memref<17x64x128xf32, #tpu.memory_space<vmem>>, vector<1x64x128xf32>
    %590 = vector.shape_cast %589 : vector<1x64x128xf32> to vector<64x128xf32>
    %cst_365 = arith.constant dense<0.000000e+00> : vector<2x128xf32>
    %591 = tpu.matmul %588, %590, %cst_365 {dimension_numbers = #tpu.dot_dimension_numbers<[1], [0], [0], [1], [0, 0, 1, 1], [], []>} : vector<2x64xf32>, vector<64x128xf32>, vector<2x128xf32> -> vector<2x128xf32>
    %592 = arith.addf %587, %591 : vector<2x128xf32>
    %593 = vector.extract_strided_slice %512 {offsets = [30, 0], sizes = [2, 64], strides = [1, 1]} : vector<34x64xf32> to vector<2x64xf32>
    %c15 = arith.constant 15 : index
    %c0_366 = arith.constant 0 : index
    %c0_367 = arith.constant 0 : index
    %594 = vector.load %arg37[%c15, %c0_366, %c0_367] : memref<17x64x128xf32, #tpu.memory_space<vmem>>, vector<1x64x128xf32>
    %595 = vector.shape_cast %594 : vector<1x64x128xf32> to vector<64x128xf32>
    %cst_368 = arith.constant dense<0.000000e+00> : vector<2x128xf32>
    %596 = tpu.matmul %593, %595, %cst_368 {dimension_numbers = #tpu.dot_dimension_numbers<[1], [0], [0], [1], [0, 0, 1, 1], [], []>} : vector<2x64xf32>, vector<64x128xf32>, vector<2x128xf32> -> vector<2x128xf32>
    %597 = arith.addf %592, %596 : vector<2x128xf32>
    %598 = vector.extract_strided_slice %512 {offsets = [32, 0], sizes = [2, 64], strides = [1, 1]} : vector<34x64xf32> to vector<2x64xf32>
    %c16 = arith.constant 16 : index
    %c0_369 = arith.constant 0 : index
    %c0_370 = arith.constant 0 : index
    %599 = vector.load %arg37[%c16, %c0_369, %c0_370] : memref<17x64x128xf32, #tpu.memory_space<vmem>>, vector<1x64x128xf32>
    %600 = vector.shape_cast %599 : vector<1x64x128xf32> to vector<64x128xf32>
    %cst_371 = arith.constant dense<0.000000e+00> : vector<2x128xf32>
    %601 = tpu.matmul %598, %600, %cst_371 {dimension_numbers = #tpu.dot_dimension_numbers<[1], [0], [0], [1], [0, 0, 1, 1], [], []>} : vector<2x64xf32>, vector<64x128xf32>, vector<2x128xf32> -> vector<2x128xf32>
    %602 = arith.addf %597, %601 : vector<2x128xf32>
    %c0_372 = arith.constant 0 : index
    %c0_373 = arith.constant 0 : index
    %c0_374 = arith.constant 0 : index
    %603 = vector.load %arg39[%c0_372, %c0_373, %c0_374] : memref<1x2x128xf32, #tpu.memory_space<vmem>>, vector<1x2x128xf32>
    %604 = vector.shape_cast %603 : vector<1x2x128xf32> to vector<2x128xf32>
    %605 = vector.shape_cast %602 : vector<2x128xf32> to vector<1x2x128xf32>
    tpu.vector_store %arg39[%c0_372, %c0_373, %c0_374], %605 {strides = array<i32>} : memref<1x2x128xf32, #tpu.memory_space<vmem>>, vector<1x2x128xf32>,
    return
  }
  func.func @transform_0(%arg0: i32) -> (i32, i32, i32) {
    %c0_i32 = arith.constant 0 : i32
    %c0_i32_0 = arith.constant 0 : i32
    %c0_i32_1 = arith.constant 0 : i32
    return %arg0, %c0_i32, %c0_i32_0 : i32, i32, i32
  }
  func.func @transform_1(%arg0: i32) -> (i32, i32) {
    %c0_i32 = arith.constant 0 : i32
    %c0_i32_0 = arith.constant 0 : i32
    %c0_i32_1 = arith.constant 0 : i32
    return %c0_i32, %c0_i32_0 : i32, i32
  }
  func.func @transform_2(%arg0: i32) -> (i32, i32) {
    %c0_i32 = arith.constant 0 : i32
    %c0_i32_0 = arith.constant 0 : i32
    %c0_i32_1 = arith.constant 0 : i32
    return %c0_i32, %c0_i32_0 : i32, i32
  }
  func.func @transform_3(%arg0: i32) -> (i32, i32) {
    %c0_i32 = arith.constant 0 : i32
    %c0_i32_0 = arith.constant 0 : i32
    %c0_i32_1 = arith.constant 0 : i32
    return %c0_i32, %c0_i32_0 : i32, i32
  }
  func.func @transform_4(%arg0: i32) -> (i32, i32) {
    %c0_i32 = arith.constant 0 : i32
    %c0_i32_0 = arith.constant 0 : i32
    %c0_i32_1 = arith.constant 0 : i32
    return %c0_i32, %c0_i32_0 : i32, i32
  }
  func.func @transform_5(%arg0: i32) -> (i32, i32) {
    %c0_i32 = arith.constant 0 : i32
    %c0_i32_0 = arith.constant 0 : i32
    %c0_i32_1 = arith.constant 0 : i32
    return %c0_i32, %c0_i32_0 : i32, i32
  }
  func.func @transform_6(%arg0: i32) -> (i32, i32) {
    %c0_i32 = arith.constant 0 : i32
    %c0_i32_0 = arith.constant 0 : i32
    %c0_i32_1 = arith.constant 0 : i32
    return %c0_i32, %c0_i32_0 : i32, i32
  }
  func.func @transform_7(%arg0: i32) -> (i32, i32) {
    %c0_i32 = arith.constant 0 : i32
    %c0_i32_0 = arith.constant 0 : i32
    %c0_i32_1 = arith.constant 0 : i32
    return %c0_i32, %c0_i32_0 : i32, i32
  }
  func.func @transform_8(%arg0: i32) -> (i32, i32) {
    %c0_i32 = arith.constant 0 : i32
    %c0_i32_0 = arith.constant 0 : i32
    %c0_i32_1 = arith.constant 0 : i32
    return %c0_i32, %c0_i32_0 : i32, i32
  }
  func.func @transform_9(%arg0: i32) -> (i32, i32) {
    %c0_i32 = arith.constant 0 : i32
    %c0_i32_0 = arith.constant 0 : i32
    %c0_i32_1 = arith.constant 0 : i32
    return %c0_i32, %c0_i32_0 : i32, i32
  }
  func.func @transform_10(%arg0: i32) -> (i32, i32) {
    %c0_i32 = arith.constant 0 : i32
    %c0_i32_0 = arith.constant 0 : i32
    %c0_i32_1 = arith.constant 0 : i32
    return %c0_i32, %c0_i32_0 : i32, i32
  }
  func.func @transform_11(%arg0: i32) -> (i32, i32) {
    %c0_i32 = arith.constant 0 : i32
    %c0_i32_0 = arith.constant 0 : i32
    %c0_i32_1 = arith.constant 0 : i32
    return %c0_i32, %c0_i32_0 : i32, i32
  }
  func.func @transform_12(%arg0: i32) -> (i32, i32, i32) {
    %c0_i32 = arith.constant 0 : i32
    %c0_i32_0 = arith.constant 0 : i32
    %c0_i32_1 = arith.constant 0 : i32
    %c0_i32_2 = arith.constant 0 : i32
    return %c0_i32, %c0_i32_0, %c0_i32_1 : i32, i32, i32
  }
  func.func @transform_13(%arg0: i32) -> (i32, i32) {
    %c0_i32 = arith.constant 0 : i32
    %c0_i32_0 = arith.constant 0 : i32
    %c0_i32_1 = arith.constant 0 : i32
    return %c0_i32, %c0_i32_0 : i32, i32
  }
  func.func @transform_14(%arg0: i32) -> (i32, i32, i32) {
    %c0_i32 = arith.constant 0 : i32
    %c0_i32_0 = arith.constant 0 : i32
    %c0_i32_1 = arith.constant 0 : i32
    %c0_i32_2 = arith.constant 0 : i32
    return %c0_i32, %c0_i32_0, %c0_i32_1 : i32, i32, i32
  }
  func.func @transform_15(%arg0: i32) -> (i32, i32, i32) {
    %c0_i32 = arith.constant 0 : i32
    %c0_i32_0 = arith.constant 0 : i32
    %c0_i32_1 = arith.constant 0 : i32
    %c0_i32_2 = arith.constant 0 : i32
    return %c0_i32, %c0_i32_0, %c0_i32_1 : i32, i32, i32
  }
  func.func @transform_16(%arg0: i32) -> (i32, i32, i32) {
    %c0_i32 = arith.constant 0 : i32
    %c0_i32_0 = arith.constant 0 : i32
    %c0_i32_1 = arith.constant 0 : i32
    %c0_i32_2 = arith.constant 0 : i32
    return %c0_i32, %c0_i32_0, %c0_i32_1 : i32, i32, i32
  }
  func.func @transform_17(%arg0: i32) -> (i32, i32, i32) {
    %c0_i32 = arith.constant 0 : i32
    %c0_i32_0 = arith.constant 0 : i32
    %c0_i32_1 = arith.constant 0 : i32
    %c0_i32_2 = arith.constant 0 : i32
    return %c0_i32, %c0_i32_0, %c0_i32_1 : i32, i32, i32
  }
  func.func @transform_18(%arg0: i32) -> (i32, i32, i32) {
    %c0_i32 = arith.constant 0 : i32
    %c0_i32_0 = arith.constant 0 : i32
    %c0_i32_1 = arith.constant 0 : i32
    %c0_i32_2 = arith.constant 0 : i32
    return %c0_i32, %c0_i32_0, %c0_i32_1 : i32, i32, i32
  }
  func.func @transform_19(%arg0: i32) -> (i32, i32, i32) {
    %c0_i32 = arith.constant 0 : i32
    %c0_i32_0 = arith.constant 0 : i32
    %c0_i32_1 = arith.constant 0 : i32
    %c0_i32_2 = arith.constant 0 : i32
    return %c0_i32, %c0_i32_0, %c0_i32_1 : i32, i32, i32
  }
  func.func @transform_20(%arg0: i32) -> (i32, i32, i32) {
    %c0_i32 = arith.constant 0 : i32
    %c0_i32_0 = arith.constant 0 : i32
    %c0_i32_1 = arith.constant 0 : i32
    %c0_i32_2 = arith.constant 0 : i32
    return %c0_i32, %c0_i32_0, %c0_i32_1 : i32, i32, i32
  }
  func.func @transform_21(%arg0: i32) -> (i32, i32, i32) {
    %c0_i32 = arith.constant 0 : i32
    %c0_i32_0 = arith.constant 0 : i32
    %c0_i32_1 = arith.constant 0 : i32
    %c0_i32_2 = arith.constant 0 : i32
    return %c0_i32, %c0_i32_0, %c0_i32_1 : i32, i32, i32
  }
  func.func @transform_22(%arg0: i32) -> (i32, i32, i32, i32) {
    %c0_i32 = arith.constant 0 : i32
    %c0_i32_0 = arith.constant 0 : i32
    %c0_i32_1 = arith.constant 0 : i32
    %c0_i32_2 = arith.constant 0 : i32
    %c0_i32_3 = arith.constant 0 : i32
    return %c0_i32, %c0_i32_0, %c0_i32_1, %c0_i32_2 : i32, i32, i32, i32
  }
  func.func @transform_23(%arg0: i32) -> (i32, i32, i32) {
    %c0_i32 = arith.constant 0 : i32
    %c0_i32_0 = arith.constant 0 : i32
    %c0_i32_1 = arith.constant 0 : i32
    %c0_i32_2 = arith.constant 0 : i32
    return %c0_i32, %c0_i32_0, %c0_i32_1 : i32, i32, i32
  }
  func.func @transform_24(%arg0: i32) -> (i32, i32, i32) {
    %c0_i32 = arith.constant 0 : i32
    %c0_i32_0 = arith.constant 0 : i32
    %c0_i32_1 = arith.constant 0 : i32
    %c0_i32_2 = arith.constant 0 : i32
    return %c0_i32, %c0_i32_0, %c0_i32_1 : i32, i32, i32
  }
  func.func @transform_25(%arg0: i32) -> (i32, i32, i32) {
    %c0_i32 = arith.constant 0 : i32
    %c0_i32_0 = arith.constant 0 : i32
    %c0_i32_1 = arith.constant 0 : i32
    %c0_i32_2 = arith.constant 0 : i32
    return %c0_i32, %c0_i32_0, %c0_i32_1 : i32, i32, i32
  }
  func.func @transform_26(%arg0: i32) -> (i32, i32, i32) {
    %c0_i32 = arith.constant 0 : i32
    %c0_i32_0 = arith.constant 0 : i32
    %c0_i32_1 = arith.constant 0 : i32
    %c0_i32_2 = arith.constant 0 : i32
    return %c0_i32, %c0_i32_0, %c0_i32_1 : i32, i32, i32
  }
  func.func @transform_27(%arg0: i32) -> (i32, i32, i32) {
    %c0_i32 = arith.constant 0 : i32
    %c0_i32_0 = arith.constant 0 : i32
    %c0_i32_1 = arith.constant 0 : i32
    %c0_i32_2 = arith.constant 0 : i32
    return %c0_i32, %c0_i32_0, %c0_i32_1 : i32, i32, i32
  }
  func.func @transform_28(%arg0: i32) -> (i32, i32, i32) {
    %c0_i32 = arith.constant 0 : i32
    %c0_i32_0 = arith.constant 0 : i32
    %c0_i32_1 = arith.constant 0 : i32
    %c0_i32_2 = arith.constant 0 : i32
    return %c0_i32, %c0_i32_0, %c0_i32_1 : i32, i32, i32
  }
  func.func @transform_29(%arg0: i32) -> (i32, i32, i32) {
    %c0_i32 = arith.constant 0 : i32
    %c0_i32_0 = arith.constant 0 : i32
    %c0_i32_1 = arith.constant 0 : i32
    %c0_i32_2 = arith.constant 0 : i32
    return %c0_i32, %c0_i32_0, %c0_i32_1 : i32, i32, i32
  }
  func.func @transform_30(%arg0: i32) -> (i32, i32, i32) {
    %c0_i32 = arith.constant 0 : i32
    %c0_i32_0 = arith.constant 0 : i32
    %c0_i32_1 = arith.constant 0 : i32
    %c0_i32_2 = arith.constant 0 : i32
    return %c0_i32, %c0_i32_0, %c0_i32_1 : i32, i32, i32
  }
  func.func @transform_31(%arg0: i32) -> (i32, i32, i32) {
    %c0_i32 = arith.constant 0 : i32
    %c0_i32_0 = arith.constant 0 : i32
    %c0_i32_1 = arith.constant 0 : i32
    %c0_i32_2 = arith.constant 0 : i32
    return %c0_i32, %c0_i32_0, %c0_i32_1 : i32, i32, i32
  }
  func.func @transform_32(%arg0: i32) -> (i32, i32, i32) {
    %c0_i32 = arith.constant 0 : i32
    %c0_i32_0 = arith.constant 0 : i32
    %c0_i32_1 = arith.constant 0 : i32
    %c0_i32_2 = arith.constant 0 : i32
    return %c0_i32, %c0_i32_0, %c0_i32_1 : i32, i32, i32
  }
  func.func @transform_33(%arg0: i32) -> (i32, i32, i32) {
    %c0_i32 = arith.constant 0 : i32
    %c0_i32_0 = arith.constant 0 : i32
    %c0_i32_1 = arith.constant 0 : i32
    %c0_i32_2 = arith.constant 0 : i32
    return %c0_i32, %c0_i32_0, %c0_i32_1 : i32, i32, i32
  }
  func.func @transform_34(%arg0: i32) -> (i32, i32) {
    %c0_i32 = arith.constant 0 : i32
    %c0_i32_0 = arith.constant 0 : i32
    %c0_i32_1 = arith.constant 0 : i32
    return %c0_i32, %c0_i32_0 : i32, i32
  }
  func.func @transform_35(%arg0: i32) -> (i32, i32) {
    %c0_i32 = arith.constant 0 : i32
    %c0_i32_0 = arith.constant 0 : i32
    %c0_i32_1 = arith.constant 0 : i32
    return %c0_i32, %c0_i32_0 : i32, i32
  }
  func.func @transform_36(%arg0: i32) -> (i32, i32, i32) {
    %c0_i32 = arith.constant 0 : i32
    %c0_i32_0 = arith.constant 0 : i32
    %c0_i32_1 = arith.constant 0 : i32
    %c0_i32_2 = arith.constant 0 : i32
    return %c0_i32, %c0_i32_0, %c0_i32_1 : i32, i32, i32
  }
  func.func @transform_37(%arg0: i32) -> (i32, i32) {
    %c0_i32 = arith.constant 0 : i32
    %c0_i32_0 = arith.constant 0 : i32
    %c0_i32_1 = arith.constant 0 : i32
    return %c0_i32, %c0_i32_0 : i32, i32
  }
  func.func @transform_38(%arg0: i32) -> (i32, i32, i32) {
    %c0_i32 = arith.constant 0 : i32
    %c0_i32_0 = arith.constant 0 : i32
    %c0_i32_1 = arith.constant 0 : i32
    return %arg0, %c0_i32, %c0_i32_0 : i32, i32, i32
  }
  func.func @transform_39(%arg0: i32) -> (i32, i32, i32) {
    %c0_i32 = arith.constant 0 : i32
    %c0_i32_0 = arith.constant 0 : i32
    %c0_i32_1 = arith.constant 0 : i32
    return %arg0, %c0_i32, %c0_i32_0 : i32, i32, i32
  }
}

</mosaic_0001>

<bundles_post_ra>
// kernel: tile.9
= control target key start
LH: loop header
LB: loop body
LE: loop exit
PB: predicated region body
PF: predicated region fallthrough
CT: control target
= control target key end

     0   :  { %s7_s6 = smov 3  ;;  %s21_s9 = smov 3  ;;  %vm4_vm0 = vcmask 15360   ;;  %vm11_vm1 = vcmask 277760   ;;  %vm18_vm2 = vcmask 261360   ;;  %vm25_vm3 = vcmask 244960   ;;  %s236_s0 = inlined_call_operand.vmem [shape: f32[17,2,2], index: 0, kind: input, shape index: {}]   ;;  %s237_s1 = inlined_call_operand.vmem [shape: f32[34,2], index: 1, kind: output, shape index: {}]  }
   0x1   :  { %v124_v0 = vld [vmem:[%s236_s0 + $0x10] ss:$24 sm:%s7_s6]   ;;  %s156_s10 = smov 32   ;;  %v126_v1 = vld [vmem:[%s236_s0 + $0xe] ss:$24 sm:%s21_s9]   ;;  %s157_s13 = smov 28  }
   0x2   :  { %9 = vrot.lane.b32.xlu0 %v124_v0, %s156_s10  ;;  %23 = vrot.lane.b32.xlu1 %v126_v1, %s157_s13  ;;  %s14_s14 = smov 3  ;;  %s28_s15 = smov 3  ;;  %vm32_vm4 = vcmask 228560   ;;  %vm39_vm5 = vcmask 212160   ;;  %vm46_vm6 = vcmask 195760   ;;  %vm53_vm7 = vcmask 179360  }
   0x3   :  { %v125_v2 = vld [vmem:[%s236_s0 + $0xf] ss:$24 sm:%s14_s14]   ;;  %v127_v3 = vld [vmem:[%s236_s0 + $0xd] ss:$24 sm:%s28_s15]   ;;  %s35_s20 = smov 3  ;;  %s158_s23 = smov 30  }
   0x4   :  { %v128_v4 = vld [vmem:[%s236_s0 + $0xc] ss:$24 sm:%s35_s20]   ;;  %s159_s24 = smov 24   ;;  %s160_s25 = smov 26   ;;  %vm60_vm8 = vcmask 162960   ;;  %vm67_vm9 = vcmask 146560  }
   0x5   :  { %37 = vrot.lane.b32.xlu2 %v128_v4, %s159_s24  ;;  %s49_s26 = smov 3  ;;  %s42_s27 = smov 3  ;;  %vm74_vm10 = vcmask 130160   ;;  %vm81_vm11 = vcmask 113760   ;;  %vm88_vm12 = vcmask 97360   ;;  %vm95_vm13 = vcmask 80960  }
   0x6   :  { %s56_s28 = smov 3  ;;  %v130_v5 = vld [vmem:[%s236_s0 + $0xa] ss:$24 sm:%s49_s26]   ;;  %v129_v6 = vld [vmem:[%s236_s0 + $0xb] ss:$24 sm:%s42_s27]   ;;  %s161_s6 = smov 20  }
   0x7   :  { %v131_v7 = vld [vmem:[%s236_s0 + $0x9] ss:$24 sm:%s56_s28]   ;;  %s162_s7 = smov 22   ;;  %s163_s8 = smov 18   ;;  %vm102_vm14 = vcmask 64560   ;;  %vm109_vm15 = vcmask 48160  }
   0x8   :  { %s70_s9 = smov 3  ;;  %s63_s10 = smov 3 }
   0x9   :  { %s77_s11 = smov 3  ;;  %v133_v8 = vld [vmem:[%s236_s0 + $0x7] ss:$24 sm:%s70_s9]   ;;  %v132_v9 = vld [vmem:[%s236_s0 + $0x8] ss:$24 sm:%s63_s10]   ;;  %s164_s18 = smov 14  }
   0xa   :  { %16 = vrot.lane.b32.xlu0 %v125_v2, %s158_s23  ;;  %30 = vrot.lane.b32.xlu1 %v127_v3, %s160_s25  ;;  %v134_v10 = vld [vmem:[%s236_s0 + $0x6] ss:$24 sm:%s77_s11]   ;;  %s165_s19 = smov 16   ;;  %s166_s20 = smov 12  }
   0xb   :  { %s91_s21 = smov 3  ;;  %s84_s22 = smov 3 }
   0xc   :  { %s98_s23 = smov 3  ;;  %v136_v11 = vld [vmem:[%s236_s0 + $0x4] ss:$24 sm:%s91_s21]   ;;  %v135_v12 = vld [vmem:[%s236_s0 + $0x5] ss:$24 sm:%s84_s22]   ;;  %s167_s30 = smov 8  }
   0xd   :  { %44 = vrot.lane.b32.xlu2 %v129_v6, %s162_s7  ;;  %v137_v13 = vld [vmem:[%s236_s0 + $0x3] ss:$24 sm:%s98_s23]   ;;  %s168_s2 = smov 10   ;;  %s169_s3 = smov 6  }
   0xe   :  { %s112_s4 = smov 3  ;;  %s105_s5 = smov 3 }
   0xf   :  { %v139_v14 = vld [vmem:[%s236_s0 + $0x1] ss:$24 sm:%s112_s4]   ;;  %v138_v15 = vld [vmem:[%s236_s0 + $0x2] ss:$24 sm:%s105_s5]   ;;  %s170_s10 = smov 2   ;;  %s171_s11 = smov 4  }
  0x10   :  { %s2_s12 = smov 3 }
  0x11   :  { %v3_v16 = vld [vmem:[%s236_s0] ss:$24 sm:%s2_s12]  }
  0x12   :  { %51 = vrot.lane.b32.xlu0 %v130_v5, %s161_s6  ;;  %58 = vrot.lane.b32.xlu1 %v131_v7, %s163_s8  ;;  %5 = vst.msk [vmem:[#allocation0] sm:$0x3] %vm4_vm0, %v3_v16   ;;  %vm116_vm0 = vcmask 31760  }
  0x15   :  { %65 = vrot.lane.b32.xlu2 %v132_v9, %s165_s19 }
  0x1a   :  { %72 = vrot.lane.b32.xlu0 %v133_v8, %s164_s18  ;;  %79 = vrot.lane.b32.xlu1 %v134_v10, %s166_s20 }
  0x1d   :  { %86 = vrot.lane.b32.xlu2 %v135_v12, %s168_s2 }
  0x22   :  { %93 = vrot.lane.b32.xlu0 %v136_v11, %s167_s30  ;;  %100 = vrot.lane.b32.xlu1 %v137_v13, %s169_s3 }
  0x25   :  { %107 = vrot.lane.b32.xlu2 %v138_v15, %s171_s11 }
  0x2a   :  { %114 = vrot.lane.b32.xlu0 %v139_v14, %s170_s10 }
  0x5f   :  { %v38_v17 = vpop.permute.xlu2 %37  }
  0x67   :  { %v45_v18 = vpop.permute.xlu2 %44  }
  0x6f   :  { %v66_v20 = vpop.permute.xlu2 %65  }
  0x74   :  { %v10_v19 = vpop.permute.xlu0 %9   ;;  %v24_v21 = vpop.permute.xlu1 %23  }
  0x75   :  { %12 = vst.msk [vmem:[#allocation0] sm:$0x3] %vm11_vm1, %v10_v19  }
  0x77   :  { %v87_v23 = vpop.permute.xlu2 %86  }
  0x7c   :  { %v17_v22 = vpop.permute.xlu0 %16   ;;  %v31_v24 = vpop.permute.xlu1 %30  }
  0x7d   :  { %19 = vst.msk [vmem:[#allocation0] sm:$0x3] %vm18_vm2, %v17_v22  }
  0x7e   :  { %26 = vst.msk [vmem:[#allocation0] sm:$0x3] %vm25_vm3, %v24_v21  }
  0x7f   :  { %33 = vst.msk [vmem:[#allocation0] sm:$0x3] %vm32_vm4, %v31_v24   ;;  %v108_v26 = vpop.permute.xlu2 %107  }
  0x80   :  { %40 = vst.msk [vmem:[#allocation0] sm:$0x3] %vm39_vm5, %v38_v17  }
  0x81   :  { %47 = vst.msk [vmem:[#allocation0] sm:$0x3] %vm46_vm6, %v45_v18  }
  0x84   :  { %v52_v25 = vpop.permute.xlu0 %51   ;;  %v59_v27 = vpop.permute.xlu1 %58  }
  0x85   :  { %54 = vst.msk [vmem:[#allocation0] sm:$0x3] %vm53_vm7, %v52_v25  }
  0x86   :  { %61 = vst.msk [vmem:[#allocation0] sm:$0x3] %vm60_vm8, %v59_v27  }
  0x87   :  { %68 = vst.msk [vmem:[#allocation0] sm:$0x3] %vm67_vm9, %v66_v20  }
  0x8c   :  { %v73_v28 = vpop.permute.xlu0 %72   ;;  %v80_v29 = vpop.permute.xlu1 %79  }
  0x8d   :  { %75 = vst.msk [vmem:[#allocation0] sm:$0x3] %vm74_vm10, %v73_v28  }
  0x8e   :  { %82 = vst.msk [vmem:[#allocation0] sm:$0x3] %vm81_vm11, %v80_v29  }
  0x8f   :  { %89 = vst.msk [vmem:[#allocation0] sm:$0x3] %vm88_vm12, %v87_v23  }
  0x94   :  { %v94_v30 = vpop.permute.xlu0 %93   ;;  %v101_v31 = vpop.permute.xlu1 %100  }
  0x95   :  { %96 = vst.msk [vmem:[#allocation0] sm:$0x3] %vm95_vm13, %v94_v30  }
  0x96   :  { %103 = vst.msk [vmem:[#allocation0] sm:$0x3] %vm102_vm14, %v101_v31  }
  0x97   :  { %110 = vst.msk [vmem:[#allocation0] sm:$0x3] %vm109_vm15, %v108_v26  }
  0x9c   :  { %v115_v32 = vpop.permute.xlu0 %114  }
  0x9d   :  { %117 = vst.msk [vmem:[#allocation0] sm:$0x3] %vm116_vm0, %v115_v32  }
  0xa4   :  { %v120_v33 = vld [vmem:[#allocation0] sm:$0x3] }
  0xa5   :  { %123 = vst [vmem:[%s237_s1] sm:$0x3] %v120_v33 }

// kernel: gat_forward.1
= control target key start
LH: loop header
LB: loop body
LE: loop exit
PB: predicated region body
PF: predicated region fallthrough
CT: control target
= control target key end

     0   :  { %s7377_s6 = smov 1   ;;  %s7378_s10 = smov 2   ;;  %s10451_s0 = inlined_call_operand.smem [shape: u32[40], index: -1, kind: input, shape index: {}] }
   0x1   :  { %s7429_s5 = sld [smem:[%s10451_s0]]   ;;  %s7379_s14 = smov 3  }
   0x2   :  { %s7434_s9 = sld [smem:[%s10451_s0 + %s7377_s6]]   ;;  %s7380_s18 = smov 4  }
   0x3   :  { %s7439_s13 = sld [smem:[%s10451_s0 + %s7378_s10]]   ;;  %s7381_s22 = smov 5  }
   0x4   :  { %s7444_s17 = sld [smem:[%s10451_s0 + %s7379_s14]]   ;;  %s7382_s26 = smov 6  }
   0x5   :  { %s7449_s21 = sld [smem:[%s10451_s0 + %s7380_s18]]   ;;  %s7383_s30 = smov 7  }
   0x6   :  { %s7454_s25 = sld [smem:[%s10451_s0 + %s7381_s22]]   ;;  %s7384_s4 = smov 8  }
   0x7   :  { %s7459_s29 = sld [smem:[%s10451_s0 + %s7382_s26]]   ;;  %s7385_s10 = smov 9  }
   0x8   :  { %s7464_s3 = sld [smem:[%s10451_s0 + %s7383_s30]]   ;;  %s7386_s15 = smov 10  }
   0x9   :  { %s7469_s8 = sld [smem:[%s10451_s0 + %s7384_s4]]   ;;  %s7387_s20 = smov 11  }
   0xa   :  { %s7474_s14 = sld [smem:[%s10451_s0 + %s7385_s10]]   ;;  %s7388_s26 = smov 12  }
   0xb   :  { %s7479_s19 = sld [smem:[%s10451_s0 + %s7386_s15]]   ;;  %s7389_s1 = smov 13  }
   0xc   :  { %s7484_s24 = sld [smem:[%s10451_s0 + %s7387_s20]]   ;;  %s7390_s7 = smov 14  }
   0xd   :  { %s7489_s30 = sld [smem:[%s10451_s0 + %s7388_s26]]   ;;  %s7391_s15 = smov 15  }
   0xe   :  { %s7494_s6 = sld [smem:[%s10451_s0 + %s7389_s1]]   ;;  %s7392_s22 = smov 16  }
   0xf   :  { %s7499_s12 = sld [smem:[%s10451_s0 + %s7390_s7]]   ;;  %s7393_s28 = smov 17  }
  0x10   :  { %s7504_s20 = sld [smem:[%s10451_s0 + %s7391_s15]]   ;;  %s7394_s7 = smov 18  }
  0x11   :  { %s7509_s27 = sld [smem:[%s10451_s0 + %s7392_s22]]   ;;  %s7395_s15 = smov 19  }
  0x12   :  { %s7514_s4 = sld [smem:[%s10451_s0 + %s7393_s28]]   ;;  %s7396_s22 = smov 20  }
  0x13   :  { %10472 = sst [smem:[#allocation5_spill]] %s7489_s30  ;;  %s7397_s28 = smov 21  }
  0x14   :  { %10473 = sst [smem:[#allocation6_spill]] %s7494_s6 }
  0x15   :  { %10474 = sst [smem:[#allocation7_spill]] %s7499_s12 }
  0x16   :  { %10475 = sst [smem:[#allocation8_spill]] %s7504_s20 }
  0x17   :  { %s7519_s6 = sld [smem:[%s10451_s0 + %s7394_s7]]   ;;  %s7398_s7 = smov 22  }
  0x18   :  { %s7524_s30 = sld [smem:[%s10451_s0 + %s7395_s15]]   ;;  %s7399_s15 = smov 23  }
  0x19   :  { %s7529_s20 = sld [smem:[%s10451_s0 + %s7396_s22]]   ;;  %s7400_s22 = smov 24  }
  0x1a   :  { %s7534_s12 = sld [smem:[%s10451_s0 + %s7397_s28]]   ;;  %s7401_s28 = smov 25  }
  0x1d   :  { %10476 = sst [smem:[#allocation9_spill]] %s7519_s6 }
  0x1e   :  { %10477 = sst [smem:[#allocation10_spill]] %s7524_s30 }
  0x1f   :  { %10478 = sst [smem:[#allocation11_spill]] %s7529_s20 }
  0x20   :  { %10479 = sst [smem:[#allocation12_spill]] %s7534_s12 }
  0x21   :  { %s7539_s6 = sld [smem:[%s10451_s0 + %s7398_s7]]   ;;  %s7402_s7 = smov 26  }
  0x22   :  { %s7544_s30 = sld [smem:[%s10451_s0 + %s7399_s15]]   ;;  %s7403_s15 = smov 27  }
  0x23   :  { %s7549_s20 = sld [smem:[%s10451_s0 + %s7400_s22]]   ;;  %s7404_s22 = smov 28  }
  0x24   :  { %s7554_s12 = sld [smem:[%s10451_s0 + %s7401_s28]]   ;;  %s7405_s28 = smov 29  }
  0x27   :  { %10480 = sst [smem:[#allocation13_spill]] %s7539_s6 }
  0x28   :  { %10481 = sst [smem:[#allocation14_spill]] %s7544_s30 }
  0x29   :  { %10482 = sst [smem:[#allocation15_spill]] %s7549_s20 }
  0x2a   :  { %10483 = sst [smem:[#allocation16_spill]] %s7554_s12 }
  0x2b   :  { %s7559_s6 = sld [smem:[%s10451_s0 + %s7402_s7]]   ;;  %s7406_s7 = smov 30  }
  0x2c   :  { %s7564_s30 = sld [smem:[%s10451_s0 + %s7403_s15]]   ;;  %s7407_s15 = smov 31  }
  0x2d   :  { %s7569_s20 = sld [smem:[%s10451_s0 + %s7404_s22]]   ;;  %s7408_s22 = smov 32  }
  0x2e   :  { %s7574_s12 = sld [smem:[%s10451_s0 + %s7405_s28]]   ;;  %s7409_s28 = smov 33  }
  0x31   :  { %10484 = sst [smem:[#allocation17_spill]] %s7559_s6 }
  0x32   :  { %10485 = sst [smem:[#allocation18_spill]] %s7564_s30 }
  0x33   :  { %10486 = sst [smem:[#allocation19_spill]] %s7569_s20 }
  0x34   :  { %10487 = sst [smem:[#allocation20_spill]] %s7574_s12 }
  0x35   :  { %s7579_s6 = sld [smem:[%s10451_s0 + %s7406_s7]]   ;;  %s7410_s7 = smov 34  }
  0x36   :  { %s7584_s30 = sld [smem:[%s10451_s0 + %s7407_s15]]   ;;  %s7411_s15 = smov 35  }
  0x37   :  { %s7589_s20 = sld [smem:[%s10451_s0 + %s7408_s22]]   ;;  %s7412_s22 = smov 36  }
  0x38   :  { %s7594_s12 = sld [smem:[%s10451_s0 + %s7409_s28]]   ;;  %s7413_s28 = smov 37  }
  0x3b   :  { %10488 = sst [smem:[#allocation21_spill]] %s7579_s6 }
  0x3c   :  { %10489 = sst [smem:[#allocation22_spill]] %s7584_s30 }
  0x3d   :  { %10490 = sst [smem:[#allocation23_spill]] %s7589_s20 }
  0x3e   :  { %10491 = sst [smem:[#allocation24_spill]] %s7594_s12 }
  0x3f   :  { %s7599_s6 = sld [smem:[%s10451_s0 + %s7410_s7]]   ;;  %s7414_s7 = smov 38  }
  0x40   :  { %s7604_s30 = sld [smem:[%s10451_s0 + %s7411_s15]]   ;;  %s7415_s15 = smov 39  }
  0x41   :  { %s7609_s20 = sld [smem:[%s10451_s0 + %s7412_s22]]  }
  0x42   :  { %s7614_s12 = sld [smem:[%s10451_s0 + %s7413_s28]]  }
  0x45   :  { %10492 = sst [smem:[#allocation25_spill]] %s7599_s6 }
  0x46   :  { %10493 = sst [smem:[#allocation26_spill]] %s7604_s30 }
  0x47   :  { %s7619_s6 = sld [smem:[%s10451_s0 + %s7414_s7]]  }
  0x48   :  { %s7624_s30 = sld [smem:[%s10451_s0 + %s7415_s15]]  }
  0x49   :  { %v167_v0 = vld [vmem:[%s7434_s9] sm:$0x3]  ;;  %vm188_vm0 = vcmask 1041408   ;;  %vm172_vm1 = vcmask 15360   ;;  %v231_v2 = vld [vmem:[%s7444_s17 + $0x38] sm:$0xff]  ;;  %v230_v3 = vld [vmem:[%s7444_s17 + $0x30] sm:$0xff] }
  0x4a   :  { %v162_v1 = vld [vmem:[%s7429_s5] sm:$0xff]  ;;  %6329 = vmatpush.msk.msra.mxu0 %vm188_vm0, %v167_v0  ;;  %263 = vmatpush.msra.mxu1 %v231_v2  ;;  %v229_v4 = vld [vmem:[%s7444_s17 + $0x28] sm:$0xff]  ;;  %v227_v7 = vld [vmem:[%s7444_s17 + $0x18] sm:$0xff] }
  0x4b   :  { %6330 = vmatmul.msk.f32.vlgmr.msra.gmra.mxu0 %vm172_vm1, %v162_v1  ;;  %342 = vmatpush.msra.mxu3 %v231_v2  ;;  %v228_v5 = vld [vmem:[%s7444_s17 + $0x20] sm:$0xff]  ;;  %v163_v6 = vld [vmem:[%s7429_s5 + $0x8] sm:$0xff]  ;;  %v226_v8 = vld [vmem:[%s7444_s17 + $0x10] sm:$0xff] }
  0x4c   :  { %264 = vmatpush.msra.mxu1 %v230_v3 }
  0x4d   :  { %343 = vmatpush.msra.mxu3 %v230_v3 }
  0x4e   :  { %265 = vmatpush.msra.mxu1 %v229_v4 }
  0x4f   :  { %344 = vmatpush.msra.mxu3 %v229_v4 }
  0x50   :  { %266 = vmatpush.msra.mxu1 %v228_v5 }
  0x51   :  { %345 = vmatpush.msra.mxu3 %v228_v5 }
  0x52   :  { %267 = vmatpush.msra.mxu1 %v227_v7 }
  0x53   :  { %6331 = vmatmul.msk.f32.gmra.mxu0 %vm172_vm1, %v163_v6  ;;  %346 = vmatpush.msra.mxu3 %v227_v7 }
  0x54   :  { %268 = vmatpush.msra.mxu1 %v226_v8 }
  0x55   :  { %347 = vmatpush.msra.mxu3 %v226_v8 }
  0x56   :  { %85 = vsyncpa [#allocation3], 0  ;;  %v164_v9 = vld [vmem:[%s7429_s5 + $0x10] sm:$0xff]  ;;  %v165_v10 = vld [vmem:[%s7429_s5 + $0x18] sm:$0xff]  ;;  %vm239_vm2 = vcmask 523264   ;;  %vm287_vm3 = vcmask 277504  }
  0x57   :  { %v166_v11 = vld [vmem:[%s7429_s5 + $0x20] sm:$0x3]  ;;  %v225_v12 = vld [vmem:[%s7444_s17 + $0x8] sm:$0xff]  ;;  %vm408_vm4 = vcmask 1043456   ;;  %vm404_vm5 = vcmask 31744   ;;  %v235_v59 = vld [vmem:[%s7454_s25 + $0x10] sm:$0xff] }
  0x58   :  { %269 = vmatpush.msra.mxu1 %v225_v12  ;;  %348 = vmatpush.msra.mxu3 %v225_v12  ;;  %v224_v13 = vld [vmem:[%s7444_s17] sm:$0xff]  ;;  %v234_v58 = vld [vmem:[%s7454_s25 + $0x8] sm:$0xff]  ;;  %v236_v60 = vld [vmem:[%s7454_s25 + $0x18] sm:$0xff]  ;;  %s10496_s0 = sld [smem:[#allocation9_spill]] }
  0x59   :  { %v7043_v14 = vld [vmem:[%s7439_s13] ss:$0 sm:$0xff]  ;;  %s10497_s5 = sld [smem:[#allocation7_spill]] }
  0x5a   :  { %270 = vmatpush.msra.mxu1 %v224_v13  ;;  %349 = vmatpush.msra.mxu3 %v224_v13  ;;  %v238_v39 = vld [vmem:[%s7459_s29] sm:$0x3]  ;;  %s10498_s9 = sld [smem:[#allocation8_spill]]  ;;  %s7418_s29 = smov 96  }
  0x5b   :  { %6332 = vmatmul.msk.f32.gmra.mxu0 %vm172_vm1, %v164_v9  ;;  %v232_v41 = vld [vmem:[%s7449_s21] sm:$0xf]  ;;  %s10499_s13 = sld [smem:[#allocation10_spill]] }
  0x5c   :  { %6357 = vmatpush.msk.msrb.mxu0 %vm408_vm4, %v232_v41  ;;  %v233_v56 = vld [vmem:[%s7454_s25] sm:$0xff]  ;;  %s10500_s17 = sld [smem:[#allocation11_spill]] }
  0x5d   :  { %v237_v62 = vld [vmem:[%s7454_s25 + $0x20] sm:$0x3]  ;;  %s10501_s21 = sld [smem:[#allocation12_spill]]  ;;  %s7417_s25 = smov 112  }
  0x5e   :  { %v7709_v2 = vld [vmem:[%s7464_s3] ss:$0 sm:$0xff]  ;;  %s10502_s3 = sld [smem:[#allocation5_spill]] }
  0x5f   :  { %v7712_v5 = vld [vmem:[%s7469_s8] ss:$0 sm:$0xff]  ;;  %s7419_s8 = smov 80   ;;  %s10506_s22 = sld [smem:[#allocation17_spill]] }
  0x60   :  { %s10507_s23 = sld [smem:[#allocation16_spill]] }
  0x61   :  { %s10508_s26 = sld [smem:[#allocation14_spill]] }
  0x62   :  { %s10509_s28 = sld [smem:[#allocation18_spill]] }
  0x63   :  { %6333 = vmatmul.msk.f32.gmra.mxu0 %vm172_vm1, %v165_v10  ;;  %s10510_s1 = sld [smem:[#allocation21_spill]] }
  0x64   :  { %s10511_s2 = sld [smem:[#allocation19_spill]] }
  0x65   :  { %s10512_s7 = sld [smem:[#allocation20_spill]] }
  0x66   :  { %s10513_s10 = sld [smem:[#allocation22_spill]] }
  0x67   :  { %s10514_s11 = sld [smem:[#allocation23_spill]] }
  0x68   :  { %s10519_s15 = sld [smem:[#allocation24_spill]] }
  0x6b   :  { %6334 = vmatmul.msk.f32.gmra.mxu0 %vm172_vm1, %v166_v11 }
  0xc8   :  { %v209_v15 = vpop.f32.mrf.mxu0 }
  0xc9   :  { %v7647_v16 = vadd.f32 %v7043_v14, %v209_v15 }
  0xcb   :  { %6335 = vmatmul.msk.f32.vlgmr.msra.gmra.mxu1 %vm239_vm2, %v7647_v16  ;;  %v314_v17 = vmul.f32 %v7647_v16, %v7647_v16 }
  0xcd   :  { %6342 = vmatmul.msk.f32.vlgmr.msra.gmra.mxu3 %vm239_vm2, %v314_v17  ;;  %v794_v17 = vld [vmem:[%s7474_s14 + $0x30] sm:$0xff] }
  0xd0   :  { %v212_v18 = vpop.f32.mrf.mxu0 }
  0xd1   :  { %v7654_v19 = vadd.f32 %v7043_v14, %v212_v18  ;;  %v793_v18 = vld [vmem:[%s7474_s14 + $0x28] sm:$0xff] }
  0xd3   :  { %6336 = vmatmul.msk.f32.gmra.mxu1 %vm239_vm2, %v7654_v19  ;;  %v315_v20 = vmul.f32 %v7654_v19, %v7654_v19 }
  0xd5   :  { %6343 = vmatmul.msk.f32.gmra.mxu3 %vm239_vm2, %v315_v20 }
  0xd8   :  { %v215_v21 = vpop.f32.mrf.mxu0 }
  0xd9   :  { %v7661_v22 = vadd.f32 %v7043_v14, %v215_v21 }
  0xdb   :  { %6337 = vmatmul.msk.f32.gmra.mxu1 %vm239_vm2, %v7661_v22  ;;  %v316_v23 = vmul.f32 %v7661_v22, %v7661_v22 }
  0xdd   :  { %6344 = vmatmul.msk.f32.gmra.mxu3 %vm239_vm2, %v316_v23  ;;  %v792_v23 = vld [vmem:[%s7474_s14 + $0x20] sm:$0xff] }
  0xe0   :  { %v218_v24 = vpop.f32.mrf.mxu0 }
  0xe1   :  { %v7668_v25 = vadd.f32 %v7043_v14, %v218_v24 }
  0xe3   :  { %6338 = vmatmul.msk.f32.gmra.mxu1 %vm239_vm2, %v7668_v25  ;;  %v317_v26 = vmul.f32 %v7668_v25, %v7668_v25 }
  0xe5   :  { %6345 = vmatmul.msk.f32.gmra.mxu3 %vm239_vm2, %v317_v26 }
  0xe8   :  { %v221_v27 = vpop.f32.mrf.mxu0 }
  0xe9   :  { %v7675_v28 = vadd.f32 %v7043_v14, %v221_v27  ;;  %v795_v14 = vld [vmem:[%s7474_s14 + $0x38] sm:$0xff] }
  0xea   :  { %823 = vmatpush.msrb.mxu1 %v795_v14 }
  0xeb   :  { %6339 = vmatmul.msk.f32.gmra.mxu1 %vm239_vm2, %v7675_v28  ;;  %v318_v29 = vmul.f32 %v7675_v28, %v7675_v28 }
  0xec   :  { %824 = vmatpush.msrb.mxu1 %v794_v17 }
  0xed   :  { %6346 = vmatmul.msk.f32.gmra.mxu3 %vm239_vm2, %v318_v29 }
  0xee   :  { %825 = vmatpush.msrb.mxu1 %v793_v18 }
  0xf0   :  { %826 = vmatpush.msrb.mxu1 %v792_v23 }
 0x148   :  { %v272_v30 = vpop.f32.mrf.mxu1 }
 0x150   :  { %v275_v31 = vpop.f32.mrf.mxu1  ;;  %v351_v32 = vpop.f32.mrf.mxu3 }
 0x158   :  { %v278_v33 = vpop.f32.mrf.mxu1  ;;  %v354_v34 = vpop.f32.mrf.mxu3 }
 0x160   :  { %v281_v35 = vpop.f32.mrf.mxu1  ;;  %v357_v36 = vpop.f32.mrf.mxu3 }
 0x168   :  { %v284_v37 = vpop.f32.mrf.mxu1  ;;  %v360_v38 = vpop.f32.mrf.mxu3 }
 0x169   :  { %6340 = vmatpush.msk.msra.mxu2 %vm188_vm0, %v284_v37 }
 0x16b   :  { %306 = vmatpush.msra.mxu2 %v281_v35 }
 0x16d   :  { %307 = vmatpush.msra.mxu2 %v278_v33 }
 0x16f   :  { %308 = vmatpush.msra.mxu2 %v275_v31  ;;  %v791_v31 = vld [vmem:[%s7474_s14 + $0x18] sm:$0xff] }
 0x170   :  { %v363_v40 = vpop.f32.mrf.mxu3  ;;  %827 = vmatpush.msrb.mxu1 %v791_v31 }
 0x171   :  { %309 = vmatpush.msra.mxu2 %v272_v30 }
 0x172   :  { %6341 = vmatmul.msk.f32.vlgmr.msra.gmra.mxu2 %vm287_vm3, %v238_v39 }
 0x173   :  { %6347 = vmatpush.msk.msrb.mxu2 %vm188_vm0, %v363_v40 }
 0x175   :  { %381 = vmatpush.msrb.mxu2 %v360_v38 }
 0x177   :  { %382 = vmatpush.msrb.mxu2 %v357_v36  ;;  %v790_v36 = vld [vmem:[%s7474_s14 + $0x10] sm:$0xff] }
 0x178   :  { %828 = vmatpush.msrb.mxu1 %v790_v36 }
 0x179   :  { %383 = vmatpush.msrb.mxu2 %v354_v34 }
 0x17b   :  { %384 = vmatpush.msrb.mxu2 %v351_v32 }
 0x17c   :  { %6348 = vmatmul.msk.f32.vlgmr.msrb.gmra.mxu2 %vm287_vm3, %v238_v39 }
 0x17d   :  { %6349 = vmatpush.msk.msra.mxu2 %vm408_vm4, %v232_v41  ;;  %v789_v41 = vld [vmem:[%s7474_s14 + $0x8] sm:$0xff] }
 0x17e   :  { %829 = vmatpush.msrb.mxu1 %v789_v41 }
 0x1f5   :  { %v311_v42 = vpop.f32.mrf.mxu2 }
 0x1f6   :  { %v389_v43 = vmul.f32 0.0036764706, %v311_v42 }
 0x1f8   :  { %6350 = vmatmul.msk.f32.vlgmr.msra.gmra.mxu2 %vm404_vm5, %v389_v43  ;;  %v391_v45 = vmul.f32 %v389_v43, %v389_v43 }
 0x1ff   :  { %v386_v44 = vpop.f32.mrf.mxu2 }
 0x200   :  { %v390_v46 = vmul.f32 0.0036764706, %v386_v44 }
 0x202   :  { %v392_v47 = vsub.f32 %v390_v46, %v391_v45  ;;  %v788_v46 = vld [vmem:[%s7474_s14] sm:$0xff]  ;;  %s10503_s14 = sld [smem:[#allocation13_spill]] }
 0x203   :  { %830 = vmatpush.msrb.mxu1 %v788_v46 }
 0x204   :  { %v393_v48 = vadd.f32 1e-05, %v392_v47 }
 0x206   :  { %7072 = vrsqrt.f32 %v393_v48  ;;  %vm400_vm7 = vweird.f32 %v393_v48 }
 0x20c   :  { %v7073_v49 = vpop.eup %7072 }
 0x20d   :  { %v395_v50 = vmul.f32 %v7073_v49, %v393_v48  ;;  %vm401_vm6 = vweird.f32 %v7073_v49 }
 0x20e   :  { %vm402_vm8 = vmor %vm400_vm7, %vm401_vm6 }
 0x20f   :  { %v396_v51 = vmul.f32 %v7073_v49, %v395_v50 }
 0x211   :  { %v397_v52 = vmul.f32 0.5, %v396_v51 }
 0x213   :  { %v398_v53 = vsub.f32 1.5, %v397_v52 }
 0x215   :  { %v399_v54 = vmul.f32 %v7073_v49, %v398_v53 }
 0x217   :  { %v403_v55 = vsel %vm402_vm8, %v7073_v49, %v399_v54 }
 0x218   :  { %6358 = vmatmul.msk.f32.vlgmr.msrb.gmra.mxu0 %vm404_vm5, %v403_v55 }
 0x27b   :  { %v429_v57 = vpop.f32.mrf.mxu2 }
 0x27c   :  { %6351 = vmatpush.msk.msrb.mxu2 %vm188_vm0, %v429_v57 }
 0x27d   :  { %6352 = vmatmul.msk.f32.vlgmr.msrb.gmra.mxu2 %vm172_vm1, %v233_v56 }
 0x285   :  { %6353 = vmatmul.msk.f32.gmra.mxu2 %vm172_vm1, %v234_v58 }
 0x28d   :  { %6354 = vmatmul.msk.f32.gmra.mxu2 %vm172_vm1, %v235_v59 }
 0x295   :  { %v502_v61 = vpop.f32.mrf.mxu0  ;;  %6355 = vmatmul.msk.f32.gmra.mxu2 %vm172_vm1, %v236_v60 }
 0x296   :  { %6359 = vmatpush.msk.msra.mxu0 %vm188_vm0, %v502_v61 }
 0x297   :  { %6360 = vmatmul.msk.f32.vlgmr.msra.gmra.mxu0 %vm172_vm1, %v233_v56 }
 0x29d   :  { %6356 = vmatmul.msk.f32.gmra.mxu2 %vm172_vm1, %v237_v62 }
 0x29f   :  { %6361 = vmatmul.msk.f32.gmra.mxu0 %vm172_vm1, %v234_v58 }
 0x2a7   :  { %6362 = vmatmul.msk.f32.gmra.mxu0 %vm172_vm1, %v235_v59 }
 0x2af   :  { %6363 = vmatmul.msk.f32.gmra.mxu0 %vm172_vm1, %v236_v60 }
 0x2b7   :  { %6364 = vmatmul.msk.f32.gmra.mxu0 %vm172_vm1, %v237_v62 }
 0x300   :  { %v467_v63 = vpop.f32.mrf.mxu2 }
 0x301   :  { %v540_v1 = vsub.f32 %v7647_v16, %v467_v63 }
 0x308   :  { %v470_v0 = vpop.f32.mrf.mxu2 }
 0x309   :  { %v541_v8 = vsub.f32 %v7654_v19, %v470_v0 }
 0x310   :  { %v473_v10 = vpop.f32.mrf.mxu2 }
 0x311   :  { %v542_v24 = vsub.f32 %v7661_v22, %v473_v10 }
 0x314   :  { %v525_v3 = vpop.f32.mrf.mxu0 }
 0x315   :  { %v545_v4 = vmul.f32 %v540_v1, %v525_v3 }
 0x317   :  { %v554_v6 = vmul.f32 %v7709_v2, %v545_v4 }
 0x318   :  { %v476_v22 = vpop.f32.mrf.mxu2 }
 0x319   :  { %v7716_v7 = vadd.f32 %v7712_v5, %v554_v6  ;;  %v543_v48 = vsub.f32 %v7668_v25, %v476_v22 }
 0x31b   :  { %v7720_v9 = vmul.f32 0.70710677, %v7716_v7 }
 0x31c   :  { %v528_v11 = vpop.f32.mrf.mxu0 }
 0x31d   :  { %v578_v12 = vmul.f32 %v7720_v9, %v7720_v9  ;;  %v546_v13 = vmul.f32 %v541_v8, %v528_v11 }
 0x31f   :  { %v7725_v15 = vmin.f32 %v578_v12, 16.0  ;;  %v555_v16 = vmul.f32 %v7709_v2, %v546_v13 }
 0x320   :  { %v479_v62 = vpop.f32.mrf.mxu2 }
 0x321   :  { %v580_v19 = vmul.f32 2.1237322e-06, %v7725_v15  ;;  %v7732_v20 = vadd.f32 %v7712_v5, %v555_v16  ;;  %v591_v21 = vmul.f32 3.8918573e-05, %v7725_v15  ;;  %v544_v11 = vsub.f32 %v7675_v28, %v479_v62 }
 0x323   :  { %v581_v26 = vadd.f32 0.00028619796, %v580_v19  ;;  %v7738_v27 = vmul.f32 0.70710677, %v7732_v20  ;;  %v592_v29 = vadd.f32 0.001143296, %v591_v21 }
 0x324   :  { %v531_v30 = vpop.f32.mrf.mxu0 }
 0x325   :  { %v582_v32 = vmul.f32 %v581_v26, %v7725_v15  ;;  %v618_v33 = vmul.f32 %v7738_v27, %v7738_v27  ;;  %v547_v34 = vmul.f32 %v542_v24, %v531_v30  ;;  %v593_v35 = vmul.f32 %v592_v29, %v7725_v15 }
 0x327   :  { %v583_v37 = vadd.f32 0.0036580483, %v582_v32  ;;  %v7746_v38 = vmin.f32 %v618_v33, 16.0  ;;  %v556_v39 = vmul.f32 %v7709_v2, %v547_v34  ;;  %v594_v40 = vadd.f32 0.014752088, %v593_v35 }
 0x329   :  { %v7751_v42 = vadd.f32 %v7712_v5, %v556_v39  ;;  %v595_v43 = vmul.f32 %v594_v40, %v7725_v15  ;;  %v620_v44 = vmul.f32 2.1237322e-06, %v7746_v38  ;;  %v584_v45 = vmul.f32 %v583_v37, %v7725_v15 }
 0x32a   :  { %v631_v47 = vmul.f32 3.8918573e-05, %v7746_v38 }
 0x32b   :  { %v7760_v49 = vmul.f32 0.70710677, %v7751_v42  ;;  %v596_v50 = vadd.f32 0.112945676, %v595_v43  ;;  %v621_v52 = vadd.f32 0.00028619796, %v620_v44 }
 0x32c   :  { %v534_v51 = vpop.f32.mrf.mxu0  ;;  %v632_v53 = vadd.f32 0.001143296, %v631_v47  ;;  %v585_v57 = vadd.f32 0.05243302, %v584_v45 }
 0x32d   :  { %v658_v54 = vmul.f32 %v7760_v49, %v7760_v49  ;;  %v548_v55 = vmul.f32 %v543_v48, %v534_v51  ;;  %v597_v56 = vmul.f32 %v596_v50, %v7725_v15  ;;  %v622_v58 = vmul.f32 %v621_v52, %v7746_v38 }
 0x32e   :  { %v633_v25 = vmul.f32 %v632_v53, %v7746_v38  ;;  %v586_v6 = vmul.f32 %v585_v57, %v7725_v15 }
 0x32f   :  { %v7767_v59 = vmin.f32 %v658_v54, 16.0  ;;  %v557_v60 = vmul.f32 %v7709_v2, %v548_v55  ;;  %v598_v61 = vadd.f32 0.4994258, %v597_v56  ;;  %v623_v63 = vadd.f32 0.0036580483, %v622_v58 }
 0x330   :  { %v634_v0 = vadd.f32 0.014752088, %v633_v25  ;;  %v587_v23 = vadd.f32 0.18741608, %v586_v6 }
 0x331   :  { %v7771_v1 = vadd.f32 %v7712_v5, %v557_v60  ;;  %v599_v3 = vmul.f32 %v598_v61, %v7725_v15  ;;  %v660_v4 = vmul.f32 2.1237322e-06, %v7767_v59  ;;  %v624_v8 = vmul.f32 %v623_v63, %v7746_v38 }
 0x332   :  { %v635_v10 = vmul.f32 %v634_v0, %v7746_v38  ;;  %v671_v18 = vmul.f32 3.8918573e-05, %v7767_v59 }
 0x333   :  { %v7780_v12 = vmul.f32 0.70710677, %v7771_v1  ;;  %v600_v13 = vadd.f32 1.0, %v599_v3  ;;  %v661_v17 = vadd.f32 0.00028619796, %v660_v4 }
 0x334   :  { %v537_v14 = vpop.f32.mrf.mxu0  ;;  %v636_v16 = vadd.f32 0.112945676, %v635_v10  ;;  %v625_v24 = vadd.f32 0.05243302, %v624_v8  ;;  %v672_v31 = vadd.f32 0.001143296, %v671_v18 }
 0x335   :  { %v698_v19 = vmul.f32 %v7780_v12, %v7780_v12  ;;  %v549_v21 = vmul.f32 %v544_v11, %v537_v14  ;;  %7074 = vrcp.f32 %v600_v13  ;;  %v662_v30 = vmul.f32 %v661_v17, %v7767_v59 }
 0x336   :  { %v637_v29 = vmul.f32 %v636_v16, %v7746_v38  ;;  %v626_v35 = vmul.f32 %v625_v24, %v7746_v38  ;;  %v673_v22 = vmul.f32 %v672_v31, %v7767_v59  ;;  %v610_v46 = vand.u32 2147483647, %v600_v13 }
 0x337   :  { %v7785_v26 = vmin.f32 %v698_v19, 16.0  ;;  %v558_v28 = vmul.f32 %v7709_v2, %v549_v21  ;;  %v588_v2 = vmul.f32 %v587_v23, %v7725_v15  ;;  %v663_v41 = vadd.f32 0.0036580483, %v662_v30 }
 0x338   :  { %v638_v33 = vadd.f32 0.4994258, %v637_v29  ;;  %v674_v43 = vadd.f32 0.014752088, %v673_v22  ;;  %v612_v47 = vand.u32 2147483648, %v600_v13  ;;  %vm606_vm10 = vweird.f32 %v600_v13 }
 0x339   :  { %v7791_v32 = vadd.f32 %v7712_v5, %v558_v28  ;;  %v700_v34 = vmul.f32 2.1237322e-06, %v7785_v26  ;;  %v711_v36 = vmul.f32 3.8918573e-05, %v7785_v26  ;;  %v627_v51 = vadd.f32 0.18741608, %v626_v35 }
 0x33a   :  { %v639_v40 = vmul.f32 %v638_v33, %v7746_v38  ;;  %v675_v15 = vmul.f32 %v674_v43, %v7767_v59  ;;  %v589_v53 = vadd.f32 1.1283791, %v588_v2  ;;  %v664_v55 = vmul.f32 %v663_v41, %v7767_v59 }
 0x33b   :  { %v7075_v37 = vpop.eup %7074  ;;  %v7799_v39 = vmul.f32 0.70710677, %v7791_v32  ;;  %v701_v44 = vadd.f32 0.00028619796, %v700_v34  ;;  %v712_v52 = vadd.f32 0.001143296, %v711_v36  ;;  %v628_v63 = vmul.f32 %v627_v51, %v7746_v38 }
 0x33c   :  { %v602_v5 = vmul.f32 %v7075_v37, %v600_v13  ;;  %v7804_v48 = vadd.f32 1.0, %v639_v40  ;;  %vm607_vm9 = vweird.f32 %v7075_v37  ;;  %v676_v57 = vadd.f32 0.112945676, %v675_v15 }
 0x33d   :  { %v738_v45 = vmul.f32 %v7799_v39, %v7799_v39  ;;  %v702_v58 = vmul.f32 %v701_v44, %v7785_v26  ;;  %vm7812_vm11 = vcmp.eq.f32.partialorder %v610_v46, 8.507059e+37  ;;  %v713_v60 = vmul.f32 %v712_v52, %v7785_v26  ;;  %vm608_vm12 = vmor %vm606_vm10, %vm607_vm9 }
 0x33e   :  { %v603_v50 = vsub.f32 1.0, %v602_v5  ;;  %7076 = vrcp.f32 %v7804_v48  ;;  %v613_v62 = vor.u32 1.1754944e-38, %v612_v47  ;;  %v677_v0 = vmul.f32 %v676_v57, %v7767_v59 }
 0x33f   :  { %v7807_v54 = vmin.f32 %v738_v45, 16.0  ;;  %v590_v3 = vmul.f32 %v589_v53, %v7720_v9  ;;  %v665_v4 = vadd.f32 0.05243302, %v664_v55  ;;  %v714_v6 = vadd.f32 0.014752088, %v713_v60 }
 0x340   :  { %v604_v56 = vmul.f32 %v7075_v37, %v603_v50  ;;  %v678_v11 = vadd.f32 0.4994258, %v677_v0  ;;  %v703_v13 = vadd.f32 0.0036580483, %v702_v58  ;;  %v568_v19 = vmul.f32 0.5, %v7716_v7 }
 0x341   :  { %v740_v8 = vmul.f32 2.1237322e-06, %v7807_v54  ;;  %v751_v14 = vmul.f32 3.8918573e-05, %v7807_v54  ;;  %v715_v38 = vmul.f32 %v714_v6, %v7785_v26  ;;  %v629_v21 = vadd.f32 1.1283791, %v628_v63 }
 0x342   :  { %v605_v61 = vadd.f32 %v7075_v37, %v604_v56  ;;  %v650_v24 = vand.u32 2147483647, %v7804_v48  ;;  %v666_v28 = vmul.f32 %v665_v4, %v7767_v59  ;;  %v679_v29 = vmul.f32 %v678_v11, %v7767_v59 }
 0x343   :  { %v741_v18 = vadd.f32 0.00028619796, %v740_v8  ;;  %v716_v30 = vadd.f32 0.112945676, %v715_v38  ;;  %v704_v34 = vmul.f32 %v703_v13, %v7785_v26  ;;  %v752_v35 = vadd.f32 0.001143296, %v751_v14 }
 0x344   :  { %v609_v10 = vsel %vm608_vm12, %v7075_v37, %v605_v61  ;;  %v7077_v16 = vpop.eup %7076  ;;  %v652_v22 = vand.u32 2147483648, %v7804_v48  ;;  %v680_v36 = vadd.f32 1.0, %v679_v29  ;;  %vm646_vm14 = vweird.f32 %v7804_v48 }
 0x345   :  { %v614_v17 = vsel %vm7812_vm11, %v613_v62, %v609_v10  ;;  %v642_v23 = vmul.f32 %v7077_v16, %v7804_v48  ;;  %v717_v7 = vmul.f32 %v716_v30, %v7785_v26  ;;  %v742_v37 = vmul.f32 %v741_v18, %v7807_v54 }
 0x346   :  { %v615_v9 = vmul.f32 %v614_v17, %v590_v3  ;;  %vm647_vm13 = vweird.f32 %v7077_v16  ;;  %v753_v41 = vmul.f32 %v752_v35, %v7807_v54  ;;  %v667_v5 = vadd.f32 0.18741608, %v666_v28 }
 0x347   :  { %v643_v33 = vsub.f32 1.0, %v642_v23  ;;  %7078 = vrcp.f32 %v680_v36  ;;  %v705_v45 = vadd.f32 0.05243302, %v704_v34  ;;  %v718_v46 = vadd.f32 0.4994258, %v717_v7  ;;  %vm648_vm15 = vmor %vm646_vm14, %vm647_vm13 }
 0x348   :  { %v6365_v31 = vclamps-f32 %v615_v9, 1.0  ;;  %v653_v47 = vor.u32 1.1754944e-38, %v652_v22  ;;  %v743_v50 = vadd.f32 0.0036580483, %v742_v37  ;;  %v754_v51 = vadd.f32 0.014752088, %v753_v41 }
 0x349   :  { %v644_v40 = vmul.f32 %v7077_v16, %v643_v33  ;;  %v630_v15 = vmul.f32 %v629_v21, %v7738_v27  ;;  %vm651_vm1 = vcmp.eq.f32.partialorder %v650_v24, 8.507059e+37  ;;  %v719_v53 = vmul.f32 %v718_v46, %v7785_v26 }
 0x34a   :  { %v778_v2 = vadd.f32 1.0, %v6365_v31  ;;  %v668_v48 = vmul.f32 %v667_v5, %v7767_v59  ;;  %v755_v56 = vmul.f32 %v754_v51, %v7807_v54  ;;  %v706_v58 = vmul.f32 %v705_v45, %v7785_v26 }
 0x34b   :  { %v645_v44 = vadd.f32 %v7077_v16, %v644_v40  ;;  %v720_v25 = vadd.f32 1.0, %v719_v53  ;;  %v744_v61 = vmul.f32 %v743_v50, %v7807_v54  ;;  %v569_v27 = vmul.f32 0.5, %v7732_v20 }
 0x34c   :  { %v783_v43 = vmul.f32 %v778_v2, %v568_v19  ;;  %v756_v62 = vadd.f32 0.112945676, %v755_v56  ;;  %v669_v3 = vadd.f32 1.1283791, %v668_v48  ;;  %v707_v8 = vadd.f32 0.18741608, %v706_v58 }
 0x34d   :  { %v649_v52 = vsel %vm648_vm15, %v7077_v16, %v645_v44  ;;  %v7079_v60 = vpop.eup %7078  ;;  %7080 = vrcp.f32 %v720_v25  ;;  %v690_v10 = vand.u32 2147483647, %v680_v36  ;;  %v692_v11 = vand.u32 2147483648, %v680_v36 }
 0x34e   :  { %6370 = vmatmul.msk.f32.vlgmr.msrb.gmra.mxu1 %vm239_vm2, %v783_v43  ;;  %v654_v55 = vsel %vm651_vm1, %v653_v47, %v649_v52  ;;  %v682_v0 = vmul.f32 %v7079_v60, %v680_v36  ;;  %v757_v59 = vmul.f32 %v756_v62, %v7807_v54  ;;  %v745_v13 = vadd.f32 0.05243302, %v744_v61 }
 0x34f   :  { %v655_v57 = vmul.f32 %v654_v55, %v630_v15  ;;  %vm687_vm4 = vweird.f32 %v7079_v60  ;;  %vm686_vm5 = vweird.f32 %v680_v36  ;;  %v670_v19 = vmul.f32 %v669_v3, %v7760_v49 }
 0x350   :  { %v683_v6 = vsub.f32 1.0, %v682_v0  ;;  %v758_v17 = vadd.f32 0.4994258, %v757_v59  ;;  %vm688_vm6 = vmor %vm686_vm5, %vm687_vm4  ;;  %v693_v9 = vor.u32 1.1754944e-38, %v692_v11  ;;  %v708_v21 = vmul.f32 %v707_v8, %v7785_v26 }
 0x351   :  { %v6366_v63 = vclamps-f32 %v655_v57, 1.0  ;;  %vm691_vm7 = vcmp.eq.f32.partialorder %v690_v10, 8.507059e+37  ;;  %v746_v28 = vmul.f32 %v745_v13, %v7807_v54  ;;  %v732_v34 = vand.u32 2147483648, %v720_v25  ;;  %v848_v10 = vld [vmem:[%s7484_s24 + $0x8] sm:$0xff] }
 0x352   :  { %v684_v16 = vmul.f32 %v7079_v60, %v683_v6  ;;  %v759_v20 = vmul.f32 %v758_v17, %v7807_v54  ;;  %v709_v35 = vadd.f32 1.1283791, %v708_v21  ;;  %v730_v36 = vand.u32 2147483647, %v720_v25 }
 0x353   :  { %v779_v4 = vadd.f32 1.0, %v6366_v63  ;;  %v7081_v38 = vpop.eup %7080  ;;  %v747_v7 = vadd.f32 0.18741608, %v746_v28  ;;  %vm726_vm9 = vweird.f32 %v720_v25  ;;  %v570_v26 = vmul.f32 0.5, %v7751_v42  ;;  %v851_v28 = vld [vmem:[%s7484_s24 + $0x20] sm:$0x3] }
 0x354   :  { %v685_v18 = vadd.f32 %v7079_v60, %v684_v16  ;;  %v722_v23 = vmul.f32 %v7081_v38, %v720_v25  ;;  %v760_v29 = vadd.f32 1.0, %v759_v20  ;;  %vm727_vm8 = vweird.f32 %v7081_v38  ;;  %v849_v16 = vld [vmem:[%s7484_s24 + $0x10] sm:$0xff] }
 0x355   :  { %v784_v14 = vmul.f32 %v779_v4, %v569_v27  ;;  %vm728_vm10 = vmor %vm726_vm9, %vm727_vm8  ;;  %v733_v40 = vor.u32 1.1754944e-38, %v732_v34  ;;  %v710_v41 = vmul.f32 %v709_v35, %v7780_v12  ;;  %vm731_vm11 = vcmp.eq.f32.partialorder %v730_v36, 8.507059e+37  ;;  %v7046_v27 = vld [vmem:[%s7479_s19] ss:$0 sm:$0xff]  ;;  %s10504_s19 = sld [smem:[#allocation15_spill]] }
 0x356   :  { %v689_v24 = vsel %vm688_vm6, %v7079_v60, %v685_v18  ;;  %v723_v31 = vsub.f32 1.0, %v722_v23  ;;  %7082 = vrcp.f32 %v760_v29  ;;  %v748_v46 = vmul.f32 %v747_v7, %v7807_v54  ;;  %v847_v4 = vld [vmem:[%s7484_s24] sm:$0xff] }
 0x357   :  { %6371 = vmatmul.msk.f32.gmra.mxu1 %vm239_vm2, %v784_v14  ;;  %v694_v30 = vsel %vm691_vm7, %v693_v9, %v689_v24  ;;  %v571_v42 = vmul.f32 0.5, %v7771_v1  ;;  %v772_v53 = vand.u32 2147483648, %v760_v29  ;;  %v770_v12 = vand.u32 2147483647, %v760_v29 }
 0x358   :  { %v695_v33 = vmul.f32 %v694_v30, %v670_v19  ;;  %v724_v22 = vmul.f32 %v7081_v38, %v723_v31  ;;  %v749_v52 = vadd.f32 1.1283791, %v748_v46  ;;  %vm766_vm13 = vweird.f32 %v760_v29  ;;  %v850_v19 = vld [vmem:[%s7484_s24 + $0x18] sm:$0xff]  ;;  %s10505_s24 = sld [smem:[#allocation6_spill]] }
 0x359   :  { %v773_v54 = vor.u32 1.1754944e-38, %v772_v53  ;;  %vm771_vm15 = vcmp.eq.f32.partialorder %v770_v12, 8.507059e+37  ;;  %v572_v62 = vmul.f32 0.5, %v7791_v32  ;;  %vm876_vm1 = vcmask 517120  }
 0x35a   :  { %v6367_v49 = vclamps-f32 %v695_v33, 1.0  ;;  %v725_v37 = vadd.f32 %v7081_v38, %v724_v22  ;;  %v750_v58 = vmul.f32 %v749_v52, %v7799_v39  ;;  %v7416_v33 = vmov 64.0  }
 0x35b   :  { %7084 = vrcp.f32 %v7416_v33 }
 0x35c   :  { %v780_v2 = vadd.f32 1.0, %v6367_v49  ;;  %v729_v5 = vsel %vm728_vm10, %v7081_v38, %v725_v37  ;;  %v7083_v43 = vpop.eup %7082 }
 0x35d   :  { %v734_v45 = vsel %vm731_vm11, %v733_v40, %v729_v5  ;;  %v762_v50 = vmul.f32 %v7083_v43, %v760_v29  ;;  %vm767_vm12 = vweird.f32 %v7083_v43 }
 0x35e   :  { %v785_v44 = vmul.f32 %v780_v2, %v570_v26  ;;  %v735_v47 = vmul.f32 %v734_v45, %v710_v41  ;;  %vm768_vm14 = vmor %vm766_vm13, %vm767_vm12 }
 0x35f   :  { %v763_v15 = vsub.f32 1.0, %v762_v50 }
 0x360   :  { %6372 = vmatmul.msk.f32.gmra.mxu1 %vm239_vm2, %v785_v44  ;;  %v6368_v51 = vclamps-f32 %v735_v47, 1.0 }
 0x361   :  { %v764_v48 = vmul.f32 %v7083_v43, %v763_v15  ;;  %v7085_v34 = vpop.eup %7084 }
 0x362   :  { %v781_v55 = vadd.f32 1.0, %v6368_v51  ;;  %v881_v35 = vmul.f32 64.0, %v7085_v34  ;;  %vm885_vm4 = vweird.f32 %v7085_v34 }
 0x363   :  { %v765_v57 = vadd.f32 %v7083_v43, %v764_v48 }
 0x364   :  { %v786_v56 = vmul.f32 %v781_v55, %v571_v42  ;;  %v882_v22 = vsub.f32 1.0, %v881_v35 }
 0x365   :  { %v769_v25 = vsel %vm768_vm14, %v7083_v43, %v765_v57 }
 0x366   :  { %v774_v1 = vsel %vm771_vm15, %v773_v54, %v769_v25  ;;  %v883_v36 = vmul.f32 %v7085_v34, %v882_v22 }
 0x367   :  { %v775_v60 = vmul.f32 %v774_v1, %v750_v58  ;;  %v1064_v1 = vld [vmem:[%s7514_s4 + $0x38] sm:$0xff] }
 0x368   :  { %6373 = vmatmul.msk.f32.gmra.mxu1 %vm239_vm2, %v786_v56  ;;  %v884_v49 = vadd.f32 %v7085_v34, %v883_v36  ;;  %1077 = vmatpush.msra.mxu2 %v1064_v1 }
 0x369   :  { %v6369_v61 = vclamps-f32 %v775_v60, 1.0  ;;  %v1005_v60 = vld [vmem:[%s7509_s27 + $0x38] sm:$0xff] }
 0x36a   :  { %v7885_v7 = vsel %vm885_vm4, %v7085_v34, %v884_v49  ;;  %1033 = vmatpush.msrb.mxu3 %v1005_v60 }
 0x36b   :  { %v782_v63 = vadd.f32 1.0, %v6369_v61  ;;  %v1108_v61 = vld [vmem:[%s10496_s0 + $0x38] sm:$0xff] }
 0x36c   :  { %1121 = vmatpush.msrb.mxu0 %v1108_v61 }
 0x36d   :  { %v787_v0 = vmul.f32 %v782_v63, %v572_v62  ;;  %v1063_v62 = vld [vmem:[%s7514_s4 + $0x30] sm:$0xff] }
 0x36e   :  { %v1004_v63 = vld [vmem:[%s7509_s27 + $0x30] sm:$0xff]  ;;  %1078 = vmatpush.msra.mxu2 %v1063_v62 }
 0x36f   :  { %1034 = vmatpush.msrb.mxu3 %v1004_v63 }
 0x370   :  { %6374 = vmatmul.msk.f32.gmra.mxu1 %vm239_vm2, %v787_v0  ;;  %v1107_v0 = vld [vmem:[%s10496_s0 + $0x30] sm:$0xff] }
 0x371   :  { %1122 = vmatpush.msrb.mxu0 %v1107_v0 }
 0x3cb   :  { %v832_v3 = vpop.f32.mrf.mxu1 }
 0x3cc   :  { %v833_v6 = vadd.f32 %v7046_v27, %v832_v3  ;;  %v1062_v3 = vld [vmem:[%s7514_s4 + $0x28] sm:$0xff] }
 0x3cd   :  { %1079 = vmatpush.msra.mxu2 %v1062_v3 }
 0x3ce   :  { %v7861_v39 = vadd.f32 %v847_v4, %v833_v6  ;;  %v1106_v4 = vld [vmem:[%s10496_s0 + $0x28] sm:$0xff]  ;;  %v1002_v6 = vld [vmem:[%s7509_s27 + $0x20] sm:$0xff] }
 0x3cf   :  { %1123 = vmatpush.msrb.mxu0 %v1106_v4 }
 0x3d0   :  { %v864_v8 = vsel %vm239_vm2, %v7861_v39, 0.0 }
 0x3d1   :  { %865 = vadd.xlane.f32.xlu0 %v864_v8  ;;  %v1061_v8 = vld [vmem:[%s7514_s4 + $0x20] sm:$0xff] }
 0x3d2   :  { %1080 = vmatpush.msra.mxu2 %v1061_v8 }
 0x3d4   :  { %v835_v59 = vpop.f32.mrf.mxu1 }
 0x3d5   :  { %v836_v11 = vadd.f32 %v7046_v27, %v835_v59  ;;  %v1105_v59 = vld [vmem:[%s10496_s0 + $0x20] sm:$0xff] }
 0x3d6   :  { %1124 = vmatpush.msrb.mxu0 %v1105_v59 }
 0x3d7   :  { %v7866_v32 = vadd.f32 %v848_v10, %v836_v11  ;;  %v1001_v10 = vld [vmem:[%s7509_s27 + $0x18] sm:$0xff] }
 0x3d8   :  { %v1060_v11 = vld [vmem:[%s7514_s4 + $0x18] sm:$0xff] }
 0x3d9   :  { %v867_v13 = vsel %vm239_vm2, %v7866_v32, 0.0  ;;  %1081 = vmatpush.msra.mxu2 %v1060_v11 }
 0x3da   :  { %868 = vadd.xlane.f32.xlu0 %v867_v13  ;;  %v1104_v13 = vld [vmem:[%s10496_s0 + $0x18] sm:$0xff] }
 0x3db   :  { %1125 = vmatpush.msrb.mxu0 %v1104_v13 }
 0x3dd   :  { %v838_v14 = vpop.f32.mrf.mxu1 }
 0x3de   :  { %v839_v17 = vadd.f32 %v7046_v27, %v838_v14  ;;  %v1000_v14 = vld [vmem:[%s7509_s27 + $0x10] sm:$0xff] }
 0x3e0   :  { %v7871_v38 = vadd.f32 %v849_v16, %v839_v17  ;;  %v1059_v16 = vld [vmem:[%s7514_s4 + $0x10] sm:$0xff] }
 0x3e1   :  { %v1103_v17 = vld [vmem:[%s10496_s0 + $0x10] sm:$0xff]  ;;  %1082 = vmatpush.msra.mxu2 %v1059_v16 }
 0x3e2   :  { %v870_v18 = vsel %vm239_vm2, %v7871_v38, 0.0  ;;  %1126 = vmatpush.msrb.mxu0 %v1103_v17 }
 0x3e3   :  { %871 = vadd.xlane.f32.xlu1 %v870_v18 }
 0x3e5   :  { %v841_v20 = vpop.f32.mrf.mxu1 }
 0x3e6   :  { %v842_v9 = vadd.f32 %v7046_v27, %v841_v20 }
 0x3e8   :  { %v7876_v21 = vadd.f32 %v850_v19, %v842_v9  ;;  %v999_v19 = vld [vmem:[%s7509_s27 + $0x8] sm:$0xff] }
 0x3e9   :  { %v1058_v9 = vld [vmem:[%s7514_s4 + $0x8] sm:$0xff] }
 0x3ea   :  { %v873_v23 = vsel %vm239_vm2, %v7876_v21, 0.0  ;;  %1083 = vmatpush.msra.mxu2 %v1058_v9 }
 0x3eb   :  { %874 = vadd.xlane.f32.xlu1 %v873_v23  ;;  %v1102_v23 = vld [vmem:[%s10496_s0 + $0x8] sm:$0xff] }
 0x3ec   :  { %1127 = vmatpush.msrb.mxu0 %v1102_v23 }
 0x3ed   :  { %v844_v24 = vpop.f32.mrf.mxu1 }
 0x3ee   :  { %v845_v29 = vadd.f32 %v7046_v27, %v844_v24  ;;  %v1003_v27 = vld [vmem:[%s7509_s27 + $0x28] sm:$0xff] }
 0x3ef   :  { %1035 = vmatpush.msrb.mxu3 %v1003_v27 }
 0x3f0   :  { %v7881_v30 = vadd.f32 %v851_v28, %v845_v29  ;;  %v998_v28 = vld [vmem:[%s7509_s27] sm:$0xff] }
 0x3f1   :  { %1036 = vmatpush.msrb.mxu3 %v1002_v6  ;;  %v1057_v29 = vld [vmem:[%s7514_s4] sm:$0xff] }
 0x3f2   :  { %v877_v31 = vsel %vm876_vm1, %v7881_v30, 0.0  ;;  %1084 = vmatpush.msra.mxu2 %v1057_v29 }
 0x3f3   :  { %878 = vadd.xlane.f32.xlu2 %v877_v31  ;;  %1037 = vmatpush.msrb.mxu3 %v1001_v10  ;;  %v1101_v31 = vld [vmem:[%s10496_s0] sm:$0xff] }
 0x3f4   :  { %1128 = vmatpush.msrb.mxu0 %v1101_v31 }
 0x3f5   :  { %1038 = vmatpush.msrb.mxu3 %v1000_v14 }
 0x3f7   :  { %1039 = vmatpush.msrb.mxu3 %v999_v19 }
 0x3f9   :  { %1040 = vmatpush.msrb.mxu3 %v998_v28 }
 0x444   :  { %v866_v37 = vpop.xlane.xlu0 %865 }
 0x445   :  { %v887_v26 = vmul.f32 %v7885_v7, %v866_v37 }
 0x447   :  { %v7889_v2 = vsub.f32 %v7861_v39, %v887_v26 }
 0x449   :  { %v897_v40 = vmul.f32 %v7889_v2, %v7889_v2 }
 0x44b   :  { %v902_v41 = vsel %vm239_vm2, %v897_v40, 0.0 }
 0x44c   :  { %903 = vadd.xlane.f32.xlu2 %v902_v41 }
 0x44d   :  { %v869_v5 = vpop.xlane.xlu0 %868 }
 0x44e   :  { %v888_v43 = vmul.f32 %v7885_v7, %v869_v5  ;;  %v7949_v5 = vld [vmem:[%s10497_s5] ss:$0 sm:$0xff] }
 0x450   :  { %v7896_v44 = vsub.f32 %v7866_v32, %v888_v43 }
 0x452   :  { %v898_v45 = vmul.f32 %v7896_v44, %v7896_v44 }
 0x454   :  { %v905_v46 = vsel %vm239_vm2, %v898_v45, 0.0 }
 0x455   :  { %906 = vadd.xlane.f32.xlu0 %v905_v46 }
 0x456   :  { %v872_v47 = vpop.xlane.xlu1 %871 }
 0x457   :  { %v889_v50 = vmul.f32 %v7885_v7, %v872_v47 }
 0x459   :  { %v7903_v51 = vsub.f32 %v7871_v38, %v889_v50 }
 0x45b   :  { %v899_v15 = vmul.f32 %v7903_v51, %v7903_v51 }
 0x45d   :  { %v908_v42 = vsel %vm239_vm2, %v899_v15, 0.0  ;;  %v7954_v15 = vld [vmem:[%s10498_s9] ss:$0 sm:$0xff] }
 0x45e   :  { %909 = vadd.xlane.f32.xlu1 %v908_v42  ;;  %v875_v52 = vpop.xlane.xlu1 %874 }
 0x45f   :  { %v890_v53 = vmul.f32 %v7885_v7, %v875_v52 }
 0x461   :  { %v7910_v55 = vsub.f32 %v7876_v21, %v890_v53 }
 0x463   :  { %v900_v48 = vmul.f32 %v7910_v55, %v7910_v55 }
 0x465   :  { %v911_v12 = vsel %vm239_vm2, %v900_v48, 0.0 }
 0x466   :  { %912 = vadd.xlane.f32.xlu2 %v911_v12  ;;  %v879_v56 = vpop.xlane.xlu2 %878 }
 0x467   :  { %v891_v57 = vmul.f32 %v7885_v7, %v879_v56 }
 0x469   :  { %v7917_v54 = vsub.f32 %v7881_v30, %v891_v57 }
 0x46b   :  { %v901_v58 = vmul.f32 %v7917_v54, %v7917_v54 }
 0x46d   :  { %v914_v25 = vsel %vm876_vm1, %v901_v58, 0.0 }
 0x46e   :  { %915 = vadd.xlane.f32.xlu0 %v914_v25 }
 0x4bf   :  { %v904_v18 = vpop.xlane.xlu2 %903 }
 0x4c0   :  { %v917_v20 = vmul.f32 %v904_v18, %v7885_v7 }
 0x4c2   :  { %v922_v24 = vadd.f32 1e-05, %v917_v20 }
 0x4c4   :  { %7086 = vrsqrt.f32 %v922_v24  ;;  %vm933_vm6 = vweird.f32 %v922_v24 }
 0x4c8   :  { %v907_v33 = vpop.xlane.xlu0 %906 }
 0x4c9   :  { %v918_v35 = vmul.f32 %v907_v33, %v7885_v7 }
 0x4ca   :  { %v7087_v34 = vpop.eup %7086 }
 0x4cb   :  { %v928_v22 = vmul.f32 %v7087_v34, %v922_v24  ;;  %v923_v36 = vadd.f32 1e-05, %v918_v35  ;;  %vm934_vm5 = vweird.f32 %v7087_v34 }
 0x4cc   :  { %vm935_vm7 = vmor %vm933_vm6, %vm934_vm5 }
 0x4cd   :  { %v929_v49 = vmul.f32 %v7087_v34, %v928_v22  ;;  %7088 = vrsqrt.f32 %v923_v36  ;;  %vm943_vm9 = vweird.f32 %v923_v36 }
 0x4cf   :  { %v930_v37 = vmul.f32 0.5, %v929_v49 }
 0x4d1   :  { %v931_v26 = vsub.f32 1.5, %v930_v37  ;;  %v910_v46 = vpop.xlane.xlu1 %909 }
 0x4d2   :  { %v919_v50 = vmul.f32 %v910_v46, %v7885_v7  ;;  %v7049_v46 = vld [vmem:[%s10501_s21] ss:$0 sm:$0xff] }
 0x4d3   :  { %v932_v40 = vmul.f32 %v7087_v34, %v931_v26  ;;  %v7089_v41 = vpop.eup %7088 }
 0x4d4   :  { %v938_v45 = vmul.f32 %v7089_v41, %v923_v36  ;;  %v924_v52 = vadd.f32 1e-05, %v919_v50  ;;  %vm944_vm8 = vweird.f32 %v7089_v41 }
 0x4d5   :  { %v936_v43 = vsel %vm935_vm7, %v7087_v34, %v932_v40  ;;  %vm945_vm10 = vmor %vm943_vm9, %vm944_vm8  ;;  %v7050_v40 = vld [vmem:[%s10499_s13] ss:$0 sm:$0xff]  ;;  %vm1145_vm8 = vcmask 130048   ;;  %vm1235_vm9 = vcmask 271360  }
 0x4d6   :  { %v977_v47 = vmul.f32 %v936_v43, %v7889_v2  ;;  %v939_v42 = vmul.f32 %v7089_v41, %v938_v45  ;;  %7090 = vrsqrt.f32 %v924_v52  ;;  %vm953_vm12 = vweird.f32 %v924_v52 }
 0x4d8   :  { %v985_v53 = vmul.f32 %v7949_v5, %v977_v47  ;;  %v940_v48 = vmul.f32 0.5, %v939_v42 }
 0x4d9   :  { %v913_v57 = vpop.xlane.xlu2 %912 }
 0x4da   :  { %v7958_v12 = vadd.f32 %v7954_v15, %v985_v53  ;;  %v941_v56 = vsub.f32 1.5, %v940_v48  ;;  %v920_v58 = vmul.f32 %v913_v57, %v7885_v7 }
 0x4dc   :  { %6375 = vmatmul.msk.f32.vlgmr.msrb.gmra.mxu3 %vm239_vm2, %v7958_v12  ;;  %6380 = vmatmul.msk.f32.vlgmr.msra.gmra.mxu2 %vm239_vm2, %v7958_v12  ;;  %v942_v2 = vmul.f32 %v7089_v41, %v941_v56  ;;  %v7091_v1 = vpop.eup %7090  ;;  %v925_v61 = vadd.f32 1e-05, %v920_v58 }
 0x4dd   :  { %6385 = vmatmul.msk.f32.vlgmr.msrb.gmra.mxu0 %vm239_vm2, %v7958_v12  ;;  %v948_v62 = vmul.f32 %v7091_v1, %v924_v52  ;;  %vm954_vm11 = vweird.f32 %v7091_v1 }
 0x4de   :  { %v946_v25 = vsel %vm945_vm10, %v7089_v41, %v942_v2  ;;  %7092 = vrsqrt.f32 %v925_v61  ;;  %vm955_vm13 = vmor %vm953_vm12, %vm954_vm11  ;;  %vm963_vm15 = vweird.f32 %v925_v61  ;;  %v7051_v41 = vld [vmem:[%s10500_s17] ss:$0 sm:$0xff] }
 0x4df   :  { %v978_v60 = vmul.f32 %v946_v25, %v7896_v44  ;;  %v949_v0 = vmul.f32 %v7091_v1, %v948_v62 }
 0x4e1   :  { %v986_v63 = vmul.f32 %v7949_v5, %v978_v60  ;;  %v950_v3 = vmul.f32 0.5, %v949_v0  ;;  %v916_v4 = vpop.xlane.xlu0 %915 }
 0x4e2   :  { %v921_v44 = vmul.f32 %v916_v4, %v7885_v7 }
 0x4e3   :  { %v7970_v27 = vadd.f32 %v7954_v15, %v986_v63  ;;  %v951_v6 = vsub.f32 1.5, %v950_v3 }
 0x4e4   :  { %v7093_v8 = vpop.eup %7092  ;;  %v926_v11 = vadd.f32 1e-05, %v921_v44 }
 0x4e5   :  { %6376 = vmatmul.msk.f32.gmra.mxu3 %vm239_vm2, %v7970_v27  ;;  %6381 = vmatmul.msk.f32.gmra.mxu2 %vm239_vm2, %v7970_v27  ;;  %v952_v59 = vmul.f32 %v7091_v1, %v951_v6  ;;  %v958_v10 = vmul.f32 %v7093_v8, %v925_v61  ;;  %vm964_vm14 = vweird.f32 %v7093_v8 }
 0x4e6   :  { %6386 = vmatmul.msk.f32.gmra.mxu0 %vm239_vm2, %v7970_v27  ;;  %7094 = vrsqrt.f32 %v926_v11  ;;  %vm965_vm4 = vmor %vm963_vm15, %vm964_vm14  ;;  %vm973_vm6 = vweird.f32 %v926_v11 }
 0x4e7   :  { %v956_v13 = vsel %vm955_vm13, %v7091_v1, %v952_v59  ;;  %v959_v14 = vmul.f32 %v7093_v8, %v958_v10 }
 0x4e8   :  { %v979_v16 = vmul.f32 %v956_v13, %v7903_v51 }
 0x4e9   :  { %v960_v17 = vmul.f32 0.5, %v959_v14 }
 0x4ea   :  { %v987_v18 = vmul.f32 %v7949_v5, %v979_v16 }
 0x4eb   :  { %v961_v20 = vsub.f32 1.5, %v960_v17 }
 0x4ec   :  { %v7982_v19 = vadd.f32 %v7954_v15, %v987_v18  ;;  %v7095_v9 = vpop.eup %7094 }
 0x4ed   :  { %v962_v23 = vmul.f32 %v7093_v8, %v961_v20  ;;  %v968_v24 = vmul.f32 %v7095_v9, %v926_v11  ;;  %vm974_vm5 = vweird.f32 %v7095_v9 }
 0x4ee   :  { %6377 = vmatmul.msk.f32.gmra.mxu3 %vm239_vm2, %v7982_v19  ;;  %6382 = vmatmul.msk.f32.gmra.mxu2 %vm239_vm2, %v7982_v19  ;;  %vm975_vm7 = vmor %vm973_vm6, %vm974_vm5 }
 0x4ef   :  { %v966_v51 = vsel %vm965_vm4, %v7093_v8, %v962_v23  ;;  %6387 = vmatmul.msk.f32.gmra.mxu0 %vm239_vm2, %v7982_v19  ;;  %v969_v29 = vmul.f32 %v7095_v9, %v968_v24 }
 0x4f0   :  { %v980_v28 = vmul.f32 %v966_v51, %v7910_v55 }
 0x4f1   :  { %v970_v31 = vmul.f32 0.5, %v969_v29 }
 0x4f2   :  { %v988_v33 = vmul.f32 %v7949_v5, %v980_v28 }
 0x4f3   :  { %v971_v34 = vsub.f32 1.5, %v970_v31 }
 0x4f4   :  { %v7993_v35 = vadd.f32 %v7954_v15, %v988_v33 }
 0x4f5   :  { %v972_v22 = vmul.f32 %v7095_v9, %v971_v34 }
 0x4f6   :  { %6378 = vmatmul.msk.f32.gmra.mxu3 %vm239_vm2, %v7993_v35  ;;  %6383 = vmatmul.msk.f32.gmra.mxu2 %vm239_vm2, %v7993_v35 }
 0x4f7   :  { %6388 = vmatmul.msk.f32.gmra.mxu0 %vm239_vm2, %v7993_v35  ;;  %v976_v55 = vsel %vm975_vm7, %v7095_v9, %v972_v22 }
 0x4f8   :  { %v981_v36 = vmul.f32 %v976_v55, %v7917_v54 }
 0x4fa   :  { %v989_v49 = vmul.f32 %v7949_v5, %v981_v36 }
 0x4fc   :  { %v8004_v37 = vadd.f32 %v7954_v15, %v989_v49 }
 0x4fe   :  { %6379 = vmatmul.msk.f32.gmra.mxu3 %vm239_vm2, %v8004_v37  ;;  %6384 = vmatmul.msk.f32.gmra.mxu2 %vm239_vm2, %v8004_v37 }
 0x4ff   :  { %6389 = vmatmul.msk.f32.gmra.mxu0 %vm239_vm2, %v8004_v37 }
 0x55a   :  { %v1130_v26 = vpop.f32.mrf.mxu0 }
 0x55b   :  { %v1131_v50 = vadd.f32 %v7049_v46, %v1130_v26  ;;  %v1213_v26 = vld [vmem:[%s10502_s3] sm:$0xff] }
 0x55f   :  { %v1042_v43 = vpop.f32.mrf.mxu3  ;;  %v1086_v45 = vpop.f32.mrf.mxu2 }
 0x560   :  { %v8014_v54 = vadd.f32 %v7050_v40, %v1042_v43  ;;  %v8016_v5 = vadd.f32 %v7051_v41, %v1086_v45 }
 0x562   :  { %1341 = vrot.lane.b32.xlu1 %v8016_v5, %s7417_s25  ;;  %1331 = vrot.lane.b32.xlu0 %v8014_v54, %s7417_s25 }
 0x563   :  { %v1133_v47 = vpop.f32.mrf.mxu0 }
 0x564   :  { %v1134_v15 = vadd.f32 %v7049_v46, %v1133_v47 }
 0x566   :  { %v8023_v42 = vpack.i.bf16 %v1131_v50, %v1134_v15 }
 0x568   :  { %v1089_v52 = vpop.f32.mrf.mxu2  ;;  %v1045_v48 = vpop.f32.mrf.mxu3 }
 0x569   :  { %v8025_v53 = vadd.f32 %v7051_v41, %v1089_v52  ;;  %v8033_v56 = vadd.f32 %v7050_v40, %v1045_v48  ;;  %v1215_v48 = vld [vmem:[%s10502_s3 + $0x10] sm:$0xff] }
 0x56a   :  { %1648 = vrot.lane.b32.xlu1 %v8016_v5, %s7418_s29  ;;  %1638 = vrot.lane.b32.xlu0 %v8014_v54, %s7418_s29 }
 0x56b   :  { %1343 = vrot.lane.b32.xlu2 %v8025_v53, %s7417_s25 }
 0x56c   :  { %v1136_v2 = vpop.f32.mrf.mxu0 }
 0x56d   :  { %v1137_v60 = vadd.f32 %v7049_v46, %v1136_v2 }
 0x571   :  { %v1048_v57 = vpop.f32.mrf.mxu3  ;;  %v1092_v58 = vpop.f32.mrf.mxu2 }
 0x572   :  { %1650 = vrot.lane.b32.xlu1 %v8025_v53, %s7418_s29  ;;  %1640 = vrot.lane.b32.xlu0 %v8033_v56, %s7418_s29  ;;  %v8041_v25 = vadd.f32 %v7051_v41, %v1092_v58  ;;  %v8051_v4 = vadd.f32 %v7050_v40, %v1048_v57 }
 0x573   :  { %1333 = vrot.lane.b32.xlu2 %v8033_v56, %s7417_s25 }
 0x574   :  { %v1139_v1 = vpop.f32.mrf.mxu0 }
 0x575   :  { %v1140_v61 = vadd.f32 %v7049_v46, %v1139_v1 }
 0x577   :  { %v8047_v62 = vpack.i.bf16 %v1137_v60, %v1140_v61 }
 0x579   :  { %v1051_v63 = vpop.f32.mrf.mxu3  ;;  %v1095_v0 = vpop.f32.mrf.mxu2 }
 0x57a   :  { %1652 = vrot.lane.b32.xlu1 %v8041_v25, %s7418_s29  ;;  %1345 = vrot.lane.b32.xlu0 %v8041_v25, %s7417_s25  ;;  %v8049_v3 = vadd.f32 %v7051_v41, %v1095_v0  ;;  %v8075_v13 = vadd.f32 %v7050_v40, %v1051_v63 }
 0x57c   :  { %1347 = vrot.lane.b32.xlu2 %v8049_v3, %s7417_s25  ;;  %v1142_v6 = vpop.f32.mrf.mxu0 }
 0x57d   :  { %v8055_v44 = vadd.f32 %v7049_v46, %v1142_v6  ;;  %v1214_v46 = vld [vmem:[%s10502_s3 + $0x8] sm:$0xff] }
 0x57f   :  { %6400 = vmatpush.msk.msra.mxu3 %vm188_vm0, %v8055_v44 }
 0x581   :  { %1309 = vmatpush.msra.mxu3 %v1140_v61  ;;  %v1054_v8 = vpop.f32.mrf.mxu3  ;;  %v1098_v59 = vpop.f32.mrf.mxu2  ;;  %v1216_v61 = vld [vmem:[%s10502_s3 + $0x18] sm:$0xff] }
 0x582   :  { %1335 = vrot.lane.b32.xlu0 %v8051_v4, %s7417_s25  ;;  %v8061_v10 = vadd.f32 %v7050_v40, %v1054_v8  ;;  %v8063_v11 = vadd.f32 %v7051_v41, %v1098_v59 }
 0x583   :  { %1310 = vmatpush.msra.mxu3 %v1137_v60 }
 0x584   :  { %1349 = vrot.lane.b32.xlu1 %v8063_v11, %s7417_s25  ;;  %6390 = vmatpush.xpose.msk.msra.mxu1 %vm1145_vm8, %v8063_v11 }
 0x585   :  { %1311 = vmatpush.msra.mxu3 %v1134_v15  ;;  %1339 = vrot.lane.b32.xlu2 %v8061_v10, %s7417_s25 }
 0x587   :  { %1312 = vmatpush.msra.mxu3 %v1131_v50 }
 0x588   :  { %6391 = vmatpush.xpose.msk.msra.mxu1 %vm1145_vm8, %v8049_v3 }
 0x58a   :  { %1642 = vrot.lane.b32.xlu0 %v8051_v4, %s7418_s29 }
 0x58c   :  { %6392 = vmatpush.xpose.msk.msra.mxu1 %vm1145_vm8, %v8041_v25 }
 0x590   :  { %6393 = vmatpush.xpose.msk.msra.mxu1 %vm1145_vm8, %v8025_v53 }
 0x592   :  { %1337 = vrot.lane.b32.xlu0 %v8075_v13, %s7417_s25 }
 0x594   :  { %6394 = vmatpush.xpose.msk.msra.mxu1 %vm1145_vm8, %v8016_v5 }
 0x597   :  { %6395 = vmatmul.msk.f32.vlgmr.msra.gmra.mxu1 %vm1145_vm8, %v8014_v54 }
 0x59a   :  { %1654 = vrot.lane.b32.xlu0 %v8049_v3, %s7418_s29 }
 0x59f   :  { %6396 = vmatmul.msk.f32.gmra.mxu1 %vm1145_vm8, %v8033_v56 }
 0x5a2   :  { %1656 = vrot.lane.b32.xlu0 %v8063_v11, %s7418_s29 }
 0x5a7   :  { %6397 = vmatmul.msk.f32.gmra.mxu1 %vm1145_vm8, %v8051_v4 }
 0x5af   :  { %6398 = vmatmul.msk.f32.gmra.mxu1 %vm1145_vm8, %v8075_v13 }
 0x5b7   :  { %6399 = vmatmul.msk.f32.gmra.mxu1 %vm1145_vm8, %v8061_v10 }
 0x5c5   :  { %v1344_v23 = vpop.permute.xlu2 %1343 }
 0x5cd   :  { %v1334_v28 = vpop.permute.xlu2 %1333 }
 0x5d4   :  { %v1342_v14 = vpop.permute.xlu1 %1341  ;;  %v1332_v16 = vpop.permute.xlu0 %1331 }
 0x5d6   :  { %v1348_v34 = vpop.permute.xlu2 %1347 }
 0x5dc   :  { %v1639_v17 = vpop.permute.xlu0 %1638  ;;  %v1649_v18 = vpop.permute.xlu1 %1648 }
 0x5df   :  { %v1340_v58 = vpop.permute.xlu2 %1339 }
 0x5e4   :  { %v1641_v20 = vpop.permute.xlu0 %1640  ;;  %v1651_v9 = vpop.permute.xlu1 %1650 }
 0x5ec   :  { %v1346_v24 = vpop.permute.xlu0 %1345  ;;  %v1653_v51 = vpop.permute.xlu1 %1652 }
 0x5f4   :  { %v1336_v29 = vpop.permute.xlu0 %1335 }
 0x5f6   :  { %v1350_v31 = vpop.permute.xlu1 %1349 }
 0x5f7   :  { %6406 = vmatpush.xpose.msk.msrb.mxu2 %vm1145_vm8, %v1350_v31 }
 0x5fb   :  { %6407 = vmatpush.xpose.msk.msrb.mxu2 %vm1145_vm8, %v1348_v34  ;;  %v6416_v34 = vld [vmem:[%s10502_s3 + $0x28] sm:$0xff] }
 0x5fc   :  { %v1643_v33 = vpop.permute.xlu0 %1642 }
 0x5ff   :  { %6408 = vmatpush.xpose.msk.msrb.mxu2 %vm1145_vm8, %v1346_v24 }
 0x603   :  { %6409 = vmatpush.xpose.msk.msrb.mxu2 %vm1145_vm8, %v1344_v23 }
 0x604   :  { %v1338_v22 = vpop.permute.xlu0 %1337 }
 0x607   :  { %6410 = vmatpush.xpose.msk.msrb.mxu2 %vm1145_vm8, %v1342_v14  ;;  %v1217_v14 = vld [vmem:[%s10502_s3 + $0x20] sm:$0x3] }
 0x60a   :  { %6411 = vmatmul.msk.f32.vlgmr.msrb.gmra.mxu2 %vm1145_vm8, %v1332_v16 }
 0x60c   :  { %v1655_v55 = vpop.permute.xlu0 %1654 }
 0x612   :  { %6412 = vmatmul.msk.f32.gmra.mxu2 %vm1145_vm8, %v1334_v28 }
 0x614   :  { %v1657_v36 = vpop.permute.xlu0 %1656  ;;  %v1193_v49 = vpop.f32.mrf.mxu1 }
 0x615   :  { %6439 = vmatpush.xpose.msk.msra.mxu2 %vm1145_vm8, %v1657_v36  ;;  %v1208_v40 = vmul.f32 0.25, %v1193_v49 }
 0x617   :  { %v1218_v41 = vadd.f32 %v1213_v26, %v1208_v40 }
 0x619   :  { %6440 = vmatpush.xpose.msk.msra.mxu2 %vm1145_vm8, %v1655_v55  ;;  %v1223_v43 = vsel %vm287_vm3, %v1218_v41, -inf }
 0x61a   :  { %1224 = vmax.xlane.f32.xlu1 %v1223_v43  ;;  %6413 = vmatmul.msk.f32.gmra.mxu2 %vm1145_vm8, %v1336_v29 }
 0x61c   :  { %v1196_v45 = vpop.f32.mrf.mxu1 }
 0x61d   :  { %6441 = vmatpush.xpose.msk.msra.mxu2 %vm1145_vm8, %v1653_v51  ;;  %v1209_v47 = vmul.f32 0.25, %v1196_v45 }
 0x61f   :  { %v1219_v50 = vadd.f32 %v1214_v46, %v1209_v47  ;;  %v6417_v46 = vld [vmem:[%s10502_s3 + $0x30] sm:$0xff] }
 0x621   :  { %6442 = vmatpush.xpose.msk.msra.mxu2 %vm1145_vm8, %v1651_v9  ;;  %v1226_v15 = vsel %vm287_vm3, %v1219_v50, -inf }
 0x622   :  { %1227 = vmax.xlane.f32.xlu2 %v1226_v15  ;;  %6414 = vmatmul.msk.f32.gmra.mxu2 %vm1145_vm8, %v1338_v22 }
 0x624   :  { %v1199_v52 = vpop.f32.mrf.mxu1 }
 0x625   :  { %6443 = vmatpush.xpose.msk.msra.mxu2 %vm1145_vm8, %v1649_v18  ;;  %v1210_v2 = vmul.f32 0.25, %v1199_v52 }
 0x627   :  { %v1220_v57 = vadd.f32 %v1215_v48, %v1210_v2 }
 0x629   :  { %v1229_v1 = vsel %vm287_vm3, %v1220_v57, -inf }
 0x62a   :  { %1230 = vmax.xlane.f32.xlu0 %v1229_v1  ;;  %6415 = vmatmul.msk.f32.gmra.mxu2 %vm1145_vm8, %v1340_v58  ;;  %v6418_v58 = vld [vmem:[%s10502_s3 + $0x38] sm:$0xff] }
 0x62c   :  { %v1202_v60 = vpop.f32.mrf.mxu1 }
 0x62d   :  { %v1211_v63 = vmul.f32 0.25, %v1202_v60 }
 0x62f   :  { %v8121_v0 = vadd.f32 %v1216_v61, %v1211_v63 }
 0x631   :  { %v1232_v6 = vsel %vm287_vm3, %v8121_v0, -inf }
 0x632   :  { %1233 = vmax.xlane.f32.xlu2 %v1232_v6  ;;  %6444 = vmatmul.msk.f32.vlgmr.msra.gmra.mxu2 %vm1145_vm8, %v1639_v17 }
 0x633   :  { %1646 = vrot.lane.b32.xlu1 %v8061_v10, %s7418_s29 }
 0x634   :  { %v1205_v8 = vpop.f32.mrf.mxu1 }
 0x635   :  { %v1212_v59 = vmul.f32 0.25, %v1205_v8 }
 0x637   :  { %v1222_v16 = vadd.f32 %v1217_v14, %v1212_v59 }
 0x639   :  { %v1236_v18 = vsel %vm1235_vm9, %v1222_v16, -inf }
 0x63a   :  { %6445 = vmatmul.msk.f32.gmra.mxu2 %vm1145_vm8, %v1641_v20 }
 0x642   :  { %6446 = vmatmul.msk.f32.gmra.mxu2 %vm1145_vm8, %v1643_v33 }
 0x64a   :  { %1644 = vrot.lane.b32.xlu2 %v8075_v13, %s7418_s29 }
 0x65d   :  { %1237 = vmax.xlane.f32.xlu1 %v1236_v18 }
 0x68d   :  { %v1225_v17 = vpop.xlane.xlu1 %1224  ;;  %v1388_v24 = vpop.f32.mrf.mxu2 }
 0x68e   :  { %v1239_v9 = vsub.f32 %v1218_v41, %v1225_v17  ;;  %v1403_v31 = vmul.f32 0.25, %v1388_v24 }
 0x690   :  { %v1244_v23 = vmul.f32 1.442695, %v1239_v9  ;;  %v8139_v36 = vadd.f32 %v6416_v34, %v1403_v31  ;;  %v6420_v31 = vld [vmem:[%s10502_s3 + $0x48] sm:$0x3] }
 0x692   :  { %7096 = vpow2.f32 %v1244_v23  ;;  %v1419_v43 = vsel %vm287_vm3, %v8139_v36, -inf }
 0x695   :  { %v1228_v20 = vpop.xlane.xlu2 %1227  ;;  %v1391_v22 = vpop.f32.mrf.mxu2 }
 0x696   :  { %v1240_v51 = vsub.f32 %v1219_v50, %v1228_v20  ;;  %v1404_v41 = vmul.f32 0.25, %v1391_v22 }
 0x698   :  { %v8134_v28 = vpop.eup %7096  ;;  %v1246_v29 = vmul.f32 1.442695, %v1240_v51  ;;  %v8148_v47 = vadd.f32 %v6417_v46, %v1404_v41  ;;  %v1329_v46 = vld [vmem:[%s10503_s14] sm:$0xff] }
 0x699   :  { %v1254_v33 = vsel %vm287_vm3, %v8134_v28, 0.0 }
 0x69a   :  { %7098 = vpow2.f32 %v1246_v29  ;;  %1255 = vadd.xlane.f32.xlu0 %v1254_v33 }
 0x69d   :  { %v1231_v55 = vpop.xlane.xlu0 %1230  ;;  %v1394_v50 = vpop.f32.mrf.mxu2 }
 0x69e   :  { %v1241_v49 = vsub.f32 %v1220_v57, %v1231_v55  ;;  %v1405_v48 = vmul.f32 0.25, %v1394_v50  ;;  %v1422_v57 = vsel %vm287_vm3, %v8148_v47, -inf }
 0x6a0   :  { %v8141_v26 = vpop.eup %7098  ;;  %v1248_v40 = vmul.f32 1.442695, %v1241_v49  ;;  %v8157_v1 = vadd.f32 %v6418_v58, %v1405_v48  ;;  %v6450_v49 = vld [vmem:[%s10502_s3 + $0x58] sm:$0xff] }
 0x6a1   :  { %v1257_v45 = vsel %vm287_vm3, %v8141_v26, 0.0 }
 0x6a2   :  { %7100 = vpow2.f32 %v1248_v40  ;;  %1420 = vmax.xlane.f32.xlu0 %v1419_v43  ;;  %1258 = vadd.xlane.f32.xlu1 %v1257_v45  ;;  %v1425_v61 = vsel %vm287_vm3, %v8157_v1, -inf  ;;  %v1330_v45 = vld [vmem:[%s10503_s14 + $0x8] sm:$0xff] }
 0x6a3   :  { %1620 = vmatpush.msrb.mxu3 %v1330_v45 }
 0x6a5   :  { %v1234_v15 = vpop.xlane.xlu2 %1233  ;;  %v1647_v63 = vpop.permute.xlu1 %1646  ;;  %1621 = vmatpush.msrb.mxu3 %v1329_v46 }
 0x6a6   :  { %v1397_v8 = vpop.f32.mrf.mxu2  ;;  %v1242_v14 = vsub.f32 %v8121_v0, %v1234_v15 }
 0x6a7   :  { %v1406_v18 = vmul.f32 0.25, %v1397_v8 }
 0x6a8   :  { %v8150_v52 = vpop.eup %7100  ;;  %v1250_v9 = vmul.f32 1.442695, %v1242_v14 }
 0x6a9   :  { %v1260_v2 = vsel %vm287_vm3, %v8150_v52, 0.0 }
 0x6aa   :  { %1261 = vadd.xlane.f32.xlu2 %v1260_v2  ;;  %1423 = vmax.xlane.f32.xlu0 %v1422_v57 }
 0x6ad   :  { %v1645_v60 = vpop.permute.xlu2 %1644 }
 0x6ae   :  { %6447 = vmatmul.msk.f32.gmra.mxu2 %vm1145_vm8, %v1645_v60 }
 0x6b2   :  { %1426 = vmax.xlane.f32.xlu2 %v1425_v61 }
 0x6b6   :  { %6448 = vmatmul.msk.f32.gmra.mxu2 %vm1145_vm8, %v1647_v63 }
 0x6bb   :  { %1915 = vrot.lane.b32.xlu1 %v8049_v3, %s7419_s8  ;;  %v6419_v3 = vld [vmem:[%s10502_s3 + $0x40] sm:$0xff] }
 0x6bc   :  { %v8175_v23 = vadd.f32 %v6419_v3, %v1406_v18 }
 0x6be   :  { %1917 = vrot.lane.b32.xlu0 %v8063_v11, %s7419_s8  ;;  %v1400_v11 = vpop.f32.mrf.mxu2  ;;  %v1428_v24 = vsel %vm287_vm3, %v8175_v23, -inf }
 0x6bf   :  { %v1407_v29 = vmul.f32 0.25, %v1400_v11 }
 0x6c1   :  { %v8188_v33 = vadd.f32 %v6420_v31, %v1407_v29 }
 0x6c3   :  { %6989 = vrot.lane.b32.xlu1 %v8023_v42, %s7417_s25  ;;  %v1431_v55 = vsel %vm1235_vm9, %v8188_v33, -inf }
 0x6c6   :  { %v1695_v20 = vpop.f32.mrf.mxu2 }
 0x6c7   :  { %v1710_v18 = vmul.f32 0.25, %v1695_v20  ;;  %v6452_v20 = vld [vmem:[%s10502_s3 + $0x68] sm:$0xff] }
 0x6ca   :  { %1486 = vrot.lane.b32.xlu2 %v8055_v44, %s7417_s25 }
 0x6ce   :  { %v1698_v34 = vpop.f32.mrf.mxu2 }
 0x6cf   :  { %v1711_v22 = vmul.f32 0.25, %v1698_v34 }
 0x6d0   :  { %v1238_v6 = vpop.xlane.xlu1 %1237 }
 0x6d1   :  { %v1243_v59 = vsub.f32 %v1222_v16, %v1238_v6  ;;  %v8193_v40 = vadd.f32 %v6450_v49, %v1711_v22 }
 0x6d2   :  { %1913 = vrot.lane.b32.xlu2 %v8041_v25, %s7419_s8 }
 0x6d3   :  { %v1252_v17 = vmul.f32 1.442695, %v1243_v59  ;;  %v1729_v41 = vsel %vm287_vm3, %v8193_v40, -inf }
 0x6d5   :  { %7102 = vpow2.f32 %v1252_v17 }
 0x6d6   :  { %7104 = vpow2.f32 %v1250_v9 }
 0x6db   :  { %v8179_v25 = vpop.eup %7102 }
 0x6dc   :  { %v8181_v16 = vpop.eup %7104  ;;  %v1266_v0 = vsel %vm1235_vm9, %v8179_v25, 0.0 }
 0x6dd   :  { %v1263_v51 = vsel %vm287_vm3, %v8181_v16, 0.0 }
 0x6e8   :  { %1429 = vmax.xlane.f32.xlu0 %v1428_v24 }
 0x6ed   :  { %1267 = vadd.xlane.f32.xlu1 %v1266_v0 }
 0x6f0   :  { %1264 = vadd.xlane.f32.xlu0 %v1263_v51 }
 0x6fb   :  { %1432 = vmax.xlane.f32.xlu2 %v1431_v55  ;;  %v6451_v55 = vld [vmem:[%s10502_s3 + $0x60] sm:$0xff] }
 0x703   :  { %1730 = vmax.xlane.f32.xlu2 %v1729_v41 }
 0x704   :  { %6984 = vrot.lane.b32.xlu0 %v8047_v62, %s7417_s25 }
 0x706   :  { %1911 = vrot.lane.b32.xlu1 %v8025_v53, %s7419_s8 }
 0x70c   :  { %1909 = vrot.lane.b32.xlu0 %v8016_v5, %s7419_s8 }
 0x70d   :  { %v1256_v43 = vpop.xlane.xlu0 %1255 }
 0x70e   :  { %7106 = vrcp.f32 %v1256_v43 }
 0x714   :  { %v7107_v50 = vpop.eup %7106 }
 0x715   :  { %v1274_v15 = vmul.f32 %v7107_v50, %v8134_v28  ;;  %v1421_v48 = vpop.xlane.xlu0 %1420  ;;  %v1259_v2 = vpop.xlane.xlu1 %1258 }
 0x716   :  { %7108 = vrcp.f32 %v1259_v2  ;;  %v1434_v3 = vsub.f32 %v8139_v36, %v1421_v48  ;;  %v6453_v48 = vld [vmem:[%s10502_s3 + $0x70] sm:$0x3] }
 0x717   :  { %6401 = vmatmul.msk.f32.vlgmr.msra.gmra.mxu3 %vm287_vm3, %v1274_v15 }
 0x718   :  { %v1439_v0 = vmul.f32 1.442695, %v1434_v3 }
 0x71c   :  { %v7109_v57 = vpop.eup %7108 }
 0x71d   :  { %v1424_v58 = vpop.xlane.xlu0 %1423  ;;  %v1262_v53 = vpop.xlane.xlu2 %1261  ;;  %v1275_v60 = vmul.f32 %v7109_v57, %v8141_v26 }
 0x71e   :  { %v1435_v5 = vsub.f32 %v8148_v47, %v1424_v58  ;;  %7110 = vrcp.f32 %v1262_v53  ;;  %v1701_v47 = vpop.f32.mrf.mxu2 }
 0x71f   :  { %6402 = vmatmul.msk.f32.gmra.mxu3 %vm287_vm3, %v1275_v60  ;;  %v1712_v31 = vmul.f32 0.25, %v1701_v47 }
 0x720   :  { %v1441_v61 = vmul.f32 1.442695, %v1435_v5 }
 0x721   :  { %v8237_v43 = vadd.f32 %v6451_v55, %v1712_v31 }
 0x722   :  { %7112 = vpow2.f32 %v1441_v61 }
 0x723   :  { %v1732_v15 = vsel %vm287_vm3, %v8237_v43, -inf }
 0x724   :  { %v7111_v63 = vpop.eup %7110 }
 0x725   :  { %v1427_v28 = vpop.xlane.xlu2 %1426  ;;  %v1276_v6 = vmul.f32 %v7111_v63, %v8150_v52  ;;  %v6449_v52 = vld [vmem:[%s10502_s3 + $0x50] sm:$0xff] }
 0x726   :  { %v1436_v8 = vsub.f32 %v8157_v1, %v1427_v28  ;;  %v8225_v24 = vadd.f32 %v6449_v52, %v1710_v18 }
 0x727   :  { %6403 = vmatmul.msk.f32.gmra.mxu3 %vm287_vm3, %v1276_v6 }
 0x728   :  { %v8213_v59 = vpop.eup %7112  ;;  %v1443_v14 = vmul.f32 1.442695, %v1436_v8  ;;  %v1726_v34 = vsel %vm287_vm3, %v8225_v24, -inf }
 0x729   :  { %v1452_v26 = vsel %vm287_vm3, %v8213_v59, 0.0 }
 0x72a   :  { %7114 = vpow2.f32 %v1443_v14  ;;  %1453 = vadd.xlane.f32.xlu2 %v1452_v26 }
 0x72b   :  { %7116 = vpow2.f32 %v1439_v0 }
 0x72d   :  { %v1487_v17 = vpop.permute.xlu2 %1486  ;;  %v1916_v36 = vpop.permute.xlu1 %1915 }
 0x72e   :  { %6421 = vmatpush.msk.msra.mxu0 %vm188_vm0, %v1487_v17 }
 0x730   :  { %v8220_v1 = vpop.eup %7114  ;;  %v1918_v9 = vpop.permute.xlu0 %1917 }
 0x731   :  { %6467 = vmatpush.xpose.msk.msra.mxu3 %vm1145_vm8, %v1918_v9  ;;  %v1455_v11 = vsel %vm287_vm3, %v8220_v1, 0.0  ;;  %v1704_v51 = vpop.f32.mrf.mxu2  ;;  %v8239_v46 = vpop.eup %7116 }
 0x732   :  { %1456 = vadd.xlane.f32.xlu2 %v1455_v11  ;;  %v1713_v29 = vmul.f32 0.25, %v1704_v51  ;;  %v1449_v2 = vsel %vm287_vm3, %v8239_v46, 0.0 }
 0x734   :  { %v8231_v22 = vadd.f32 %v6452_v20, %v1713_v29 }
 0x735   :  { %6468 = vmatpush.xpose.msk.msra.mxu3 %vm1145_vm8, %v1916_v36  ;;  %v1914_v41 = vpop.permute.xlu2 %1913  ;;  %v6990_v60 = vpop.permute.xlu1 %6989 }
 0x736   :  { %1727 = vmax.xlane.f32.xlu0 %v1726_v34  ;;  %v1735_v49 = vsel %vm287_vm3, %v8231_v22, -inf  ;;  %v6992_v11 = vunpack.i.h.bf16 %v6990_v60 }
 0x737   :  { %1736 = vmax.xlane.f32.xlu1 %v1735_v49 }
 0x739   :  { %6469 = vmatpush.xpose.msk.msra.mxu3 %vm1145_vm8, %v1914_v41  ;;  %v1707_v45 = vpop.f32.mrf.mxu2 }
 0x73a   :  { %v1714_v50 = vmul.f32 0.25, %v1707_v45 }
 0x73c   :  { %v8246_v57 = vadd.f32 %v6453_v48, %v1714_v50 }
 0x73e   :  { %1733 = vmax.xlane.f32.xlu0 %v1732_v15  ;;  %v1738_v58 = vsel %vm1235_vm9, %v8246_v57, -inf }
 0x73f   :  { %1450 = vadd.xlane.f32.xlu1 %v1449_v2 }
 0x746   :  { %1739 = vmax.xlane.f32.xlu0 %v1738_v58 }
 0x74a   :  { %1899 = vrot.lane.b32.xlu2 %v8014_v54, %s7419_s8 }
 0x758   :  { %1901 = vrot.lane.b32.xlu1 %v8033_v56, %s7419_s8 }
 0x75a   :  { %1905 = vrot.lane.b32.xlu0 %v8075_v13, %s7419_s8 }
 0x75b   :  { %v1430_v53 = vpop.xlane.xlu0 %1429 }
 0x75c   :  { %v1437_v56 = vsub.f32 %v8175_v23, %v1430_v53 }
 0x75e   :  { %v1445_v26 = vmul.f32 1.442695, %v1437_v56 }
 0x760   :  { %v1268_v61 = vpop.xlane.xlu1 %1267 }
 0x763   :  { %v1265_v5 = vpop.xlane.xlu0 %1264 }
 0x764   :  { %7118 = vrcp.f32 %v1265_v5 }
 0x765   :  { %7120 = vrcp.f32 %v1268_v61 }
 0x76a   :  { %v7119_v63 = vpop.eup %7118 }
 0x76b   :  { %v1277_v28 = vmul.f32 %v7119_v63, %v8181_v16  ;;  %v7121_v8 = vpop.eup %7120 }
 0x76c   :  { %v1278_v13 = vmul.f32 %v7121_v8, %v8179_v25  ;;  %v6991_v25 = vunpack.i.l.bf16 %v6990_v60 }
 0x76d   :  { %6404 = vmatmul.msk.f32.gmra.mxu3 %vm287_vm3, %v1277_v28 }
 0x76e   :  { %v1433_v6 = vpop.xlane.xlu2 %1432 }
 0x76f   :  { %v1438_v54 = vsub.f32 %v8188_v33, %v1433_v6 }
 0x771   :  { %v1447_v14 = vmul.f32 1.442695, %v1438_v54 }
 0x773   :  { %7122 = vpow2.f32 %v1447_v14 }
 0x774   :  { %7124 = vpow2.f32 %v1445_v26 }
 0x775   :  { %6405 = vmatmul.msk.f32.gmra.mxu3 %vm287_vm3, %v1278_v13 }
 0x776   :  { %v6985_v47 = vpop.permute.xlu0 %6984  ;;  %v1731_v18 = vpop.xlane.xlu2 %1730 }
 0x777   :  { %v6986_v17 = vunpack.i.l.bf16 %v6985_v47  ;;  %v1742_v16 = vsub.f32 %v8193_v40, %v1731_v18  ;;  %v6987_v33 = vunpack.i.h.bf16 %v6985_v47 }
 0x778   :  { %v1912_v3 = vpop.permute.xlu1 %1911 }
 0x779   :  { %v8263_v52 = vpop.eup %7122  ;;  %v1748_v9 = vmul.f32 1.442695, %v1742_v16  ;;  %1521 = vmatpush.msra.mxu0 %v6986_v17  ;;  %6470 = vmatpush.xpose.msk.msra.mxu3 %vm1145_vm8, %v1912_v3 }
 0x77a   :  { %v1461_v23 = vsel %vm1235_vm9, %v8263_v52, 0.0  ;;  %v8268_v40 = vpop.eup %7124 }
 0x77b   :  { %7126 = vpow2.f32 %v1748_v9  ;;  %1522 = vmatpush.msra.mxu0 %v6987_v33  ;;  %1462 = vadd.xlane.f32.xlu2 %v1461_v23  ;;  %v1458_v20 = vsel %vm287_vm3, %v8268_v40, 0.0 }
 0x77d   :  { %1523 = vmatpush.msra.mxu0 %v6991_v25 }
 0x77e   :  { %v1910_v0 = vpop.permute.xlu0 %1909 }
 0x77f   :  { %1524 = vmatpush.msra.mxu0 %v6992_v11  ;;  %6471 = vmatpush.xpose.msk.msra.mxu3 %vm1145_vm8, %v1910_v0  ;;  %v6428_v11 = vld [vmem:[%s10503_s14 + $0x18] sm:$0xff] }
 0x780   :  { %1573 = vmatpush.msrb.mxu1 %v6428_v11 }
 0x781   :  { %v8271_v51 = vpop.eup %7126 }
 0x782   :  { %v1759_v29 = vsel %vm287_vm3, %v8271_v51, 0.0  ;;  %1459 = vadd.xlane.f32.xlu1 %v1458_v20  ;;  %v6427_v20 = vld [vmem:[%s10503_s14 + $0x10] sm:$0xff] }
 0x783   :  { %1760 = vadd.xlane.f32.xlu2 %v1759_v29  ;;  %1574 = vmatpush.msrb.mxu1 %v6427_v20  ;;  %v6480_v20 = vld [vmem:[%s10502_s3 + $0x90] sm:$0xff] }
 0x79a   :  { %v1314_v36 = vpop.f32.mrf.mxu3 }
 0x79b   :  { %6434 = vmatmul.msk.f32.vlgmr.msrb.gmra.mxu3 %vm1145_vm8, %v1314_v36  ;;  %1903 = vrot.lane.b32.xlu1 %v8051_v4, %s7419_s8 }
 0x7a2   :  { %v1317_v31 = vpop.f32.mrf.mxu3 }
 0x7a3   :  { %6435 = vmatmul.msk.f32.gmra.mxu3 %vm1145_vm8, %v1317_v31  ;;  %1789 = vrot.lane.b32.xlu1 %v8055_v44, %s7418_s29 }
 0x7a9   :  { %v1728_v34 = vpop.xlane.xlu0 %1727 }
 0x7aa   :  { %v1741_v55 = vsub.f32 %v8225_v24, %v1728_v34  ;;  %v1320_v49 = vpop.f32.mrf.mxu3  ;;  %v1737_v41 = vpop.xlane.xlu1 %1736 }
 0x7ab   :  { %6436 = vmatmul.msk.f32.gmra.mxu3 %vm1145_vm8, %v1320_v49  ;;  %v1744_v50 = vsub.f32 %v8231_v22, %v1737_v41  ;;  %6994 = vrot.lane.b32.xlu1 %v8047_v62, %s7418_s29  ;;  %v1454_v24 = vpop.xlane.xlu2 %1453 }
 0x7ac   :  { %v1746_v45 = vmul.f32 1.442695, %v1741_v55 }
 0x7ad   :  { %v1752_v4 = vmul.f32 1.442695, %v1744_v50 }
 0x7ae   :  { %7128 = vpow2.f32 %v1746_v45 }
 0x7af   :  { %7130 = vpow2.f32 %v1752_v4 }
 0x7b1   :  { %v1734_v6 = vpop.xlane.xlu0 %1733 }
 0x7b2   :  { %v1451_v15 = vpop.xlane.xlu1 %1450  ;;  %v1743_v8 = vsub.f32 %v8237_v43, %v1734_v6 }
 0x7b3   :  { %7132 = vrcp.f32 %v1451_v15  ;;  %6999 = vrot.lane.b32.xlu1 %v8023_v42, %s7418_s29  ;;  %v1457_v5 = vpop.xlane.xlu2 %1456 }
 0x7b4   :  { %v8288_v48 = vpop.eup %7128  ;;  %7134 = vrcp.f32 %v1454_v24 }
 0x7b5   :  { %v1756_v2 = vsel %vm287_vm3, %v8288_v48, 0.0  ;;  %v8294_v58 = vpop.eup %7130  ;;  %7136 = vrcp.f32 %v1457_v5 }
 0x7b6   :  { %1757 = vadd.xlane.f32.xlu0 %v1756_v2  ;;  %v1765_v22 = vsel %vm287_vm3, %v8294_v58, 0.0 }
 0x7b7   :  { %1766 = vadd.xlane.f32.xlu2 %v1765_v22 }
 0x7b9   :  { %v7133_v53 = vpop.eup %7132  ;;  %v1740_v14 = vpop.xlane.xlu0 %1739 }
 0x7ba   :  { %v1469_v60 = vmul.f32 %v7133_v53, %v8239_v46  ;;  %v7135_v61 = vpop.eup %7134  ;;  %v1750_v46 = vmul.f32 1.442695, %v1743_v8  ;;  %v1745_v13 = vsub.f32 %v8246_v57, %v1740_v14  ;;  %v6461_v14 = vld [vmem:[%s10503_s14 + $0x28] sm:$0xff] }
 0x7bb   :  { %v1470_v63 = vmul.f32 %v7135_v61, %v8213_v59  ;;  %v7137_v28 = vpop.eup %7136  ;;  %v1900_v43 = vpop.permute.xlu2 %1899  ;;  %1876 = vmatpush.msra.mxu1 %v6461_v14 }
 0x7bc   :  { %6422 = vmatmul.msk.f32.vlgmr.msra.gmra.mxu0 %vm287_vm3, %v1469_v60  ;;  %v1471_v54 = vmul.f32 %v7137_v28, %v8220_v1  ;;  %7138 = vpow2.f32 %v1750_v46  ;;  %v1754_v26 = vmul.f32 1.442695, %v1745_v13 }
 0x7be   :  { %7140 = vpow2.f32 %v1754_v26  ;;  %v6477_v26 = vld [vmem:[%s10502_s3 + $0x78] sm:$0xff] }
 0x7c2   :  { %v8307_v56 = vpop.eup %7138 }
 0x7c3   :  { %v1762_v59 = vsel %vm287_vm3, %v8307_v56, 0.0 }
 0x7c4   :  { %6423 = vmatmul.msk.f32.gmra.mxu0 %vm287_vm3, %v1470_v63  ;;  %v8312_v47 = vpop.eup %7140 }
 0x7c5   :  { %v1768_v18 = vsel %vm1235_vm9, %v8312_v47, 0.0 }
 0x7ca   :  { %1907 = vrot.lane.b32.xlu0 %v8061_v10, %s7419_s8  ;;  %v1902_v10 = vpop.permute.xlu1 %1901 }
 0x7cc   :  { %6424 = vmatmul.msk.f32.gmra.mxu0 %vm287_vm3, %v1471_v54 }
 0x7dd   :  { %1763 = vadd.xlane.f32.xlu1 %v1762_v59 }
 0x7ee   :  { %v1463_v57 = vpop.xlane.xlu2 %1462 }
 0x7f0   :  { %v1323_v1 = vpop.f32.mrf.mxu3 }
 0x7f1   :  { %6437 = vmatmul.msk.f32.gmra.mxu3 %vm1145_vm8, %v1323_v1 }
 0x7f4   :  { %1769 = vadd.xlane.f32.xlu0 %v1768_v18 }
 0x7f5   :  { %v1460_v17 = vpop.xlane.xlu1 %1459 }
 0x7f6   :  { %7142 = vrcp.f32 %v1460_v17  ;;  %v1761_v49 = vpop.xlane.xlu2 %1760  ;;  %v6478_v17 = vld [vmem:[%s10502_s3 + $0x80] sm:$0xff] }
 0x7f7   :  { %7144 = vrcp.f32 %v1463_v57 }
 0x7f8   :  { %v1326_v16 = vpop.f32.mrf.mxu3 }
 0x7f9   :  { %6438 = vmatmul.msk.f32.gmra.mxu3 %vm1145_vm8, %v1326_v16 }
 0x7fc   :  { %v7143_v3 = vpop.eup %7142 }
 0x7fd   :  { %v1472_v33 = vmul.f32 %v7143_v3, %v8268_v40  ;;  %v7145_v9 = vpop.eup %7144  ;;  %v1906_v40 = vpop.permute.xlu0 %1905  ;;  %v6460_v3 = vld [vmem:[%s10503_s14 + $0x20] sm:$0xff] }
 0x7fe   :  { %v1473_v23 = vmul.f32 %v7145_v9, %v8263_v52  ;;  %1877 = vmatpush.msra.mxu1 %v6460_v3 }
 0x7ff   :  { %6425 = vmatmul.msk.f32.gmra.mxu0 %vm287_vm3, %v1472_v33 }
 0x801   :  { %6472 = vmatmul.msk.f32.vlgmr.msra.gmra.mxu3 %vm1145_vm8, %v1900_v43 }
 0x807   :  { %6426 = vmatmul.msk.f32.gmra.mxu0 %vm287_vm3, %v1473_v23  ;;  %v6479_v23 = vld [vmem:[%s10502_s3 + $0x88] sm:$0xff] }
 0x808   :  { %7004 = vrot.lane.b32.xlu0 %v8047_v62, %s7419_s8 }
 0x809   :  { %6473 = vmatmul.msk.f32.gmra.mxu3 %vm1145_vm8, %v1902_v10 }
 0x80d   :  { %v1904_v25 = vpop.permute.xlu1 %1903 }
 0x811   :  { %6474 = vmatmul.msk.f32.gmra.mxu3 %vm1145_vm8, %v1904_v25 }
 0x815   :  { %v1790_v0 = vpop.permute.xlu1 %1789 }
 0x816   :  { %6454 = vmatpush.msk.msrb.mxu0 %vm188_vm0, %v1790_v0 }
 0x819   :  { %6475 = vmatmul.msk.f32.gmra.mxu3 %vm1145_vm8, %v1906_v40 }
 0x81d   :  { %v6995_v52 = vpop.permute.xlu1 %6994 }
 0x81e   :  { %v6996_v29 = vunpack.i.l.bf16 %v6995_v52  ;;  %v6997_v36 = vunpack.i.h.bf16 %v6995_v52  ;;  %v8339_v5 = vpop.f32.mrf.mxu3 }
 0x820   :  { %1824 = vmatpush.msrb.mxu0 %v6996_v29 }
 0x822   :  { %1825 = vmatpush.msrb.mxu0 %v6997_v36 }
 0x825   :  { %v7000_v62 = vpop.permute.xlu1 %6999 }
 0x826   :  { %v7001_v31 = vunpack.i.l.bf16 %v7000_v62  ;;  %v7002_v34 = vunpack.i.h.bf16 %v7000_v62  ;;  %v8344_v28 = vpop.f32.mrf.mxu3 }
 0x828   :  { %1826 = vmatpush.msrb.mxu0 %v7001_v31 }
 0x829   :  { %v1758_v55 = vpop.xlane.xlu0 %1757 }
 0x82a   :  { %7146 = vrcp.f32 %v1758_v55  ;;  %1827 = vmatpush.msrb.mxu0 %v7002_v34  ;;  %v1767_v53 = vpop.xlane.xlu2 %1766  ;;  %v6481_v55 = vld [vmem:[%s10502_s3 + $0x98] sm:$0x3] }
 0x82b   :  { %7148 = vrcp.f32 %v1761_v49 }
 0x82e   :  { %v8347_v54 = vpop.f32.mrf.mxu3 }
 0x830   :  { %v7147_v41 = vpop.eup %7146 }
 0x831   :  { %v1776_v45 = vmul.f32 %v7147_v41, %v8288_v48  ;;  %v7149_v50 = vpop.eup %7148  ;;  %v2176_v41 = vld [vmem:[%s10504_s19 + $0x38] sm:$0xff] }
 0x832   :  { %v1777_v4 = vmul.f32 %v7149_v50, %v8271_v51 }
 0x833   :  { %6455 = vmatmul.msk.f32.vlgmr.msrb.gmra.mxu0 %vm287_vm3, %v1776_v45  ;;  %v2175_v45 = vld [vmem:[%s10504_s19 + $0x30] sm:$0xff] }
 0x839   :  { %v1526_v15 = vpop.f32.mrf.mxu0 }
 0x83a   :  { %6429 = vmatmul.msk.f32.vlgmr.msrb.gmra.mxu1 %vm1145_vm8, %v1526_v15 }
 0x83b   :  { %6456 = vmatmul.msk.f32.gmra.mxu0 %vm287_vm3, %v1777_v4  ;;  %2185 = vmatpush.msrb.mxu1 %v2176_v41  ;;  %v2174_v4 = vld [vmem:[%s10504_s19 + $0x28] sm:$0xff] }
 0x83c   :  { %v1908_v24 = vpop.permute.xlu0 %1907 }
 0x83d   :  { %6476 = vmatmul.msk.f32.gmra.mxu3 %vm1145_vm8, %v1908_v24  ;;  %2186 = vmatpush.msrb.mxu1 %v2175_v45  ;;  %v2173_v24 = vld [vmem:[%s10504_s19 + $0x20] sm:$0xff] }
 0x83f   :  { %2187 = vmatpush.msrb.mxu1 %v2174_v4 }
 0x841   :  { %v1529_v2 = vpop.f32.mrf.mxu0  ;;  %2188 = vmatpush.msrb.mxu1 %v2173_v24 }
 0x842   :  { %6430 = vmatmul.msk.f32.gmra.mxu1 %vm1145_vm8, %v1529_v2  ;;  %v2172_v2 = vld [vmem:[%s10504_s19 + $0x18] sm:$0xff] }
 0x843   :  { %2189 = vmatpush.msrb.mxu1 %v2172_v2 }
 0x849   :  { %v1532_v22 = vpop.f32.mrf.mxu0 }
 0x84a   :  { %6431 = vmatmul.msk.f32.gmra.mxu1 %vm1145_vm8, %v1532_v22  ;;  %v2171_v22 = vld [vmem:[%s10504_s19 + $0x10] sm:$0xff] }
 0x84b   :  { %2190 = vmatpush.msrb.mxu1 %v2171_v22 }
 0x850   :  { %v1764_v48 = vpop.xlane.xlu1 %1763 }
 0x851   :  { %7150 = vrcp.f32 %v1764_v48  ;;  %v2170_v48 = vld [vmem:[%s10504_s19 + $0x8] sm:$0xff] }
 0x852   :  { %7152 = vrcp.f32 %v1767_v53  ;;  %v2169_v53 = vld [vmem:[%s10504_s19] sm:$0xff]  ;;  %2191 = vmatpush.msrb.mxu1 %v2170_v48 }
 0x854   :  { %2192 = vmatpush.msrb.mxu1 %v2169_v53 }
 0x857   :  { %v7151_v60 = vpop.eup %7150 }
 0x858   :  { %v1778_v51 = vmul.f32 %v7151_v60, %v8307_v56  ;;  %v7153_v61 = vpop.eup %7152 }
 0x859   :  { %v1779_v63 = vmul.f32 %v7153_v61, %v8294_v58 }
 0x85a   :  { %6457 = vmatmul.msk.f32.gmra.mxu0 %vm287_vm3, %v1778_v51 }
 0x862   :  { %6458 = vmatmul.msk.f32.gmra.mxu0 %vm287_vm3, %v1779_v63 }
 0x867   :  { %v1770_v6 = vpop.xlane.xlu0 %1769 }
 0x868   :  { %7154 = vrcp.f32 %v1770_v6 }
 0x86e   :  { %v7155_v8 = vpop.eup %7154 }
 0x86f   :  { %v1780_v46 = vmul.f32 %v7155_v8, %v8312_v47 }
 0x871   :  { %6459 = vmatmul.msk.f32.gmra.mxu0 %vm287_vm3, %v1780_v46 }
 0x874   :  { %v8351_v56 = vpop.f32.mrf.mxu3 }
 0x87c   :  { %v8353_v59 = vpop.f32.mrf.mxu3  ;;  %v1535_v58 = vpop.f32.mrf.mxu0 }
 0x87d   :  { %6432 = vmatmul.msk.f32.gmra.mxu1 %vm1145_vm8, %v1535_v58 }
 0x884   :  { %v1956_v13 = vpop.f32.mrf.mxu3  ;;  %v1538_v10 = vpop.f32.mrf.mxu0 }
 0x885   :  { %v1971_v1 = vmul.f32 0.25, %v1956_v13  ;;  %6433 = vmatmul.msk.f32.gmra.mxu1 %vm1145_vm8, %v1538_v10 }
 0x887   :  { %v1982_v47 = vadd.f32 %v6477_v26, %v1971_v1 }
 0x889   :  { %v1987_v43 = vsel %vm287_vm3, %v1982_v47, -inf }
 0x88a   :  { %1988 = vmax.xlane.f32.xlu2 %v1987_v43 }
 0x88c   :  { %v1959_v18 = vpop.f32.mrf.mxu3 }
 0x88d   :  { %v1972_v16 = vmul.f32 0.25, %v1959_v18 }
 0x88f   :  { %v1983_v57 = vadd.f32 %v6478_v17, %v1972_v16 }
 0x891   :  { %v1990_v33 = vsel %vm287_vm3, %v1983_v57, -inf }
 0x892   :  { %1991 = vmax.xlane.f32.xlu2 %v1990_v33 }
 0x894   :  { %v1962_v9 = vpop.f32.mrf.mxu3 }
 0x895   :  { %v1973_v25 = vmul.f32 0.25, %v1962_v9  ;;  %v7005_v9 = vpop.permute.xlu0 %7004 }
 0x897   :  { %v1984_v11 = vadd.f32 %v6479_v23, %v1973_v25 }
 0x899   :  { %v1993_v0 = vsel %vm287_vm3, %v1984_v11, -inf }
 0x89a   :  { %1994 = vmax.xlane.f32.xlu2 %v1993_v0  ;;  %v7006_v0 = vunpack.i.l.bf16 %v7005_v9 }
 0x89c   :  { %v1965_v40 = vpop.f32.mrf.mxu3 }
 0x89d   :  { %v1974_v52 = vmul.f32 0.25, %v1965_v40  ;;  %v7007_v40 = vunpack.i.h.bf16 %v7005_v9  ;;  %v2274_v9 = vld [vmem:[%s10506_s22 + $0x30] sm:$0xff] }
 0x89f   :  { %v8366_v29 = vadd.f32 %v6480_v20, %v1974_v52 }
 0x8a1   :  { %v1996_v36 = vsel %vm287_vm3, %v8366_v29, -inf }
 0x8a2   :  { %1997 = vmax.xlane.f32.xlu2 %v1996_v36 }
 0x8b0   :  { %v1829_v62 = vpop.f32.mrf.mxu0 }
 0x8b1   :  { %6462 = vmatmul.msk.f32.vlgmr.msra.gmra.mxu1 %vm1145_vm8, %v1829_v62 }
 0x8b7   :  { %v8409_v43 = vpop.f32.mrf.mxu1 }
 0x8b8   :  { %v1832_v31 = vpop.f32.mrf.mxu0 }
 0x8b9   :  { %6463 = vmatmul.msk.f32.gmra.mxu1 %vm1145_vm8, %v1832_v31 }
 0x8c0   :  { %v1968_v34 = vpop.f32.mrf.mxu3 }
 0x8c1   :  { %v1975_v49 = vmul.f32 0.25, %v1968_v34 }
 0x8c3   :  { %v1986_v50 = vadd.f32 %v6481_v55, %v1975_v49 }
 0x8c5   :  { %v1999_v15 = vsel %vm1235_vm9, %v1986_v50, -inf }
 0x8c6   :  { %2000 = vmax.xlane.f32.xlu2 %v1999_v15 }
 0x8d7   :  { %v1835_v60 = vpop.f32.mrf.mxu0 }
 0x8d8   :  { %6464 = vmatmul.msk.f32.gmra.mxu1 %vm1145_vm8, %v1835_v60 }
 0x8de   :  { %2050 = vrot.lane.b32.xlu2 %v8055_v44, %s7419_s8 }
 0x8df   :  { %v1838_v51 = vpop.f32.mrf.mxu0 }
 0x8e0   :  { %6465 = vmatmul.msk.f32.gmra.mxu1 %vm1145_vm8, %v1838_v51 }
 0x8ee   :  { %v1841_v61 = vpop.f32.mrf.mxu0 }
 0x8ef   :  { %6466 = vmatmul.msk.f32.gmra.mxu1 %vm1145_vm8, %v1841_v61 }
 0x8f7   :  { %6495 = vmatmul.msk.f32.vlgmr.msrb.gmra.mxu1 %vm239_vm2, %v7958_v12 }
 0x8fd   :  { %v1989_v63 = vpop.xlane.xlu2 %1988 }
 0x8fe   :  { %v2002_v6 = vsub.f32 %v1982_v47, %v1989_v63 }
 0x8ff   :  { %6496 = vmatmul.msk.f32.gmra.mxu1 %vm239_vm2, %v7970_v27 }
 0x900   :  { %v2007_v8 = vmul.f32 1.442695, %v2002_v6 }
 0x902   :  { %7156 = vpow2.f32 %v2007_v8 }
 0x905   :  { %v1992_v46 = vpop.xlane.xlu2 %1991 }
 0x906   :  { %v2003_v58 = vsub.f32 %v1983_v57, %v1992_v46  ;;  %v857_v46 = vld [vmem:[%s10505_s24] sm:$0xff] }
 0x907   :  { %6497 = vmatmul.msk.f32.gmra.mxu1 %vm239_vm2, %v7982_v19 }
 0x908   :  { %v8393_v44 = vpop.eup %7156  ;;  %v2009_v14 = vmul.f32 1.442695, %v2003_v58  ;;  %v6489_v58 = vld [vmem:[%s10503_s14 + $0x38] sm:$0xff] }
 0x909   :  { %v2017_v13 = vsel %vm287_vm3, %v8393_v44, 0.0  ;;  %2137 = vmatpush.msra.mxu0 %v6489_v58 }
 0x90a   :  { %7158 = vpow2.f32 %v2009_v14  ;;  %2018 = vadd.xlane.f32.xlu1 %v2017_v13 }
 0x90d   :  { %v1995_v12 = vpop.xlane.xlu2 %1994 }
 0x90e   :  { %v2004_v26 = vsub.f32 %v1984_v11, %v1995_v12 }
 0x90f   :  { %6498 = vmatmul.msk.f32.gmra.mxu1 %vm239_vm2, %v7993_v35  ;;  %v8413_v35 = vpop.f32.mrf.mxu1 }
 0x910   :  { %v8399_v27 = vpop.eup %7158  ;;  %v2011_v10 = vmul.f32 1.442695, %v2004_v26 }
 0x911   :  { %v2020_v1 = vsel %vm287_vm3, %v8399_v27, 0.0 }
 0x912   :  { %7160 = vpow2.f32 %v2011_v10  ;;  %2021 = vadd.xlane.f32.xlu0 %v2020_v1  ;;  %v6488_v10 = vld [vmem:[%s10503_s14 + $0x30] sm:$0xff]  ;;  %v858_v1 = vld [vmem:[%s10505_s24 + $0x8] sm:$0xff] }
 0x913   :  { %2138 = vmatpush.msra.mxu0 %v6488_v10 }
 0x915   :  { %v1998_v17 = vpop.xlane.xlu2 %1997 }
 0x916   :  { %v2005_v3 = vsub.f32 %v8366_v29, %v1998_v17 }
 0x917   :  { %6499 = vmatmul.msk.f32.gmra.mxu1 %vm239_vm2, %v8004_v37  ;;  %v8415_v18 = vpop.f32.mrf.mxu1 }
 0x918   :  { %v8405_v19 = vpop.eup %7160  ;;  %v2013_v23 = vmul.f32 1.442695, %v2005_v3  ;;  %v861_v3 = vld [vmem:[%s10505_s24 + $0x20] sm:$0x3] }
 0x919   :  { %v2023_v47 = vsel %vm287_vm3, %v8405_v19, 0.0 }
 0x91a   :  { %2024 = vadd.xlane.f32.xlu2 %v2023_v47  ;;  %v860_v47 = vld [vmem:[%s10505_s24 + $0x18] sm:$0xff] }
 0x91f   :  { %v8417_v16 = vpop.f32.mrf.mxu1 }
 0x923   :  { %7009 = vrot.lane.b32.xlu1 %v8023_v42, %s7419_s8 }
 0x927   :  { %v8420_v25 = vpop.f32.mrf.mxu1 }
 0x92f   :  { %v8424_v52 = vpop.f32.mrf.mxu1 }
 0x937   :  { %v8427_v62 = vpop.f32.mrf.mxu1 }
 0x939   :  { %v2001_v57 = vpop.xlane.xlu2 %2000 }
 0x93a   :  { %v2006_v37 = vsub.f32 %v1986_v50, %v2001_v57 }
 0x93c   :  { %v2015_v33 = vmul.f32 1.442695, %v2006_v37 }
 0x93e   :  { %7162 = vpow2.f32 %v2015_v33  ;;  %v2275_v33 = vld [vmem:[%s10506_s22 + $0x38] sm:$0xff] }
 0x93f   :  { %7164 = vpow2.f32 %v2013_v23  ;;  %v2273_v23 = vld [vmem:[%s10506_s22 + $0x28] sm:$0xff] }
 0x941   :  { %v2051_v11 = vpop.permute.xlu2 %2050 }
 0x942   :  { %6482 = vmatpush.msk.msrb.mxu2 %vm188_vm0, %v2051_v11  ;;  %v2272_v11 = vld [vmem:[%s10506_s22 + $0x20] sm:$0xff] }
 0x944   :  { %v7163_v42 = vpop.eup %7162  ;;  %2085 = vmatpush.msrb.mxu2 %v7006_v0 }
 0x945   :  { %v2029_v20 = vsel %vm1235_vm9, %v7163_v42, 0.0  ;;  %v7165_v29 = vpop.eup %7164 }
 0x946   :  { %2030 = vadd.xlane.f32.xlu0 %v2029_v20  ;;  %2086 = vmatpush.msrb.mxu2 %v7007_v40  ;;  %v2026_v36 = vsel %vm287_vm3, %v7165_v29, 0.0  ;;  %v2271_v40 = vld [vmem:[%s10506_s22 + $0x18] sm:$0xff]  ;;  %v2270_v20 = vld [vmem:[%s10506_s22 + $0x10] sm:$0xff] }
 0x94d   :  { %2027 = vadd.xlane.f32.xlu1 %v2026_v36  ;;  %v2268_v36 = vld [vmem:[%s10506_s22] sm:$0xff] }
 0x955   :  { %v8429_v31 = vpop.f32.mrf.mxu1 }
 0x95d   :  { %v8431_v34 = vpop.f32.mrf.mxu1 }
 0x96c   :  { %v8433_v55 = vpop.f32.mrf.mxu1 }
 0x974   :  { %v2194_v49 = vpop.f32.mrf.mxu1 }
 0x97c   :  { %v2197_v41 = vpop.f32.mrf.mxu1 }
 0x97d   :  { %v2019_v4 = vpop.xlane.xlu1 %2018 }
 0x97e   :  { %7166 = vrcp.f32 %v2019_v4  ;;  %v7052_v4 = vld [vmem:[%s10508_s26] ss:$0 sm:$0xff] }
 0x984   :  { %v2200_v45 = vpop.f32.mrf.mxu1  ;;  %v7167_v22 = vpop.eup %7166 }
 0x985   :  { %v2022_v24 = vpop.xlane.xlu0 %2021  ;;  %v2037_v60 = vmul.f32 %v7167_v22, %v8393_v44 }
 0x986   :  { %7168 = vrcp.f32 %v2022_v24 }
 0x98c   :  { %v2203_v50 = vpop.f32.mrf.mxu1  ;;  %v7169_v61 = vpop.eup %7168 }
 0x98d   :  { %v2025_v51 = vpop.xlane.xlu2 %2024  ;;  %v2038_v63 = vmul.f32 %v7169_v61, %v8399_v27 }
 0x98e   :  { %7170 = vrcp.f32 %v2025_v51 }
 0x994   :  { %v2206_v15 = vpop.f32.mrf.mxu1  ;;  %v7171_v6 = vpop.eup %7170 }
 0x995   :  { %6500 = vmatpush.msk.msrb.mxu3 %vm188_vm0, %v2206_v15  ;;  %v7010_v2 = vpop.permute.xlu1 %7009  ;;  %v2039_v8 = vmul.f32 %v7171_v6, %v8405_v19  ;;  %v859_v19 = vld [vmem:[%s10505_s24 + $0x10] sm:$0xff] }
 0x996   :  { %v7011_v48 = vunpack.i.l.bf16 %v7010_v2  ;;  %v7012_v53 = vunpack.i.h.bf16 %v7010_v2 }
 0x997   :  { %2243 = vmatpush.msrb.mxu3 %v2203_v50 }
 0x998   :  { %2087 = vmatpush.msrb.mxu2 %v7011_v48 }
 0x999   :  { %2244 = vmatpush.msrb.mxu3 %v2200_v45  ;;  %v7053_v45 = vld [vmem:[%s10507_s23] ss:$0 sm:$0xff] }
 0x99a   :  { %2088 = vmatpush.msrb.mxu2 %v7012_v53  ;;  %v1627_v53 = vadd.f32 %v8344_v28, %v8413_v35 }
 0x99b   :  { %6483 = vmatmul.msk.f32.vlgmr.msrb.gmra.mxu2 %vm287_vm3, %v2037_v60  ;;  %2245 = vmatpush.msrb.mxu3 %v2197_v41  ;;  %v1624_v41 = vadd.f32 %v8339_v5, %v8409_v43 }
 0x99c   :  { %2303 = vmatpush.msra.mxu2 %v2275_v33  ;;  %v1895_v51 = vadd.f32 %v8427_v62, %v1627_v53 }
 0x99d   :  { %2246 = vmatpush.msrb.mxu3 %v2194_v49  ;;  %v1894_v50 = vadd.f32 %v8424_v52, %v1624_v41  ;;  %v1630_v52 = vadd.f32 %v8347_v54, %v8415_v18 }
 0x99e   :  { %6501 = vmatmul.msk.f32.vlgmr.msrb.gmra.mxu3 %vm287_vm3, %v857_v46  ;;  %2304 = vmatpush.msra.mxu2 %v2274_v9 }
 0x99f   :  { %v1896_v46 = vadd.f32 %v8429_v31, %v1630_v52 }
 0x9a0   :  { %2305 = vmatpush.msra.mxu2 %v2273_v23 }
 0x9a2   :  { %2306 = vmatpush.msra.mxu2 %v2272_v11 }
 0x9a3   :  { %6484 = vmatmul.msk.f32.gmra.mxu2 %vm287_vm3, %v2038_v63 }
 0x9a4   :  { %2307 = vmatpush.msra.mxu2 %v2271_v40 }
 0x9a6   :  { %6502 = vmatmul.msk.f32.gmra.mxu3 %vm287_vm3, %v858_v1  ;;  %2308 = vmatpush.msra.mxu2 %v2270_v20 }
 0x9ab   :  { %6485 = vmatmul.msk.f32.gmra.mxu2 %vm287_vm3, %v2039_v8 }
 0x9ae   :  { %6503 = vmatmul.msk.f32.gmra.mxu3 %vm287_vm3, %v859_v19 }
 0x9b6   :  { %6504 = vmatmul.msk.f32.gmra.mxu3 %vm287_vm3, %v860_v47 }
 0x9b9   :  { %v2031_v14 = vpop.xlane.xlu0 %2030 }
 0x9be   :  { %6505 = vmatmul.msk.f32.gmra.mxu3 %vm287_vm3, %v861_v3 }
 0x9c0   :  { %v2028_v44 = vpop.xlane.xlu1 %2027 }
 0x9c1   :  { %7172 = vrcp.f32 %v2028_v44 }
 0x9c2   :  { %7174 = vrcp.f32 %v2031_v14 }
 0x9c7   :  { %v7173_v13 = vpop.eup %7172 }
 0x9c8   :  { %v2040_v12 = vmul.f32 %v7173_v13, %v7165_v29  ;;  %v7175_v26 = vpop.eup %7174  ;;  %v2269_v29 = vld [vmem:[%s10506_s22 + $0x8] sm:$0xff]  ;;  %v1633_v13 = vadd.f32 %v8351_v56, %v8417_v16 }
 0x9c9   :  { %v2041_v27 = vmul.f32 %v7175_v26, %v7163_v42  ;;  %2309 = vmatpush.msra.mxu2 %v2269_v29 }
 0x9ca   :  { %6486 = vmatmul.msk.f32.gmra.mxu2 %vm287_vm3, %v2040_v12  ;;  %v1897_v12 = vadd.f32 %v8431_v34, %v1633_v13  ;;  %v7054_v34 = vld [vmem:[%s10509_s28] ss:$0 sm:$0xff] }
 0x9cb   :  { %2310 = vmatpush.msra.mxu2 %v2268_v36  ;;  %v2472_v13 = vld [vmem:[%s10510_s1 + $0x60] sm:$0xff] }
 0x9d2   :  { %6487 = vmatmul.msk.f32.gmra.mxu2 %vm287_vm3, %v2041_v27  ;;  %v1636_v27 = vadd.f32 %v8353_v59, %v8420_v25 }
 0x9d4   :  { %v1898_v19 = vadd.f32 %v8433_v55, %v1636_v27  ;;  %v2466_v27 = vld [vmem:[%s10510_s1 + $0x30] sm:$0xff] }
 0xa1e   :  { %v2090_v17 = vpop.f32.mrf.mxu2 }
 0xa1f   :  { %6490 = vmatmul.msk.f32.vlgmr.msra.gmra.mxu0 %vm1145_vm8, %v2090_v17 }
 0xa21   :  { %v2248_v49 = vpop.f32.mrf.mxu3 }
 0xa22   :  { %v2249_v2 = vadd.f32 %v7053_v45, %v2248_v49 }
 0xa26   :  { %v2093_v57 = vpop.f32.mrf.mxu2 }
 0xa27   :  { %6491 = vmatmul.msk.f32.gmra.mxu0 %vm1145_vm8, %v2093_v57 }
 0xa29   :  { %v2251_v48 = vpop.f32.mrf.mxu3 }
 0xa2a   :  { %v2252_v5 = vadd.f32 %v7053_v45, %v2251_v48 }
 0xa2e   :  { %v2096_v37 = vpop.f32.mrf.mxu2 }
 0xa2f   :  { %6492 = vmatmul.msk.f32.gmra.mxu0 %vm1145_vm8, %v2096_v37 }
 0xa31   :  { %v2254_v8 = vpop.f32.mrf.mxu3 }
 0xa32   :  { %v2255_v35 = vadd.f32 %v7053_v45, %v2254_v8 }
 0xa39   :  { %v2257_v14 = vpop.f32.mrf.mxu3 }
 0xa3a   :  { %v2258_v26 = vadd.f32 %v7053_v45, %v2257_v14  ;;  %v2475_v14 = vld [vmem:[%s10510_s1 + $0x78] sm:$0xff] }
 0xa3b   :  { %2537 = vmatpush.msra.mxu1 %v2475_v14 }
 0xa41   :  { %v2260_v1 = vpop.f32.mrf.mxu3 }
 0xa42   :  { %v2261_v57 = vadd.f32 %v7053_v45, %v2260_v1  ;;  %v2464_v1 = vld [vmem:[%s10510_s1 + $0x20] sm:$0xff] }
 0xa4d   :  { %v2099_v0 = vpop.f32.mrf.mxu2 }
 0xa4e   :  { %6493 = vmatmul.msk.f32.gmra.mxu0 %vm1145_vm8, %v2099_v0 }
 0xa55   :  { %v2102_v42 = vpop.f32.mrf.mxu2 }
 0xa56   :  { %6494 = vmatmul.msk.f32.gmra.mxu0 %vm1145_vm8, %v2102_v42 }
 0xa9c   :  { %v2140_v15 = vpop.f32.mrf.mxu0 }
 0xa9d   :  { %v2155_v24 = vadd.f32 %v2140_v15, %v1894_v50 }
 0xa9f   :  { %v2164_v22 = vadd.f32 %v7052_v4, %v2155_v24 }
 0xaa1   :  { %v2263_v60 = vadd.f32 %v2249_v2, %v2164_v22 }
 0xaa3   :  { %6506 = vmatmul.msk.f32.vlgmr.msra.gmra.mxu2 %vm239_vm2, %v2263_v60 }
 0xaa4   :  { %v2143_v61 = vpop.f32.mrf.mxu0 }
 0xaa5   :  { %v2156_v63 = vadd.f32 %v2143_v61, %v1895_v51 }
 0xaa7   :  { %v2165_v43 = vadd.f32 %v7052_v4, %v2156_v63 }
 0xaa9   :  { %v2264_v6 = vadd.f32 %v2252_v5, %v2165_v43 }
 0xaab   :  { %6507 = vmatmul.msk.f32.gmra.mxu2 %vm239_vm2, %v2264_v6 }
 0xaac   :  { %v2146_v58 = vpop.f32.mrf.mxu0 }
 0xaad   :  { %v2157_v28 = vadd.f32 %v2146_v58, %v1896_v46 }
 0xaaf   :  { %v2166_v44 = vadd.f32 %v7052_v4, %v2157_v28 }
 0xab1   :  { %v2265_v62 = vadd.f32 %v2255_v35, %v2166_v44 }
 0xab3   :  { %6508 = vmatmul.msk.f32.gmra.mxu2 %vm239_vm2, %v2265_v62  ;;  %v2474_v62 = vld [vmem:[%s10510_s1 + $0x70] sm:$0xff] }
 0xab4   :  { %2505 = vmatpush.msrb.mxu0 %v2474_v62 }
 0xab6   :  { %2506 = vmatpush.msrb.mxu0 %v2472_v13 }
 0xacb   :  { %v2149_v54 = vpop.f32.mrf.mxu0 }
 0xacc   :  { %v2158_v18 = vadd.f32 %v2149_v54, %v1897_v12  ;;  %v2473_v12 = vld [vmem:[%s10510_s1 + $0x68] sm:$0xff]  ;;  %v2470_v54 = vld [vmem:[%s10510_s1 + $0x50] sm:$0xff] }
 0xacd   :  { %2538 = vmatpush.msra.mxu1 %v2473_v12  ;;  %2507 = vmatpush.msrb.mxu0 %v2470_v54 }
 0xace   :  { %v2167_v31 = vadd.f32 %v7052_v4, %v2158_v18  ;;  %v2471_v18 = vld [vmem:[%s10510_s1 + $0x58] sm:$0xff] }
 0xacf   :  { %2539 = vmatpush.msra.mxu1 %v2471_v18 }
 0xad0   :  { %v2266_v10 = vadd.f32 %v2258_v26, %v2167_v31  ;;  %v2468_v26 = vld [vmem:[%s10510_s1 + $0x40] sm:$0xff]  ;;  %v2469_v31 = vld [vmem:[%s10510_s1 + $0x48] sm:$0xff] }
 0xad1   :  { %2508 = vmatpush.msrb.mxu0 %v2468_v26  ;;  %2540 = vmatpush.msra.mxu1 %v2469_v31 }
 0xad2   :  { %6509 = vmatmul.msk.f32.gmra.mxu2 %vm239_vm2, %v2266_v10  ;;  %v2467_v10 = vld [vmem:[%s10510_s1 + $0x38] sm:$0xff] }
 0xad3   :  { %v2152_v47 = vpop.f32.mrf.mxu0  ;;  %2509 = vmatpush.msrb.mxu0 %v2466_v27  ;;  %2541 = vmatpush.msra.mxu1 %v2467_v10 }
 0xad4   :  { %v2159_v17 = vadd.f32 %v2152_v47, %v1898_v19  ;;  %v2465_v19 = vld [vmem:[%s10510_s1 + $0x28] sm:$0xff]  ;;  %v2462_v47 = vld [vmem:[%s10510_s1 + $0x10] sm:$0xff] }
 0xad5   :  { %2510 = vmatpush.msrb.mxu0 %v2464_v1  ;;  %2542 = vmatpush.msra.mxu1 %v2465_v19 }
 0xad6   :  { %v2168_v56 = vadd.f32 %v7052_v4, %v2159_v17  ;;  %v2463_v17 = vld [vmem:[%s10510_s1 + $0x18] sm:$0xff] }
 0xad7   :  { %2511 = vmatpush.msrb.mxu0 %v2462_v47  ;;  %2543 = vmatpush.msra.mxu1 %v2463_v17 }
 0xad8   :  { %v2267_v16 = vadd.f32 %v2261_v57, %v2168_v56  ;;  %v2460_v57 = vld [vmem:[%s10510_s1] sm:$0xff]  ;;  %v2461_v56 = vld [vmem:[%s10510_s1 + $0x8] sm:$0xff] }
 0xad9   :  { %2512 = vmatpush.msrb.mxu0 %v2460_v57  ;;  %2544 = vmatpush.msra.mxu1 %v2461_v56 }
 0xada   :  { %6510 = vmatmul.msk.f32.gmra.mxu2 %vm239_vm2, %v2267_v16 }
 0xb26   :  { %v2312_v37 = vpop.f32.mrf.mxu2 }
 0xb27   :  { %v2313_v3 = vadd.f32 %v7054_v34, %v2312_v37 }
 0xb29   :  { %v8493_v33 = vadd.f32 %v2313_v3, %v7861_v39 }
 0xb2b   :  { %v2334_v59 = vsel %vm239_vm2, %v8493_v33, 0.0 }
 0xb2c   :  { %2335 = vadd.xlane.f32.xlu2 %v2334_v59 }
 0xb2e   :  { %v2315_v25 = vpop.f32.mrf.mxu2 }
 0xb2f   :  { %v2316_v55 = vadd.f32 %v7054_v34, %v2315_v25 }
 0xb31   :  { %v8498_v9 = vadd.f32 %v2316_v55, %v7866_v32 }
 0xb33   :  { %v2337_v23 = vsel %vm239_vm2, %v8498_v9, 0.0 }
 0xb34   :  { %2338 = vadd.xlane.f32.xlu1 %v2337_v23 }
 0xb36   :  { %v2318_v11 = vpop.f32.mrf.mxu2 }
 0xb37   :  { %v2319_v0 = vadd.f32 %v7054_v34, %v2318_v11 }
 0xb39   :  { %v8503_v42 = vadd.f32 %v2319_v0, %v7871_v38 }
 0xb3b   :  { %v2340_v39 = vsel %vm239_vm2, %v8503_v42, 0.0 }
 0xb3c   :  { %2341 = vadd.xlane.f32.xlu0 %v2340_v39 }
 0xb55   :  { %v2321_v40 = vpop.f32.mrf.mxu2 }
 0xb56   :  { %v2322_v20 = vadd.f32 %v7054_v34, %v2321_v40 }
 0xb58   :  { %v8508_v29 = vadd.f32 %v2322_v20, %v7876_v21 }
 0xb5a   :  { %v2343_v32 = vsel %vm239_vm2, %v8508_v29, 0.0 }
 0xb5b   :  { %2344 = vadd.xlane.f32.xlu2 %v2343_v32 }
 0xb5d   :  { %v2324_v36 = vpop.f32.mrf.mxu2 }
 0xb5e   :  { %v2325_v49 = vadd.f32 %v7054_v34, %v2324_v36 }
 0xb60   :  { %v8513_v41 = vadd.f32 %v2325_v49, %v7881_v30 }
 0xb62   :  { %v2346_v38 = vsel %vm876_vm1, %v8513_v41, 0.0 }
 0xb63   :  { %2347 = vadd.xlane.f32.xlu1 %v2346_v38 }
 0xb9f   :  { %v2336_v45 = vpop.xlane.xlu2 %2335 }
 0xba0   :  { %v2349_v50 = vmul.f32 %v2336_v45, %v7885_v7  ;;  %v8572_v45 = vld [vmem:[%s10511_s2] ss:$0 sm:$0xff] }
 0xba2   :  { %v8519_v4 = vsub.f32 %v8493_v33, %v2349_v50 }
 0xba4   :  { %v2359_v21 = vmul.f32 %v8519_v4, %v8519_v4 }
 0xba6   :  { %v2364_v15 = vsel %vm239_vm2, %v2359_v21, 0.0 }
 0xba7   :  { %v2339_v24 = vpop.xlane.xlu1 %2338  ;;  %2365 = vadd.xlane.f32.xlu0 %v2364_v15  ;;  %v8575_v15 = vld [vmem:[%s10512_s7] ss:$0 sm:$0xff] }
 0xba8   :  { %v2350_v30 = vmul.f32 %v2339_v24, %v7885_v7 }
 0xbaa   :  { %v8526_v2 = vsub.f32 %v8498_v9, %v2350_v30 }
 0xbac   :  { %v2360_v22 = vmul.f32 %v8526_v2, %v8526_v2 }
 0xbae   :  { %v2367_v48 = vsel %vm239_vm2, %v2360_v22, 0.0 }
 0xbaf   :  { %v2342_v53 = vpop.xlane.xlu0 %2341  ;;  %2368 = vadd.xlane.f32.xlu2 %v2367_v48 }
 0xbb0   :  { %v2351_v60 = vmul.f32 %v2342_v53, %v7885_v7 }
 0xbb2   :  { %v8533_v51 = vsub.f32 %v8503_v42, %v2351_v60 }
 0xbb4   :  { %v2361_v61 = vmul.f32 %v8533_v51, %v8533_v51 }
 0xbb6   :  { %v2370_v63 = vsel %vm239_vm2, %v2361_v61, 0.0 }
 0xbb7   :  { %2371 = vadd.xlane.f32.xlu1 %v2370_v63 }
 0xbce   :  { %v2345_v5 = vpop.xlane.xlu2 %2344 }
 0xbcf   :  { %v2352_v43 = vmul.f32 %v2345_v5, %v7885_v7 }
 0xbd1   :  { %v8540_v52 = vsub.f32 %v8508_v29, %v2352_v43 }
 0xbd3   :  { %v2362_v6 = vmul.f32 %v8540_v52, %v8540_v52 }
 0xbd5   :  { %v2373_v8 = vsel %vm239_vm2, %v2362_v6, 0.0 }
 0xbd6   :  { %2374 = vadd.xlane.f32.xlu0 %v2373_v8  ;;  %v2348_v46 = vpop.xlane.xlu1 %2347 }
 0xbd7   :  { %v2353_v58 = vmul.f32 %v2348_v46, %v7885_v7 }
 0xbd9   :  { %v8547_v28 = vsub.f32 %v8513_v41, %v2353_v58 }
 0xbdb   :  { %v2363_v35 = vmul.f32 %v8547_v28, %v8547_v28 }
 0xbdd   :  { %v2376_v44 = vsel %vm876_vm1, %v2363_v35, 0.0 }
 0xbde   :  { %2377 = vadd.xlane.f32.xlu2 %v2376_v44 }
 0xc1a   :  { %v2366_v16 = vpop.xlane.xlu0 %2365 }
 0xc1b   :  { %v2379_v34 = vmul.f32 %v2366_v16, %v7885_v7 }
 0xc1d   :  { %v2384_v37 = vadd.f32 1e-05, %v2379_v34 }
 0xc1f   :  { %7176 = vrsqrt.f32 %v2384_v37  ;;  %vm2395_vm11 = vweird.f32 %v2384_v37 }
 0xc22   :  { %v2369_v3 = vpop.xlane.xlu2 %2368 }
 0xc23   :  { %v2380_v59 = vmul.f32 %v2369_v3, %v7885_v7 }
 0xc25   :  { %v7177_v25 = vpop.eup %7176  ;;  %v2385_v55 = vadd.f32 1e-05, %v2380_v59 }
 0xc26   :  { %v2390_v23 = vmul.f32 %v7177_v25, %v2384_v37  ;;  %vm2396_vm10 = vweird.f32 %v7177_v25 }
 0xc27   :  { %7178 = vrsqrt.f32 %v2385_v55  ;;  %vm2397_vm12 = vmor %vm2395_vm11, %vm2396_vm10  ;;  %vm2405_vm14 = vweird.f32 %v2385_v55 }
 0xc28   :  { %v2391_v11 = vmul.f32 %v7177_v25, %v2390_v23 }
 0xc2a   :  { %v2392_v0 = vmul.f32 0.5, %v2391_v11  ;;  %v2372_v39 = vpop.xlane.xlu1 %2371 }
 0xc2b   :  { %v2381_v40 = vmul.f32 %v2372_v39, %v7885_v7  ;;  %v2476_v39 = vld [vmem:[%s10513_s10] sm:$0x3] }
 0xc2c   :  { %v2393_v20 = vsub.f32 1.5, %v2392_v0 }
 0xc2d   :  { %v7179_v32 = vpop.eup %7178  ;;  %v2386_v36 = vadd.f32 1e-05, %v2381_v40  ;;  %v8605_v40 = vperm.slane %v2476_v39, 0 }
 0xc2e   :  { %v2394_v49 = vmul.f32 %v7177_v25, %v2393_v20  ;;  %v2400_v38 = vmul.f32 %v7179_v32, %v2385_v55  ;;  %vm2406_vm13 = vweird.f32 %v7179_v32  ;;  %v8607_v20 = vperm.slane %v2476_v39, 1 }
 0xc2f   :  { %7180 = vrsqrt.f32 %v2386_v36  ;;  %vm2407_vm15 = vmor %vm2405_vm14, %vm2406_vm13  ;;  %vm2415_vm5 = vweird.f32 %v2386_v36 }
 0xc30   :  { %v2398_v50 = vsel %vm2397_vm12, %v7177_v25, %v2394_v49  ;;  %v2401_v21 = vmul.f32 %v7179_v32, %v2400_v38 }
 0xc31   :  { %v2439_v24 = vmul.f32 %v2398_v50, %v8519_v4  ;;  %v3016_v50 = vld [vmem:[%s10514_s11 + $0x78] sm:$0xff] }
 0xc32   :  { %v2402_v30 = vmul.f32 0.5, %v2401_v21  ;;  %v3032_v21 = vld [vmem:[%s10514_s11 + $0xf8] sm:$0xff]  ;;  %3033 = vmatpush.msra.mxu3 %v3016_v50  ;;  %v3025_v50 = vld [vmem:[%s10514_s11 + $0xc0] sm:$0xff] }
 0xc33   :  { %v2447_v22 = vmul.f32 %v8572_v45, %v2439_v24  ;;  %3065 = vmatpush.msrb.mxu2 %v3032_v21 }
 0xc34   :  { %v2403_v48 = vsub.f32 1.5, %v2402_v30  ;;  %v3015_v30 = vld [vmem:[%s10514_s11 + $0x70] sm:$0xff] }
 0xc35   :  { %v7181_v53 = vpop.eup %7180  ;;  %v2455_v60 = vadd.f32 %v8575_v15, %v2447_v22  ;;  %v3031_v22 = vld [vmem:[%s10514_s11 + $0xf0] sm:$0xff]  ;;  %3034 = vmatpush.msra.mxu3 %v3015_v30 }
 0xc36   :  { %v2404_v61 = vmul.f32 %v7179_v32, %v2403_v48  ;;  %v2410_v63 = vmul.f32 %v7181_v53, %v2386_v36  ;;  %vm2416_vm4 = vweird.f32 %v7181_v53  ;;  %3066 = vmatpush.msrb.mxu2 %v3031_v22 }
 0xc37   :  { %6511 = vmatmul.msk.f32.vlgmr.msrb.gmra.mxu0 %vm239_vm2, %v2455_v60  ;;  %6516 = vmatmul.msk.f32.vlgmr.msra.gmra.mxu1 %vm239_vm2, %v2455_v60  ;;  %vm2417_vm6 = vmor %vm2415_vm5, %vm2416_vm4 }
 0xc38   :  { %v2408_v5 = vsel %vm2407_vm15, %v7179_v32, %v2404_v61  ;;  %v2411_v43 = vmul.f32 %v7181_v53, %v2410_v63  ;;  %v3014_v63 = vld [vmem:[%s10514_s11 + $0x68] sm:$0xff] }
 0xc39   :  { %v2440_v4 = vmul.f32 %v2408_v5, %v8526_v2  ;;  %v3030_v5 = vld [vmem:[%s10514_s11 + $0xe8] sm:$0xff]  ;;  %3035 = vmatpush.msra.mxu3 %v3014_v63 }
 0xc3a   :  { %v2412_v6 = vmul.f32 0.5, %v2411_v43  ;;  %3067 = vmatpush.msrb.mxu2 %v3030_v5 }
 0xc3b   :  { %v2448_v8 = vmul.f32 %v8572_v45, %v2440_v4 }
 0xc3c   :  { %v2413_v46 = vsub.f32 1.5, %v2412_v6 }
 0xc3d   :  { %v2456_v58 = vadd.f32 %v8575_v15, %v2448_v8 }
 0xc3e   :  { %v2414_v35 = vmul.f32 %v7181_v53, %v2413_v46 }
 0xc3f   :  { %6512 = vmatmul.msk.f32.gmra.mxu0 %vm239_vm2, %v2456_v58  ;;  %6517 = vmatmul.msk.f32.gmra.mxu1 %vm239_vm2, %v2456_v58 }
 0xc40   :  { %v2418_v44 = vsel %vm2417_vm6, %v7181_v53, %v2414_v35  ;;  %v3013_v35 = vld [vmem:[%s10514_s11 + $0x60] sm:$0xff] }
 0xc41   :  { %v2441_v62 = vmul.f32 %v2418_v44, %v8533_v51  ;;  %v3029_v44 = vld [vmem:[%s10514_s11 + $0xe0] sm:$0xff]  ;;  %3036 = vmatpush.msra.mxu3 %v3013_v35  ;;  %v3007_v35 = vld [vmem:[%s10514_s11 + $0x30] sm:$0xff] }
 0xc42   :  { %3068 = vmatpush.msrb.mxu2 %v3029_v44  ;;  %v3023_v44 = vld [vmem:[%s10514_s11 + $0xb0] sm:$0xff] }
 0xc43   :  { %v2449_v14 = vmul.f32 %v8572_v45, %v2441_v62 }
 0xc45   :  { %v2457_v2 = vadd.f32 %v8575_v15, %v2449_v14 }
 0xc47   :  { %6513 = vmatmul.msk.f32.gmra.mxu0 %vm239_vm2, %v2457_v2  ;;  %6518 = vmatmul.msk.f32.gmra.mxu1 %vm239_vm2, %v2457_v2 }
 0xc49   :  { %v2375_v13 = vpop.xlane.xlu0 %2374 }
 0xc4a   :  { %v2382_v12 = vmul.f32 %v2375_v13, %v7885_v7 }
 0xc4c   :  { %v2387_v54 = vadd.f32 1e-05, %v2382_v12 }
 0xc4e   :  { %7182 = vrsqrt.f32 %v2387_v54  ;;  %vm2425_vm10 = vweird.f32 %v2387_v54 }
 0xc51   :  { %v2378_v18 = vpop.xlane.xlu2 %2377 }
 0xc52   :  { %v2383_v26 = vmul.f32 %v2378_v18, %v7885_v7 }
 0xc54   :  { %v7183_v31 = vpop.eup %7182  ;;  %v2388_v27 = vadd.f32 1e-05, %v2383_v26 }
 0xc55   :  { %v2420_v10 = vmul.f32 %v7183_v31, %v2387_v54  ;;  %vm2426_vm7 = vweird.f32 %v7183_v31 }
 0xc56   :  { %7184 = vrsqrt.f32 %v2388_v27  ;;  %vm2427_vm11 = vmor %vm2425_vm10, %vm2426_vm7  ;;  %vm2435_vm13 = vweird.f32 %v2388_v27 }
 0xc57   :  { %v2421_v51 = vmul.f32 %v7183_v31, %v2420_v10  ;;  %v3028_v10 = vld [vmem:[%s10514_s11 + $0xd8] sm:$0xff] }
 0xc58   :  { %3069 = vmatpush.msrb.mxu2 %v3028_v10 }
 0xc59   :  { %v2422_v1 = vmul.f32 0.5, %v2421_v51 }
 0xc5b   :  { %v2423_v19 = vsub.f32 1.5, %v2422_v1 }
 0xc5c   :  { %v7185_v47 = vpop.eup %7184 }
 0xc5d   :  { %v2424_v17 = vmul.f32 %v7183_v31, %v2423_v19  ;;  %v2430_v57 = vmul.f32 %v7185_v47, %v2388_v27  ;;  %vm2436_vm12 = vweird.f32 %v7185_v47  ;;  %v3012_v27 = vld [vmem:[%s10514_s11 + $0x58] sm:$0xff]  ;;  %v3011_v19 = vld [vmem:[%s10514_s11 + $0x50] sm:$0xff] }
 0xc5e   :  { %vm2437_vm14 = vmor %vm2435_vm13, %vm2436_vm12  ;;  %3037 = vmatpush.msra.mxu3 %v3012_v27  ;;  %v3022_v27 = vld [vmem:[%s10514_s11 + $0xa8] sm:$0xff] }
 0xc5f   :  { %v2428_v56 = vsel %vm2427_vm11, %v7183_v31, %v2424_v17  ;;  %v2431_v16 = vmul.f32 %v7185_v47, %v2430_v57 }
 0xc60   :  { %v2442_v34 = vmul.f32 %v2428_v56, %v8540_v52  ;;  %3038 = vmatpush.msra.mxu3 %v3011_v19  ;;  %v3005_v19 = vld [vmem:[%s10514_s11 + $0x20] sm:$0xff] }
 0xc61   :  { %v2432_v37 = vmul.f32 0.5, %v2431_v16 }
 0xc62   :  { %v2450_v3 = vmul.f32 %v8572_v45, %v2442_v34 }
 0xc63   :  { %v2433_v59 = vsub.f32 1.5, %v2432_v37 }
 0xc64   :  { %v2458_v25 = vadd.f32 %v8575_v15, %v2450_v3 }
 0xc65   :  { %v2434_v55 = vmul.f32 %v7185_v47, %v2433_v59  ;;  %v3010_v59 = vld [vmem:[%s10514_s11 + $0x48] sm:$0xff] }
 0xc66   :  { %6514 = vmatmul.msk.f32.gmra.mxu0 %vm239_vm2, %v2458_v25  ;;  %6519 = vmatmul.msk.f32.gmra.mxu1 %vm239_vm2, %v2458_v25  ;;  %v3026_v25 = vld [vmem:[%s10514_s11 + $0xc8] sm:$0xff] }
 0xc67   :  { %v2438_v23 = vsel %vm2437_vm14, %v7185_v47, %v2434_v55  ;;  %v3027_v47 = vld [vmem:[%s10514_s11 + $0xd0] sm:$0xff]  ;;  %3039 = vmatpush.msra.mxu3 %v3010_v59  ;;  %v3004_v59 = vld [vmem:[%s10514_s11 + $0x18] sm:$0xff] }
 0xc68   :  { %v2443_v52 = vmul.f32 %v2438_v23, %v8547_v28  ;;  %3070 = vmatpush.msrb.mxu2 %v3027_v47  ;;  %v3021_v47 = vld [vmem:[%s10514_s11 + $0xa0] sm:$0xff] }
 0xc6a   :  { %v2451_v11 = vmul.f32 %v8572_v45, %v2443_v52  ;;  %3071 = vmatpush.msrb.mxu2 %v3026_v25 }
 0xc6c   :  { %v2459_v0 = vadd.f32 %v8575_v15, %v2451_v11  ;;  %3072 = vmatpush.msrb.mxu2 %v3025_v50 }
 0xc6e   :  { %6515 = vmatmul.msk.f32.gmra.mxu0 %vm239_vm2, %v2459_v0  ;;  %6520 = vmatmul.msk.f32.gmra.mxu1 %vm239_vm2, %v2459_v0 }
 0xcb4   :  { %v2514_v32 = vpop.f32.mrf.mxu0  ;;  %v2546_v36 = vpop.f32.mrf.mxu1 }
 0xcb5   :  { %v8610_v49 = vadd.f32 %v2514_v32, %v8605_v40  ;;  %v8613_v28 = vadd.f32 %v2546_v36, %v8607_v20  ;;  %v3009_v36 = vld [vmem:[%s10514_s11 + $0x40] sm:$0xff] }
 0xcb6   :  { %3040 = vmatpush.msra.mxu3 %v3009_v36 }
 0xcb7   :  { %v8616_v38 = vmul.f32 0.70710677, %v8610_v49  ;;  %v8619_v45 = vmul.f32 0.70710677, %v8613_v28 }
 0xcb9   :  { %v2581_v15 = vmul.f32 %v8616_v38, %v8616_v38  ;;  %v2621_v24 = vmul.f32 %v8619_v45, %v8619_v45 }
 0xcbb   :  { %v8629_v48 = vmin.f32 %v2581_v15, 16.0  ;;  %v8631_v53 = vmin.f32 %v2621_v24, 16.0 }
 0xcbc   :  { %v2517_v60 = vpop.f32.mrf.mxu0  ;;  %v2549_v61 = vpop.f32.mrf.mxu1 }
 0xcbd   :  { %v2583_v43 = vmul.f32 2.1237322e-06, %v8629_v48  ;;  %v2594_v4 = vmul.f32 3.8918573e-05, %v8629_v48  ;;  %v2623_v6 = vmul.f32 2.1237322e-06, %v8631_v53  ;;  %v8639_v8 = vadd.f32 %v2517_v60, %v8605_v40 }
 0xcbe   :  { %v2634_v46 = vmul.f32 3.8918573e-05, %v8631_v53  ;;  %v8643_v58 = vadd.f32 %v2549_v61, %v8607_v20 }
 0xcbf   :  { %v2584_v62 = vadd.f32 0.00028619796, %v2583_v43  ;;  %v2595_v14 = vadd.f32 0.001143296, %v2594_v4  ;;  %v2624_v2 = vadd.f32 0.00028619796, %v2623_v6 }
 0xcc0   :  { %v2635_v13 = vadd.f32 0.001143296, %v2634_v46  ;;  %v8648_v12 = vmul.f32 0.70710677, %v8639_v8  ;;  %v8654_v31 = vmul.f32 0.70710677, %v8643_v58 }
 0xcc1   :  { %v2585_v54 = vmul.f32 %v2584_v62, %v8629_v48  ;;  %v2596_v18 = vmul.f32 %v2595_v14, %v8629_v48  ;;  %v2625_v26 = vmul.f32 %v2624_v2, %v8631_v53  ;;  %v3008_v43 = vld [vmem:[%s10514_s11 + $0x38] sm:$0xff] }
 0xcc2   :  { %v2636_v51 = vmul.f32 %v2635_v13, %v8631_v53  ;;  %v2661_v1 = vmul.f32 %v8648_v12, %v8648_v12  ;;  %v2701_v16 = vmul.f32 %v8654_v31, %v8654_v31  ;;  %v3024_v4 = vld [vmem:[%s10514_s11 + $0xb8] sm:$0xff]  ;;  %3041 = vmatpush.msra.mxu3 %v3008_v43 }
 0xcc3   :  { %v2586_v17 = vadd.f32 0.0036580483, %v2585_v54  ;;  %v2597_v57 = vadd.f32 0.014752088, %v2596_v18  ;;  %v2626_v56 = vadd.f32 0.0036580483, %v2625_v26  ;;  %3073 = vmatpush.msrb.mxu2 %v3024_v4 }
 0xcc4   :  { %v2637_v34 = vadd.f32 0.014752088, %v2636_v51  ;;  %v8665_v37 = vmin.f32 %v2661_v1, 16.0  ;;  %v2520_v3 = vpop.f32.mrf.mxu0  ;;  %v8672_v11 = vmin.f32 %v2701_v16, 16.0  ;;  %3042 = vmatpush.msra.mxu3 %v3007_v35  ;;  %v3006_v26 = vld [vmem:[%s10514_s11 + $0x28] sm:$0xff]  ;;  %v2552_v36 = vpop.f32.mrf.mxu1 }
 0xcc5   :  { %v2587_v55 = vmul.f32 %v2586_v17, %v8629_v48  ;;  %v2598_v23 = vmul.f32 %v2597_v57, %v8629_v48  ;;  %v2627_v52 = vmul.f32 %v2626_v56, %v8631_v53  ;;  %v8677_v32 = vadd.f32 %v2520_v3, %v8605_v40  ;;  %3074 = vmatpush.msrb.mxu2 %v3023_v44 }
 0xcc6   :  { %v2638_v0 = vmul.f32 %v2637_v34, %v8631_v53  ;;  %v2663_v39 = vmul.f32 2.1237322e-06, %v8665_v37  ;;  %v2703_v60 = vmul.f32 2.1237322e-06, %v8672_v11  ;;  %3043 = vmatpush.msra.mxu3 %v3006_v26 }
 0xcc7   :  { %v2588_v21 = vadd.f32 0.05243302, %v2587_v55  ;;  %v2599_v15 = vadd.f32 0.112945676, %v2598_v23  ;;  %v2628_v24 = vadd.f32 0.05243302, %v2627_v52  ;;  %3075 = vmatpush.msrb.mxu2 %v3022_v27 }
 0xcc8   :  { %v2639_v30 = vadd.f32 0.112945676, %v2638_v0  ;;  %v2664_v22 = vadd.f32 0.00028619796, %v2663_v39  ;;  %v8689_v46 = vmul.f32 0.70710677, %v8677_v32  ;;  %3044 = vmatpush.msra.mxu3 %v3005_v19 }
 0xcc9   :  { %v2589_v61 = vmul.f32 %v2588_v21, %v8629_v48  ;;  %v2600_v63 = vmul.f32 %v2599_v15, %v8629_v48  ;;  %v2629_v5 = vmul.f32 %v2628_v24, %v8631_v53  ;;  %v2704_v2 = vadd.f32 0.00028619796, %v2703_v60  ;;  %3076 = vmatpush.msrb.mxu2 %v3021_v47  ;;  %v3020_v55 = vld [vmem:[%s10514_s11 + $0x98] sm:$0xff]  ;;  %v3003_v23 = vld [vmem:[%s10514_s11 + $0x10] sm:$0xff]  ;;  %v3017_v60 = vld [vmem:[%s10514_s11 + $0x80] sm:$0xff] }
 0xcca   :  { %v2640_v6 = vmul.f32 %v2639_v30, %v8631_v53  ;;  %v2665_v14 = vmul.f32 %v2664_v22, %v8665_v37  ;;  %v2741_v18 = vmul.f32 %v8689_v46, %v8689_v46  ;;  %3045 = vmatpush.msra.mxu3 %v3004_v59  ;;  %v8722_v24 = vadd.f32 %v2552_v36, %v8607_v20  ;;  %v3018_v30 = vld [vmem:[%s10514_s11 + $0x88] sm:$0xff]  ;;  %v3001_v22 = vld [vmem:[%s10514_s11] sm:$0xff] }
 0xccb   :  { %v2601_v62 = vadd.f32 0.4994258, %v2600_v63  ;;  %v2590_v13 = vadd.f32 0.18741608, %v2589_v61  ;;  %v2630_v51 = vadd.f32 0.18741608, %v2629_v5  ;;  %v2705_v56 = vmul.f32 %v2704_v2, %v8672_v11  ;;  %3077 = vmatpush.msrb.mxu2 %v3020_v55 }
 0xccc   :  { %v2641_v54 = vadd.f32 0.4994258, %v2640_v6  ;;  %v2666_v57 = vadd.f32 0.0036580483, %v2665_v14  ;;  %v8705_v16 = vmin.f32 %v2741_v18, 16.0  ;;  %3046 = vmatpush.msra.mxu3 %v3003_v23 }
 0xccd   :  { %v2602_v10 = vmul.f32 %v2601_v62, %v8629_v48  ;;  %v2591_v34 = vmul.f32 %v2590_v13, %v8629_v48  ;;  %v2631_v25 = vmul.f32 %v2630_v51, %v8631_v53  ;;  %v3019_v48 = vld [vmem:[%s10514_s11 + $0x90] sm:$0xff]  ;;  %v2706_v0 = vadd.f32 0.0036580483, %v2705_v56 }
 0xcce   :  { %v2642_v1 = vmul.f32 %v2641_v54, %v8631_v53  ;;  %v2667_v52 = vmul.f32 %v2666_v57, %v8665_v37  ;;  %v2743_v39 = vmul.f32 2.1237322e-06, %v8705_v16  ;;  %3078 = vmatpush.msrb.mxu2 %v3019_v48  ;;  %v3002_v53 = vld [vmem:[%s10514_s11 + $0x8] sm:$0xff]  ;;  %v2674_v61 = vmul.f32 3.8918573e-05, %v8665_v37 }
 0xccf   :  { %v8702_v17 = vadd.f32 1.0, %v2602_v10  ;;  %v2592_v50 = vadd.f32 1.1283791, %v2591_v34  ;;  %v2632_v15 = vadd.f32 1.1283791, %v2631_v25  ;;  %3047 = vmatpush.msra.mxu3 %v3002_v53  ;;  %v2707_v43 = vmul.f32 %v2706_v0, %v8672_v11 }
 0xcd0   :  { %v8708_v3 = vadd.f32 1.0, %v2642_v1  ;;  %v2668_v5 = vadd.f32 0.05243302, %v2667_v52  ;;  %v2744_v4 = vadd.f32 0.00028619796, %v2743_v39  ;;  %3079 = vmatpush.msrb.mxu2 %v3018_v30 }
 0xcd1   :  { %7186 = vrcp.f32 %v8702_v17  ;;  %v2613_v21 = vand.u32 2147483647, %v8702_v17  ;;  %v2714_v6 = vmul.f32 3.8918573e-05, %v8672_v11  ;;  %v2593_v44 = vmul.f32 %v2592_v50, %v8616_v38  ;;  %3048 = vmatpush.msra.mxu3 %v3001_v22 }
 0xcd2   :  { %7188 = vrcp.f32 %v8708_v3  ;;  %vm2609_vm15 = vweird.f32 %v8702_v17  ;;  %v2615_v14 = vand.u32 2147483648, %v8702_v17  ;;  %v2633_v2 = vmul.f32 %v2632_v15, %v8619_v45  ;;  %3080 = vmatpush.msrb.mxu2 %v3017_v60 }
 0xcd3   :  { %vm2649_vm4 = vweird.f32 %v8708_v3  ;;  %v2754_v54 = vmul.f32 3.8918573e-05, %v8705_v16  ;;  %vm8738_vm5 = vcmp.eq.f32.partialorder %v2613_v21, 8.507059e+37  ;;  %v8743_v38 = vmul.f32 0.70710677, %v8722_v24 }
 0xcd4   :  { %v2675_v27 = vadd.f32 0.001143296, %v2674_v61  ;;  %v2653_v51 = vand.u32 2147483647, %v8708_v3  ;;  %v2745_v45 = vmul.f32 %v2744_v4, %v8705_v16  ;;  %v2715_v1 = vadd.f32 0.001143296, %v2714_v6 }
 0xcd5   :  { %v2655_v47 = vand.u32 2147483648, %v8708_v3  ;;  %v2755_v59 = vadd.f32 0.001143296, %v2754_v54  ;;  %v2669_v55 = vmul.f32 %v2668_v5, %v8665_v37  ;;  %v2781_v23 = vmul.f32 %v8743_v38, %v8743_v38 }
 0xcd6   :  { %v2676_v57 = vmul.f32 %v2675_v27, %v8665_v37  ;;  %v2716_v34 = vmul.f32 %v2715_v1, %v8672_v11  ;;  %v2616_v52 = vor.u32 1.1754944e-38, %v2615_v14  ;;  %v2746_v39 = vadd.f32 0.0036580483, %v2745_v45 }
 0xcd7   :  { %v7187_v63 = vpop.eup %7186  ;;  %vm2654_vm12 = vcmp.eq.f32.partialorder %v2653_v51, 8.507059e+37  ;;  %v2656_v53 = vor.u32 1.1754944e-38, %v2655_v47  ;;  %v8762_v5 = vmin.f32 %v2781_v23, 16.0 }
 0xcd8   :  { %v7189_v35 = vpop.eup %7188  ;;  %v2605_v62 = vmul.f32 %v7187_v63, %v8702_v17  ;;  %vm2610_vm6 = vweird.f32 %v7187_v63  ;;  %v2677_v48 = vadd.f32 0.014752088, %v2676_v57  ;;  %v2717_v36 = vadd.f32 0.014752088, %v2716_v34 }
 0xcd9   :  { %v2645_v13 = vmul.f32 %v7189_v35, %v8708_v3  ;;  %vm2650_vm7 = vweird.f32 %v7189_v35  ;;  %vm2611_vm10 = vmor %vm2609_vm15, %vm2610_vm6  ;;  %v2756_v17 = vmul.f32 %v2755_v59, %v8705_v16  ;;  %v2708_v3 = vadd.f32 0.05243302, %v2707_v43 }
 0xcda   :  { %v2606_v18 = vsub.f32 1.0, %v2605_v62  ;;  %vm2651_vm11 = vmor %vm2649_vm4, %vm2650_vm7  ;;  %v2678_v21 = vmul.f32 %v2677_v48, %v8665_v37  ;;  %v2718_v22 = vmul.f32 %v2717_v36, %v8672_v11  ;;  %v2747_v6 = vmul.f32 %v2746_v39, %v8705_v16 }
 0xcdb   :  { %v2646_v10 = vsub.f32 1.0, %v2645_v13  ;;  %v2561_v43 = vmul.f32 0.5, %v8610_v49  ;;  %v2783_v45 = vmul.f32 2.1237322e-06, %v8762_v5  ;;  %v2709_v23 = vmul.f32 %v2708_v3, %v8672_v11 }
 0xcdc   :  { %v2607_v19 = vmul.f32 %v7187_v63, %v2606_v18  ;;  %v2719_v13 = vadd.f32 0.112945676, %v2718_v22  ;;  %v2670_v18 = vadd.f32 0.18741608, %v2669_v55  ;;  %v2748_v57 = vadd.f32 0.05243302, %v2747_v6 }
 0xcdd   :  { %v2647_v56 = vmul.f32 %v7189_v35, %v2646_v10 }
 0xcde   :  { %v2608_v25 = vadd.f32 %v7187_v63, %v2607_v19  ;;  %v2720_v10 = vmul.f32 %v2719_v13, %v8672_v11  ;;  %v2562_v19 = vmul.f32 0.5, %v8613_v28  ;;  %v2784_v28 = vadd.f32 0.00028619796, %v2783_v45 }
 0xcdf   :  { %v2648_v0 = vadd.f32 %v7189_v35, %v2647_v56  ;;  %v2794_v45 = vmul.f32 3.8918573e-05, %v8762_v5 }
 0xce0   :  { %v2612_v50 = vsel %vm2611_vm10, %v7187_v63, %v2608_v25  ;;  %v2679_v63 = vadd.f32 0.112945676, %v2678_v21  ;;  %v2721_v55 = vadd.f32 0.4994258, %v2720_v10  ;;  %v2785_v3 = vmul.f32 %v2784_v28, %v8762_v5 }
 0xce1   :  { %v2617_v15 = vsel %vm8738_vm5, %v2616_v52, %v2612_v50  ;;  %v2652_v30 = vsel %vm2651_vm11, %v7189_v35, %v2648_v0  ;;  %v2749_v50 = vmul.f32 %v2748_v57, %v8705_v16 }
 0xce2   :  { %v2618_v60 = vmul.f32 %v2617_v15, %v2593_v44  ;;  %v2657_v61 = vsel %vm2654_vm12, %v2656_v53, %v2652_v30  ;;  %v2680_v27 = vmul.f32 %v2679_v63, %v8665_v37  ;;  %v2722_v36 = vmul.f32 %v2721_v55, %v8672_v11 }
 0xce3   :  { %v2658_v4 = vmul.f32 %v2657_v61, %v2633_v2  ;;  %v2523_v62 = vpop.f32.mrf.mxu0  ;;  %v2555_v14 = vpop.f32.mrf.mxu1  ;;  %v2757_v2 = vadd.f32 0.014752088, %v2756_v17 }
 0xce4   :  { %v6521_v54 = vclamps-f32 %v2618_v60, 1.0  ;;  %v8766_v35 = vadd.f32 %v2523_v62, %v8605_v40  ;;  %v8769_v26 = vadd.f32 %v2555_v14, %v8607_v20  ;;  %v2681_v25 = vadd.f32 0.4994258, %v2680_v27 }
 0xce5   :  { %v6522_v44 = vclamps-f32 %v2658_v4, 1.0  ;;  %v2758_v52 = vmul.f32 %v2757_v2, %v8705_v16  ;;  %v2671_v60 = vmul.f32 %v2670_v18, %v8665_v37  ;;  %v8802_v63 = vadd.f32 1.0, %v2722_v36 }
 0xce6   :  { %v2981_v51 = vadd.f32 1.0, %v6521_v54  ;;  %v8776_v1 = vmul.f32 0.70710677, %v8766_v35  ;;  %v8780_v56 = vmul.f32 0.70710677, %v8769_v26  ;;  %v2682_v39 = vmul.f32 %v2681_v25, %v8665_v37 }
 0xce7   :  { %v2982_v47 = vadd.f32 1.0, %v6522_v44  ;;  %v2759_v17 = vadd.f32 0.112945676, %v2758_v52  ;;  %v2710_v4 = vadd.f32 0.18741608, %v2709_v23  ;;  %vm2729_vm6 = vweird.f32 %v8802_v63 }
 0xce8   :  { %v2991_v34 = vmul.f32 %v2981_v51, %v2561_v43  ;;  %v2821_v59 = vmul.f32 %v8776_v1, %v8776_v1  ;;  %v2861_v48 = vmul.f32 %v8780_v56, %v8780_v56  ;;  %v2683_v22 = vadd.f32 1.0, %v2682_v39 }
 0xce9   :  { %v2992_v49 = vmul.f32 %v2982_v47, %v2562_v19  ;;  %v2760_v14 = vmul.f32 %v2759_v17, %v8705_v16  ;;  %v2672_v13 = vadd.f32 1.1283791, %v2671_v60  ;;  %v2711_v18 = vmul.f32 %v2710_v4, %v8672_v11 }
 0xcea   :  { %v8788_v0 = vmin.f32 %v2821_v59, 16.0  ;;  %3049 = vmatmul.f32.vlgmr.msra.gmra.mxu3 %v2991_v34  ;;  %v8800_v61 = vmin.f32 %v2861_v48, 16.0  ;;  %7190 = vrcp.f32 %v2683_v22  ;;  %v2786_v44 = vadd.f32 0.0036580483, %v2785_v3 }
 0xceb   :  { %3081 = vmatmul.f32.vlgmr.msrb.gmra.mxu2 %v2992_v49  ;;  %v2526_v53 = vpop.f32.mrf.mxu0  ;;  %v2558_v21 = vpop.f32.mrf.mxu1  ;;  %7192 = vrcp.f32 %v8802_v63  ;;  %v2761_v51 = vadd.f32 0.4994258, %v2760_v14  ;;  %v8825_v47 = vmul.f32 0.5, %v8639_v8  ;;  %v2673_v57 = vmul.f32 %v2672_v13, %v8648_v12 }
 0xcec   :  { %v8794_v15 = vadd.f32 %v2526_v53, %v8605_v40  ;;  %v8797_v30 = vadd.f32 %v2558_v21, %v8607_v20  ;;  %v2823_v6 = vmul.f32 2.1237322e-06, %v8788_v0  ;;  %v2750_v40 = vadd.f32 0.18741608, %v2749_v50 }
 0xced   :  { %v2863_v54 = vmul.f32 2.1237322e-06, %v8800_v61  ;;  %v8829_v11 = vmul.f32 0.5, %v8643_v58  ;;  %v2712_v59 = vadd.f32 1.1283791, %v2711_v18  ;;  %v2787_v25 = vmul.f32 %v2786_v44, %v8762_v5 }
 0xcee   :  { %v8807_v62 = vmul.f32 0.70710677, %v8794_v15  ;;  %v8810_v20 = vmul.f32 0.70710677, %v8797_v30  ;;  %v2824_v27 = vadd.f32 0.00028619796, %v2823_v6  ;;  %v2751_v10 = vmul.f32 %v2750_v40, %v8705_v16 }
 0xcef   :  { %v2864_v34 = vadd.f32 0.00028619796, %v2863_v54  ;;  %v2762_v8 = vmul.f32 %v2761_v51, %v8705_v16  ;;  %vm2689_vm13 = vweird.f32 %v2683_v22  ;;  %v2795_v12 = vadd.f32 0.001143296, %v2794_v45 }
 0xcf0   :  { %v2901_v37 = vmul.f32 %v8807_v62, %v8807_v62  ;;  %v2941_v43 = vmul.f32 %v8810_v20, %v8810_v20  ;;  %v7191_v19 = vpop.eup %7190  ;;  %v2825_v55 = vmul.f32 %v2824_v27, %v8788_v0  ;;  %v2752_v48 = vadd.f32 1.1283791, %v2751_v10 }
 0xcf1   :  { %v2685_v49 = vmul.f32 %v7191_v19, %v2683_v22  ;;  %v7193_v23 = vpop.eup %7192  ;;  %v2865_v36 = vmul.f32 %v2864_v34, %v8800_v61  ;;  %v2693_v50 = vand.u32 2147483647, %v2683_v22  ;;  %v2695_v53 = vand.u32 2147483648, %v2683_v22 }
 0xcf2   :  { %v8819_v2 = vmin.f32 %v2901_v37, 16.0  ;;  %v8834_v28 = vmin.f32 %v2941_v43, 16.0  ;;  %v2725_v58 = vmul.f32 %v7193_v23, %v8802_v63  ;;  %v8839_v21 = vadd.f32 1.0, %v2762_v8 }
 0xcf3   :  { %v2686_v39 = vsub.f32 1.0, %v2685_v49  ;;  %v2826_v17 = vadd.f32 0.0036580483, %v2825_v55  ;;  %vm2690_vm14 = vweird.f32 %v7191_v19  ;;  %v2735_v16 = vand.u32 2147483648, %v8802_v63 }
 0xcf4   :  { %v2903_v52 = vmul.f32 2.1237322e-06, %v8819_v2  ;;  %v2726_v4 = vsub.f32 1.0, %v2725_v58  ;;  %v2943_v6 = vmul.f32 2.1237322e-06, %v8834_v28  ;;  %7194 = vrcp.f32 %v8839_v21  ;;  %vm2691_vm4 = vmor %vm2689_vm13, %vm2690_vm14 }
 0xcf5   :  { %v2687_v60 = vmul.f32 %v7191_v19, %v2686_v39  ;;  %vm2730_vm15 = vweird.f32 %v7193_v23  ;;  %v2733_v14 = vand.u32 2147483647, %v8802_v63  ;;  %v2866_v13 = vadd.f32 0.0036580483, %v2865_v36 }
 0xcf6   :  { %v2904_v3 = vadd.f32 0.00028619796, %v2903_v52  ;;  %v2727_v37 = vmul.f32 %v7193_v23, %v2726_v4  ;;  %vm2694_vm5 = vcmp.eq.f32.partialorder %v2693_v50, 8.507059e+37  ;;  %v2696_v54 = vor.u32 1.1754944e-38, %v2695_v53  ;;  %vm2731_vm7 = vmor %vm2729_vm6, %vm2730_vm15 }
 0xcf7   :  { %v2688_v40 = vadd.f32 %v7191_v19, %v2687_v60  ;;  %v2827_v18 = vmul.f32 %v2826_v17, %v8788_v0  ;;  %v2796_v10 = vmul.f32 %v2795_v12, %v8762_v5  ;;  %v2944_v51 = vadd.f32 0.00028619796, %v2943_v6 }
 0xcf8   :  { %v2728_v27 = vadd.f32 %v7193_v23, %v2727_v37  ;;  %v2905_v43 = vmul.f32 %v2904_v3, %v8819_v2  ;;  %v2736_v34 = vor.u32 1.1754944e-38, %v2735_v16  ;;  %v2713_v55 = vmul.f32 %v2712_v59, %v8654_v31 }
 0xcf9   :  { %v2692_v44 = vsel %vm2691_vm4, %v7191_v19, %v2688_v40  ;;  %vm2734_vm10 = vcmp.eq.f32.partialorder %v2733_v14, 8.507059e+37  ;;  %v2753_v63 = vmul.f32 %v2752_v48, %v8689_v46  ;;  %v2788_v8 = vadd.f32 0.05243302, %v2787_v25 }
 0xcfa   :  { %v2697_v45 = vsel %vm2694_vm5, %v2696_v54, %v2692_v44  ;;  %v2732_v49 = vsel %vm2731_vm7, %v7193_v23, %v2728_v27  ;;  %v7195_v52 = vpop.eup %7194  ;;  %v2867_v19 = vmul.f32 %v2866_v13, %v8800_v61  ;;  %v8853_v58 = vadd.f32 0.05243302, %v2827_v18 }
 0xcfb   :  { %v2698_v22 = vmul.f32 %v2697_v45, %v2673_v57  ;;  %v2737_v39 = vsel %vm2734_vm10, %v2736_v34, %v2732_v49  ;;  %v2765_v50 = vmul.f32 %v7195_v52, %v8839_v21  ;;  %v2906_v53 = vadd.f32 0.0036580483, %v2905_v43 }
 0xcfc   :  { %v2738_v36 = vmul.f32 %v2737_v39, %v2713_v55  ;;  %v2945_v17 = vmul.f32 %v2944_v51, %v8834_v28  ;;  %v2797_v31 = vadd.f32 0.014752088, %v2796_v10  ;;  %v2834_v57 = vmul.f32 3.8918573e-05, %v8788_v0 }
 0xcfd   :  { %v6523_v12 = vclamps-f32 %v2698_v22, 1.0  ;;  %v2766_v60 = vsub.f32 1.0, %v2765_v50  ;;  %v2773_v46 = vand.u32 2147483647, %v8839_v21  ;;  %v2775_v25 = vand.u32 2147483648, %v8839_v21 }
 0xcfe   :  { %v6524_v23 = vclamps-f32 %v2738_v36, 1.0  ;;  %v2798_v48 = vmul.f32 %v2797_v31, %v8762_v5  ;;  %v2835_v4 = vadd.f32 0.001143296, %v2834_v57  ;;  %v2874_v3 = vmul.f32 3.8918573e-05, %v8800_v61 }
 0xcff   :  { %v2983_v59 = vadd.f32 1.0, %v6523_v12  ;;  %v2767_v40 = vmul.f32 %v7195_v52, %v2766_v60  ;;  %vm2770_vm11 = vweird.f32 %v7195_v52  ;;  %v2946_v37 = vadd.f32 0.0036580483, %v2945_v17 }
 0xd00   :  { %v2984_v16 = vadd.f32 1.0, %v6524_v23  ;;  %v2799_v14 = vadd.f32 0.112945676, %v2798_v48  ;;  %v2836_v13 = vmul.f32 %v2835_v4, %v8788_v0  ;;  %v2875_v54 = vadd.f32 0.001143296, %v2874_v3 }
 0xd01   :  { %v2993_v6 = vmul.f32 %v2983_v59, %v8825_v47  ;;  %v2768_v44 = vadd.f32 %v7195_v52, %v2767_v40  ;;  %vm2769_vm12 = vweird.f32 %v8839_v21  ;;  %v2914_v27 = vmul.f32 3.8918573e-05, %v8819_v2 }
 0xd02   :  { %v2994_v18 = vmul.f32 %v2984_v16, %v8829_v11  ;;  %vm2771_vm13 = vmor %vm2769_vm12, %vm2770_vm11  ;;  %v2776_v10 = vor.u32 1.1754944e-38, %v2775_v25  ;;  %v2800_v47 = vmul.f32 %v2799_v14, %v8762_v5  ;;  %v2837_v43 = vadd.f32 0.014752088, %v2836_v13 }
 0xd03   :  { %3052 = vmatmul.f32.gmra.mxu3 %v2993_v6  ;;  %v2876_v51 = vmul.f32 %v2875_v54, %v8800_v61  ;;  %v2772_v45 = vsel %vm2771_vm13, %v7195_v52, %v2768_v44  ;;  %vm2774_vm14 = vcmp.eq.f32.partialorder %v2773_v46, 8.507059e+37  ;;  %v2915_v34 = vadd.f32 0.001143296, %v2914_v27 }
 0xd04   :  { %3084 = vmatmul.f32.gmra.mxu2 %v2994_v18  ;;  %v2954_v55 = vmul.f32 3.8918573e-05, %v8834_v28  ;;  %v2777_v22 = vsel %vm2774_vm14, %v2776_v10, %v2772_v45  ;;  %v2801_v11 = vadd.f32 0.4994258, %v2800_v47  ;;  %v2838_v49 = vmul.f32 %v2837_v43, %v8788_v0 }
 0xd05   :  { %v2877_v21 = vadd.f32 0.014752088, %v2876_v51  ;;  %v2868_v39 = vadd.f32 0.05243302, %v2867_v19  ;;  %v2778_v12 = vmul.f32 %v2777_v22, %v2753_v63  ;;  %v2916_v36 = vmul.f32 %v2915_v34, %v8819_v2 }
 0xd06   :  { %v2955_v50 = vadd.f32 0.001143296, %v2954_v55  ;;  %v2907_v17 = vmul.f32 %v2906_v53, %v8819_v2  ;;  %v2802_v31 = vmul.f32 %v2801_v11, %v8762_v5  ;;  %v2839_v57 = vadd.f32 0.112945676, %v2838_v49 }
 0xd07   :  { %v2878_v52 = vmul.f32 %v2877_v21, %v8800_v61  ;;  %v2789_v59 = vmul.f32 %v2788_v8, %v8762_v5  ;;  %v6525_v23 = vclamps-f32 %v2778_v12, 1.0  ;;  %v2917_v60 = vadd.f32 0.014752088, %v2916_v36 }
 0xd08   :  { %v2956_v46 = vmul.f32 %v2955_v50, %v8834_v28  ;;  %v2947_v25 = vmul.f32 %v2946_v37, %v8834_v28  ;;  %v8878_v19 = vadd.f32 1.0, %v2802_v31  ;;  %v2840_v63 = vmul.f32 %v2839_v57, %v8788_v0 }
 0xd09   :  { %v2879_v48 = vadd.f32 0.112945676, %v2878_v52  ;;  %v2565_v53 = vmul.f32 0.5, %v8677_v32  ;;  %v2985_v4 = vadd.f32 1.0, %v6525_v23  ;;  %v2918_v3 = vmul.f32 %v2917_v60, %v8819_v2 }
 0xd0a   :  { %v2957_v6 = vadd.f32 0.014752088, %v2956_v46  ;;  %v2829_v8 = vmul.f32 %v8853_v58, %v8788_v0  ;;  %v2869_v16 = vmul.f32 %v2868_v39, %v8800_v61  ;;  %v2908_v40 = vadd.f32 0.05243302, %v2907_v17 }
 0xd0b   :  { %7196 = vrcp.f32 %v8878_v19  ;;  %v2995_v37 = vmul.f32 %v2985_v4, %v2565_v53  ;;  %v2841_v14 = vadd.f32 0.4994258, %v2840_v63  ;;  %v2880_v13 = vmul.f32 %v2879_v48, %v8800_v61 }
 0xd0c   :  { %v2919_v54 = vadd.f32 0.112945676, %v2918_v3  ;;  %v2790_v18 = vadd.f32 0.18741608, %v2789_v59  ;;  %v2948_v44 = vadd.f32 0.05243302, %v2947_v25  ;;  %v2958_v32 = vmul.f32 %v2957_v6, %v8834_v28 }
 0xd0d   :  { %3055 = vmatmul.f32.gmra.mxu3 %v2995_v37  ;;  %v2842_v27 = vmul.f32 %v2841_v14, %v8788_v0  ;;  %v2881_v10 = vadd.f32 0.4994258, %v2880_v13  ;;  %v2830_v47 = vadd.f32 0.18741608, %v2829_v8  ;;  %v2870_v43 = vadd.f32 0.18741608, %v2869_v16 }
 0xd0e   :  { %v2920_v58 = vmul.f32 %v2919_v54, %v8819_v2  ;;  %v2959_v51 = vadd.f32 0.112945676, %v2958_v32  ;;  %v2909_v45 = vmul.f32 %v2908_v40, %v8819_v2  ;;  %v2791_v49 = vmul.f32 %v2790_v18, %v8762_v5 }
 0xd0f   :  { %v8892_v34 = vadd.f32 1.0, %v2842_v27  ;;  %v2882_v55 = vmul.f32 %v2881_v10, %v8800_v61  ;;  %v2949_v21 = vmul.f32 %v2948_v44, %v8834_v28  ;;  %v2831_v36 = vmul.f32 %v2830_v47, %v8788_v0 }
 0xd10   :  { %v2921_v22 = vadd.f32 0.4994258, %v2920_v58  ;;  %v2960_v39 = vmul.f32 %v2959_v51, %v8834_v28  ;;  %v2871_v50 = vmul.f32 %v2870_v43, %v8800_v61  ;;  %v2566_v57 = vmul.f32 0.5, %v8722_v24 }
 0xd11   :  { %v7197_v11 = vpop.eup %7196  ;;  %7198 = vrcp.f32 %v8892_v34  ;;  %v8902_v17 = vadd.f32 1.0, %v2882_v55  ;;  %v2910_v52 = vadd.f32 0.18741608, %v2909_v45  ;;  %v2792_v23 = vadd.f32 1.1283791, %v2791_v49 }
 0xd12   :  { %v2805_v12 = vmul.f32 %v7197_v11, %v8878_v19  ;;  %v2922_v31 = vmul.f32 %v2921_v22, %v8819_v2  ;;  %v2961_v59 = vadd.f32 0.4994258, %v2960_v39  ;;  %v2950_v60 = vadd.f32 0.18741608, %v2949_v21 }
 0xd13   :  { %v2815_v46 = vand.u32 2147483648, %v8878_v19  ;;  %7200 = vrcp.f32 %v8902_v17  ;;  %vm2810_vm15 = vweird.f32 %v7197_v11  ;;  %v2813_v0 = vand.u32 2147483647, %v8878_v19 }
 0xd14   :  { %v2806_v5 = vsub.f32 1.0, %v2805_v12  ;;  %v8909_v61 = vadd.f32 1.0, %v2922_v31  ;;  %v8912_v63 = vmul.f32 0.5, %v8766_v35  ;;  %v2832_v48 = vadd.f32 1.1283791, %v2831_v36 }
 0xd15   :  { %v2872_v24 = vadd.f32 1.1283791, %v2871_v50  ;;  %v2962_v53 = vmul.f32 %v2961_v59, %v8834_v28  ;;  %v2911_v3 = vmul.f32 %v2910_v52, %v8819_v2  ;;  %vm2809_vm4 = vweird.f32 %v8878_v19 }
 0xd16   :  { %v2807_v25 = vmul.f32 %v7197_v11, %v2806_v5  ;;  %7202 = vrcp.f32 %v8909_v61  ;;  %v2793_v8 = vmul.f32 %v2792_v23, %v8743_v38  ;;  %v2951_v16 = vmul.f32 %v2950_v60, %v8834_v28  ;;  %vm2811_vm5 = vmor %vm2809_vm4, %vm2810_vm15 }
 0xd17   :  { %v7199_v4 = vpop.eup %7198  ;;  %v2816_v40 = vor.u32 1.1754944e-38, %v2815_v46  ;;  %vm2814_vm6 = vcmp.eq.f32.partialorder %v2813_v0, 8.507059e+37  ;;  %v2853_v14 = vand.u32 2147483647, %v8892_v34  ;;  %v8922_v13 = vadd.f32 1.0, %v2962_v53 }
 0xd18   :  { %v2808_v6 = vadd.f32 %v7197_v11, %v2807_v25  ;;  %v2845_v35 = vmul.f32 %v7199_v4, %v8892_v34  ;;  %v2833_v54 = vmul.f32 %v2832_v48, %v8776_v1  ;;  %v2855_v44 = vand.u32 2147483648, %v8892_v34 }
 0xd19   :  { %v7201_v2 = vpop.eup %7200  ;;  %v2873_v38 = vmul.f32 %v2872_v24, %v8780_v56  ;;  %v2912_v28 = vadd.f32 1.1283791, %v2911_v3  ;;  %v8928_v10 = vadd.f32 1.1283791, %v2951_v16  ;;  %vm2850_vm7 = vweird.f32 %v7199_v4 }
 0xd1a   :  { %v2812_v37 = vsel %vm2811_vm5, %v7197_v11, %v2808_v6  ;;  %v2846_v18 = vsub.f32 1.0, %v2845_v35  ;;  %v2885_v27 = vmul.f32 %v7201_v2, %v8902_v17  ;;  %7204 = vrcp.f32 %v8922_v13 }
 0xd1b   :  { %v2817_v19 = vsel %vm2814_vm6, %v2816_v40, %v2812_v37  ;;  %vm2849_vm10 = vweird.f32 %v8892_v34  ;;  %vm8932_vm11 = vcmp.eq.f32.partialorder %v2853_v14, 8.507059e+37  ;;  %v2856_v45 = vor.u32 1.1754944e-38, %v2855_v44 }
 0xd1c   :  { %v2818_v32 = vmul.f32 %v2817_v19, %v2793_v8  ;;  %v2847_v58 = vmul.f32 %v7199_v4, %v2846_v18  ;;  %v7203_v47 = vpop.eup %7202  ;;  %v2886_v51 = vsub.f32 1.0, %v2885_v27  ;;  %v2895_v55 = vand.u32 2147483648, %v8902_v17  ;;  %vm2851_vm12 = vmor %vm2849_vm10, %vm2850_vm7 }
 0xd1d   :  { %v2925_v22 = vmul.f32 %v7203_v47, %v8909_v61  ;;  %vm2890_vm13 = vweird.f32 %v7201_v2  ;;  %v2893_v21 = vand.u32 2147483647, %v8902_v17  ;;  %vm2889_vm14 = vweird.f32 %v8902_v17 }
 0xd1e   :  { %v6526_v43 = vclamps-f32 %v2818_v32, 1.0  ;;  %v2848_v56 = vadd.f32 %v7199_v4, %v2847_v58  ;;  %v2887_v49 = vmul.f32 %v7201_v2, %v2886_v51  ;;  %v2933_v12 = vand.u32 2147483647, %v8909_v61  ;;  %vm2891_vm15 = vmor %vm2889_vm14, %vm2890_vm13 }
 0xd1f   :  { %v2926_v34 = vsub.f32 1.0, %v2925_v22  ;;  %v2935_v52 = vand.u32 2147483648, %v8909_v61  ;;  %v2896_v23 = vor.u32 1.1754944e-38, %v2895_v55  ;;  %vm2930_vm4 = vweird.f32 %v7203_v47 }
 0xd20   :  { %v2986_v11 = vadd.f32 1.0, %v6526_v43  ;;  %v2852_v39 = vsel %vm2851_vm12, %v7199_v4, %v2848_v56  ;;  %v2888_v31 = vadd.f32 %v7201_v2, %v2887_v49  ;;  %v7205_v5 = vpop.eup %7204  ;;  %v2913_v46 = vmul.f32 %v2912_v28, %v8807_v62  ;;  %v7057_v56 = vld [vmem:[%s10519_s15] ss:$0 sm:$0xff] }
 0xd21   :  { %v2857_v50 = vsel %vm8932_vm11, %v2856_v45, %v2852_v39  ;;  %v2927_v60 = vmul.f32 %v7203_v47, %v2926_v34  ;;  %vm2894_vm5 = vcmp.eq.f32.partialorder %v2893_v21, 8.507059e+37  ;;  %v2965_v25 = vmul.f32 %v7205_v5, %v8922_v13 }
 0xd22   :  { %v2996_v36 = vmul.f32 %v2986_v11, %v2566_v57  ;;  %v2858_v59 = vmul.f32 %v2857_v50, %v2833_v54  ;;  %v2892_v17 = vsel %vm2891_vm15, %v7201_v2, %v2888_v31  ;;  %vm2929_vm6 = vweird.f32 %v8909_v61 }
 0xd23   :  { %v2897_v0 = vsel %vm2894_vm5, %v2896_v23, %v2892_v17  ;;  %v2928_v48 = vadd.f32 %v7203_v47, %v2927_v60  ;;  %vm2931_vm7 = vmor %vm2929_vm6, %vm2930_vm4  ;;  %vm2934_vm10 = vcmp.eq.f32.partialorder %v2933_v12, 8.507059e+37  ;;  %v2936_v53 = vor.u32 1.1754944e-38, %v2935_v52 }
 0xd24   :  { %3087 = vmatmul.f32.gmra.mxu2 %v2996_v36  ;;  %v6527_v57 = vclamps-f32 %v2858_v59, 1.0  ;;  %v2898_v24 = vmul.f32 %v2897_v0, %v2873_v38  ;;  %v2966_v4 = vsub.f32 1.0, %v2965_v25  ;;  %v2973_v8 = vand.u32 2147483647, %v8922_v13 }
 0xd25   :  { %v2932_v6 = vsel %vm2931_vm7, %v7203_v47, %v2928_v48  ;;  %v2975_v62 = vand.u32 2147483648, %v8922_v13  ;;  %vm2970_vm11 = vweird.f32 %v7205_v5  ;;  %v2568_v61 = vmul.f32 0.5, %v8769_v26 }
 0xd26   :  { %v2987_v3 = vadd.f32 1.0, %v6527_v57  ;;  %v6528_v16 = vclamps-f32 %v2898_v24, 1.0  ;;  %v2937_v40 = vsel %vm2934_vm10, %v2936_v53, %v2932_v6  ;;  %v2967_v35 = vmul.f32 %v7205_v5, %v2966_v4 }
 0xd27   :  { %v2938_v14 = vmul.f32 %v2937_v40, %v2913_v46  ;;  %vm2969_vm12 = vweird.f32 %v8922_v13  ;;  %v2976_v18 = vor.u32 1.1754944e-38, %v2975_v62  ;;  %v2953_v44 = vmul.f32 %v8928_v10, %v8810_v20 }
 0xd28   :  { %v2997_v37 = vmul.f32 %v2987_v3, %v8912_v63  ;;  %v2988_v2 = vadd.f32 1.0, %v6528_v16  ;;  %v2968_v54 = vadd.f32 %v7205_v5, %v2967_v35  ;;  %vm2971_vm13 = vmor %vm2969_vm12, %vm2970_vm11  ;;  %vm2974_vm14 = vcmp.eq.f32.partialorder %v2973_v8, 8.507059e+37 }
 0xd29   :  { %v6529_v19 = vclamps-f32 %v2938_v14, 1.0  ;;  %v2569_v63 = vmul.f32 0.5, %v8794_v15  ;;  %v2570_v13 = vmul.f32 0.5, %v8797_v30 }
 0xd2a   :  { %3058 = vmatmul.f32.gmra.mxu3 %v2997_v37  ;;  %v2998_v38 = vmul.f32 %v2988_v2, %v2568_v61  ;;  %v2972_v28 = vsel %vm2971_vm13, %v7205_v5, %v2968_v54 }
 0xd2b   :  { %v2989_v32 = vadd.f32 1.0, %v6529_v19  ;;  %v2977_v27 = vsel %vm2974_vm14, %v2976_v18, %v2972_v28 }
 0xd2c   :  { %3090 = vmatmul.f32.gmra.mxu2 %v2998_v38  ;;  %v2978_v26 = vmul.f32 %v2977_v27, %v2953_v44 }
 0xd2d   :  { %v2999_v58 = vmul.f32 %v2989_v32, %v2569_v63 }
 0xd2e   :  { %v6530_v47 = vclamps-f32 %v2978_v26, 1.0 }
 0xd30   :  { %v2990_v43 = vadd.f32 1.0, %v6530_v47 }
 0xd32   :  { %3061 = vmatmul.f32.gmra.mxu3 %v2999_v58  ;;  %v3000_v1 = vmul.f32 %v2990_v43, %v2570_v13 }
 0xd34   :  { %3093 = vmatmul.f32.gmra.mxu2 %v3000_v1 }
 0xd6d   :  { %v3050_v51 = vpop.f32.mrf.mxu3 }
 0xd6e   :  { %v3082_v20 = vpop.f32.mrf.mxu2 }
 0xd6f   :  { %v3083_v10 = vadd.f32 %v3082_v20, %v3050_v51  ;;  %v6540_v20 = vld [vmem:[%s7509_s27 + $0x78] sm:$0xff] }
 0xd70   :  { %3278 = vmatpush.msra.mxu0 %v6540_v20 }
 0xd71   :  { %v3097_v45 = vadd.f32 %v3083_v10, %v8493_v33  ;;  %v6554_v10 = vld [vmem:[%s7514_s4 + $0x78] sm:$0xff] }
 0xd72   :  { %3324 = vmatpush.msrb.mxu1 %v6554_v10 }
 0xd73   :  { %v8958_v55 = vadd.f32 %v7057_v56, %v3097_v45  ;;  %v6539_v45 = vld [vmem:[%s7509_s27 + $0x70] sm:$0xff] }
 0xd74   :  { %3279 = vmatpush.msra.mxu0 %v6539_v45 }
 0xd75   :  { %v3115_v15 = vsel %vm239_vm2, %v8958_v55, 0.0 }
 0xd76   :  { %3116 = vadd.xlane.f32.xlu1 %v3115_v15  ;;  %v6553_v15 = vld [vmem:[%s7514_s4 + $0x70] sm:$0xff] }
 0xd77   :  { %3325 = vmatpush.msrb.mxu1 %v6553_v15 }
 0xd86   :  { %v3053_v22 = vpop.f32.mrf.mxu3 }
 0xd87   :  { %v3085_v11 = vpop.f32.mrf.mxu2 }
 0xd88   :  { %v3086_v49 = vadd.f32 %v3085_v11, %v3053_v22  ;;  %v6567_v22 = vld [vmem:[%s10496_s0 + $0x70] sm:$0xff] }
 0xd8a   :  { %v3098_v30 = vadd.f32 %v3086_v49, %v8498_v9 }
 0xd8c   :  { %v8963_v21 = vadd.f32 %v7057_v56, %v3098_v30  ;;  %v9021_v30 = vld [vmem:[%s10497_s5 + $0x1] ss:$0 sm:$0xff] }
 0xd8e   :  { %v3118_v39 = vsel %vm239_vm2, %v8963_v21, 0.0 }
 0xd8f   :  { %3119 = vadd.xlane.f32.xlu0 %v3118_v39 }
 0xd90   :  { %v3056_v34 = vpop.f32.mrf.mxu3 }
 0xda7   :  { %v3088_v12 = vpop.f32.mrf.mxu2 }
 0xda8   :  { %v3089_v33 = vadd.f32 %v3088_v12, %v3056_v34 }
 0xdaa   :  { %v3099_v36 = vadd.f32 %v3089_v33, %v8503_v42  ;;  %v6538_v33 = vld [vmem:[%s7509_s27 + $0x68] sm:$0xff] }
 0xdab   :  { %3280 = vmatpush.msra.mxu0 %v6538_v33 }
 0xdac   :  { %v8968_v50 = vadd.f32 %v7057_v56, %v3099_v36  ;;  %v6552_v36 = vld [vmem:[%s7514_s4 + $0x68] sm:$0xff] }
 0xdad   :  { %v3059_v52 = vpop.f32.mrf.mxu3  ;;  %3326 = vmatpush.msrb.mxu1 %v6552_v36 }
 0xdae   :  { %v3121_v31 = vsel %vm239_vm2, %v8968_v50, 0.0 }
 0xdaf   :  { %3122 = vadd.xlane.f32.xlu2 %v3121_v31  ;;  %v3091_v5 = vpop.f32.mrf.mxu2  ;;  %v6566_v31 = vld [vmem:[%s10496_s0 + $0x68] sm:$0xff] }
 0xdb0   :  { %v3092_v9 = vadd.f32 %v3091_v5, %v3059_v52  ;;  %v6537_v5 = vld [vmem:[%s7509_s27 + $0x60] sm:$0xff] }
 0xdb1   :  { %3281 = vmatpush.msra.mxu0 %v6537_v5 }
 0xdb2   :  { %v3100_v59 = vadd.f32 %v3092_v9, %v8508_v29  ;;  %v6551_v9 = vld [vmem:[%s7514_s4 + $0x60] sm:$0xff] }
 0xdb3   :  { %3327 = vmatpush.msrb.mxu1 %v6551_v9 }
 0xdb4   :  { %v8973_v23 = vadd.f32 %v7057_v56, %v3100_v59  ;;  %v6565_v59 = vld [vmem:[%s10496_s0 + $0x60] sm:$0xff] }
 0xdb5   :  { %v3062_v60 = vpop.f32.mrf.mxu3 }
 0xdb6   :  { %v3124_v46 = vsel %vm239_vm2, %v8973_v23, 0.0 }
 0xdb7   :  { %v3094_v17 = vpop.f32.mrf.mxu2  ;;  %3125 = vadd.xlane.f32.xlu1 %v3124_v46 }
 0xdb8   :  { %v3095_v42 = vadd.f32 %v3094_v17, %v3062_v60  ;;  %v9031_v60 = vld [vmem:[%s10498_s9 + $0x1] ss:$0 sm:$0xff]  ;;  %v6536_v17 = vld [vmem:[%s7509_s27 + $0x58] sm:$0xff] }
 0xdb9   :  { %3282 = vmatpush.msra.mxu0 %v6536_v17 }
 0xdba   :  { %v3101_v25 = vadd.f32 %v3095_v42, %v8513_v41  ;;  %v6550_v42 = vld [vmem:[%s7514_s4 + $0x58] sm:$0xff] }
 0xdbb   :  { %3328 = vmatpush.msrb.mxu1 %v6550_v42 }
 0xdbc   :  { %v8978_v57 = vadd.f32 %v7057_v56, %v3101_v25  ;;  %v6568_v56 = vld [vmem:[%s10496_s0 + $0x78] sm:$0xff] }
 0xdbd   :  { %3370 = vmatpush.msrb.mxu3 %v6568_v56  ;;  %v6564_v25 = vld [vmem:[%s10496_s0 + $0x58] sm:$0xff] }
 0xdbe   :  { %v3127_v0 = vsel %vm876_vm1, %v8978_v57, 0.0 }
 0xdbf   :  { %3128 = vadd.xlane.f32.xlu0 %v3127_v0  ;;  %3371 = vmatpush.msrb.mxu3 %v6567_v22  ;;  %v6535_v0 = vld [vmem:[%s7509_s27 + $0x50] sm:$0xff] }
 0xdc0   :  { %3283 = vmatpush.msra.mxu0 %v6535_v0 }
 0xdc1   :  { %3372 = vmatpush.msrb.mxu3 %v6566_v31 }
 0xdc3   :  { %3373 = vmatpush.msrb.mxu3 %v6565_v59 }
 0xdc5   :  { %3374 = vmatpush.msrb.mxu3 %v6564_v25 }
 0xde9   :  { %v3117_v48 = vpop.xlane.xlu1 %3116 }
 0xdea   :  { %v3130_v29 = vmul.f32 %v3117_v48, %v7885_v7  ;;  %v6549_v48 = vld [vmem:[%s7514_s4 + $0x50] sm:$0xff] }
 0xdeb   :  { %3329 = vmatpush.msrb.mxu1 %v6549_v48 }
 0xdec   :  { %v3135_v24 = vsub.f32 %v8958_v55, %v3130_v29  ;;  %v6563_v29 = vld [vmem:[%s10496_s0 + $0x50] sm:$0xff] }
 0xded   :  { %3375 = vmatpush.msrb.mxu3 %v6563_v29 }
 0xdee   :  { %v3140_v53 = vmul.f32 %v3135_v24, %v3135_v24 }
 0xdf0   :  { %v3145_v4 = vsel %vm239_vm2, %v3140_v53, 0.0  ;;  %v6534_v53 = vld [vmem:[%s7509_s27 + $0x48] sm:$0xff] }
 0xdf1   :  { %3146 = vadd.xlane.f32.xlu2 %v3145_v4  ;;  %v6548_v4 = vld [vmem:[%s7514_s4 + $0x48] sm:$0xff]  ;;  %3284 = vmatpush.msra.mxu0 %v6534_v53 }
 0xdf2   :  { %3330 = vmatpush.msrb.mxu1 %v6548_v4  ;;  %v7060_v4 = vld [vmem:[%s10499_s13 + $0x1] ss:$0 sm:$0xff] }
 0xe02   :  { %v3120_v3 = vpop.xlane.xlu0 %3119 }
 0xe03   :  { %v3131_v6 = vmul.f32 %v3120_v3, %v7885_v7  ;;  %v6562_v3 = vld [vmem:[%s10496_s0 + $0x48] sm:$0xff] }
 0xe04   :  { %3376 = vmatpush.msrb.mxu3 %v6562_v3  ;;  %v7061_v3 = vld [vmem:[%s10500_s17 + $0x1] ss:$0 sm:$0xff] }
 0xe05   :  { %v8987_v41 = vsub.f32 %v8963_v21, %v3131_v6 }
 0xe07   :  { %v3141_v8 = vmul.f32 %v8987_v41, %v8987_v41 }
 0xe09   :  { %v3148_v62 = vsel %vm239_vm2, %v3141_v8, 0.0  ;;  %v6533_v8 = vld [vmem:[%s7509_s27 + $0x40] sm:$0xff]  ;;  %s10528_s27 = sld [smem:[#allocation25_spill]] }
 0xe0a   :  { %3149 = vadd.xlane.f32.xlu1 %v3148_v62  ;;  %v6547_v62 = vld [vmem:[%s7514_s4 + $0x40] sm:$0xff]  ;;  %3285 = vmatpush.msra.mxu0 %v6533_v8  ;;  %s10529_s4 = sld [smem:[#allocation26_spill]] }
 0xe0b   :  { %3331 = vmatpush.msrb.mxu1 %v6547_v62 }
 0xe22   :  { %v3123_v16 = vpop.xlane.xlu2 %3122 }
 0xe23   :  { %v3132_v40 = vmul.f32 %v3123_v16, %v7885_v7  ;;  %v6561_v16 = vld [vmem:[%s10496_s0 + $0x40] sm:$0xff]  ;;  %s7367_s0 = scalar_lea.hbm %s7619_s6, 2 }
 0xe24   :  { %3377 = vmatpush.msrb.mxu3 %v6561_v16 }
 0xe25   :  { %v8994_v35 = vsub.f32 %v8968_v50, %v3132_v40 }
 0xe27   :  { %v3142_v37 = vmul.f32 %v8994_v35, %v8994_v35 }
 0xe29   :  { %v3151_v14 = vsel %vm239_vm2, %v3142_v37, 0.0 }
 0xe2a   :  { %3152 = vadd.xlane.f32.xlu0 %v3151_v14  ;;  %v3126_v61 = vpop.xlane.xlu1 %3125 }
 0xe2b   :  { %v3133_v2 = vmul.f32 %v3126_v61, %v7885_v7 }
 0xe2d   :  { %v9001_v54 = vsub.f32 %v8973_v23, %v3133_v2 }
 0xe2f   :  { %v3143_v19 = vmul.f32 %v9001_v54, %v9001_v54 }
 0xe31   :  { %v3154_v18 = vsel %vm239_vm2, %v3143_v19, 0.0 }
 0xe32   :  { %v3129_v44 = vpop.xlane.xlu0 %3128  ;;  %3155 = vadd.xlane.f32.xlu2 %v3154_v18 }
 0xe33   :  { %v3134_v38 = vmul.f32 %v3129_v44, %v7885_v7 }
 0xe35   :  { %v9008_v28 = vsub.f32 %v8978_v57, %v3134_v38 }
 0xe37   :  { %v3144_v63 = vmul.f32 %v9008_v28, %v9008_v28 }
 0xe39   :  { %v3157_v32 = vsel %vm876_vm1, %v3144_v63, 0.0 }
 0xe3a   :  { %3158 = vadd.xlane.f32.xlu1 %v3157_v32 }
 0xe64   :  { %v3147_v27 = vpop.xlane.xlu2 %3146 }
 0xe65   :  { %v3160_v26 = vmul.f32 %v3147_v27, %v7885_v7 }
 0xe67   :  { %v3165_v58 = vadd.f32 1e-05, %v3160_v26 }
 0xe69   :  { %7206 = vrsqrt.f32 %v3165_v58  ;;  %vm3176_vm4 = vweird.f32 %v3165_v58 }
 0xe6f   :  { %v7207_v47 = vpop.eup %7206 }
 0xe70   :  { %v3171_v13 = vmul.f32 %v7207_v47, %v3165_v58  ;;  %vm3177_vm15 = vweird.f32 %v7207_v47 }
 0xe71   :  { %vm3178_vm5 = vmor %vm3176_vm4, %vm3177_vm15 }
 0xe72   :  { %v3172_v43 = vmul.f32 %v7207_v47, %v3171_v13 }
 0xe74   :  { %v3173_v1 = vmul.f32 0.5, %v3172_v43 }
 0xe76   :  { %v3174_v51 = vsub.f32 1.5, %v3173_v1 }
 0xe78   :  { %v3175_v11 = vmul.f32 %v7207_v47, %v3174_v51 }
 0xe7a   :  { %v3179_v49 = vsel %vm3178_vm5, %v7207_v47, %v3175_v11 }
 0xe7b   :  { %v3220_v34 = vmul.f32 %v3179_v49, %v3135_v24 }
 0xe7d   :  { %v3150_v39 = vpop.xlane.xlu1 %3149  ;;  %v3228_v46 = vmul.f32 %v9021_v30, %v3220_v34 }
 0xe7e   :  { %v3161_v12 = vmul.f32 %v3150_v39, %v7885_v7 }
 0xe7f   :  { %v9041_v24 = vadd.f32 %v9031_v60, %v3228_v46 }
 0xe80   :  { %v3166_v52 = vadd.f32 1e-05, %v3161_v12 }
 0xe81   :  { %6542 = vmatmul.msk.f32.vlgmr.msra.gmra.mxu0 %vm239_vm2, %v9041_v24  ;;  %6556 = vmatmul.msk.f32.vlgmr.msrb.gmra.mxu1 %vm239_vm2, %v9041_v24 }
 0xe82   :  { %7208 = vrsqrt.f32 %v3166_v52  ;;  %6570 = vmatmul.msk.f32.vlgmr.msrb.gmra.mxu3 %vm239_vm2, %v9041_v24  ;;  %vm3186_vm7 = vweird.f32 %v3166_v52 }
 0xe88   :  { %v7209_v6 = vpop.eup %7208 }
 0xe89   :  { %v3181_v40 = vmul.f32 %v7209_v6, %v3166_v52  ;;  %vm3187_vm6 = vweird.f32 %v7209_v6 }
 0xe8a   :  { %vm3188_vm10 = vmor %vm3186_vm7, %vm3187_vm6 }
 0xe8b   :  { %v3182_v37 = vmul.f32 %v7209_v6, %v3181_v40 }
 0xe8d   :  { %v3183_v14 = vmul.f32 0.5, %v3182_v37 }
 0xe8f   :  { %v3184_v61 = vsub.f32 1.5, %v3183_v14  ;;  %v7062_v14 = vld [vmem:[%s10501_s21 + $0x1] ss:$0 sm:$0xff] }
 0xe91   :  { %v3185_v2 = vmul.f32 %v7209_v6, %v3184_v61 }
 0xe93   :  { %v3189_v19 = vsel %vm3188_vm10, %v7209_v6, %v3185_v2 }
 0xe94   :  { %v3221_v18 = vmul.f32 %v3189_v19, %v8987_v41 }
 0xe96   :  { %v3229_v44 = vmul.f32 %v9021_v30, %v3221_v18 }
 0xe98   :  { %v9058_v38 = vadd.f32 %v9031_v60, %v3229_v44 }
 0xe9a   :  { %6543 = vmatmul.msk.f32.gmra.mxu0 %vm239_vm2, %v9058_v38  ;;  %6557 = vmatmul.msk.f32.gmra.mxu1 %vm239_vm2, %v9058_v38 }
 0xe9b   :  { %6571 = vmatmul.msk.f32.gmra.mxu3 %vm239_vm2, %v9058_v38 }
 0xe9d   :  { %v3153_v63 = vpop.xlane.xlu0 %3152 }
 0xe9e   :  { %v3162_v32 = vmul.f32 %v3153_v63, %v7885_v7 }
 0xea0   :  { %v3167_v27 = vadd.f32 1e-05, %v3162_v32 }
 0xea2   :  { %7210 = vrsqrt.f32 %v3167_v27  ;;  %vm3196_vm12 = vweird.f32 %v3167_v27 }
 0xea5   :  { %v3156_v41 = vpop.xlane.xlu2 %3155 }
 0xea6   :  { %v3163_v58 = vmul.f32 %v3156_v41, %v7885_v7 }
 0xea8   :  { %v7211_v26 = vpop.eup %7210  ;;  %v3168_v13 = vadd.f32 1e-05, %v3163_v58 }
 0xea9   :  { %v3191_v47 = vmul.f32 %v7211_v26, %v3167_v27  ;;  %vm3197_vm11 = vweird.f32 %v7211_v26 }
 0xeaa   :  { %7212 = vrsqrt.f32 %v3168_v13  ;;  %vm3198_vm13 = vmor %vm3196_vm12, %vm3197_vm11  ;;  %vm3206_vm15 = vweird.f32 %v3168_v13 }
 0xeab   :  { %v3192_v43 = vmul.f32 %v7211_v26, %v3191_v47 }
 0xead   :  { %v3193_v1 = vmul.f32 0.5, %v3192_v43  ;;  %v3159_v20 = vpop.xlane.xlu1 %3158 }
 0xeae   :  { %v3164_v10 = vmul.f32 %v3159_v20, %v7885_v7 }
 0xeaf   :  { %v3194_v51 = vsub.f32 1.5, %v3193_v1 }
 0xeb0   :  { %v7213_v45 = vpop.eup %7212  ;;  %v3169_v15 = vadd.f32 1e-05, %v3164_v10 }
 0xeb1   :  { %v3195_v56 = vmul.f32 %v7211_v26, %v3194_v51  ;;  %v3201_v11 = vmul.f32 %v7213_v45, %v3168_v13  ;;  %vm3207_vm14 = vweird.f32 %v7213_v45 }
 0xeb2   :  { %7214 = vrsqrt.f32 %v3169_v15  ;;  %vm3208_vm4 = vmor %vm3206_vm15, %vm3207_vm14  ;;  %vm3216_vm6 = vweird.f32 %v3169_v15 }
 0xeb3   :  { %v3199_v22 = vsel %vm3198_vm13, %v7211_v26, %v3195_v56  ;;  %v3202_v39 = vmul.f32 %v7213_v45, %v3201_v11 }
 0xeb4   :  { %v3222_v49 = vmul.f32 %v3199_v22, %v8994_v35 }
 0xeb5   :  { %v3203_v12 = vmul.f32 0.5, %v3202_v39 }
 0xeb6   :  { %v3230_v34 = vmul.f32 %v9021_v30, %v3222_v49 }
 0xeb7   :  { %v3204_v36 = vsub.f32 1.5, %v3203_v12 }
 0xeb8   :  { %v9072_v33 = vadd.f32 %v9031_v60, %v3230_v34  ;;  %v7215_v31 = vpop.eup %7214 }
 0xeb9   :  { %v3205_v35 = vmul.f32 %v7213_v45, %v3204_v36  ;;  %v3211_v52 = vmul.f32 %v7215_v31, %v3169_v15  ;;  %vm3217_vm5 = vweird.f32 %v7215_v31 }
 0xeba   :  { %6544 = vmatmul.msk.f32.gmra.mxu0 %vm239_vm2, %v9072_v33  ;;  %6558 = vmatmul.msk.f32.gmra.mxu1 %vm239_vm2, %v9072_v33  ;;  %vm3218_vm7 = vmor %vm3216_vm6, %vm3217_vm5 }
 0xebb   :  { %6572 = vmatmul.msk.f32.gmra.mxu3 %vm239_vm2, %v9072_v33  ;;  %v3209_v5 = vsel %vm3208_vm4, %v7213_v45, %v3205_v35  ;;  %v3212_v9 = vmul.f32 %v7215_v31, %v3211_v52 }
 0xebc   :  { %v3223_v59 = vmul.f32 %v3209_v5, %v9001_v54 }
 0xebd   :  { %v3213_v46 = vmul.f32 0.5, %v3212_v9 }
 0xebe   :  { %v3231_v17 = vmul.f32 %v9021_v30, %v3223_v59 }
 0xebf   :  { %v3214_v42 = vsub.f32 1.5, %v3213_v46 }
 0xec0   :  { %v9083_v25 = vadd.f32 %v9031_v60, %v3231_v17 }
 0xec1   :  { %v3215_v0 = vmul.f32 %v7215_v31, %v3214_v42 }
 0xec2   :  { %6545 = vmatmul.msk.f32.gmra.mxu0 %vm239_vm2, %v9083_v25  ;;  %6559 = vmatmul.msk.f32.gmra.mxu1 %vm239_vm2, %v9083_v25 }
 0xec3   :  { %v3219_v54 = vsel %vm3218_vm7, %v7215_v31, %v3215_v0  ;;  %6573 = vmatmul.msk.f32.gmra.mxu3 %vm239_vm2, %v9083_v25 }
 0xec4   :  { %v3224_v48 = vmul.f32 %v3219_v54, %v9008_v28  ;;  %v3461_v54 = vld [vmem:[%s10502_s3] sm:$0xff] }
 0xec6   :  { %v3232_v29 = vmul.f32 %v9021_v30, %v3224_v48 }
 0xec8   :  { %v9094_v53 = vadd.f32 %v9031_v60, %v3232_v29 }
 0xeca   :  { %6546 = vmatmul.msk.f32.gmra.mxu0 %vm239_vm2, %v9094_v53  ;;  %6560 = vmatmul.msk.f32.gmra.mxu1 %vm239_vm2, %v9094_v53 }
 0xecb   :  { %6574 = vmatmul.msk.f32.gmra.mxu3 %vm239_vm2, %v9094_v53 }
 0xefe   :  { %v3287_v6 = vpop.f32.mrf.mxu0  ;;  %v3333_v28 = vpop.f32.mrf.mxu1 }
 0xeff   :  { %v9104_v8 = vadd.f32 %v7060_v4, %v3287_v6  ;;  %v9106_v30 = vadd.f32 %v7061_v3, %v3333_v28  ;;  %v3462_v6 = vld [vmem:[%s10502_s3 + $0x8] sm:$0xff] }
 0xf01   :  { %3579 = vrot.lane.b32.xlu0 %v9104_v8, %s7417_s25  ;;  %3589 = vrot.lane.b32.xlu2 %v9106_v30, %s7417_s25 }
 0xf05   :  { %v3379_v60 = vpop.f32.mrf.mxu3 }
 0xf06   :  { %v3380_v2 = vadd.f32 %v7062_v14, %v3379_v60 }
 0xf17   :  { %v3290_v62 = vpop.f32.mrf.mxu0  ;;  %v3336_v16 = vpop.f32.mrf.mxu1 }
 0xf18   :  { %v9112_v40 = vadd.f32 %v7060_v4, %v3290_v62  ;;  %v9114_v37 = vadd.f32 %v7061_v3, %v3336_v16 }
 0xf1a   :  { %3591 = vrot.lane.b32.xlu0 %v9114_v37, %s7417_s25  ;;  %3581 = vrot.lane.b32.xlu1 %v9112_v40, %s7417_s25 }
 0xf1e   :  { %v3382_v61 = vpop.f32.mrf.mxu3 }
 0xf1f   :  { %v3383_v19 = vadd.f32 %v7062_v14, %v3382_v61  ;;  %v3463_v61 = vld [vmem:[%s10502_s3 + $0x10] sm:$0xff] }
 0xf21   :  { %v9121_v18 = vpack.i.bf16 %v3380_v2, %v3383_v19 }
 0xf37   :  { %v3339_v44 = vpop.f32.mrf.mxu1  ;;  %v3293_v26 = vpop.f32.mrf.mxu0 }
 0xf38   :  { %v9123_v63 = vadd.f32 %v7061_v3, %v3339_v44  ;;  %v9133_v1 = vadd.f32 %v7060_v4, %v3293_v26  ;;  %v3464_v26 = vld [vmem:[%s10502_s3 + $0x18] sm:$0xff] }
 0xf3a   :  { %3593 = vrot.lane.b32.xlu1 %v9123_v63, %s7417_s25 }
 0xf3e   :  { %v3385_v32 = vpop.f32.mrf.mxu3 }
 0xf3f   :  { %v3342_v27 = vpop.f32.mrf.mxu1  ;;  %v3386_v47 = vadd.f32 %v7062_v14, %v3385_v32  ;;  %v3296_v45 = vpop.f32.mrf.mxu0 }
 0xf40   :  { %v9127_v41 = vadd.f32 %v7061_v3, %v3342_v27  ;;  %v9169_v15 = vadd.f32 %v7060_v4, %v3296_v45 }
 0xf42   :  { %3595 = vrot.lane.b32.xlu2 %v9127_v41, %s7417_s25  ;;  %3901 = vrot.lane.b32.xlu0 %v9127_v41, %s7418_s29 }
 0xf46   :  { %v3388_v58 = vpop.f32.mrf.mxu3 }
 0xf47   :  { %v3389_v13 = vadd.f32 %v7062_v14, %v3388_v58  ;;  %v3345_v43 = vpop.f32.mrf.mxu1  ;;  %v3299_v22 = vpop.f32.mrf.mxu0 }
 0xf48   :  { %v9135_v51 = vadd.f32 %v7061_v3, %v3345_v43  ;;  %v9175_v11 = vadd.f32 %v7060_v4, %v3299_v22  ;;  %v3465_v22 = vld [vmem:[%s10502_s3 + $0x20] sm:$0x3] }
 0xf49   :  { %v9137_v20 = vpack.i.bf16 %v3386_v47, %v3389_v13 }
 0xf4a   :  { %3583 = vrot.lane.b32.xlu2 %v9133_v1, %s7417_s25  ;;  %3597 = vrot.lane.b32.xlu0 %v9135_v51, %s7417_s25 }
 0xf4b   :  { %6575 = vmatpush.xpose.msk.msra.mxu2 %vm1145_vm8, %v9135_v51 }
 0xf4e   :  { %v3391_v10 = vpop.f32.mrf.mxu3 }
 0xf4f   :  { %v9145_v56 = vadd.f32 %v7062_v14, %v3391_v10  ;;  %6576 = vmatpush.xpose.msk.msra.mxu2 %vm1145_vm8, %v9127_v41 }
 0xf51   :  { %6585 = vmatpush.msk.msrb.mxu0 %vm188_vm0, %v9145_v56 }
 0xf52   :  { %3899 = vrot.lane.b32.xlu2 %v9123_v63, %s7418_s29  ;;  %3903 = vrot.lane.b32.xlu0 %v9135_v51, %s7418_s29 }
 0xf53   :  { %3556 = vmatpush.msrb.mxu0 %v3389_v13  ;;  %6577 = vmatpush.xpose.msk.msra.mxu2 %vm1145_vm8, %v9123_v63 }
 0xf55   :  { %3557 = vmatpush.msrb.mxu0 %v3386_v47 }
 0xf57   :  { %6578 = vmatpush.xpose.msk.msra.mxu2 %vm1145_vm8, %v9114_v37  ;;  %3558 = vmatpush.msrb.mxu0 %v3383_v19 }
 0xf59   :  { %3559 = vmatpush.msrb.mxu0 %v3380_v2 }
 0xf5a   :  { %3897 = vrot.lane.b32.xlu2 %v9114_v37, %s7418_s29 }
 0xf5b   :  { %6579 = vmatpush.xpose.msk.msra.mxu2 %vm1145_vm8, %v9106_v30  ;;  %v3590_v39 = vpop.permute.xlu2 %3589 }
 0xf5e   :  { %6580 = vmatmul.msk.f32.vlgmr.msra.gmra.mxu2 %vm1145_vm8, %v9104_v8 }
 0xf62   :  { %3895 = vrot.lane.b32.xlu2 %v9106_v30, %s7418_s29 }
 0xf66   :  { %6581 = vmatmul.msk.f32.gmra.mxu2 %vm1145_vm8, %v9112_v40 }
 0xf6a   :  { %3585 = vrot.lane.b32.xlu2 %v9169_v15, %s7417_s25 }
 0xf6e   :  { %6582 = vmatmul.msk.f32.gmra.mxu2 %vm1145_vm8, %v9133_v1 }
 0xf72   :  { %3587 = vrot.lane.b32.xlu2 %v9175_v11, %s7417_s25 }
 0xf73   :  { %v3580_v49 = vpop.permute.xlu0 %3579 }
 0xf76   :  { %6583 = vmatmul.msk.f32.gmra.mxu2 %vm1145_vm8, %v9169_v15 }
 0xf7a   :  { %3885 = vrot.lane.b32.xlu2 %v9104_v8, %s7418_s29 }
 0xf7e   :  { %6584 = vmatmul.msk.f32.gmra.mxu2 %vm1145_vm8, %v9175_v11 }
 0xf82   :  { %3887 = vrot.lane.b32.xlu2 %v9112_v40, %s7418_s29 }
 0xf8a   :  { %3891 = vrot.lane.b32.xlu2 %v9169_v15, %s7418_s29 }
 0xf8c   :  { %v3592_v34 = vpop.permute.xlu0 %3591  ;;  %v3582_v35 = vpop.permute.xlu1 %3581 }
 0xf9c   :  { %v3596_v12 = vpop.permute.xlu2 %3595 }
 0xfa4   :  { %v3584_v31 = vpop.permute.xlu2 %3583 }
 0xfac   :  { %v3900_v5 = vpop.permute.xlu2 %3899  ;;  %v3594_v9 = vpop.permute.xlu1 %3593 }
 0xfb4   :  { %v3902_v36 = vpop.permute.xlu0 %3901  ;;  %v3898_v59 = vpop.permute.xlu2 %3897 }
 0xfbc   :  { %v3598_v52 = vpop.permute.xlu0 %3597  ;;  %v3896_v17 = vpop.permute.xlu2 %3895 }
 0xfbd   :  { %6593 = vmatpush.xpose.msk.msra.mxu1 %vm1145_vm8, %v3598_v52 }
 0xfc1   :  { %6594 = vmatpush.xpose.msk.msra.mxu1 %vm1145_vm8, %v3596_v12 }
 0xfc4   :  { %v3904_v46 = vpop.permute.xlu0 %3903  ;;  %v3586_v42 = vpop.permute.xlu2 %3585 }
 0xfc5   :  { %6595 = vmatpush.xpose.msk.msra.mxu1 %vm1145_vm8, %v3594_v9 }
 0xfc9   :  { %6596 = vmatpush.xpose.msk.msra.mxu1 %vm1145_vm8, %v3592_v34 }
 0xfcc   :  { %v3588_v60 = vpop.permute.xlu2 %3587 }
 0xfcd   :  { %6597 = vmatpush.xpose.msk.msra.mxu1 %vm1145_vm8, %v3590_v39 }
 0xfd0   :  { %6598 = vmatmul.msk.f32.vlgmr.msra.gmra.mxu1 %vm1145_vm8, %v3580_v49 }
 0xfd1   :  { %6626 = vmatpush.xpose.msk.msrb.mxu1 %vm1145_vm8, %v3904_v46 }
 0xfd4   :  { %v3886_v44 = vpop.permute.xlu2 %3885 }
 0xfd5   :  { %6627 = vmatpush.xpose.msk.msrb.mxu1 %vm1145_vm8, %v3902_v36 }
 0xfd8   :  { %6599 = vmatmul.msk.f32.gmra.mxu1 %vm1145_vm8, %v3582_v35 }
 0xfd9   :  { %6628 = vmatpush.xpose.msk.msrb.mxu1 %vm1145_vm8, %v3900_v5 }
 0xfdc   :  { %v3888_v43 = vpop.permute.xlu2 %3887 }
 0xfdd   :  { %6629 = vmatpush.xpose.msk.msrb.mxu1 %vm1145_vm8, %v3898_v59 }
 0xfe0   :  { %6600 = vmatmul.msk.f32.gmra.mxu1 %vm1145_vm8, %v3584_v31 }
 0xfe1   :  { %6630 = vmatpush.xpose.msk.msrb.mxu1 %vm1145_vm8, %v3896_v17  ;;  %v3441_v0 = vpop.f32.mrf.mxu2 }
 0xfe2   :  { %v3456_v48 = vmul.f32 0.25, %v3441_v0 }
 0xfe4   :  { %v3466_v29 = vadd.f32 %v3461_v54, %v3456_v48  ;;  %v6603_v54 = vld [vmem:[%s10502_s3 + $0x28] sm:$0xff] }
 0xfe6   :  { %v3471_v4 = vsel %vm287_vm3, %v3466_v29, -inf }
 0xfe7   :  { %3472 = vmax.xlane.f32.xlu1 %v3471_v4 }
 0xfe8   :  { %6601 = vmatmul.msk.f32.gmra.mxu1 %vm1145_vm8, %v3586_v42 }
 0xfe9   :  { %v3444_v3 = vpop.f32.mrf.mxu2 }
 0xfea   :  { %v3457_v28 = vmul.f32 0.25, %v3444_v3 }
 0xfec   :  { %v3467_v62 = vadd.f32 %v3462_v6, %v3457_v28 }
 0xfee   :  { %v3474_v16 = vsel %vm287_vm3, %v3467_v62, -inf }
 0xfef   :  { %3475 = vmax.xlane.f32.xlu0 %v3474_v16  ;;  %v6604_v16 = vld [vmem:[%s10502_s3 + $0x30] sm:$0xff] }
 0xff0   :  { %6602 = vmatmul.msk.f32.gmra.mxu1 %vm1145_vm8, %v3588_v60 }
 0xff1   :  { %v3447_v14 = vpop.f32.mrf.mxu2 }
 0xff2   :  { %v3458_v2 = vmul.f32 0.25, %v3447_v14 }
 0xff4   :  { %v3468_v19 = vadd.f32 %v3463_v61, %v3458_v2 }
 0xff6   :  { %v3477_v32 = vsel %vm287_vm3, %v3468_v19, -inf }
 0xff7   :  { %3478 = vmax.xlane.f32.xlu1 %v3477_v32 }
 0xff8   :  { %6631 = vmatmul.msk.f32.vlgmr.msrb.gmra.mxu1 %vm1145_vm8, %v3886_v44 }
 0xff9   :  { %v3450_v27 = vpop.f32.mrf.mxu2 }
 0xffa   :  { %v3459_v58 = vmul.f32 0.25, %v3450_v27 }
 0xffc   :  { %v3469_v47 = vadd.f32 %v3464_v26, %v3459_v58 }
 0xffe   :  { %v3480_v13 = vsel %vm287_vm3, %v3469_v47, -inf }
 0xfff   :  { %3481 = vmax.xlane.f32.xlu1 %v3480_v13 }
0x1000   :  { %6632 = vmatmul.msk.f32.gmra.mxu1 %vm1145_vm8, %v3888_v43  ;;  %v6607_v43 = vld [vmem:[%s10502_s3 + $0x48] sm:$0x3] }
0x1001   :  { %v3453_v10 = vpop.f32.mrf.mxu2 }
0x1002   :  { %v3460_v45 = vmul.f32 0.25, %v3453_v10  ;;  %v6605_v10 = vld [vmem:[%s10502_s3 + $0x38] sm:$0xff] }
0x1003   :  { %3893 = vrot.lane.b32.xlu0 %v9175_v11, %s7418_s29 }
0x1004   :  { %v9219_v49 = vadd.f32 %v3465_v22, %v3460_v45 }
0x1006   :  { %v3483_v39 = vsel %vm1235_vm9, %v9219_v49, -inf }
0x1018   :  { %3889 = vrot.lane.b32.xlu1 %v9133_v1, %s7418_s29 }
0x102d   :  { %3484 = vmax.xlane.f32.xlu0 %v3483_v39 }
0x104d   :  { %v3636_v34 = vpop.f32.mrf.mxu1 }
0x104e   :  { %v3651_v17 = vmul.f32 0.25, %v3636_v34 }
0x1050   :  { %v9228_v4 = vadd.f32 %v6603_v54, %v3651_v17 }
0x1055   :  { %v3639_v12 = vpop.f32.mrf.mxu1 }
0x1056   :  { %v3652_v28 = vmul.f32 0.25, %v3639_v12 }
0x1058   :  { %v9237_v2 = vadd.f32 %v6604_v16, %v3652_v28  ;;  %v6606_v28 = vld [vmem:[%s10502_s3 + $0x40] sm:$0xff] }
0x105a   :  { %v3473_v36 = vpop.xlane.xlu1 %3472  ;;  %v3669_v58 = vsel %vm287_vm3, %v9237_v2, -inf }
0x105b   :  { %v3486_v31 = vsub.f32 %v3466_v29, %v3473_v36 }
0x105d   :  { %v3491_v35 = vmul.f32 1.442695, %v3486_v31  ;;  %v3642_v52 = vpop.f32.mrf.mxu1 }
0x105e   :  { %v3653_v27 = vmul.f32 0.25, %v3642_v52 }
0x105f   :  { %7216 = vpow2.f32 %v3491_v35  ;;  %v6636_v35 = vld [vmem:[%s10502_s3 + $0x50] sm:$0xff] }
0x1062   :  { %v3476_v5 = vpop.xlane.xlu0 %3475 }
0x1063   :  { %v3487_v9 = vsub.f32 %v3467_v62, %v3476_v5  ;;  %v3666_v62 = vsel %vm287_vm3, %v9228_v4, -inf }
0x1065   :  { %v9223_v59 = vpop.eup %7216  ;;  %v3493_v46 = vmul.f32 1.442695, %v3487_v9  ;;  %v3645_v0 = vpop.f32.mrf.mxu1 }
0x1066   :  { %v3501_v42 = vsel %vm287_vm3, %v9223_v59, 0.0 }
0x1067   :  { %7218 = vpow2.f32 %v3493_v46  ;;  %3502 = vadd.xlane.f32.xlu2 %v3501_v42  ;;  %v3892_v46 = vpop.permute.xlu2 %3891 }
0x106a   :  { %v3479_v48 = vpop.xlane.xlu1 %3478 }
0x106b   :  { %v3488_v29 = vsub.f32 %v3468_v19, %v3479_v48 }
0x106d   :  { %v9230_v3 = vpop.eup %7218  ;;  %v3495_v6 = vmul.f32 1.442695, %v3488_v29  ;;  %v3648_v14 = vpop.f32.mrf.mxu1 }
0x106e   :  { %v3504_v60 = vsel %vm287_vm3, %v9230_v3, 0.0  ;;  %v3655_v26 = vmul.f32 0.25, %v3648_v14  ;;  %v6637_v14 = vld [vmem:[%s10502_s3 + $0x58] sm:$0xff] }
0x106f   :  { %7220 = vpow2.f32 %v3495_v6  ;;  %3505 = vadd.xlane.f32.xlu0 %v3504_v60  ;;  %3667 = vmax.xlane.f32.xlu2 %v3666_v62  ;;  %v3654_v6 = vmul.f32 0.25, %v3645_v0 }
0x1070   :  { %v9247_v45 = vadd.f32 %v6607_v43, %v3655_v26 }
0x1071   :  { %v9283_v60 = vadd.f32 %v6606_v28, %v3654_v6 }
0x1072   :  { %v3482_v61 = vpop.xlane.xlu1 %3481  ;;  %v3678_v12 = vsel %vm1235_vm9, %v9247_v45, -inf }
0x1073   :  { %v3489_v19 = vsub.f32 %v3469_v47, %v3482_v61  ;;  %v9249_v47 = vadd.f32 %v6605_v10, %v3653_v27  ;;  %v3675_v16 = vsel %vm287_vm3, %v9283_v60, -inf }
0x1075   :  { %v9239_v44 = vpop.eup %7220  ;;  %v3497_v32 = vmul.f32 1.442695, %v3489_v19  ;;  %v3942_v22 = vpop.f32.mrf.mxu1  ;;  %v3672_v36 = vsel %vm287_vm3, %v9249_v47, -inf }
0x1076   :  { %v3507_v13 = vsel %vm287_vm3, %v9239_v44, 0.0  ;;  %v3957_v34 = vmul.f32 0.25, %v3942_v22  ;;  %v3894_v17 = vpop.permute.xlu0 %3893 }
0x1077   :  { %7222 = vpow2.f32 %v3497_v32  ;;  %3670 = vmax.xlane.f32.xlu0 %v3669_v58  ;;  %3508 = vadd.xlane.f32.xlu1 %v3507_v13 }
0x1078   :  { %v9260_v52 = vadd.f32 %v6636_v35, %v3957_v34 }
0x107a   :  { %v3972_v5 = vsel %vm287_vm3, %v9260_v52, -inf }
0x107d   :  { %v9251_v39 = vpop.eup %7222  ;;  %v3945_v62 = vpop.f32.mrf.mxu1 }
0x107e   :  { %v3510_v31 = vsel %vm287_vm3, %v9251_v39, 0.0 }
0x107f   :  { %3679 = vmax.xlane.f32.xlu0 %v3678_v12  ;;  %3673 = vmax.xlane.f32.xlu1 %v3672_v36 }
0x1080   :  { %3511 = vadd.xlane.f32.xlu2 %v3510_v31 }
0x1087   :  { %3973 = vmax.xlane.f32.xlu1 %v3972_v5 }
0x108a   :  { %v3890_v9 = vpop.permute.xlu1 %3889 }
0x108b   :  { %6633 = vmatmul.msk.f32.gmra.mxu1 %vm1145_vm8, %v3890_v9  ;;  %v6638_v9 = vld [vmem:[%s10502_s3 + $0x60] sm:$0xff] }
0x1093   :  { %7019 = vrot.lane.b32.xlu0 %v9121_v18, %s7417_s25  ;;  %6634 = vmatmul.msk.f32.gmra.mxu1 %vm1145_vm8, %v3892_v46 }
0x109b   :  { %4157 = vrot.lane.b32.xlu0 %v9114_v37, %s7419_s8  ;;  %6635 = vmatmul.msk.f32.gmra.mxu1 %vm1145_vm8, %v3894_v17 }
0x10a0   :  { %v3485_v42 = vpop.xlane.xlu0 %3484  ;;  %3733 = vrot.lane.b32.xlu1 %v9145_v56, %s7417_s25 }
0x10a1   :  { %v3490_v54 = vsub.f32 %v9219_v49, %v3485_v42  ;;  %v3958_v49 = vmul.f32 0.25, %v3945_v62 }
0x10a3   :  { %v3499_v48 = vmul.f32 1.442695, %v3490_v54 }
0x10a5   :  { %7224 = vpow2.f32 %v3499_v48  ;;  %v6639_v48 = vld [vmem:[%s10502_s3 + $0x68] sm:$0xff] }
0x10a8   :  { %4159 = vrot.lane.b32.xlu1 %v9123_v63, %s7419_s8  ;;  %v9288_v63 = vadd.f32 %v6637_v14, %v3958_v49 }
0x10aa   :  { %v3975_v0 = vsel %vm287_vm3, %v9288_v63, -inf }
0x10ab   :  { %v9276_v29 = vpop.eup %7224 }
0x10ac   :  { %v3513_v37 = vsel %vm1235_vm9, %v9276_v29, 0.0 }
0x10ad   :  { %3514 = vadd.xlane.f32.xlu2 %v3513_v37 }
0x10b0   :  { %4155 = vrot.lane.b32.xlu1 %v9106_v30, %s7419_s8 }
0x10b5   :  { %3676 = vmax.xlane.f32.xlu2 %v3675_v16 }
0x10bd   :  { %3976 = vmax.xlane.f32.xlu2 %v3975_v0  ;;  %v6640_v0 = vld [vmem:[%s10502_s3 + $0x70] sm:$0x3] }
0x10d5   :  { %7014 = vrot.lane.b32.xlu2 %v9137_v20, %s7417_s25 }
0x10da   :  { %v3503_v61 = vpop.xlane.xlu2 %3502 }
0x10db   :  { %7226 = vrcp.f32 %v3503_v61 }
0x10dd   :  { %4163 = vrot.lane.b32.xlu2 %v9135_v51, %s7419_s8 }
0x10e1   :  { %v7227_v30 = vpop.eup %7226 }
0x10e2   :  { %v3521_v19 = vmul.f32 %v7227_v30, %v9223_v59  ;;  %v3506_v32 = vpop.xlane.xlu0 %3505  ;;  %v3668_v43 = vpop.xlane.xlu2 %3667 }
0x10e3   :  { %7228 = vrcp.f32 %v3506_v32  ;;  %v3681_v62 = vsub.f32 %v9228_v4, %v3668_v43  ;;  %v6592_v4 = vld [vmem:[%s10503_s14 + $0x48] sm:$0xff] }
0x10e4   :  { %6586 = vmatmul.msk.f32.vlgmr.msrb.gmra.mxu0 %vm287_vm3, %v3521_v19 }
0x10e5   :  { %4161 = vrot.lane.b32.xlu2 %v9127_v41, %s7419_s8  ;;  %v3686_v16 = vmul.f32 1.442695, %v3681_v62  ;;  %3867 = vmatpush.msra.mxu0 %v6592_v4 }
0x10e9   :  { %v7229_v27 = vpop.eup %7228 }
0x10ea   :  { %v3671_v26 = vpop.xlane.xlu0 %3670  ;;  %v3509_v58 = vpop.xlane.xlu1 %3508  ;;  %v3522_v13 = vmul.f32 %v7229_v27, %v9230_v3  ;;  %v6591_v27 = vld [vmem:[%s10503_s14 + $0x40] sm:$0xff] }
0x10eb   :  { %v3682_v10 = vsub.f32 %v9237_v2, %v3671_v26  ;;  %7230 = vrcp.f32 %v3509_v58  ;;  %3868 = vmatpush.msra.mxu0 %v6591_v27 }
0x10ec   :  { %6587 = vmatmul.msk.f32.gmra.mxu0 %vm287_vm3, %v3522_v13 }
0x10ed   :  { %v3688_v51 = vmul.f32 1.442695, %v3682_v10  ;;  %4145 = vrot.lane.b32.xlu2 %v9104_v8, %s7419_s8 }
0x10ef   :  { %7232 = vpow2.f32 %v3688_v51 }
0x10f1   :  { %v7231_v59 = vpop.eup %7230 }
0x10f2   :  { %v3680_v22 = vpop.xlane.xlu0 %3679  ;;  %v3523_v41 = vmul.f32 %v7231_v59, %v9239_v44  ;;  %v3674_v35 = vpop.xlane.xlu1 %3673 }
0x10f3   :  { %v3685_v34 = vsub.f32 %v9247_v45, %v3680_v22  ;;  %v3512_v12 = vpop.xlane.xlu2 %3511  ;;  %v3683_v19 = vsub.f32 %v9249_v47, %v3674_v35 }
0x10f4   :  { %7234 = vrcp.f32 %v3512_v12  ;;  %6588 = vmatmul.msk.f32.gmra.mxu0 %vm287_vm3, %v3523_v41 }
0x10f5   :  { %v9308_v3 = vpop.eup %7232  ;;  %v3694_v2 = vmul.f32 1.442695, %v3685_v34  ;;  %4035 = vrot.lane.b32.xlu2 %v9145_v56, %s7418_s29  ;;  %v3690_v26 = vmul.f32 1.442695, %v3683_v19 }
0x10f6   :  { %v3699_v8 = vsel %vm287_vm3, %v9308_v3, 0.0 }
0x10f7   :  { %7236 = vpow2.f32 %v3694_v2  ;;  %3700 = vadd.xlane.f32.xlu1 %v3699_v8 }
0x10f8   :  { %7238 = vpow2.f32 %v3686_v16 }
0x10fa   :  { %v7235_v36 = vpop.eup %7234 }
0x10fb   :  { %v3524_v44 = vmul.f32 %v7235_v36, %v9251_v39  ;;  %v9325_v39 = vpop.xlane.xlu1 %3973 }
0x10fd   :  { %v9315_v45 = vpop.eup %7236  ;;  %6589 = vmatmul.msk.f32.gmra.mxu0 %vm287_vm3, %v3524_v44  ;;  %7024 = vrot.lane.b32.xlu2 %v9137_v20, %s7418_s29 }
0x10fe   :  { %v3708_v31 = vsel %vm1235_vm9, %v9315_v45, 0.0 }
0x10ff   :  { %3709 = vadd.xlane.f32.xlu1 %v3708_v31 }
0x1105   :  { %7029 = vrot.lane.b32.xlu2 %v9121_v18, %s7418_s29  ;;  %v7020_v44 = vpop.permute.xlu0 %7019 }
0x1108   :  { %v3948_v5 = vpop.f32.mrf.mxu1 }
0x1109   :  { %v3959_v46 = vmul.f32 0.25, %v3948_v5  ;;  %v7021_v5 = vunpack.i.l.bf16 %v7020_v44 }
0x110b   :  { %v9327_v17 = vadd.f32 %v6638_v9, %v3959_v46  ;;  %v7022_v9 = vunpack.i.h.bf16 %v7020_v44 }
0x110d   :  { %v3978_v42 = vsel %vm287_vm3, %v9327_v17, -inf }
0x110e   :  { %3979 = vmax.xlane.f32.xlu0 %v3978_v42 }
0x1110   :  { %v3951_v54 = vpop.f32.mrf.mxu1 }
0x1111   :  { %v3960_v6 = vmul.f32 0.25, %v3951_v54  ;;  %v4158_v54 = vpop.permute.xlu0 %4157 }
0x1112   :  { %v3734_v37 = vpop.permute.xlu1 %3733 }
0x1113   :  { %v9332_v28 = vadd.f32 %v6639_v48, %v3960_v6  ;;  %6608 = vmatpush.msk.msra.mxu3 %vm188_vm0, %v3734_v37  ;;  %v3987_v6 = vsub.f32 %v9260_v52, %v9325_v39 }
0x1115   :  { %v3981_v49 = vsel %vm287_vm3, %v9332_v28, -inf  ;;  %v3992_v62 = vmul.f32 1.442695, %v3987_v6 }
0x1116   :  { %3982 = vmax.xlane.f32.xlu0 %v3981_v49 }
0x1118   :  { %4147 = vrot.lane.b32.xlu1 %v9112_v40, %s7419_s8  ;;  %v3954_v14 = vpop.f32.mrf.mxu1  ;;  %v9348_v40 = vpop.eup %7238 }
0x1119   :  { %v3961_v61 = vmul.f32 0.25, %v3954_v14  ;;  %v3696_v13 = vsel %vm287_vm3, %v9348_v40, 0.0 }
0x111b   :  { %v9341_v30 = vadd.f32 %v6640_v0, %v3961_v61 }
0x111d   :  { %v3984_v32 = vsel %vm1235_vm9, %v9341_v30, -inf }
0x111e   :  { %3985 = vmax.xlane.f32.xlu0 %v3984_v32 }
0x1120   :  { %v3515_v58 = vpop.xlane.xlu2 %3514 }
0x1121   :  { %7240 = vrcp.f32 %v3515_v58 }
0x1122   :  { %7242 = vpow2.f32 %v3690_v26 }
0x1126   :  { %3697 = vadd.xlane.f32.xlu0 %v3696_v13 }
0x1127   :  { %v7241_v43 = vpop.eup %7240 }
0x1128   :  { %v3677_v47 = vpop.xlane.xlu2 %3676  ;;  %v3525_v10 = vmul.f32 %v7241_v43, %v9276_v29  ;;  %v9354_v59 = vpop.eup %7242 }
0x1129   :  { %v3684_v51 = vsub.f32 %v9283_v60, %v3677_v47  ;;  %v3702_v41 = vsel %vm287_vm3, %v9354_v59, 0.0 }
0x112a   :  { %6590 = vmatmul.msk.f32.gmra.mxu0 %vm287_vm3, %v3525_v10 }
0x112b   :  { %v3692_v22 = vmul.f32 1.442695, %v3684_v51 }
0x112d   :  { %7244 = vpow2.f32 %v3692_v22 }
0x112e   :  { %3703 = vadd.xlane.f32.xlu2 %v3702_v41 }
0x1130   :  { %v3977_v34 = vpop.xlane.xlu2 %3976 }
0x1131   :  { %v3988_v12 = vsub.f32 %v9288_v63, %v3977_v34 }
0x1133   :  { %v9360_v2 = vpop.eup %7244  ;;  %v3994_v8 = vmul.f32 1.442695, %v3988_v12 }
0x1134   :  { %v3705_v29 = vsel %vm287_vm3, %v9360_v2, 0.0 }
0x1135   :  { %7246 = vpow2.f32 %v3994_v8 }
0x1136   :  { %3706 = vadd.xlane.f32.xlu2 %v3705_v29  ;;  %7248 = vpow2.f32 %v3992_v62 }
0x1138   :  { %v7015_v60 = vpop.permute.xlu2 %7014 }
0x1139   :  { %v7016_v36 = vunpack.i.l.bf16 %v7015_v60  ;;  %v7017_v35 = vunpack.i.h.bf16 %v7015_v60 }
0x113a   :  { %4149 = vrot.lane.b32.xlu0 %v9133_v1, %s7419_s8  ;;  %v4160_v1 = vpop.permute.xlu1 %4159 }
0x113b   :  { %v9366_v31 = vpop.eup %7246  ;;  %3768 = vmatpush.msra.mxu3 %v7016_v36 }
0x113c   :  { %v4005_v63 = vsel %vm287_vm3, %v9366_v31, 0.0  ;;  %v9380_v16 = vpop.eup %7248 }
0x113d   :  { %3769 = vmatpush.msra.mxu3 %v7017_v35  ;;  %v4002_v52 = vsel %vm287_vm3, %v9380_v16, 0.0 }
0x113e   :  { %4006 = vadd.xlane.f32.xlu2 %v4005_v63 }
0x113f   :  { %3770 = vmatpush.msra.mxu3 %v7021_v5 }
0x1140   :  { %v4164_v46 = vpop.permute.xlu2 %4163 }
0x1141   :  { %3771 = vmatpush.msra.mxu3 %v7022_v9  ;;  %6654 = vmatpush.xpose.msk.msrb.mxu0 %vm1145_vm8, %v4164_v46 }
0x1142   :  { %v4156_v37 = vpop.permute.xlu1 %4155 }
0x1148   :  { %v4162_v42 = vpop.permute.xlu2 %4161 }
0x1149   :  { %6655 = vmatpush.xpose.msk.msrb.mxu0 %vm1145_vm8, %v4162_v42 }
0x114d   :  { %6656 = vmatpush.xpose.msk.msrb.mxu0 %vm1145_vm8, %v4160_v1 }
0x1150   :  { %v9373_v48 = vpop.permute.xlu2 %4145 }
0x1151   :  { %6657 = vmatpush.xpose.msk.msrb.mxu0 %vm1145_vm8, %v4158_v54 }
0x1155   :  { %6658 = vmatpush.xpose.msk.msrb.mxu0 %vm1145_vm8, %v4156_v37 }
0x1158   :  { %v4036_v49 = vpop.permute.xlu2 %4035 }
0x1159   :  { %6641 = vmatpush.msk.msrb.mxu3 %vm188_vm0, %v4036_v49 }
0x1160   :  { %v7025_v14 = vpop.permute.xlu2 %7024 }
0x1161   :  { %v7026_v0 = vunpack.i.l.bf16 %v7025_v14  ;;  %v3561_v61 = vpop.f32.mrf.mxu0  ;;  %v7027_v19 = vunpack.i.h.bf16 %v7025_v14 }
0x1162   :  { %6621 = vmatmul.msk.f32.vlgmr.msra.gmra.mxu0 %vm1145_vm8, %v3561_v61 }
0x1163   :  { %4070 = vmatpush.msrb.mxu3 %v7026_v0 }
0x1164   :  { %4003 = vadd.xlane.f32.xlu0 %v4002_v52  ;;  %v6615_v52 = vld [vmem:[%s10503_s14 + $0x58] sm:$0xff] }
0x1165   :  { %4071 = vmatpush.msrb.mxu3 %v7027_v19  ;;  %3820 = vmatpush.msrb.mxu2 %v6615_v52  ;;  %v6686_v52 = vld [vmem:[%s10504_s19 + $0x58] sm:$0xff] }
0x1168   :  { %v7030_v39 = vpop.permute.xlu2 %7029 }
0x1169   :  { %v7031_v32 = vunpack.i.l.bf16 %v7030_v39  ;;  %v3564_v4 = vpop.f32.mrf.mxu0  ;;  %v7032_v27 = vunpack.i.h.bf16 %v7030_v39 }
0x116a   :  { %6622 = vmatmul.msk.f32.gmra.mxu0 %vm1145_vm8, %v3564_v4  ;;  %v3701_v60 = vpop.xlane.xlu1 %3700 }
0x116b   :  { %4072 = vmatpush.msrb.mxu3 %v7031_v32  ;;  %v6614_v32 = vld [vmem:[%s10503_s14 + $0x50] sm:$0xff] }
0x116c   :  { %3821 = vmatpush.msrb.mxu2 %v6614_v32  ;;  %v6685_v32 = vld [vmem:[%s10504_s19 + $0x50] sm:$0xff] }
0x116d   :  { %4073 = vmatpush.msrb.mxu3 %v7032_v27 }
0x1171   :  { %v3567_v26 = vpop.f32.mrf.mxu0 }
0x1172   :  { %6623 = vmatmul.msk.f32.gmra.mxu0 %vm1145_vm8, %v3567_v26  ;;  %v3710_v54 = vpop.xlane.xlu1 %3709 }
0x1178   :  { %4151 = vrot.lane.b32.xlu0 %v9169_v15, %s7419_s8 }
0x117a   :  { %v3570_v58 = vpop.f32.mrf.mxu0 }
0x117b   :  { %6624 = vmatmul.msk.f32.gmra.mxu0 %vm1145_vm8, %v3570_v58 }
0x1181   :  { %v3980_v13 = vpop.xlane.xlu0 %3979 }
0x1182   :  { %v3989_v43 = vsub.f32 %v9327_v17, %v3980_v13 }
0x1184   :  { %v3996_v47 = vmul.f32 1.442695, %v3989_v43 }
0x1186   :  { %7250 = vpow2.f32 %v3996_v47 }
0x1189   :  { %v3983_v10 = vpop.xlane.xlu0 %3982 }
0x118a   :  { %v3990_v41 = vsub.f32 %v9332_v28, %v3983_v10  ;;  %v4148_v37 = vpop.permute.xlu1 %4147 }
0x118c   :  { %v9391_v51 = vpop.eup %7250  ;;  %v3998_v12 = vmul.f32 1.442695, %v3990_v41 }
0x118d   :  { %v4008_v22 = vsel %vm287_vm3, %v9391_v51, 0.0 }
0x118e   :  { %4009 = vadd.xlane.f32.xlu1 %v4008_v22 }
0x1191   :  { %v3986_v34 = vpop.xlane.xlu0 %3985 }
0x1192   :  { %v3991_v15 = vsub.f32 %v9341_v30, %v3986_v34 }
0x1194   :  { %v4000_v8 = vmul.f32 1.442695, %v3991_v15  ;;  %v6648_v15 = vld [vmem:[%s10503_s14 + $0x68] sm:$0xff] }
0x1195   :  { %4122 = vmatpush.msra.mxu2 %v6648_v15 }
0x1196   :  { %7252 = vpow2.f32 %v4000_v8  ;;  %v6664_v8 = vld [vmem:[%s10502_s3 + $0x78] sm:$0xff] }
0x1197   :  { %7254 = vpow2.f32 %v3998_v12 }
0x1199   :  { %v3698_v29 = vpop.xlane.xlu0 %3697 }
0x119a   :  { %7256 = vrcp.f32 %v3698_v29 }
0x119b   :  { %7258 = vrcp.f32 %v3701_v60 }
0x119c   :  { %v9397_v17 = vpop.eup %7252 }
0x119d   :  { %v4014_v36 = vsel %vm1235_vm9, %v9397_v17, 0.0  ;;  %v9401_v44 = vpop.eup %7254 }
0x119e   :  { %4015 = vadd.xlane.f32.xlu2 %v4014_v36  ;;  %v4011_v30 = vsel %vm287_vm3, %v9401_v44, 0.0 }
0x11a0   :  { %v7257_v35 = vpop.eup %7256 }
0x11a1   :  { %v3716_v28 = vmul.f32 %v7257_v35, %v9348_v40  ;;  %v3704_v63 = vpop.xlane.xlu2 %3703  ;;  %v7259_v5 = vpop.eup %7258 }
0x11a2   :  { %4012 = vadd.xlane.f32.xlu0 %v4011_v30  ;;  %7260 = vrcp.f32 %v3704_v63  ;;  %v3717_v46 = vmul.f32 %v7259_v5, %v9308_v3 }
0x11a3   :  { %6609 = vmatmul.msk.f32.vlgmr.msra.gmra.mxu3 %vm287_vm3, %v3716_v28 }
0x11a7   :  { %v3573_v9 = vpop.f32.mrf.mxu0 }
0x11a8   :  { %6625 = vmatmul.msk.f32.gmra.mxu0 %vm1145_vm8, %v3573_v9  ;;  %v7261_v1 = vpop.eup %7260 }
0x11a9   :  { %v3707_v42 = vpop.xlane.xlu2 %3706  ;;  %v3718_v40 = vmul.f32 %v7261_v1, %v9354_v59 }
0x11aa   :  { %7262 = vrcp.f32 %v3707_v42 }
0x11ab   :  { %6610 = vmatmul.msk.f32.gmra.mxu3 %vm287_vm3, %v3717_v46  ;;  %7264 = vrcp.f32 %v3710_v54  ;;  %v6666_v46 = vld [vmem:[%s10502_s3 + $0x88] sm:$0xff] }
0x11ac   :  { %v4150_v49 = vpop.permute.xlu0 %4149 }
0x11b0   :  { %6659 = vmatmul.msk.f32.vlgmr.msrb.gmra.mxu0 %vm1145_vm8, %v9373_v48  ;;  %v7263_v6 = vpop.eup %7262 }
0x11b1   :  { %v3719_v3 = vmul.f32 %v7263_v6, %v9360_v2  ;;  %v7265_v62 = vpop.eup %7264  ;;  %v6647_v6 = vld [vmem:[%s10503_s14 + $0x60] sm:$0xff] }
0x11b2   :  { %v3720_v59 = vmul.f32 %v7265_v62, %v9315_v45  ;;  %4123 = vmatpush.msra.mxu2 %v6647_v6 }
0x11b3   :  { %6611 = vmatmul.msk.f32.gmra.mxu3 %vm287_vm3, %v3718_v40 }
0x11b6   :  { %4153 = vrot.lane.b32.xlu2 %v9175_v11, %s7419_s8  ;;  %v4007_v11 = vpop.xlane.xlu2 %4006 }
0x11b8   :  { %6660 = vmatmul.msk.f32.gmra.mxu0 %vm1145_vm8, %v4148_v37 }
0x11bb   :  { %6612 = vmatmul.msk.f32.gmra.mxu3 %vm287_vm3, %v3719_v3 }
0x11c0   :  { %6661 = vmatmul.msk.f32.gmra.mxu0 %vm1145_vm8, %v4150_v49  ;;  %v6667_v49 = vld [vmem:[%s10502_s3 + $0x90] sm:$0xff] }
0x11c3   :  { %6613 = vmatmul.msk.f32.gmra.mxu3 %vm287_vm3, %v3720_v59 }
0x11d7   :  { %v4004_v48 = vpop.xlane.xlu0 %4003 }
0x11d8   :  { %7266 = vrcp.f32 %v4004_v48 }
0x11d9   :  { %7268 = vrcp.f32 %v4007_v11 }
0x11de   :  { %v7267_v14 = vpop.eup %7266 }
0x11df   :  { %v4022_v0 = vmul.f32 %v7267_v14, %v9380_v16  ;;  %v7269_v2 = vpop.eup %7268  ;;  %v9427_v45 = vpop.f32.mrf.mxu0 }
0x11e0   :  { %v4023_v61 = vmul.f32 %v7269_v2, %v9366_v31  ;;  %v6689_v2 = vld [vmem:[%s10504_s19 + $0x70] sm:$0xff] }
0x11e1   :  { %6642 = vmatmul.msk.f32.vlgmr.msrb.gmra.mxu3 %vm287_vm3, %v4022_v0  ;;  %v6690_v0 = vld [vmem:[%s10504_s19 + $0x78] sm:$0xff] }
0x11e7   :  { %v9431_v16 = vpop.f32.mrf.mxu0 }
0x11e9   :  { %6643 = vmatmul.msk.f32.gmra.mxu3 %vm287_vm3, %v4023_v61  ;;  %v6688_v61 = vld [vmem:[%s10504_s19 + $0x68] sm:$0xff] }
0x11ea   :  { %v4152_v19 = vpop.permute.xlu0 %4151 }
0x11eb   :  { %6662 = vmatmul.msk.f32.gmra.mxu0 %vm1145_vm8, %v4152_v19  ;;  %v6687_v19 = vld [vmem:[%s10504_s19 + $0x60] sm:$0xff] }
0x11ef   :  { %v9435_v26 = vpop.f32.mrf.mxu0 }
0x11f8   :  { %v9438_v47 = vpop.f32.mrf.mxu0 }
0x1201   :  { %v4010_v39 = vpop.xlane.xlu1 %4009 }
0x1202   :  { %7270 = vrcp.f32 %v4010_v39 }
0x1208   :  { %v7271_v4 = vpop.eup %7270 }
0x1209   :  { %v4024_v27 = vmul.f32 %v7271_v4, %v9391_v51  ;;  %v6684_v4 = vld [vmem:[%s10504_s19 + $0x48] sm:$0xff] }
0x120b   :  { %6644 = vmatmul.msk.f32.gmra.mxu3 %vm287_vm3, %v4024_v27  ;;  %v6683_v27 = vld [vmem:[%s10504_s19 + $0x40] sm:$0xff] }
0x1211   :  { %v4016_v31 = vpop.xlane.xlu2 %4015 }
0x1215   :  { %v4013_v58 = vpop.xlane.xlu0 %4012 }
0x1216   :  { %7272 = vrcp.f32 %v4013_v58 }
0x1217   :  { %7274 = vrcp.f32 %v4016_v31  ;;  %v6668_v31 = vld [vmem:[%s10502_s3 + $0x98] sm:$0x3] }
0x1219   :  { %v4154_v13 = vpop.permute.xlu2 %4153 }
0x121a   :  { %6663 = vmatmul.msk.f32.gmra.mxu0 %vm1145_vm8, %v4154_v13 }
0x121c   :  { %v7273_v43 = vpop.eup %7272 }
0x121d   :  { %v4025_v10 = vmul.f32 %v7273_v43, %v9401_v44  ;;  %v7275_v51 = vpop.eup %7274 }
0x121e   :  { %v4026_v41 = vmul.f32 %v7275_v51, %v9397_v17  ;;  %v6665_v17 = vld [vmem:[%s10502_s3 + $0x80] sm:$0xff] }
0x121f   :  { %6645 = vmatmul.msk.f32.gmra.mxu3 %vm287_vm3, %v4025_v10 }
0x1225   :  { %v9442_v22 = vpop.f32.mrf.mxu0 }
0x1226   :  { %v3773_v34 = vpop.f32.mrf.mxu3 }
0x1227   :  { %6616 = vmatmul.msk.f32.vlgmr.msrb.gmra.mxu2 %vm1145_vm8, %v3773_v34  ;;  %6646 = vmatmul.msk.f32.gmra.mxu3 %vm287_vm3, %v4026_v41 }
0x1228   :  { %4432 = vmatpush.msrb.mxu2 %v6690_v0 }
0x122a   :  { %4433 = vmatpush.msrb.mxu2 %v6689_v2 }
0x122c   :  { %4434 = vmatpush.msrb.mxu2 %v6688_v61 }
0x122d   :  { %v4202_v12 = vpop.f32.mrf.mxu0 }
0x122e   :  { %v4217_v29 = vmul.f32 0.25, %v4202_v12  ;;  %v3776_v60 = vpop.f32.mrf.mxu3  ;;  %4435 = vmatpush.msrb.mxu2 %v6687_v19 }
0x122f   :  { %6617 = vmatmul.msk.f32.gmra.mxu2 %vm1145_vm8, %v3776_v60 }
0x1230   :  { %v4227_v36 = vadd.f32 %v6664_v8, %v4217_v29  ;;  %4436 = vmatpush.msrb.mxu2 %v6686_v52 }
0x1232   :  { %v4232_v44 = vsel %vm287_vm3, %v4227_v36, -inf  ;;  %4437 = vmatpush.msrb.mxu2 %v6685_v32 }
0x1233   :  { %4233 = vmax.xlane.f32.xlu1 %v4232_v44 }
0x1234   :  { %4438 = vmatpush.msrb.mxu2 %v6684_v4 }
0x1235   :  { %v4205_v35 = vpop.f32.mrf.mxu0 }
0x1236   :  { %v4218_v28 = vmul.f32 0.25, %v4205_v35  ;;  %v3779_v30 = vpop.f32.mrf.mxu3  ;;  %4439 = vmatpush.msrb.mxu2 %v6683_v27 }
0x1237   :  { %6618 = vmatmul.msk.f32.gmra.mxu2 %vm1145_vm8, %v3779_v30 }
0x1238   :  { %v9453_v63 = vadd.f32 %v6665_v17, %v4218_v28 }
0x123a   :  { %v4235_v5 = vsel %vm287_vm3, %v9453_v63, -inf }
0x123b   :  { %4236 = vmax.xlane.f32.xlu1 %v4235_v5 }
0x123d   :  { %v4208_v9 = vpop.f32.mrf.mxu0 }
0x123e   :  { %v4219_v42 = vmul.f32 0.25, %v4208_v9  ;;  %v3782_v1 = vpop.f32.mrf.mxu3 }
0x123f   :  { %6619 = vmatmul.msk.f32.gmra.mxu2 %vm1145_vm8, %v3782_v1 }
0x1240   :  { %v4229_v54 = vadd.f32 %v6666_v46, %v4219_v42 }
0x1242   :  { %v4238_v40 = vsel %vm287_vm3, %v4229_v54, -inf }
0x1243   :  { %4239 = vmax.xlane.f32.xlu2 %v4238_v40 }
0x1246   :  { %v3785_v37 = vpop.f32.mrf.mxu3 }
0x1247   :  { %6620 = vmatmul.msk.f32.gmra.mxu2 %vm1145_vm8, %v3785_v37 }
0x1264   :  { %v4075_v3 = vpop.f32.mrf.mxu3 }
0x1265   :  { %6649 = vmatmul.msk.f32.vlgmr.msra.gmra.mxu2 %vm1145_vm8, %v4075_v3 }
0x1268   :  { %v4211_v62 = vpop.f32.mrf.mxu0 }
0x1269   :  { %v4220_v59 = vmul.f32 0.25, %v4211_v62 }
0x126b   :  { %v9464_v48 = vadd.f32 %v6667_v49, %v4220_v59 }
0x126c   :  { %v4078_v11 = vpop.f32.mrf.mxu3 }
0x126d   :  { %6650 = vmatmul.msk.f32.gmra.mxu2 %vm1145_vm8, %v4078_v11  ;;  %v4241_v14 = vsel %vm287_vm3, %v9464_v48, -inf }
0x126e   :  { %4242 = vmax.xlane.f32.xlu0 %v4241_v14 }
0x1282   :  { %7034 = vrot.lane.b32.xlu0 %v9137_v20, %s7419_s8 }
0x128e   :  { %v4081_v39 = vpop.f32.mrf.mxu3 }
0x128f   :  { %6651 = vmatmul.msk.f32.gmra.mxu2 %vm1145_vm8, %v4081_v39 }
0x1297   :  { %v4214_v20 = vpop.f32.mrf.mxu0 }
0x1298   :  { %v4221_v58 = vmul.f32 0.25, %v4214_v20 }
0x129a   :  { %v4231_v13 = vadd.f32 %v6668_v31, %v4221_v58 }
0x129c   :  { %v4244_v43 = vsel %vm1235_vm9, %v4231_v13, -inf }
0x129d   :  { %4245 = vmax.xlane.f32.xlu1 %v4244_v43 }
0x12a2   :  { %v4084_v10 = vpop.f32.mrf.mxu3 }
0x12a3   :  { %6652 = vmatmul.msk.f32.gmra.mxu2 %vm1145_vm8, %v4084_v10 }
0x12a6   :  { %v4234_v51 = vpop.xlane.xlu1 %4233 }
0x12a7   :  { %v4247_v41 = vsub.f32 %v4227_v36, %v4234_v51 }
0x12a9   :  { %v4252_v34 = vmul.f32 1.442695, %v4247_v41 }
0x12aa   :  { %v4087_v15 = vpop.f32.mrf.mxu3  ;;  %v3823_v36 = vpop.f32.mrf.mxu2 }
0x12ab   :  { %7276 = vpow2.f32 %v4252_v34  ;;  %6653 = vmatmul.msk.f32.gmra.mxu2 %vm1145_vm8, %v4087_v15  ;;  %v3871_v1 = vadd.f32 %v9427_v45, %v3823_v36  ;;  %v7346_v36 = vld [vmem:[%s10505_s24] sm:$0xff] }
0x12b1   :  { %v9484_v12 = vpop.eup %7276 }
0x12b2   :  { %v4262_v8 = vsel %vm287_vm3, %v9484_v12, 0.0  ;;  %v3826_v17 = vpop.f32.mrf.mxu2 }
0x12b3   :  { %6691 = vmatmul.msk.f32.vlgmr.msrb.gmra.mxu2 %vm239_vm2, %v9041_v24  ;;  %4263 = vadd.xlane.f32.xlu0 %v4262_v8  ;;  %v4237_v24 = vpop.xlane.xlu1 %4236  ;;  %v3874_v40 = vadd.f32 %v9431_v16, %v3826_v17 }
0x12b6   :  { %v4240_v29 = vpop.xlane.xlu2 %4239  ;;  %4295 = vrot.lane.b32.xlu1 %v9145_v56, %s7419_s8 }
0x12b7   :  { %v4249_v60 = vsub.f32 %v4229_v54, %v4240_v29 }
0x12b9   :  { %v4256_v44 = vmul.f32 1.442695, %v4249_v60 }
0x12ba   :  { %v3829_v56 = vpop.f32.mrf.mxu2 }
0x12bb   :  { %7278 = vpow2.f32 %v4256_v44  ;;  %6692 = vmatmul.msk.f32.gmra.mxu2 %vm239_vm2, %v9058_v38  ;;  %v4248_v38 = vsub.f32 %v9453_v63, %v4237_v24  ;;  %v3877_v49 = vadd.f32 %v9435_v26, %v3829_v56 }
0x12bd   :  { %v4254_v30 = vmul.f32 1.442695, %v4248_v38  ;;  %v7348_v38 = vld [vmem:[%s10505_s24 + $0x10] sm:$0xff] }
0x12bf   :  { %7280 = vpow2.f32 %v4254_v30  ;;  %v7349_v30 = vld [vmem:[%s10505_s24 + $0x18] sm:$0xff] }
0x12c1   :  { %v9494_v35 = vpop.eup %7278 }
0x12c2   :  { %v4268_v28 = vsel %vm287_vm3, %v9494_v35, 0.0  ;;  %v3832_v5 = vpop.f32.mrf.mxu2 }
0x12c3   :  { %4269 = vadd.xlane.f32.xlu2 %v4268_v28  ;;  %6693 = vmatmul.msk.f32.gmra.mxu2 %vm239_vm2, %v9072_v33  ;;  %v3880_v0 = vadd.f32 %v9438_v47, %v3832_v5  ;;  %v7347_v28 = vld [vmem:[%s10505_s24 + $0x8] sm:$0xff]  ;;  %v7350_v5 = vld [vmem:[%s10505_s24 + $0x20] sm:$0x3] }
0x12c5   :  { %v9507_v9 = vpop.eup %7280 }
0x12c6   :  { %v4265_v33 = vsel %vm287_vm3, %v9507_v9, 0.0 }
0x12c7   :  { %7039 = vrot.lane.b32.xlu0 %v9121_v18, %s7419_s8 }
0x12ca   :  { %v3835_v46 = vpop.f32.mrf.mxu2 }
0x12cb   :  { %6694 = vmatmul.msk.f32.gmra.mxu2 %vm239_vm2, %v9083_v25  ;;  %v3883_v32 = vadd.f32 %v9442_v22, %v3835_v46 }
0x12d3   :  { %6695 = vmatmul.msk.f32.gmra.mxu2 %vm239_vm2, %v9094_v53 }
0x12e0   :  { %4266 = vadd.xlane.f32.xlu1 %v4265_v33 }
0x12e1   :  { %v4243_v18 = vpop.xlane.xlu0 %4242 }
0x12e2   :  { %v4250_v42 = vsub.f32 %v9464_v48, %v4243_v18  ;;  %v6675_v18 = vld [vmem:[%s10503_s14 + $0x70] sm:$0xff] }
0x12e4   :  { %v4258_v25 = vmul.f32 1.442695, %v4250_v42 }
0x12e6   :  { %7282 = vpow2.f32 %v4258_v25 }
0x12e8   :  { %v4125_v63 = vpop.f32.mrf.mxu2 }
0x12e9   :  { %v9513_v54 = vadd.f32 %v4125_v63, %v3871_v1 }
0x12ec   :  { %v9515_v53 = vpop.eup %7282 }
0x12ed   :  { %v4271_v37 = vsel %vm287_vm3, %v9515_v53, 0.0 }
0x12f0   :  { %v4128_v6 = vpop.f32.mrf.mxu2 }
0x12f1   :  { %v9520_v3 = vadd.f32 %v4128_v6, %v3874_v40  ;;  %4272 = vadd.xlane.f32.xlu0 %v4271_v37  ;;  %v6709_v40 = vld [vmem:[%s10506_s22 + $0x70] sm:$0xff]  ;;  %v6708_v6 = vld [vmem:[%s10506_s22 + $0x68] sm:$0xff]  ;;  %v6707_v37 = vld [vmem:[%s10506_s22 + $0x60] sm:$0xff] }
0x12f4   :  { %v7035_v2 = vpop.permute.xlu0 %7034 }
0x12f5   :  { %v7036_v26 = vunpack.i.l.bf16 %v7035_v2  ;;  %v7037_v39 = vunpack.i.h.bf16 %v7035_v2 }
0x1310   :  { %v4246_v62 = vpop.xlane.xlu1 %4245 }
0x1311   :  { %v4251_v59 = vsub.f32 %v4231_v13, %v4246_v62 }
0x1312   :  { %v4131_v45 = vpop.f32.mrf.mxu2 }
0x1313   :  { %v4260_v48 = vmul.f32 1.442695, %v4251_v59  ;;  %v9523_v11 = vadd.f32 %v4131_v45, %v3877_v49  ;;  %v6706_v49 = vld [vmem:[%s10506_s22 + $0x58] sm:$0xff]  ;;  %v6705_v59 = vld [vmem:[%s10506_s22 + $0x50] sm:$0xff]  ;;  %v6704_v45 = vld [vmem:[%s10506_s22 + $0x48] sm:$0xff] }
0x1315   :  { %7284 = vpow2.f32 %v4260_v48  ;;  %v6703_v48 = vld [vmem:[%s10506_s22 + $0x40] sm:$0xff] }
0x131b   :  { %v9525_v14 = vpop.eup %7284 }
0x131c   :  { %v4274_v16 = vsel %vm1235_vm9, %v9525_v14, 0.0 }
0x131d   :  { %4275 = vadd.xlane.f32.xlu2 %v4274_v16 }
0x1326   :  { %v4134_v61 = vpop.f32.mrf.mxu2  ;;  %v4264_v20 = vpop.xlane.xlu0 %4263 }
0x1327   :  { %v9530_v19 = vadd.f32 %v4134_v61, %v3880_v0  ;;  %7286 = vrcp.f32 %v4264_v20  ;;  %v7063_v0 = vld [vmem:[%s10508_s26 + $0x1] ss:$0 sm:$0xff] }
0x1328   :  { %v4296_v52 = vpop.permute.xlu1 %4295 }
0x1329   :  { %6669 = vmatpush.msk.msra.mxu1 %vm188_vm0, %v4296_v52 }
0x132b   :  { %4330 = vmatpush.msra.mxu1 %v7036_v26 }
0x132d   :  { %4331 = vmatpush.msra.mxu1 %v7037_v39  ;;  %v7287_v58 = vpop.eup %7286 }
0x132e   :  { %v4137_v4 = vpop.f32.mrf.mxu2  ;;  %v4282_v10 = vmul.f32 %v7287_v58, %v9484_v12 }
0x132f   :  { %v9534_v27 = vadd.f32 %v4137_v4, %v3883_v32 }
0x1336   :  { %v4441_v31 = vpop.f32.mrf.mxu2  ;;  %v4270_v8 = vpop.xlane.xlu2 %4269 }
0x1339   :  { %v7040_v47 = vpop.permute.xlu0 %7039 }
0x133a   :  { %v7041_v13 = vunpack.i.l.bf16 %v7040_v47  ;;  %v7042_v43 = vunpack.i.h.bf16 %v7040_v47 }
0x133c   :  { %4332 = vmatpush.msra.mxu1 %v7041_v13 }
0x133e   :  { %4333 = vmatpush.msra.mxu1 %v7042_v43  ;;  %v4444_v51 = vpop.f32.mrf.mxu2 }
0x133f   :  { %6670 = vmatmul.msk.f32.vlgmr.msra.gmra.mxu1 %vm287_vm3, %v4282_v10 }
0x1346   :  { %v4447_v41 = vpop.f32.mrf.mxu2 }
0x134e   :  { %v4450_v22 = vpop.f32.mrf.mxu2 }
0x1353   :  { %v4267_v34 = vpop.xlane.xlu1 %4266 }
0x1354   :  { %7288 = vrcp.f32 %v4267_v34 }
0x1355   :  { %7290 = vrcp.f32 %v4270_v8 }
0x1356   :  { %v4453_v15 = vpop.f32.mrf.mxu2 }
0x1357   :  { %6697 = vmatpush.msk.msra.mxu0 %vm188_vm0, %v4453_v15 }
0x1359   :  { %4476 = vmatpush.msra.mxu0 %v4450_v22 }
0x135a   :  { %v7289_v29 = vpop.eup %7288 }
0x135b   :  { %4477 = vmatpush.msra.mxu0 %v4447_v41  ;;  %v4283_v12 = vmul.f32 %v7289_v29, %v9507_v9  ;;  %v7291_v60 = vpop.eup %7290 }
0x135c   :  { %v4284_v44 = vmul.f32 %v7291_v60, %v9494_v35  ;;  %v6676_v35 = vld [vmem:[%s10503_s14 + $0x78] sm:$0xff] }
0x135d   :  { %6671 = vmatmul.msk.f32.gmra.mxu1 %vm287_vm3, %v4283_v12  ;;  %4478 = vmatpush.msra.mxu0 %v4444_v51 }
0x135e   :  { %4382 = vmatpush.msra.mxu3 %v6676_v35 }
0x135f   :  { %4479 = vmatpush.msra.mxu0 %v4441_v31 }
0x1360   :  { %6698 = vmatmul.msk.f32.vlgmr.msra.gmra.mxu0 %vm287_vm3, %v7346_v36  ;;  %4383 = vmatpush.msra.mxu3 %v6675_v18 }
0x1364   :  { %v4273_v17 = vpop.xlane.xlu0 %4272 }
0x1365   :  { %7292 = vrcp.f32 %v4273_v17  ;;  %6672 = vmatmul.msk.f32.gmra.mxu1 %vm287_vm3, %v4284_v44 }
0x1368   :  { %6699 = vmatmul.msk.f32.gmra.mxu0 %vm287_vm3, %v7347_v28  ;;  %v7065_v28 = vld [vmem:[%s10509_s28 + $0x1] ss:$0 sm:$0xff] }
0x136b   :  { %v7293_v24 = vpop.eup %7292 }
0x136c   :  { %v4285_v56 = vmul.f32 %v7293_v24, %v9515_v53  ;;  %v6710_v53 = vld [vmem:[%s10506_s22 + $0x78] sm:$0xff] }
0x136d   :  { %4538 = vmatpush.msrb.mxu1 %v6710_v53 }
0x136e   :  { %6673 = vmatmul.msk.f32.gmra.mxu1 %vm287_vm3, %v4285_v56 }
0x136f   :  { %4539 = vmatpush.msrb.mxu1 %v6709_v40 }
0x1370   :  { %6700 = vmatmul.msk.f32.gmra.mxu0 %vm287_vm3, %v7348_v38 }
0x1371   :  { %4540 = vmatpush.msrb.mxu1 %v6708_v6 }
0x1373   :  { %4541 = vmatpush.msrb.mxu1 %v6707_v37 }
0x1375   :  { %4542 = vmatpush.msrb.mxu1 %v6706_v49 }
0x1377   :  { %4543 = vmatpush.msrb.mxu1 %v6705_v59 }
0x1378   :  { %6701 = vmatmul.msk.f32.gmra.mxu0 %vm287_vm3, %v7349_v30 }
0x1379   :  { %4544 = vmatpush.msrb.mxu1 %v6704_v45 }
0x137b   :  { %4545 = vmatpush.msrb.mxu1 %v6703_v48 }
0x1380   :  { %6702 = vmatmul.msk.f32.gmra.mxu0 %vm287_vm3, %v7350_v5 }
0x1390   :  { %v4276_v9 = vpop.xlane.xlu2 %4275 }
0x1391   :  { %7294 = vrcp.f32 %v4276_v9 }
0x1397   :  { %v7295_v33 = vpop.eup %7294 }
0x1398   :  { %v4286_v46 = vmul.f32 %v7295_v33, %v9525_v14  ;;  %v7064_v14 = vld [vmem:[%s10507_s23 + $0x1] ss:$0 sm:$0xff] }
0x139a   :  { %6674 = vmatmul.msk.f32.gmra.mxu1 %vm287_vm3, %v4286_v46 }
0x13bc   :  { %v4335_v42 = vpop.f32.mrf.mxu1 }
0x13bd   :  { %6677 = vmatmul.msk.f32.vlgmr.msra.gmra.mxu3 %vm1145_vm8, %v4335_v42 }
0x13da   :  { %v4338_v25 = vpop.f32.mrf.mxu1 }
0x13db   :  { %6678 = vmatmul.msk.f32.gmra.mxu3 %vm1145_vm8, %v4338_v25 }
0x13dd   :  { %v4481_v16 = vpop.f32.mrf.mxu0 }
0x13de   :  { %v4482_v52 = vadd.f32 %v7064_v14, %v4481_v16 }
0x13e2   :  { %v4341_v1 = vpop.f32.mrf.mxu1 }
0x13e3   :  { %6679 = vmatmul.msk.f32.gmra.mxu3 %vm1145_vm8, %v4341_v1 }
0x13e5   :  { %v4484_v32 = vpop.f32.mrf.mxu0 }
0x13e6   :  { %v4485_v31 = vadd.f32 %v7064_v14, %v4484_v32 }
0x13eb   :  { %v4344_v63 = vpop.f32.mrf.mxu1 }
0x13ec   :  { %6680 = vmatmul.msk.f32.gmra.mxu3 %vm1145_vm8, %v4344_v63 }
0x13ed   :  { %v4487_v13 = vpop.f32.mrf.mxu0 }
0x13ee   :  { %v4488_v51 = vadd.f32 %v7064_v14, %v4487_v13 }
0x13f5   :  { %v4490_v22 = vpop.f32.mrf.mxu0 }
0x13fd   :  { %v4493_v12 = vpop.f32.mrf.mxu0 }
0x1417   :  { %v4347_v62 = vpop.f32.mrf.mxu1 }
0x1418   :  { %6681 = vmatmul.msk.f32.gmra.mxu3 %vm1145_vm8, %v4347_v62 }
0x1440   :  { %v4385_v2 = vpop.f32.mrf.mxu3 }
0x1441   :  { %v4400_v61 = vadd.f32 %v4385_v2, %v9513_v54 }
0x1443   :  { %v4410_v26 = vadd.f32 %v7063_v0, %v4400_v61 }
0x1445   :  { %v4496_v39 = vadd.f32 %v4482_v52, %v4410_v26 }
0x1447   :  { %6712 = vmatmul.msk.f32.vlgmr.msrb.gmra.mxu1 %vm239_vm2, %v4496_v39 }
0x145e   :  { %v4388_v4 = vpop.f32.mrf.mxu3 }
0x145f   :  { %v4401_v20 = vadd.f32 %v4388_v4, %v9520_v3  ;;  %v4491_v3 = vadd.f32 %v7064_v14, %v4490_v22  ;;  %v6730_v22 = vld [vmem:[%s10510_s1 + $0xd8] sm:$0xff] }
0x1461   :  { %v4411_v47 = vadd.f32 %v7063_v0, %v4401_v20 }
0x1463   :  { %v4497_v58 = vadd.f32 %v4485_v31, %v4411_v47 }
0x1465   :  { %6713 = vmatmul.msk.f32.gmra.mxu1 %vm239_vm2, %v4497_v58 }
0x1466   :  { %v4391_v43 = vpop.f32.mrf.mxu3 }
0x1467   :  { %v4402_v10 = vadd.f32 %v4391_v43, %v9523_v11  ;;  %v4494_v11 = vadd.f32 %v7064_v14, %v4493_v12  ;;  %v6733_v43 = vld [vmem:[%s10510_s1 + $0xf0] sm:$0xff]  ;;  %v6726_v12 = vld [vmem:[%s10510_s1 + $0xb8] sm:$0xff] }
0x1468   :  { %4744 = vmatpush.msrb.mxu3 %v6733_v43 }
0x1469   :  { %v4412_v54 = vadd.f32 %v7063_v0, %v4402_v10  ;;  %v6734_v10 = vld [vmem:[%s10510_s1 + $0xf8] sm:$0xff] }
0x146a   :  { %4776 = vmatpush.msra.mxu2 %v6734_v10 }
0x146b   :  { %v4498_v41 = vadd.f32 %v4488_v51, %v4412_v54  ;;  %v6731_v51 = vld [vmem:[%s10510_s1 + $0xe0] sm:$0xff]  ;;  %v6732_v54 = vld [vmem:[%s10510_s1 + $0xe8] sm:$0xff] }
0x146c   :  { %4745 = vmatpush.msrb.mxu3 %v6731_v51  ;;  %4777 = vmatpush.msra.mxu2 %v6732_v54 }
0x146d   :  { %6714 = vmatmul.msk.f32.gmra.mxu1 %vm239_vm2, %v4498_v41  ;;  %v6729_v41 = vld [vmem:[%s10510_s1 + $0xd0] sm:$0xff] }
0x146e   :  { %4746 = vmatpush.msrb.mxu3 %v6729_v41  ;;  %4778 = vmatpush.msra.mxu2 %v6730_v22 }
0x146f   :  { %v4394_v34 = vpop.f32.mrf.mxu3 }
0x1470   :  { %v4403_v15 = vadd.f32 %v4394_v34, %v9530_v19  ;;  %v6727_v34 = vld [vmem:[%s10510_s1 + $0xc0] sm:$0xff] }
0x1471   :  { %4747 = vmatpush.msrb.mxu3 %v6727_v34 }
0x1472   :  { %v4413_v8 = vadd.f32 %v7063_v0, %v4403_v15  ;;  %v6728_v15 = vld [vmem:[%s10510_s1 + $0xc8] sm:$0xff] }
0x1473   :  { %4779 = vmatpush.msra.mxu2 %v6728_v15 }
0x1474   :  { %v4499_v29 = vadd.f32 %v4491_v3, %v4413_v8 }
0x1475   :  { %4780 = vmatpush.msra.mxu2 %v6726_v12 }
0x1476   :  { %6715 = vmatmul.msk.f32.gmra.mxu1 %vm239_vm2, %v4499_v29  ;;  %v6725_v29 = vld [vmem:[%s10510_s1 + $0xb0] sm:$0xff] }
0x1477   :  { %4748 = vmatpush.msrb.mxu3 %v6725_v29 }
0x149b   :  { %v4397_v60 = vpop.f32.mrf.mxu3 }
0x149c   :  { %v4404_v36 = vadd.f32 %v4397_v60, %v9534_v27 }
0x149e   :  { %v4414_v44 = vadd.f32 %v7063_v0, %v4404_v36  ;;  %v6723_v36 = vld [vmem:[%s10510_s1 + $0xa0] sm:$0xff] }
0x149f   :  { %4749 = vmatpush.msrb.mxu3 %v6723_v36 }
0x14a0   :  { %v4500_v17 = vadd.f32 %v4494_v11, %v4414_v44  ;;  %v6724_v11 = vld [vmem:[%s10510_s1 + $0xa8] sm:$0xff]  ;;  %v6721_v44 = vld [vmem:[%s10510_s1 + $0x90] sm:$0xff] }
0x14a1   :  { %4781 = vmatpush.msra.mxu2 %v6724_v11  ;;  %4750 = vmatpush.msrb.mxu3 %v6721_v44 }
0x14a2   :  { %6716 = vmatmul.msk.f32.gmra.mxu1 %vm239_vm2, %v4500_v17  ;;  %v6722_v17 = vld [vmem:[%s10510_s1 + $0x98] sm:$0xff] }
0x14a3   :  { %4782 = vmatpush.msra.mxu2 %v6722_v17 }
0x14c4   :  { %v4547_v24 = vpop.f32.mrf.mxu1 }
0x14c5   :  { %v4548_v56 = vadd.f32 %v7065_v28, %v4547_v24  ;;  %v6720_v24 = vld [vmem:[%s10510_s1 + $0x88] sm:$0xff] }
0x14c6   :  { %4783 = vmatpush.msra.mxu2 %v6720_v24 }
0x14c7   :  { %v9586_v38 = vadd.f32 %v4548_v56, %v8958_v55 }
0x14c9   :  { %v4571_v19 = vsel %vm239_vm2, %v9586_v38, 0.0 }
0x14ca   :  { %4572 = vadd.xlane.f32.xlu2 %v4571_v19 }
0x14e2   :  { %v4550_v30 = vpop.f32.mrf.mxu1 }
0x14e3   :  { %v4551_v35 = vadd.f32 %v7065_v28, %v4550_v30 }
0x14e5   :  { %v9591_v5 = vadd.f32 %v4551_v35, %v8963_v21 }
0x14e7   :  { %v4574_v27 = vsel %vm239_vm2, %v9591_v5, 0.0 }
0x14e8   :  { %4575 = vadd.xlane.f32.xlu2 %v4574_v27 }
0x14ea   :  { %v4553_v9 = vpop.f32.mrf.mxu1 }
0x14eb   :  { %v4554_v33 = vadd.f32 %v7065_v28, %v4553_v9 }
0x14ed   :  { %v9596_v46 = vadd.f32 %v4554_v33, %v8968_v50  ;;  %v9663_v33 = vld [vmem:[%s10511_s2 + $0x1] ss:$0 sm:$0xff] }
0x14ef   :  { %v4577_v55 = vsel %vm239_vm2, %v9596_v46, 0.0 }
0x14f0   :  { %4578 = vadd.xlane.f32.xlu2 %v4577_v55 }
0x14f3   :  { %v4556_v18 = vpop.f32.mrf.mxu1 }
0x14f4   :  { %v4557_v42 = vadd.f32 %v7065_v28, %v4556_v18  ;;  %v9666_v18 = vld [vmem:[%s10512_s7 + $0x1] ss:$0 sm:$0xff] }
0x14f6   :  { %v9601_v25 = vadd.f32 %v4557_v42, %v8973_v23 }
0x14f8   :  { %v4580_v21 = vsel %vm239_vm2, %v9601_v25, 0.0 }
0x14f9   :  { %4581 = vadd.xlane.f32.xlu2 %v4580_v21 }
0x151f   :  { %v4559_v1 = vpop.f32.mrf.mxu1 }
0x1520   :  { %v4560_v63 = vadd.f32 %v7065_v28, %v4559_v1  ;;  %v6719_v28 = vld [vmem:[%s10510_s1 + $0x80] sm:$0xff] }
0x1521   :  { %4751 = vmatpush.msrb.mxu3 %v6719_v28 }
0x1522   :  { %v9606_v53 = vadd.f32 %v4560_v63, %v8978_v57 }
0x1524   :  { %v4583_v50 = vsel %vm876_vm1, %v9606_v53, 0.0 }
0x1525   :  { %4584 = vadd.xlane.f32.xlu0 %v4583_v50 }
0x153d   :  { %v4573_v40 = vpop.xlane.xlu2 %4572 }
0x153e   :  { %v4586_v6 = vmul.f32 %v4573_v40, %v7885_v7 }
0x1540   :  { %v9612_v37 = vsub.f32 %v9586_v38, %v4586_v6 }
0x1542   :  { %v4596_v23 = vmul.f32 %v9612_v37, %v9612_v37 }
0x1544   :  { %v4601_v62 = vsel %vm239_vm2, %v4596_v23, 0.0 }
0x1545   :  { %4602 = vadd.xlane.f32.xlu1 %v4601_v62 }
0x155b   :  { %v4576_v49 = vpop.xlane.xlu2 %4575 }
0x155c   :  { %v4587_v57 = vmul.f32 %v4576_v49, %v7885_v7 }
0x155e   :  { %v9619_v59 = vsub.f32 %v9591_v5, %v4587_v57 }
0x1560   :  { %v4597_v45 = vmul.f32 %v9619_v59, %v9619_v59 }
0x1562   :  { %v4604_v48 = vsel %vm239_vm2, %v4597_v45, 0.0 }
0x1563   :  { %4605 = vadd.xlane.f32.xlu2 %v4604_v48  ;;  %v4579_v14 = vpop.xlane.xlu2 %4578 }
0x1564   :  { %v4588_v16 = vmul.f32 %v4579_v14, %v7885_v7 }
0x1566   :  { %v9626_v0 = vsub.f32 %v9596_v46, %v4588_v16 }
0x1568   :  { %v4598_v2 = vmul.f32 %v9626_v0, %v9626_v0 }
0x156a   :  { %v4607_v61 = vsel %vm239_vm2, %v4598_v2, 0.0 }
0x156b   :  { %4608 = vadd.xlane.f32.xlu1 %v4607_v61 }
0x156c   :  { %v4582_v52 = vpop.xlane.xlu2 %4581 }
0x156d   :  { %v4589_v26 = vmul.f32 %v4582_v52, %v7885_v7 }
0x156f   :  { %v9633_v39 = vsub.f32 %v9601_v25, %v4589_v26 }
0x1571   :  { %v4599_v32 = vmul.f32 %v9633_v39, %v9633_v39 }
0x1573   :  { %v4610_v4 = vsel %vm239_vm2, %v4599_v32, 0.0 }
0x1574   :  { %4611 = vadd.xlane.f32.xlu0 %v4610_v4 }
0x1598   :  { %v4585_v20 = vpop.xlane.xlu0 %4584 }
0x1599   :  { %v4590_v31 = vmul.f32 %v4585_v20, %v7885_v7 }
0x159b   :  { %v9640_v47 = vsub.f32 %v9606_v53, %v4590_v31 }
0x159d   :  { %v4600_v58 = vmul.f32 %v9640_v47, %v9640_v47 }
0x159f   :  { %v4613_v13 = vsel %vm876_vm1, %v4600_v58, 0.0 }
0x15a0   :  { %4614 = vadd.xlane.f32.xlu2 %v4613_v13 }
0x15b8   :  { %v4603_v3 = vpop.xlane.xlu1 %4602 }
0x15b9   :  { %v4616_v8 = vmul.f32 %v4603_v3, %v7885_v7 }
0x15bb   :  { %v4621_v60 = vadd.f32 1e-05, %v4616_v8 }
0x15bd   :  { %7296 = vrsqrt.f32 %v4621_v60  ;;  %vm4632_vm3 = vweird.f32 %v4621_v60 }
0x15c3   :  { %v7297_v56 = vpop.eup %7296 }
0x15c4   :  { %v4627_v19 = vmul.f32 %v7297_v56, %v4621_v60  ;;  %vm4633_vm0 = vweird.f32 %v7297_v56 }
0x15c5   :  { %vm4634_vm8 = vmor %vm4632_vm3, %vm4633_vm0 }
0x15c6   :  { %v4628_v30 = vmul.f32 %v7297_v56, %v4627_v19 }
0x15c8   :  { %v4629_v35 = vmul.f32 0.5, %v4628_v30 }
0x15ca   :  { %v4630_v27 = vsub.f32 1.5, %v4629_v35 }
0x15cc   :  { %v4631_v9 = vmul.f32 %v7297_v56, %v4630_v27 }
0x15ce   :  { %v4635_v55 = vsel %vm4634_vm8, %v7297_v56, %v4631_v9 }
0x15cf   :  { %v4676_v42 = vmul.f32 %v4635_v55, %v9612_v37 }
0x15d1   :  { %v4684_v21 = vmul.f32 %v9663_v33, %v4676_v42  ;;  %v6735_v42 = vld [vmem:[%s10513_s10 + $0x2] sm:$0x3] }
0x15d3   :  { %v4692_v1 = vadd.f32 %v9666_v18, %v4684_v21  ;;  %v9698_v21 = vperm.slane %v6735_v42, 0 }
0x15d5   :  { %6736 = vmatmul.msk.f32.vlgmr.msrb.gmra.mxu3 %vm239_vm2, %v4692_v1  ;;  %6741 = vmatmul.msk.f32.vlgmr.msra.gmra.mxu2 %vm239_vm2, %v4692_v1  ;;  %v9700_v1 = vperm.slane %v6735_v42, 1  ;;  %v6781_v42 = vld [vmem:[%s10514_s11 + $0x1c8] sm:$0xff] }
0x15d6   :  { %v4606_v63 = vpop.xlane.xlu2 %4605 }
0x15d7   :  { %v4617_v50 = vmul.f32 %v4606_v63, %v7885_v7 }
0x15d9   :  { %v4622_v40 = vadd.f32 1e-05, %v4617_v50 }
0x15db   :  { %7298 = vrsqrt.f32 %v4622_v40  ;;  %vm4642_vm10 = vweird.f32 %v4622_v40 }
0x15de   :  { %v4609_v6 = vpop.xlane.xlu1 %4608 }
0x15df   :  { %v4618_v23 = vmul.f32 %v4609_v6, %v7885_v7 }
0x15e1   :  { %v7299_v62 = vpop.eup %7298  ;;  %v4623_v49 = vadd.f32 1e-05, %v4618_v23 }
0x15e2   :  { %v4637_v57 = vmul.f32 %v7299_v62, %v4622_v40  ;;  %vm4643_vm9 = vweird.f32 %v7299_v62 }
0x15e3   :  { %7300 = vrsqrt.f32 %v4623_v49  ;;  %vm4644_vm11 = vmor %vm4642_vm10, %vm4643_vm9  ;;  %vm4652_vm13 = vweird.f32 %v4623_v49 }
0x15e4   :  { %v4638_v37 = vmul.f32 %v7299_v62, %v4637_v57 }
0x15e6   :  { %v4639_v45 = vmul.f32 0.5, %v4638_v37 }
0x15e7   :  { %v4612_v48 = vpop.xlane.xlu0 %4611 }
0x15e8   :  { %v4640_v14 = vsub.f32 1.5, %v4639_v45  ;;  %v4619_v16 = vmul.f32 %v4612_v48, %v7885_v7 }
0x15e9   :  { %v7301_v2 = vpop.eup %7300 }
0x15ea   :  { %v4641_v61 = vmul.f32 %v7299_v62, %v4640_v14  ;;  %v4647_v52 = vmul.f32 %v7301_v2, %v4623_v49  ;;  %v4624_v26 = vadd.f32 1e-05, %v4619_v16  ;;  %vm4653_vm12 = vweird.f32 %v7301_v2 }
0x15eb   :  { %vm4654_vm14 = vmor %vm4652_vm13, %vm4653_vm12 }
0x15ec   :  { %v4645_v32 = vsel %vm4644_vm11, %v7299_v62, %v4641_v61  ;;  %v4648_v4 = vmul.f32 %v7301_v2, %v4647_v52  ;;  %7302 = vrsqrt.f32 %v4624_v26  ;;  %vm4662_vm4 = vweird.f32 %v4624_v26  ;;  %v6771_v52 = vld [vmem:[%s10514_s11 + $0x178] sm:$0xff] }
0x15ed   :  { %v4677_v20 = vmul.f32 %v4645_v32, %v9619_v59  ;;  %5273 = vmatpush.msrb.mxu0 %v6771_v52 }
0x15ee   :  { %v4649_v31 = vmul.f32 0.5, %v4648_v4 }
0x15ef   :  { %v4685_v58 = vmul.f32 %v9663_v33, %v4677_v20 }
0x15f0   :  { %v4650_v13 = vsub.f32 1.5, %v4649_v31  ;;  %v6770_v31 = vld [vmem:[%s10514_s11 + $0x170] sm:$0xff] }
0x15f1   :  { %v4693_v43 = vadd.f32 %v9666_v18, %v4685_v58  ;;  %v6786_v58 = vld [vmem:[%s10514_s11 + $0x1f0] sm:$0xff]  ;;  %5274 = vmatpush.msrb.mxu0 %v6770_v31 }
0x15f2   :  { %v7303_v10 = vpop.eup %7302  ;;  %v4651_v51 = vmul.f32 %v7301_v2, %v4650_v13 }
0x15f3   :  { %v4657_v54 = vmul.f32 %v7303_v10, %v4624_v26  ;;  %6737 = vmatmul.msk.f32.gmra.mxu3 %vm239_vm2, %v4693_v43  ;;  %6742 = vmatmul.msk.f32.gmra.mxu2 %vm239_vm2, %v4693_v43  ;;  %vm4663_vm15 = vweird.f32 %v7303_v10  ;;  %v6787_v26 = vld [vmem:[%s10514_s11 + $0x1f8] sm:$0xff] }
0x15f4   :  { %v4655_v41 = vsel %vm4654_vm14, %v7301_v2, %v4651_v51  ;;  %vm4664_vm5 = vmor %vm4662_vm4, %vm4663_vm15  ;;  %5305 = vmatpush.msra.mxu1 %v6787_v26 }
0x15f5   :  { %v4678_v22 = vmul.f32 %v4655_v41, %v9626_v0  ;;  %v4658_v59 = vmul.f32 %v7303_v10, %v4657_v54  ;;  %v6769_v41 = vld [vmem:[%s10514_s11 + $0x168] sm:$0xff] }
0x15f6   :  { %5306 = vmatpush.msra.mxu1 %v6786_v58  ;;  %5275 = vmatpush.msrb.mxu0 %v6769_v41 }
0x15f7   :  { %v4659_v34 = vmul.f32 0.5, %v4658_v59  ;;  %v4686_v15 = vmul.f32 %v9663_v33, %v4678_v22  ;;  %v6785_v22 = vld [vmem:[%s10514_s11 + $0x1e8] sm:$0xff] }
0x15f8   :  { %5307 = vmatpush.msra.mxu1 %v6785_v22  ;;  %v6776_v22 = vld [vmem:[%s10514_s11 + $0x1a0] sm:$0xff] }
0x15f9   :  { %v4660_v3 = vsub.f32 1.5, %v4659_v34  ;;  %v4694_v8 = vadd.f32 %v9666_v18, %v4686_v15 }
0x15fb   :  { %v4661_v29 = vmul.f32 %v7303_v10, %v4660_v3  ;;  %6738 = vmatmul.msk.f32.gmra.mxu3 %vm239_vm2, %v4694_v8  ;;  %6743 = vmatmul.msk.f32.gmra.mxu2 %vm239_vm2, %v4694_v8  ;;  %v6768_v3 = vld [vmem:[%s10514_s11 + $0x160] sm:$0xff] }
0x15fc   :  { %v6784_v8 = vld [vmem:[%s10514_s11 + $0x1e0] sm:$0xff]  ;;  %5276 = vmatpush.msrb.mxu0 %v6768_v3 }
0x15fd   :  { %v4665_v12 = vsel %vm4664_vm5, %v7303_v10, %v4661_v29  ;;  %5308 = vmatpush.msra.mxu1 %v6784_v8 }
0x15fe   :  { %v4679_v60 = vmul.f32 %v4665_v12, %v9633_v39 }
0x1600   :  { %v4687_v0 = vmul.f32 %v9663_v33, %v4679_v60 }
0x1602   :  { %v4695_v36 = vadd.f32 %v9666_v18, %v4687_v0 }
0x1604   :  { %6739 = vmatmul.msk.f32.gmra.mxu3 %vm239_vm2, %v4695_v36  ;;  %6744 = vmatmul.msk.f32.gmra.mxu2 %vm239_vm2, %v4695_v36 }
0x1613   :  { %v4615_v11 = vpop.xlane.xlu2 %4614 }
0x1614   :  { %v4620_v44 = vmul.f32 %v4615_v11, %v7885_v7  ;;  %v6767_v11 = vld [vmem:[%s10514_s11 + $0x158] sm:$0xff] }
0x1615   :  { %5277 = vmatpush.msrb.mxu0 %v6767_v11 }
0x1616   :  { %v4625_v17 = vadd.f32 1e-05, %v4620_v44  ;;  %v6783_v44 = vld [vmem:[%s10514_s11 + $0x1d8] sm:$0xff] }
0x1617   :  { %5309 = vmatpush.msra.mxu1 %v6783_v44 }
0x1618   :  { %7304 = vrsqrt.f32 %v4625_v17  ;;  %vm4672_vm7 = vweird.f32 %v4625_v17 }
0x161e   :  { %v7305_v28 = vpop.eup %7304 }
0x161f   :  { %v4667_v24 = vmul.f32 %v7305_v28, %v4625_v17  ;;  %vm4673_vm6 = vweird.f32 %v7305_v28 }
0x1620   :  { %vm4674_vm0 = vmor %vm4672_vm7, %vm4673_vm6 }
0x1621   :  { %v4668_v56 = vmul.f32 %v7305_v28, %v4667_v24 }
0x1623   :  { %v4669_v19 = vmul.f32 0.5, %v4668_v56  ;;  %v6766_v56 = vld [vmem:[%s10514_s11 + $0x150] sm:$0xff] }
0x1624   :  { %5278 = vmatpush.msrb.mxu0 %v6766_v56 }
0x1625   :  { %v4670_v30 = vsub.f32 1.5, %v4669_v19  ;;  %v6782_v19 = vld [vmem:[%s10514_s11 + $0x1d0] sm:$0xff] }
0x1626   :  { %5310 = vmatpush.msra.mxu1 %v6782_v19 }
0x1627   :  { %v4671_v39 = vmul.f32 %v7305_v28, %v4670_v30 }
0x1628   :  { %5311 = vmatpush.msra.mxu1 %v6781_v42 }
0x1629   :  { %v4675_v35 = vsel %vm4674_vm0, %v7305_v28, %v4671_v39 }
0x162a   :  { %v4680_v27 = vmul.f32 %v4675_v35, %v9640_v47 }
0x162c   :  { %v4688_v9 = vmul.f32 %v9663_v33, %v4680_v27 }
0x162e   :  { %v4696_v55 = vadd.f32 %v9666_v18, %v4688_v9 }
0x1630   :  { %6740 = vmatmul.msk.f32.gmra.mxu3 %vm239_vm2, %v4696_v55  ;;  %6745 = vmatmul.msk.f32.gmra.mxu2 %vm239_vm2, %v4696_v55  ;;  %v6765_v55 = vld [vmem:[%s10514_s11 + $0x148] sm:$0xff] }
0x1631   :  { %5279 = vmatpush.msrb.mxu0 %v6765_v55 }
0x1658   :  { %v4753_v63 = vpop.f32.mrf.mxu3  ;;  %v4785_v50 = vpop.f32.mrf.mxu2 }
0x1659   :  { %v9703_v40 = vadd.f32 %v4753_v63, %v9698_v21  ;;  %v9706_v47 = vadd.f32 %v4785_v50, %v9700_v1  ;;  %v6764_v50 = vld [vmem:[%s10514_s11 + $0x140] sm:$0xff] }
0x165a   :  { %5280 = vmatpush.msrb.mxu0 %v6764_v50 }
0x165b   :  { %v9709_v33 = vmul.f32 0.70710677, %v9703_v40  ;;  %v9712_v18 = vmul.f32 0.70710677, %v9706_v47 }
0x165d   :  { %v4820_v6 = vmul.f32 %v9709_v33, %v9709_v33  ;;  %v4860_v23 = vmul.f32 %v9712_v18, %v9712_v18 }
0x165f   :  { %v9718_v62 = vmin.f32 %v4820_v6, 16.0  ;;  %v9720_v49 = vmin.f32 %v4860_v23, 16.0  ;;  %v6780_v6 = vld [vmem:[%s10514_s11 + $0x1c0] sm:$0xff] }
0x1660   :  { %5312 = vmatpush.msra.mxu1 %v6780_v6 }
0x1661   :  { %v4822_v57 = vmul.f32 2.1237322e-06, %v9718_v62  ;;  %v4833_v37 = vmul.f32 3.8918573e-05, %v9718_v62  ;;  %v4862_v45 = vmul.f32 2.1237322e-06, %v9720_v49 }
0x1662   :  { %v4873_v48 = vmul.f32 3.8918573e-05, %v9720_v49 }
0x1663   :  { %v4823_v14 = vadd.f32 0.00028619796, %v4822_v57  ;;  %v4834_v16 = vadd.f32 0.001143296, %v4833_v37  ;;  %v4863_v2 = vadd.f32 0.00028619796, %v4862_v45 }
0x1664   :  { %v4874_v61 = vadd.f32 0.001143296, %v4873_v48  ;;  %v6763_v45 = vld [vmem:[%s10514_s11 + $0x138] sm:$0xff] }
0x1665   :  { %v4824_v32 = vmul.f32 %v4823_v14, %v9718_v62  ;;  %v4835_v4 = vmul.f32 %v4834_v16, %v9718_v62  ;;  %v4864_v20 = vmul.f32 %v4863_v2, %v9720_v49  ;;  %v6779_v16 = vld [vmem:[%s10514_s11 + $0x1b8] sm:$0xff]  ;;  %5281 = vmatpush.msrb.mxu0 %v6763_v45  ;;  %v6762_v2 = vld [vmem:[%s10514_s11 + $0x130] sm:$0xff] }
0x1666   :  { %v4875_v13 = vmul.f32 %v4874_v61, %v9720_v49  ;;  %5313 = vmatpush.msra.mxu1 %v6779_v16  ;;  %v6778_v61 = vld [vmem:[%s10514_s11 + $0x1b0] sm:$0xff] }
0x1667   :  { %v4825_v43 = vadd.f32 0.0036580483, %v4824_v32  ;;  %v4836_v10 = vadd.f32 0.014752088, %v4835_v4  ;;  %v4865_v51 = vadd.f32 0.0036580483, %v4864_v20  ;;  %5282 = vmatpush.msrb.mxu0 %v6762_v2 }
0x1668   :  { %v4876_v54 = vadd.f32 0.014752088, %v4875_v13  ;;  %5314 = vmatpush.msra.mxu1 %v6778_v61  ;;  %v6777_v4 = vld [vmem:[%s10514_s11 + $0x1a8] sm:$0xff] }
0x1669   :  { %v4826_v59 = vmul.f32 %v4825_v43, %v9718_v62  ;;  %v4837_v34 = vmul.f32 %v4836_v10, %v9718_v62  ;;  %v4866_v15 = vmul.f32 %v4865_v51, %v9720_v49  ;;  %v6760_v10 = vld [vmem:[%s10514_s11 + $0x120] sm:$0xff] }
0x166a   :  { %v4877_v29 = vmul.f32 %v4876_v54, %v9720_v49  ;;  %5315 = vmatpush.msra.mxu1 %v6777_v4 }
0x166b   :  { %v4827_v12 = vadd.f32 0.05243302, %v4826_v59  ;;  %v4838_v60 = vadd.f32 0.112945676, %v4837_v34  ;;  %v4867_v0 = vadd.f32 0.05243302, %v4866_v15 }
0x166c   :  { %v4878_v36 = vadd.f32 0.112945676, %v4877_v29  ;;  %5316 = vmatpush.msra.mxu1 %v6776_v22 }
0x166d   :  { %v4828_v17 = vmul.f32 %v4827_v12, %v9718_v62  ;;  %v4839_v28 = vmul.f32 %v4838_v60, %v9718_v62  ;;  %v4868_v24 = vmul.f32 %v4867_v0, %v9720_v49 }
0x166e   :  { %v4879_v30 = vmul.f32 %v4878_v36, %v9720_v49 }
0x166f   :  { %v4829_v39 = vadd.f32 0.18741608, %v4828_v17  ;;  %v4840_v35 = vadd.f32 0.4994258, %v4839_v28  ;;  %v4869_v27 = vadd.f32 0.18741608, %v4868_v24 }
0x1670   :  { %v4880_v9 = vadd.f32 0.4994258, %v4879_v30 }
0x1671   :  { %v4841_v63 = vmul.f32 %v4840_v35, %v9718_v62  ;;  %v4830_v57 = vmul.f32 %v4829_v39, %v9718_v62  ;;  %v4870_v48 = vmul.f32 %v4869_v27, %v9720_v49 }
0x1672   :  { %v4881_v23 = vmul.f32 %v4880_v9, %v9720_v49  ;;  %v6761_v49 = vld [vmem:[%s10514_s11 + $0x128] sm:$0xff] }
0x1673   :  { %v9757_v37 = vadd.f32 1.0, %v4841_v63  ;;  %v4831_v26 = vadd.f32 1.1283791, %v4830_v57  ;;  %v4871_v20 = vadd.f32 1.1283791, %v4870_v48  ;;  %5283 = vmatpush.msrb.mxu0 %v6761_v49 }
0x1674   :  { %v9761_v14 = vadd.f32 1.0, %v4881_v23 }
0x1675   :  { %7306 = vrcp.f32 %v9757_v37  ;;  %v4852_v58 = vand.u32 2147483647, %v9757_v37  ;;  %v4854_v13 = vand.u32 2147483648, %v9757_v37  ;;  %v4832_v34 = vmul.f32 %v4831_v26, %v9709_v33  ;;  %5284 = vmatpush.msrb.mxu0 %v6760_v10 }
0x1676   :  { %7308 = vrcp.f32 %v9761_v14  ;;  %v4756_v62 = vpop.f32.mrf.mxu3  ;;  %v4788_v52 = vpop.f32.mrf.mxu2  ;;  %v4892_v51 = vand.u32 2147483647, %v9761_v14  ;;  %v4894_v54 = vand.u32 2147483648, %v9761_v14  ;;  %vm4848_vm3 = vweird.f32 %v9757_v37 }
0x1677   :  { %v9769_v32 = vadd.f32 %v4756_v62, %v9698_v21  ;;  %v9774_v31 = vadd.f32 %v4788_v52, %v9700_v1  ;;  %v4872_v29 = vmul.f32 %v4871_v20, %v9712_v18  ;;  %vm4888_vm8 = vweird.f32 %v9761_v14  ;;  %v6759_v62 = vld [vmem:[%s10514_s11 + $0x118] sm:$0xff]  ;;  %v6758_v20 = vld [vmem:[%s10514_s11 + $0x110] sm:$0xff] }
0x1678   :  { %vm9797_vm9 = vcmp.eq.f32.partialorder %v4852_v58, 8.507059e+37  ;;  %v4855_v33 = vor.u32 1.1754944e-38, %v4854_v13  ;;  %vm9804_vm10 = vcmp.eq.f32.partialorder %v4892_v51, 8.507059e+37  ;;  %v4895_v18 = vor.u32 1.1754944e-38, %v4894_v54  ;;  %v6775_v52 = vld [vmem:[%s10514_s11 + $0x198] sm:$0xff]  ;;  %5285 = vmatpush.msrb.mxu0 %v6759_v62  ;;  %v6774_v58 = vld [vmem:[%s10514_s11 + $0x190] sm:$0xff] }
0x1679   :  { %v9779_v43 = vmul.f32 0.70710677, %v9769_v32  ;;  %v9785_v41 = vmul.f32 0.70710677, %v9774_v31  ;;  %5317 = vmatpush.msra.mxu1 %v6775_v52 }
0x167a   :  { %5286 = vmatpush.msrb.mxu0 %v6758_v20 }
0x167b   :  { %v7307_v59 = vpop.eup %7306  ;;  %v4900_v15 = vmul.f32 %v9779_v43, %v9779_v43  ;;  %v4940_v12 = vmul.f32 %v9785_v41, %v9785_v41  ;;  %5318 = vmatpush.msra.mxu1 %v6774_v58 }
0x167c   :  { %v7309_v3 = vpop.eup %7308  ;;  %v4844_v8 = vmul.f32 %v7307_v59, %v9757_v37  ;;  %vm4849_vm11 = vweird.f32 %v7307_v59 }
0x167d   :  { %v4884_v0 = vmul.f32 %v7309_v3, %v9761_v14  ;;  %v9802_v36 = vmin.f32 %v4900_v15, 16.0  ;;  %v9808_v17 = vmin.f32 %v4940_v12, 16.0  ;;  %vm4889_vm12 = vweird.f32 %v7309_v3  ;;  %vm9822_vm13 = vmor %vm4848_vm3, %vm4849_vm11  ;;  %v6773_v12 = vld [vmem:[%s10514_s11 + $0x188] sm:$0xff] }
0x167e   :  { %v4845_v11 = vsub.f32 1.0, %v4844_v8  ;;  %v4759_v28 = vpop.f32.mrf.mxu3  ;;  %v4791_v9 = vpop.f32.mrf.mxu2  ;;  %vm4890_vm14 = vmor %vm4888_vm8, %vm4889_vm12  ;;  %v6757_v8 = vld [vmem:[%s10514_s11 + $0x108] sm:$0xff]  ;;  %5319 = vmatpush.msra.mxu1 %v6773_v12 }
0x167f   :  { %v4885_v24 = vsub.f32 1.0, %v4884_v0  ;;  %v4902_v56 = vmul.f32 2.1237322e-06, %v9802_v36  ;;  %v4913_v19 = vmul.f32 3.8918573e-05, %v9802_v36  ;;  %v9813_v30 = vadd.f32 %v4759_v28, %v9698_v21  ;;  %5287 = vmatpush.msrb.mxu0 %v6757_v8  ;;  %v6756_v28 = vld [vmem:[%s10514_s11 + $0x100] sm:$0xff] }
0x1680   :  { %v4846_v39 = vmul.f32 %v7307_v59, %v4845_v11  ;;  %v4942_v35 = vmul.f32 2.1237322e-06, %v9808_v17  ;;  %v4953_v27 = vmul.f32 3.8918573e-05, %v9808_v17  ;;  %v9829_v61 = vadd.f32 %v4791_v9, %v9700_v1 }
0x1681   :  { %v4886_v55 = vmul.f32 %v7309_v3, %v4885_v24  ;;  %v4903_v42 = vadd.f32 0.00028619796, %v4902_v56  ;;  %v4914_v63 = vadd.f32 0.001143296, %v4913_v19  ;;  %v9818_v57 = vmul.f32 0.70710677, %v9813_v30  ;;  %5288 = vmatpush.msrb.mxu0 %v6756_v28 }
0x1682   :  { %v4847_v50 = vadd.f32 %v7307_v59, %v4846_v39  ;;  %v4943_v6 = vadd.f32 0.00028619796, %v4942_v35  ;;  %v4954_v23 = vadd.f32 0.001143296, %v4953_v27  ;;  %v6772_v24 = vld [vmem:[%s10514_s11 + $0x180] sm:$0xff]  ;;  %v4801_v27 = vmul.f32 0.5, %v9706_v47 }
0x1683   :  { %v4887_v48 = vadd.f32 %v7309_v3, %v4886_v55  ;;  %v4904_v16 = vmul.f32 %v4903_v42, %v9802_v36  ;;  %v4915_v2 = vmul.f32 %v4914_v63, %v9802_v36  ;;  %v4980_v4 = vmul.f32 %v9818_v57, %v9818_v57  ;;  %5320 = vmatpush.msra.mxu1 %v6772_v24 }
0x1684   :  { %v4851_v26 = vsel %vm9822_vm13, %v7307_v59, %v4847_v50  ;;  %v4944_v37 = vmul.f32 %v4943_v6, %v9808_v17  ;;  %v4955_v49 = vmul.f32 %v4954_v23, %v9808_v17 }
0x1685   :  { %v4856_v13 = vsel %vm9797_vm9, %v4855_v33, %v4851_v26  ;;  %v4891_v10 = vsel %vm4890_vm14, %v7309_v3, %v4887_v48  ;;  %v4905_v51 = vadd.f32 0.0036580483, %v4904_v16  ;;  %v4916_v54 = vadd.f32 0.014752088, %v4915_v2 }
0x1686   :  { %v4857_v14 = vmul.f32 %v4856_v13, %v4832_v34  ;;  %v4896_v22 = vsel %vm9804_vm10, %v4895_v18, %v4891_v10  ;;  %v4945_v59 = vadd.f32 0.0036580483, %v4944_v37  ;;  %v4956_v15 = vadd.f32 0.014752088, %v4955_v49 }
0x1687   :  { %v4897_v0 = vmul.f32 %v4896_v22, %v4872_v29  ;;  %v4906_v11 = vmul.f32 %v4905_v51, %v9802_v36  ;;  %v4917_v60 = vmul.f32 %v4916_v54, %v9802_v36  ;;  %v9852_v3 = vmin.f32 %v4980_v4, 16.0  ;;  %v4762_v51 = vpop.f32.mrf.mxu3 }
0x1688   :  { %v6746_v33 = vclamps-f32 %v4857_v14, 1.0  ;;  %v4946_v34 = vmul.f32 %v4945_v59, %v9808_v17  ;;  %v4957_v44 = vmul.f32 %v4956_v15, %v9808_v17  ;;  %v9857_v18 = vmul.f32 0.70710677, %v9829_v61 }
0x1689   :  { %v4800_v29 = vmul.f32 0.5, %v9703_v40  ;;  %v6747_v56 = vclamps-f32 %v4897_v0, 1.0  ;;  %v4907_v19 = vadd.f32 0.05243302, %v4906_v11  ;;  %v4918_v39 = vadd.f32 0.112945676, %v4917_v60 }
0x168a   :  { %v5220_v35 = vadd.f32 1.0, %v6746_v33  ;;  %v4947_v9 = vadd.f32 0.05243302, %v4946_v34  ;;  %v4958_v55 = vadd.f32 0.112945676, %v4957_v44  ;;  %v5020_v37 = vmul.f32 %v9857_v18, %v9857_v18 }
0x168b   :  { %v5221_v42 = vadd.f32 1.0, %v6747_v56  ;;  %v4908_v63 = vmul.f32 %v4907_v19, %v9802_v36  ;;  %v4919_v50 = vmul.f32 %v4918_v39, %v9802_v36  ;;  %v4982_v6 = vmul.f32 2.1237322e-06, %v9852_v3 }
0x168c   :  { %v5230_v23 = vmul.f32 %v5220_v35, %v4800_v29  ;;  %v4948_v40 = vmul.f32 %v4947_v9, %v9808_v17  ;;  %v4959_v45 = vmul.f32 %v4958_v55, %v9808_v17  ;;  %v4993_v48 = vmul.f32 3.8918573e-05, %v9852_v3 }
0x168d   :  { %v5231_v16 = vmul.f32 %v5221_v42, %v4801_v27  ;;  %v4909_v47 = vadd.f32 0.18741608, %v4908_v63  ;;  %v4920_v2 = vadd.f32 0.4994258, %v4919_v50  ;;  %v4983_v62 = vadd.f32 0.00028619796, %v4982_v6 }
0x168e   :  { %v4960_v52 = vadd.f32 0.4994258, %v4959_v45  ;;  %v4994_v26 = vadd.f32 0.001143296, %v4993_v48  ;;  %5289 = vmatmul.f32.vlgmr.msrb.gmra.mxu0 %v5230_v23  ;;  %v4949_v4 = vadd.f32 0.18741608, %v4948_v40  ;;  %v9882_v12 = vadd.f32 %v4762_v51, %v9698_v21 }
0x168f   :  { %v4921_v49 = vmul.f32 %v4920_v2, %v9802_v36  ;;  %v4984_v20 = vmul.f32 %v4983_v62, %v9852_v3  ;;  %5321 = vmatmul.f32.vlgmr.msra.gmra.mxu1 %v5231_v16  ;;  %v4910_v58 = vmul.f32 %v4909_v47, %v9802_v36  ;;  %v9878_v15 = vmin.f32 %v5020_v37, 16.0  ;;  %v4794_v36 = vpop.f32.mrf.mxu2 }
0x1690   :  { %v4961_v13 = vmul.f32 %v4960_v52, %v9808_v17  ;;  %v4995_v10 = vmul.f32 %v4994_v26, %v9852_v3  ;;  %v4950_v8 = vmul.f32 %v4949_v4, %v9808_v17  ;;  %v9890_v17 = vmul.f32 0.70710677, %v9882_v12 }
0x1691   :  { %v4922_v54 = vadd.f32 1.0, %v4921_v49  ;;  %v4985_v14 = vadd.f32 0.0036580483, %v4984_v20  ;;  %v4911_v0 = vadd.f32 1.1283791, %v4910_v58  ;;  %v9893_v29 = vadd.f32 %v4794_v36, %v9700_v1 }
0x1692   :  { %v9876_v22 = vadd.f32 1.0, %v4961_v13  ;;  %v4996_v59 = vadd.f32 0.014752088, %v4995_v10  ;;  %v5022_v34 = vmul.f32 2.1237322e-06, %v9878_v15  ;;  %v5060_v55 = vmul.f32 %v9890_v17, %v9890_v17 }
0x1693   :  { %7310 = vrcp.f32 %v4922_v54  ;;  %v4986_v11 = vmul.f32 %v4985_v14, %v9852_v3  ;;  %v4932_v60 = vand.u32 2147483647, %v4922_v54  ;;  %v5033_v44 = vmul.f32 3.8918573e-05, %v9878_v15 }
0x1694   :  { %7312 = vrcp.f32 %v9876_v22  ;;  %v4997_v33 = vmul.f32 %v4996_v59, %v9852_v3  ;;  %v4951_v28 = vadd.f32 1.1283791, %v4950_v8  ;;  %v4912_v56 = vmul.f32 %v4911_v0, %v9779_v43 }
0x1695   :  { %v4987_v24 = vadd.f32 0.05243302, %v4986_v11  ;;  %v5023_v39 = vadd.f32 0.00028619796, %v5022_v34  ;;  %v5034_v35 = vadd.f32 0.001143296, %v5033_v44  ;;  %vm4928_vm15 = vweird.f32 %v4922_v54 }
0x1696   :  { %v4998_v19 = vadd.f32 0.112945676, %v4997_v33  ;;  %v4934_v9 = vand.u32 2147483648, %v4922_v54  ;;  %vm4968_vm4 = vweird.f32 %v9876_v22  ;;  %vm9899_vm5 = vcmp.eq.f32.partialorder %v4932_v60, 8.507059e+37 }
0x1697   :  { %v4972_v6 = vand.u32 2147483647, %v9876_v22  ;;  %v5024_v23 = vmul.f32 %v5023_v39, %v9878_v15  ;;  %v4974_v45 = vand.u32 2147483648, %v9876_v22  ;;  %v4988_v48 = vmul.f32 %v4987_v24, %v9852_v3 }
0x1698   :  { %v4999_v43 = vmul.f32 %v4998_v19, %v9852_v3  ;;  %v5035_v16 = vmul.f32 %v5034_v35, %v9878_v15  ;;  %v9910_v52 = vmin.f32 %v5060_v55, 16.0  ;;  %v9913_v49 = vmul.f32 0.70710677, %v9893_v29 }
0x1699   :  { %v7311_v27 = vpop.eup %7310  ;;  %v5025_v62 = vadd.f32 0.0036580483, %v5024_v23  ;;  %v4935_v8 = vor.u32 1.1754944e-38, %v4934_v9  ;;  %v4975_v0 = vor.u32 1.1754944e-38, %v4974_v45  ;;  %v4989_v60 = vadd.f32 0.18741608, %v4988_v48 }
0x169a   :  { %v7313_v42 = vpop.eup %7312  ;;  %v4924_v63 = vmul.f32 %v7311_v27, %v4922_v54  ;;  %v5000_v2 = vadd.f32 0.4994258, %v4999_v43  ;;  %vm4929_vm6 = vweird.f32 %v7311_v27  ;;  %v5036_v37 = vadd.f32 0.014752088, %v5035_v16 }
0x169b   :  { %v4964_v40 = vmul.f32 %v7313_v42, %v9876_v22  ;;  %vm4969_vm7 = vweird.f32 %v7313_v42  ;;  %v5062_v58 = vmul.f32 2.1237322e-06, %v9910_v52  ;;  %v5026_v10 = vmul.f32 %v5025_v62, %v9878_v15  ;;  %vm4930_vm0 = vmor %vm4928_vm15, %vm4929_vm6 }
0x169c   :  { %v4925_v47 = vsub.f32 1.0, %v4924_v63  ;;  %v5001_v20 = vmul.f32 %v5000_v2, %v9852_v3  ;;  %v5037_v51 = vmul.f32 %v5036_v37, %v9878_v15  ;;  %v5073_v14 = vmul.f32 3.8918573e-05, %v9910_v52  ;;  %vm4970_vm3 = vmor %vm4968_vm4, %vm4969_vm7 }
0x169d   :  { %v4965_v26 = vsub.f32 1.0, %v4964_v40  ;;  %v5063_v34 = vadd.f32 0.00028619796, %v5062_v58  ;;  %v5100_v19 = vmul.f32 %v9913_v49, %v9913_v49  ;;  %vm4973_vm8 = vcmp.eq.f32.partialorder %v4972_v6, 8.507059e+37 }
0x169e   :  { %v4926_v4 = vmul.f32 %v7311_v27, %v4925_v47  ;;  %v9920_v36 = vadd.f32 1.0, %v5001_v20  ;;  %v5038_v33 = vadd.f32 0.112945676, %v5037_v51  ;;  %v5074_v24 = vadd.f32 0.001143296, %v5073_v14 }
0x169f   :  { %v4966_v13 = vmul.f32 %v7313_v42, %v4965_v26  ;;  %v5027_v35 = vadd.f32 0.05243302, %v5026_v10  ;;  %v4952_v63 = vmul.f32 %v4951_v28, %v9785_v41  ;;  %v5064_v22 = vmul.f32 %v5063_v34, %v9910_v52 }
0x16a0   :  { %v4927_v59 = vadd.f32 %v7311_v27, %v4926_v4  ;;  %7314 = vrcp.f32 %v9920_v36  ;;  %v4990_v43 = vmul.f32 %v4989_v60, %v9852_v3  ;;  %v5075_v40 = vmul.f32 %v5074_v24, %v9910_v52 }
0x16a1   :  { %v4967_v11 = vadd.f32 %v7313_v42, %v4966_v13  ;;  %v9937_v45 = vmin.f32 %v5100_v19, 16.0  ;;  %v5065_v6 = vadd.f32 0.0036580483, %v5064_v22  ;;  %v4802_v3 = vmul.f32 0.5, %v9769_v32 }
0x16a2   :  { %v4931_v44 = vsel %vm4930_vm0, %v7311_v27, %v4927_v59  ;;  %v5039_v27 = vmul.f32 %v5038_v33, %v9878_v15  ;;  %v5076_v47 = vadd.f32 0.014752088, %v5075_v40  ;;  %v4991_v58 = vadd.f32 1.1283791, %v4990_v43 }
0x16a3   :  { %v4936_v39 = vsel %vm9899_vm5, %v4935_v8, %v4931_v44  ;;  %v4971_v54 = vsel %vm4970_vm3, %v7313_v42, %v4967_v11  ;;  %v5028_v42 = vmul.f32 %v5027_v35, %v9878_v15  ;;  %v5102_v41 = vmul.f32 2.1237322e-06, %v9937_v45 }
0x16a4   :  { %v4937_v9 = vmul.f32 %v4936_v39, %v4912_v56  ;;  %v4976_v55 = vsel %vm4973_vm8, %v4975_v0, %v4971_v54  ;;  %v5040_v23 = vadd.f32 0.4994258, %v5039_v27  ;;  %v5113_v28 = vmul.f32 3.8918573e-05, %v9937_v45 }
0x16a5   :  { %v4977_v50 = vmul.f32 %v4976_v55, %v4952_v63  ;;  %v5066_v62 = vmul.f32 %v5065_v6, %v9910_v52  ;;  %v5077_v37 = vmul.f32 %v5076_v47, %v9910_v52  ;;  %v5103_v4 = vadd.f32 0.00028619796, %v5102_v41 }
0x16a6   :  { %v6748_v48 = vclamps-f32 %v4937_v9, 1.0  ;;  %v7315_v56 = vpop.eup %7314  ;;  %v5041_v16 = vmul.f32 %v5040_v23, %v9878_v15  ;;  %v5114_v20 = vadd.f32 0.001143296, %v5113_v28  ;;  %v5029_v10 = vadd.f32 0.18741608, %v5028_v42 }
0x16a7   :  { %v5004_v2 = vmul.f32 %v7315_v56, %v9920_v36  ;;  %v5012_v14 = vand.u32 2147483647, %v9920_v36  ;;  %v5014_v59 = vand.u32 2147483648, %v9920_v36  ;;  %v6749_v32 = vclamps-f32 %v4977_v50, 1.0 }
0x16a8   :  { %v9946_v26 = vadd.f32 1.0, %v5041_v16  ;;  %v5222_v51 = vadd.f32 1.0, %v6748_v48  ;;  %vm5009_vm9 = vweird.f32 %v7315_v56  ;;  %v5078_v0 = vadd.f32 0.112945676, %v5077_v37 }
0x16a9   :  { %v5005_v13 = vsub.f32 1.0, %v5004_v2  ;;  %v5104_v11 = vmul.f32 %v5103_v4, %v9937_v45  ;;  %v4803_v60 = vmul.f32 0.5, %v9774_v31  ;;  %v5067_v33 = vadd.f32 0.05243302, %v5066_v62 }
0x16aa   :  { %7316 = vrcp.f32 %v9946_v26  ;;  %v5115_v34 = vmul.f32 %v5114_v20, %v9937_v45  ;;  %v5232_v44 = vmul.f32 %v5222_v51, %v4802_v3  ;;  %vm5008_vm10 = vweird.f32 %v9920_v36 }
0x16ab   :  { %v5006_v8 = vmul.f32 %v7315_v56, %v5005_v13  ;;  %v5030_v19 = vmul.f32 %v5029_v10, %v9878_v15  ;;  %v5079_v39 = vmul.f32 %v5078_v0, %v9910_v52  ;;  %vm5010_vm11 = vmor %vm5008_vm10, %vm5009_vm9  ;;  %v5015_v54 = vor.u32 1.1754944e-38, %v5014_v59 }
0x16ac   :  { %v5105_v35 = vadd.f32 0.0036580483, %v5104_v11  ;;  %v5116_v9 = vadd.f32 0.014752088, %v5115_v34  ;;  %5292 = vmatmul.f32.gmra.mxu0 %v5232_v44  ;;  %v5223_v55 = vadd.f32 1.0, %v6749_v32  ;;  %v4992_v27 = vmul.f32 %v4991_v58, %v9818_v57 }
0x16ad   :  { %v5007_v24 = vadd.f32 %v7315_v56, %v5006_v8  ;;  %vm5013_vm12 = vcmp.eq.f32.partialorder %v5012_v14, 8.507059e+37  ;;  %v5080_v63 = vadd.f32 0.4994258, %v5079_v39  ;;  %v5068_v23 = vmul.f32 %v5067_v33, %v9910_v52 }
0x16ae   :  { %v5117_v36 = vmul.f32 %v5116_v9, %v9937_v45  ;;  %v5233_v15 = vmul.f32 %v5223_v55, %v4803_v60  ;;  %v5031_v50 = vadd.f32 1.1283791, %v5030_v19  ;;  %v5106_v57 = vmul.f32 %v5105_v35, %v9937_v45 }
0x16af   :  { %v5011_v31 = vsel %vm5010_vm11, %v7315_v56, %v5007_v24  ;;  %v5081_v16 = vmul.f32 %v5080_v63, %v9910_v52  ;;  %v5052_v28 = vand.u32 2147483647, %v9946_v26  ;;  %v5054_v3 = vand.u32 2147483648, %v9946_v26 }
0x16b0   :  { %v7317_v22 = vpop.eup %7316  ;;  %v5016_v43 = vsel %vm5013_vm12, %v5015_v54, %v5011_v31  ;;  %v5118_v56 = vadd.f32 0.112945676, %v5117_v36  ;;  %5324 = vmatmul.f32.gmra.mxu1 %v5233_v15  ;;  %v5069_v62 = vadd.f32 0.18741608, %v5068_v23  ;;  %v4804_v10 = vmul.f32 0.5, %v9813_v30 }
0x16b1   :  { %v5017_v40 = vmul.f32 %v5016_v43, %v4992_v27  ;;  %v5044_v42 = vmul.f32 %v7317_v22, %v9946_v26  ;;  %v9972_v37 = vadd.f32 1.0, %v5081_v16  ;;  %vm5049_vm13 = vweird.f32 %v7317_v22 }
0x16b2   :  { %v5119_v4 = vmul.f32 %v5118_v56, %v9937_v45  ;;  %v5032_v51 = vmul.f32 %v5031_v50, %v9857_v18  ;;  %vm5048_vm14 = vweird.f32 %v9946_v26  ;;  %vm5053_vm4 = vcmp.eq.f32.partialorder %v5052_v28, 8.507059e+37 }
0x16b3   :  { %v4765_v6 = vpop.f32.mrf.mxu3  ;;  %v4797_v48 = vpop.f32.mrf.mxu2  ;;  %v5045_v41 = vsub.f32 1.0, %v5044_v42  ;;  %v6750_v20 = vclamps-f32 %v5017_v40, 1.0  ;;  %7318 = vrcp.f32 %v9972_v37  ;;  %vm5050_vm15 = vmor %vm5048_vm14, %vm5049_vm13  ;;  %v5055_v8 = vor.u32 1.1754944e-38, %v5054_v3 }
0x16b4   :  { %v9965_v47 = vadd.f32 %v4765_v6, %v9698_v21  ;;  %v9970_v2 = vadd.f32 %v4797_v48, %v9700_v1  ;;  %v5107_v1 = vadd.f32 0.05243302, %v5106_v57  ;;  %v5120_v59 = vadd.f32 0.4994258, %v5119_v4 }
0x16b5   :  { %v5046_v58 = vmul.f32 %v7317_v22, %v5045_v41  ;;  %v5224_v11 = vadd.f32 1.0, %v6750_v20  ;;  %v5070_v18 = vmul.f32 %v5069_v62, %v9910_v52  ;;  %v4805_v27 = vmul.f32 0.5, %v9829_v61 }
0x16b6   :  { %v9976_v13 = vmul.f32 0.70710677, %v9965_v47  ;;  %v9979_v21 = vmul.f32 0.70710677, %v9970_v2  ;;  %v5121_v60 = vmul.f32 %v5120_v59, %v9937_v45  ;;  %v5108_v26 = vmul.f32 %v5107_v1, %v9937_v45 }
0x16b7   :  { %v5047_v14 = vadd.f32 %v7317_v22, %v5046_v58  ;;  %v5234_v24 = vmul.f32 %v5224_v11, %v4804_v10  ;;  %v5071_v31 = vadd.f32 1.1283791, %v5070_v18  ;;  %v5094_v42 = vand.u32 2147483648, %v9972_v37 }
0x16b8   :  { %v5140_v32 = vmul.f32 %v9976_v13, %v9976_v13  ;;  %v5180_v0 = vmul.f32 %v9979_v21, %v9979_v21  ;;  %v9996_v39 = vadd.f32 1.0, %v5121_v60  ;;  %v5109_v43 = vadd.f32 0.18741608, %v5108_v26 }
0x16b9   :  { %v5051_v30 = vsel %vm5050_vm15, %v7317_v22, %v5047_v14  ;;  %v7319_v35 = vpop.eup %7318  ;;  %5295 = vmatmul.f32.gmra.mxu0 %v5234_v24  ;;  %v5092_v22 = vand.u32 2147483647, %v9972_v37  ;;  %vm5088_vm6 = vweird.f32 %v9972_v37  ;;  %v5072_v10 = vmul.f32 %v5071_v31, %v9890_v17 }
0x16ba   :  { %v9991_v33 = vmin.f32 %v5140_v32, 16.0  ;;  %v5056_v34 = vsel %vm5053_vm4, %v5055_v8, %v5051_v30  ;;  %v9994_v44 = vmin.f32 %v5180_v0, 16.0  ;;  %v5084_v63 = vmul.f32 %v7319_v35, %v9972_v37 }
0x16bb   :  { %v5057_v19 = vmul.f32 %v5056_v34, %v5032_v51  ;;  %7320 = vrcp.f32 %v9996_v39  ;;  %vm5089_vm5 = vweird.f32 %v7319_v35  ;;  %v5110_v41 = vmul.f32 %v5109_v43, %v9937_v45 }
0x16bc   :  { %v5142_v54 = vmul.f32 2.1237322e-06, %v9991_v33  ;;  %v5153_v9 = vmul.f32 3.8918573e-05, %v9991_v33  ;;  %v5182_v52 = vmul.f32 2.1237322e-06, %v9994_v44  ;;  %vm5090_vm7 = vmor %vm5088_vm6, %vm5089_vm5  ;;  %vm5128_vm8 = vweird.f32 %v9996_v39 }
0x16bd   :  { %v5193_v55 = vmul.f32 3.8918573e-05, %v9994_v44  ;;  %v5085_v36 = vsub.f32 1.0, %v5084_v63  ;;  %v6751_v50 = vclamps-f32 %v5057_v19, 1.0  ;;  %v5095_v51 = vor.u32 1.1754944e-38, %v5094_v42 }
0x16be   :  { %v5143_v23 = vadd.f32 0.00028619796, %v5142_v54  ;;  %v5154_v15 = vadd.f32 0.001143296, %v5153_v9  ;;  %v5183_v40 = vadd.f32 0.00028619796, %v5182_v52 }
0x16bf   :  { %v5194_v48 = vadd.f32 0.001143296, %v5193_v55  ;;  %v5086_v61 = vmul.f32 %v7319_v35, %v5085_v36  ;;  %v5225_v56 = vadd.f32 1.0, %v6751_v50  ;;  %vm5093_vm0 = vcmp.eq.f32.partialorder %v5092_v22, 8.507059e+37 }
0x16c0   :  { %v5144_v6 = vmul.f32 %v5143_v23, %v9991_v33  ;;  %v5155_v16 = vmul.f32 %v5154_v15, %v9991_v33  ;;  %v5184_v57 = vmul.f32 %v5183_v40, %v9994_v44  ;;  %v5111_v8 = vadd.f32 1.1283791, %v5110_v41 }
0x16c1   :  { %v5195_v28 = vmul.f32 %v5194_v48, %v9994_v44  ;;  %v7321_v3 = vpop.eup %7320  ;;  %v5087_v62 = vadd.f32 %v7319_v35, %v5086_v61  ;;  %v5235_v58 = vmul.f32 %v5225_v56, %v4805_v27  ;;  %v5134_v17 = vand.u32 2147483648, %v9996_v39 }
0x16c2   :  { %v5145_v4 = vadd.f32 0.0036580483, %v5144_v6  ;;  %v5156_v20 = vadd.f32 0.014752088, %v5155_v16  ;;  %v5124_v1 = vmul.f32 %v7321_v3, %v9996_v39  ;;  %v5185_v45 = vadd.f32 0.0036580483, %v5184_v57 }
0x16c3   :  { %v5196_v14 = vadd.f32 0.014752088, %v5195_v28  ;;  %v5091_v59 = vsel %vm5090_vm7, %v7319_v35, %v5087_v62  ;;  %5327 = vmatmul.f32.gmra.mxu1 %v5235_v58  ;;  %vm5129_vm3 = vweird.f32 %v7321_v3  ;;  %v5132_v26 = vand.u32 2147483647, %v9996_v39 }
0x16c4   :  { %v5157_v37 = vmul.f32 %v5156_v20, %v9991_v33  ;;  %v5096_v32 = vsel %vm5093_vm0, %v5095_v51, %v5091_v59  ;;  %v5125_v0 = vsub.f32 1.0, %v5124_v1  ;;  %v5146_v18 = vmul.f32 %v5145_v4, %v9991_v33  ;;  %vm5130_vm9 = vmor %vm5128_vm8, %vm5129_vm3 }
0x16c5   :  { %v5197_v11 = vmul.f32 %v5196_v14, %v9994_v44  ;;  %v5097_v30 = vmul.f32 %v5096_v32, %v5072_v10  ;;  %v5186_v54 = vmul.f32 %v5185_v45, %v9994_v44  ;;  %v4806_v9 = vmul.f32 0.5, %v9882_v12 }
0x16c6   :  { %v5158_v60 = vadd.f32 0.112945676, %v5157_v37  ;;  %v5126_v34 = vmul.f32 %v7321_v3, %v5125_v0  ;;  %v5135_v27 = vor.u32 1.1754944e-38, %v5134_v17  ;;  %v5147_v31 = vadd.f32 0.05243302, %v5146_v18 }
0x16c7   :  { %v5198_v24 = vadd.f32 0.112945676, %v5197_v11  ;;  %v6752_v35 = vclamps-f32 %v5097_v30, 1.0  ;;  %v5112_v43 = vmul.f32 %v5111_v8, %v9913_v49  ;;  %vm5133_vm10 = vcmp.eq.f32.partialorder %v5132_v26, 8.507059e+37 }
0x16c8   :  { %v5159_v19 = vmul.f32 %v5158_v60, %v9991_v33  ;;  %v5127_v52 = vadd.f32 %v7321_v3, %v5126_v34  ;;  %v5187_v50 = vadd.f32 0.05243302, %v5186_v54  ;;  %v5148_v6 = vmul.f32 %v5147_v31, %v9991_v33 }
0x16c9   :  { %v5199_v55 = vmul.f32 %v5198_v24, %v9994_v44  ;;  %v5226_v22 = vadd.f32 1.0, %v6752_v35  ;;  %v4807_v57 = vmul.f32 0.5, %v9893_v29 }
0x16ca   :  { %v5160_v63 = vadd.f32 0.4994258, %v5159_v19  ;;  %v5131_v23 = vsel %vm5130_vm9, %v7321_v3, %v5127_v52  ;;  %v5188_v49 = vmul.f32 %v5187_v50, %v9994_v44  ;;  %v5149_v56 = vadd.f32 0.18741608, %v5148_v6 }
0x16cb   :  { %v5200_v36 = vadd.f32 0.4994258, %v5199_v55  ;;  %v5136_v15 = vsel %vm5133_vm10, %v5135_v27, %v5131_v23  ;;  %v5236_v12 = vmul.f32 %v5226_v22, %v4806_v9  ;;  %v4808_v55 = vmul.f32 0.5, %v9965_v47 }
0x16cc   :  { %v5161_v40 = vmul.f32 %v5160_v63, %v9991_v33  ;;  %v5137_v42 = vmul.f32 %v5136_v15, %v5112_v43  ;;  %v5189_v28 = vadd.f32 0.18741608, %v5188_v49  ;;  %v5150_v4 = vmul.f32 %v5149_v56, %v9991_v33 }
0x16cd   :  { %v5201_v39 = vmul.f32 %v5200_v36, %v9994_v44  ;;  %5298 = vmatmul.f32.gmra.mxu0 %v5236_v12  ;;  %v7068_v36 = vld [vmem:[%s10519_s15 + $0x1] ss:$0 sm:$0xff] }
0x16ce   :  { %v5162_v48 = vadd.f32 1.0, %v5161_v40  ;;  %v6753_v16 = vclamps-f32 %v5137_v42, 1.0  ;;  %v5190_v10 = vmul.f32 %v5189_v28, %v9994_v44  ;;  %v5151_v14 = vadd.f32 1.1283791, %v5150_v4 }
0x16cf   :  { %v5202_v61 = vadd.f32 1.0, %v5201_v39 }
0x16d0   :  { %7322 = vrcp.f32 %v5162_v48  ;;  %v5227_v41 = vadd.f32 1.0, %v6753_v16  ;;  %v5174_v59 = vand.u32 2147483648, %v5162_v48  ;;  %v5172_v29 = vand.u32 2147483647, %v5162_v48 }
0x16d1   :  { %7324 = vrcp.f32 %v5202_v61  ;;  %v5214_v32 = vand.u32 2147483648, %v5202_v61  ;;  %v5191_v8 = vadd.f32 1.1283791, %v5190_v10  ;;  %v5212_v11 = vand.u32 2147483647, %v5202_v61 }
0x16d2   :  { %v5237_v3 = vmul.f32 %v5227_v41, %v4807_v57  ;;  %vm5168_vm13 = vweird.f32 %v5162_v48  ;;  %v5175_v33 = vor.u32 1.1754944e-38, %v5174_v59  ;;  %vm5208_vm15 = vweird.f32 %v5202_v61 }
0x16d3   :  { %v5152_v44 = vmul.f32 %v5151_v14, %v9976_v13  ;;  %vm5173_vm4 = vcmp.eq.f32.partialorder %v5172_v29, 8.507059e+37  ;;  %v5215_v60 = vor.u32 1.1754944e-38, %v5214_v32  ;;  %v5192_v26 = vmul.f32 %v5191_v8, %v9979_v21 }
0x16d4   :  { %5330 = vmatmul.f32.gmra.mxu1 %v5237_v3  ;;  %vm5213_vm6 = vcmp.eq.f32.partialorder %v5212_v11, 8.507059e+37  ;;  %v4809_v13 = vmul.f32 0.5, %v9970_v2 }
0x16d6   :  { %v7323_v62 = vpop.eup %7322 }
0x16d7   :  { %v7325_v20 = vpop.eup %7324  ;;  %v5164_v58 = vmul.f32 %v7323_v62, %v5162_v48  ;;  %vm5169_vm11 = vweird.f32 %v7323_v62 }
0x16d8   :  { %v5204_v51 = vmul.f32 %v7325_v20, %v5202_v61  ;;  %vm5209_vm12 = vweird.f32 %v7325_v20  ;;  %vm5170_vm14 = vmor %vm5168_vm13, %vm5169_vm11 }
0x16d9   :  { %v5165_v1 = vsub.f32 1.0, %v5164_v58  ;;  %vm5210_vm5 = vmor %vm5208_vm15, %vm5209_vm12 }
0x16da   :  { %v5205_v37 = vsub.f32 1.0, %v5204_v51 }
0x16db   :  { %v5166_v45 = vmul.f32 %v7323_v62, %v5165_v1 }
0x16dc   :  { %v5206_v0 = vmul.f32 %v7325_v20, %v5205_v37 }
0x16dd   :  { %v5167_v30 = vadd.f32 %v7323_v62, %v5166_v45 }
0x16de   :  { %v5207_v17 = vadd.f32 %v7325_v20, %v5206_v0 }
0x16df   :  { %v5171_v18 = vsel %vm5170_vm14, %v7323_v62, %v5167_v30 }
0x16e0   :  { %v5176_v34 = vsel %vm5173_vm4, %v5175_v33, %v5171_v18  ;;  %v5211_v24 = vsel %vm5210_vm5, %v7325_v20, %v5207_v17 }
0x16e1   :  { %v5177_v19 = vmul.f32 %v5176_v34, %v5152_v44  ;;  %v5216_v54 = vsel %vm5213_vm6, %v5215_v60, %v5211_v24 }
0x16e2   :  { %v5217_v35 = vmul.f32 %v5216_v54, %v5192_v26 }
0x16e3   :  { %v6754_v9 = vclamps-f32 %v5177_v19, 1.0 }
0x16e4   :  { %v6755_v52 = vclamps-f32 %v5217_v35, 1.0 }
0x16e5   :  { %v5228_v27 = vadd.f32 1.0, %v6754_v9 }
0x16e6   :  { %v5229_v31 = vadd.f32 1.0, %v6755_v52 }
0x16e7   :  { %v5238_v63 = vmul.f32 %v5228_v27, %v4808_v55 }
0x16e8   :  { %v5239_v22 = vmul.f32 %v5229_v31, %v4809_v13 }
0x16e9   :  { %5301 = vmatmul.f32.gmra.mxu0 %v5238_v63 }
0x16ea   :  { %5333 = vmatmul.f32.gmra.mxu1 %v5239_v22 }
0x170b   :  { %v5290_v43 = vpop.f32.mrf.mxu0 }
0x170c   :  { %v5322_v21 = vpop.f32.mrf.mxu1 }
0x170d   :  { %v5323_v23 = vadd.f32 %v5322_v21, %v5290_v43 }
0x170f   :  { %v5337_v15 = vadd.f32 %v5323_v23, %v9586_v38  ;;  %v10077_v23 = vld [vmem:[%s10528_s27] ss:$0 sm:$0xff] }
0x1711   :  { %v5347_v40 = vadd.f32 %v7068_v36, %v5337_v15  ;;  %v10080_v15 = vld [vmem:[%s10529_s4] ss:$0 sm:$0xff] }
0x1713   :  { %v5354_v50 = vsel %vm239_vm2, %v5347_v40, 0.0 }
0x1714   :  { %5355 = vadd.xlane.f32.xlu1 %v5354_v50 }
0x1729   :  { %v5293_v12 = vpop.f32.mrf.mxu0 }
0x172d   :  { %v5325_v47 = vpop.f32.mrf.mxu1 }
0x172e   :  { %v5326_v42 = vadd.f32 %v5325_v47, %v5293_v12 }
0x1730   :  { %v5338_v2 = vadd.f32 %v5326_v42, %v9591_v5 }
0x1732   :  { %v5348_v39 = vadd.f32 %v7068_v36, %v5338_v2 }
0x1734   :  { %v5357_v6 = vsel %vm239_vm2, %v5348_v39, 0.0 }
0x1735   :  { %5358 = vadd.xlane.f32.xlu0 %v5357_v6 }
0x1736   :  { %v5296_v48 = vpop.f32.mrf.mxu0 }
0x1740   :  { %v5328_v61 = vpop.f32.mrf.mxu1 }
0x1741   :  { %v5329_v16 = vadd.f32 %v5328_v61, %v5296_v48 }
0x1743   :  { %v5339_v49 = vadd.f32 %v5329_v16, %v9596_v46 }
0x1745   :  { %v5349_v57 = vadd.f32 %v7068_v36, %v5339_v49 }
0x1747   :  { %v5360_v38 = vsel %vm239_vm2, %v5349_v57, 0.0 }
0x1748   :  { %5361 = vadd.xlane.f32.xlu2 %v5360_v38 }
0x174a   :  { %v5299_v56 = vpop.f32.mrf.mxu0 }
0x1751   :  { %v5331_v41 = vpop.f32.mrf.mxu1 }
0x1752   :  { %v5332_v28 = vadd.f32 %v5331_v41, %v5299_v56 }
0x1754   :  { %v5340_v3 = vadd.f32 %v5332_v28, %v9601_v25 }
0x1756   :  { %v5350_v62 = vadd.f32 %v7068_v36, %v5340_v3 }
0x1758   :  { %v5363_v5 = vsel %vm239_vm2, %v5350_v62, 0.0 }
0x1759   :  { %5364 = vadd.xlane.f32.xlu1 %v5363_v5  ;;  %v5713_v5 = vld [vmem:[%s7609_s20 + $0x38] sm:$0xff] }
0x175a   :  { %5725 = vmatpush.msra.mxu3 %v5713_v5  ;;  %v6807_v5 = vld [vmem:[%s7609_s20 + $0x98] sm:$0xff] }
0x1766   :  { %v5302_v4 = vpop.f32.mrf.mxu0 }
0x1767   :  { %v5334_v20 = vpop.f32.mrf.mxu1 }
0x1768   :  { %v5335_v58 = vadd.f32 %v5334_v20, %v5302_v4 }
0x176a   :  { %v5341_v10 = vadd.f32 %v5335_v58, %v9606_v53  ;;  %v5712_v58 = vld [vmem:[%s7609_s20 + $0x30] sm:$0xff] }
0x176b   :  { %5726 = vmatpush.msra.mxu3 %v5712_v58 }
0x176c   :  { %v5351_v51 = vadd.f32 %v7068_v36, %v5341_v10 }
0x176e   :  { %v5366_v46 = vsel %vm876_vm1, %v5351_v51, 0.0 }
0x176f   :  { %5367 = vadd.xlane.f32.xlu2 %v5366_v46 }
0x1787   :  { %v5356_v1 = vpop.xlane.xlu1 %5355 }
0x1788   :  { %v5369_v14 = vmul.f32 %v5356_v1, %v7885_v7  ;;  %v5711_v1 = vld [vmem:[%s7609_s20 + $0x28] sm:$0xff] }
0x1789   :  { %5727 = vmatpush.msra.mxu3 %v5711_v1 }
0x178a   :  { %v5374_v59 = vsub.f32 %v5347_v40, %v5369_v14 }
0x178c   :  { %v5379_v37 = vmul.f32 %v5374_v59, %v5374_v59 }
0x178e   :  { %v5384_v25 = vsel %vm239_vm2, %v5379_v37, 0.0 }
0x178f   :  { %5385 = vadd.xlane.f32.xlu0 %v5384_v25  ;;  %v5710_v25 = vld [vmem:[%s7609_s20 + $0x20] sm:$0xff] }
0x1790   :  { %5728 = vmatpush.msra.mxu3 %v5710_v25  ;;  %v6805_v25 = vld [vmem:[%s7609_s20 + $0x88] sm:$0xff] }
0x17a8   :  { %v5359_v45 = vpop.xlane.xlu0 %5358 }
0x17a9   :  { %v5370_v29 = vmul.f32 %v5359_v45, %v7885_v7 }
0x17ab   :  { %v10052_v32 = vsub.f32 %v5348_v39, %v5370_v29 }
0x17ad   :  { %v5380_v53 = vmul.f32 %v10052_v32, %v10052_v32 }
0x17af   :  { %v5387_v8 = vsel %vm239_vm2, %v5380_v53, 0.0  ;;  %v5709_v53 = vld [vmem:[%s7609_s20 + $0x18] sm:$0xff] }
0x17b0   :  { %5388 = vadd.xlane.f32.xlu1 %v5387_v8  ;;  %5729 = vmatpush.msra.mxu3 %v5709_v53 }
0x17bb   :  { %v5362_v0 = vpop.xlane.xlu2 %5361 }
0x17bc   :  { %v5371_v11 = vmul.f32 %v5362_v0, %v7885_v7  ;;  %v5708_v0 = vld [vmem:[%s7609_s20 + $0x10] sm:$0xff] }
0x17bd   :  { %5730 = vmatpush.msra.mxu3 %v5708_v0 }
0x17be   :  { %v10058_v30 = vsub.f32 %v5349_v57, %v5371_v11 }
0x17c0   :  { %v5381_v33 = vmul.f32 %v10058_v30, %v10058_v30 }
0x17c2   :  { %v5390_v17 = vsel %vm239_vm2, %v5381_v33, 0.0 }
0x17c3   :  { %5391 = vadd.xlane.f32.xlu0 %v5390_v17 }
0x17cc   :  { %v5365_v44 = vpop.xlane.xlu1 %5364 }
0x17cd   :  { %v5372_v18 = vmul.f32 %v5365_v44, %v7885_v7  ;;  %v5707_v44 = vld [vmem:[%s7609_s20 + $0x8] sm:$0xff] }
0x17ce   :  { %5731 = vmatpush.msra.mxu3 %v5707_v44 }
0x17cf   :  { %v10064_v60 = vsub.f32 %v5350_v62, %v5372_v18 }
0x17d1   :  { %v5382_v34 = vmul.f32 %v10064_v60, %v10064_v60 }
0x17d3   :  { %v5393_v26 = vsel %vm239_vm2, %v5382_v34, 0.0 }
0x17d4   :  { %5394 = vadd.xlane.f32.xlu2 %v5393_v26 }
0x17e2   :  { %v5368_v24 = vpop.xlane.xlu2 %5367 }
0x17e3   :  { %v5373_v19 = vmul.f32 %v5368_v24, %v7885_v7  ;;  %v5706_v24 = vld [vmem:[%s7609_s20] sm:$0xff] }
0x17e4   :  { %5732 = vmatpush.msra.mxu3 %v5706_v24  ;;  %v6829_v24 = vld [vmem:[%s7609_s20 + $0x138] sm:$0xff] }
0x17e5   :  { %v10070_v54 = vsub.f32 %v5351_v51, %v5373_v19  ;;  %5860 = vmatpush.msra.mxu0 %v6829_v24  ;;  %v6813_v24 = vld [vmem:[%s7609_s20 + $0xc0] sm:$0xff] }
0x17e7   :  { %v5383_v35 = vmul.f32 %v10070_v54, %v10070_v54 }
0x17e9   :  { %v5396_v9 = vsel %vm876_vm1, %v5383_v35, 0.0  ;;  %v6802_v35 = vld [vmem:[%s7609_s20 + $0x78] sm:$0xff] }
0x17ea   :  { %5397 = vadd.xlane.f32.xlu1 %v5396_v9  ;;  %5761 = vmatpush.msrb.mxu3 %v6802_v35 }
0x1802   :  { %v5386_v52 = vpop.xlane.xlu0 %5385 }
0x1803   :  { %v5399_v55 = vmul.f32 %v5386_v52, %v7885_v7 }
0x1805   :  { %v5404_v27 = vadd.f32 1e-05, %v5399_v55 }
0x1807   :  { %7326 = vrsqrt.f32 %v5404_v27  ;;  %vm5415_vm0 = vweird.f32 %v5404_v27 }
0x180d   :  { %v7327_v13 = vpop.eup %7326 }
0x180e   :  { %v5410_v31 = vmul.f32 %v7327_v13, %v5404_v27  ;;  %vm5416_vm7 = vweird.f32 %v7327_v13 }
0x180f   :  { %vm5417_vm3 = vmor %vm5415_vm0, %vm5416_vm7 }
0x1810   :  { %v5411_v63 = vmul.f32 %v7327_v13, %v5410_v31  ;;  %v6811_v31 = vld [vmem:[%s7609_s20 + $0xb8] sm:$0xff] }
0x1811   :  { %5794 = vmatpush.msrb.mxu2 %v6811_v31  ;;  %v6838_v31 = vld [vmem:[%s7609_s20 + $0x178] sm:$0xff] }
0x1812   :  { %v5412_v22 = vmul.f32 0.5, %v5411_v63 }
0x1814   :  { %v5413_v43 = vsub.f32 1.5, %v5412_v22 }
0x1816   :  { %v5414_v21 = vmul.f32 %v7327_v13, %v5413_v43  ;;  %v6800_v43 = vld [vmem:[%s7609_s20 + $0x68] sm:$0xff] }
0x1818   :  { %v5418_v36 = vsel %vm5417_vm3, %v7327_v13, %v5414_v21  ;;  %v6801_v13 = vld [vmem:[%s7609_s20 + $0x70] sm:$0xff] }
0x1819   :  { %v5459_v40 = vmul.f32 %v5418_v36, %v5374_v59  ;;  %5762 = vmatpush.msrb.mxu3 %v6801_v13  ;;  %v6810_v21 = vld [vmem:[%s7609_s20 + $0xb0] sm:$0xff] }
0x181a   :  { %5795 = vmatpush.msrb.mxu2 %v6810_v21  ;;  %v6819_v13 = vld [vmem:[%s7609_s20 + $0xf0] sm:$0xff]  ;;  %v6827_v21 = vld [vmem:[%s7609_s20 + $0x128] sm:$0xff] }
0x181b   :  { %v5467_v50 = vmul.f32 %v10077_v23, %v5459_v40  ;;  %5763 = vmatpush.msrb.mxu3 %v6800_v43 }
0x181d   :  { %v10084_v12 = vadd.f32 %v10080_v15, %v5467_v50 }
0x181f   :  { %v10087_v47 = vmul.f32 0.70710677, %v10084_v12  ;;  %v5480_v0 = vmul.f32 0.5, %v10084_v12 }
0x1821   :  { %v5490_v42 = vmul.f32 %v10087_v47, %v10087_v47 }
0x1823   :  { %v5491_v2 = vmin.f32 %v5490_v42, 16.0  ;;  %v5389_v16 = vpop.xlane.xlu1 %5388 }
0x1824   :  { %v5400_v49 = vmul.f32 %v5389_v16, %v7885_v7 }
0x1825   :  { %v5492_v39 = vmul.f32 2.1237322e-06, %v5491_v2  ;;  %v5503_v6 = vmul.f32 3.8918573e-05, %v5491_v2 }
0x1826   :  { %v5405_v56 = vadd.f32 1e-05, %v5400_v49  ;;  %v6798_v49 = vld [vmem:[%s7609_s20 + $0x58] sm:$0xff] }
0x1827   :  { %v5493_v48 = vadd.f32 0.00028619796, %v5492_v39  ;;  %v5504_v61 = vadd.f32 0.001143296, %v5503_v6  ;;  %v6809_v39 = vld [vmem:[%s7609_s20 + $0xa8] sm:$0xff] }
0x1828   :  { %7328 = vrsqrt.f32 %v5405_v56  ;;  %vm5425_vm9 = vweird.f32 %v5405_v56  ;;  %5796 = vmatpush.msrb.mxu2 %v6809_v39  ;;  %v6826_v39 = vld [vmem:[%s7609_s20 + $0x120] sm:$0xff] }
0x1829   :  { %v5494_v57 = vmul.f32 %v5493_v48, %v5491_v2  ;;  %v5505_v38 = vmul.f32 %v5504_v61, %v5491_v2 }
0x182b   :  { %v5506_v41 = vadd.f32 0.014752088, %v5505_v38  ;;  %v5495_v28 = vadd.f32 0.0036580483, %v5494_v57  ;;  %v6808_v57 = vld [vmem:[%s7609_s20 + $0xa0] sm:$0xff] }
0x182c   :  { %5797 = vmatpush.msrb.mxu2 %v6808_v57 }
0x182d   :  { %v5507_v3 = vmul.f32 %v5506_v41, %v5491_v2  ;;  %v5496_v4 = vmul.f32 %v5495_v28, %v5491_v2 }
0x182e   :  { %v7329_v10 = vpop.eup %7328  ;;  %5798 = vmatpush.msrb.mxu2 %v6807_v5  ;;  %v6816_v5 = vld [vmem:[%s7609_s20 + $0xd8] sm:$0xff] }
0x182f   :  { %v5508_v62 = vadd.f32 0.112945676, %v5507_v3  ;;  %v5420_v46 = vmul.f32 %v7329_v10, %v5405_v56  ;;  %v5497_v14 = vadd.f32 0.05243302, %v5496_v4  ;;  %vm5426_vm8 = vweird.f32 %v7329_v10 }
0x1830   :  { %vm5427_vm10 = vmor %vm5425_vm9, %vm5426_vm8 }
0x1831   :  { %v5509_v20 = vmul.f32 %v5508_v62, %v5491_v2  ;;  %v5421_v37 = vmul.f32 %v7329_v10, %v5420_v46  ;;  %v5498_v8 = vmul.f32 %v5497_v14, %v5491_v2  ;;  %v6797_v62 = vld [vmem:[%s7609_s20 + $0x50] sm:$0xff] }
0x1832   :  { %v6806_v46 = vld [vmem:[%s7609_s20 + $0x90] sm:$0xff] }
0x1833   :  { %v5510_v51 = vadd.f32 0.4994258, %v5509_v20  ;;  %v5422_v29 = vmul.f32 0.5, %v5421_v37  ;;  %v5499_v18 = vadd.f32 0.18741608, %v5498_v8  ;;  %5799 = vmatpush.msrb.mxu2 %v6806_v46  ;;  %v6795_v37 = vld [vmem:[%s7609_s20 + $0x40] sm:$0xff] }
0x1835   :  { %v5511_v59 = vmul.f32 %v5510_v51, %v5491_v2  ;;  %v5423_v11 = vsub.f32 1.5, %v5422_v29  ;;  %v5500_v55 = vmul.f32 %v5499_v18, %v5491_v2  ;;  %v6799_v2 = vld [vmem:[%s7609_s20 + $0x60] sm:$0xff]  ;;  %v6796_v51 = vld [vmem:[%s7609_s20 + $0x48] sm:$0xff]  ;;  %5800 = vmatpush.msrb.mxu2 %v6805_v25 }
0x1836   :  { %v5392_v33 = vpop.xlane.xlu0 %5391  ;;  %5764 = vmatpush.msrb.mxu3 %v6799_v2 }
0x1837   :  { %v10096_v45 = vadd.f32 1.0, %v5511_v59  ;;  %v5401_v17 = vmul.f32 %v5392_v33, %v7885_v7  ;;  %v5424_v34 = vmul.f32 %v7329_v10, %v5423_v11  ;;  %v5501_v40 = vadd.f32 1.1283791, %v5500_v55  ;;  %v6828_v55 = vld [vmem:[%s7609_s20 + $0x130] sm:$0xff] }
0x1838   :  { %5765 = vmatpush.msrb.mxu3 %v6798_v49  ;;  %5861 = vmatpush.msra.mxu0 %v6828_v55 }
0x1839   :  { %7330 = vrcp.f32 %v10096_v45  ;;  %v10103_v26 = vadd.f32 1e-05, %v5401_v17  ;;  %v5428_v19 = vsel %vm5427_vm10, %v7329_v10, %v5424_v34  ;;  %v5524_v36 = vand.u32 2147483648, %v10096_v45  ;;  %v6804_v17 = vld [vmem:[%s7609_s20 + $0x80] sm:$0xff] }
0x183a   :  { %v5460_v52 = vmul.f32 %v5428_v19, %v10052_v32  ;;  %v5522_v42 = vand.u32 2147483647, %v10096_v45  ;;  %vm5518_vm12 = vweird.f32 %v10096_v45  ;;  %v5502_v41 = vmul.f32 %v5501_v40, %v10087_v47  ;;  %5766 = vmatpush.msrb.mxu3 %v6797_v62  ;;  %5801 = vmatpush.msrb.mxu2 %v6804_v17  ;;  %v6818_v40 = vld [vmem:[%s7609_s20 + $0xe8] sm:$0xff]  ;;  %v6822_v17 = vld [vmem:[%s7609_s20 + $0x100] sm:$0xff] }
0x183b   :  { %7332 = vrsqrt.f32 %v10103_v26  ;;  %v5525_v38 = vor.u32 1.1754944e-38, %v5524_v36  ;;  %vm5435_vm4 = vweird.f32 %v10103_v26  ;;  %v6837_v36 = vld [vmem:[%s7609_s20 + $0x170] sm:$0xff]  ;;  %5862 = vmatpush.msra.mxu0 %v6827_v21  ;;  %v6840_v21 = vld [vmem:[%s7609_s20 + $0x180] sm:$0xff] }
0x183c   :  { %v5468_v63 = vmul.f32 %v10077_v23, %v5460_v52  ;;  %vm5523_vm14 = vcmp.eq.f32.partialorder %v5522_v42, 8.507059e+37  ;;  %5767 = vmatpush.msrb.mxu3 %v6796_v51  ;;  %5893 = vmatpush.msra.mxu2 %v6838_v31  ;;  %v6824_v51 = vld [vmem:[%s7609_s20 + $0x110] sm:$0xff] }
0x183d   :  { %5863 = vmatpush.msra.mxu0 %v6826_v39 }
0x183e   :  { %v10117_v32 = vadd.f32 %v10080_v15, %v5468_v63  ;;  %5768 = vmatpush.msrb.mxu3 %v6795_v37  ;;  %v6847_v63 = vld [vmem:[%s7609_s20 + $0x1b8] sm:$0xff]  ;;  %5894 = vmatpush.msra.mxu2 %v6837_v36 }
0x183f   :  { %v7331_v9 = vpop.eup %7330  ;;  %5926 = vmatpush.msrb.mxu1 %v6847_v63  ;;  %v6831_v63 = vld [vmem:[%s7609_s20 + $0x140] sm:$0xff] }
0x1840   :  { %v5514_v27 = vmul.f32 %v7331_v9, %v10096_v45  ;;  %vm5519_vm11 = vweird.f32 %v7331_v9  ;;  %v10123_v48 = vmul.f32 0.70710677, %v10117_v32 }
0x1841   :  { %v7333_v6 = vpop.eup %7332  ;;  %vm5520_vm13 = vmor %vm5518_vm12, %vm5519_vm11 }
0x1842   :  { %v5515_v22 = vsub.f32 1.0, %v5514_v27  ;;  %v5430_v16 = vmul.f32 %v7333_v6, %v10103_v26  ;;  %v5530_v56 = vmul.f32 %v10123_v48, %v10123_v48  ;;  %vm5436_vm15 = vweird.f32 %v7333_v6  ;;  %v6820_v26 = vld [vmem:[%s7609_s20 + $0xf8] sm:$0xff] }
0x1843   :  { %vm5437_vm5 = vmor %vm5435_vm4, %vm5436_vm15 }
0x1844   :  { %v5516_v50 = vmul.f32 %v7331_v9, %v5515_v22  ;;  %v5431_v3 = vmul.f32 %v7333_v6, %v5430_v16  ;;  %v10134_v20 = vmin.f32 %v5530_v56, 16.0  ;;  %v6845_v16 = vld [vmem:[%s7609_s20 + $0x1a8] sm:$0xff] }
0x1846   :  { %v5517_v61 = vadd.f32 %v7331_v9, %v5516_v50  ;;  %v5432_v10 = vmul.f32 0.5, %v5431_v3  ;;  %v5532_v1 = vmul.f32 2.1237322e-06, %v10134_v20  ;;  %v5543_v47 = vmul.f32 3.8918573e-05, %v10134_v20  ;;  %v6846_v50 = vld [vmem:[%s7609_s20 + $0x1b0] sm:$0xff] }
0x1847   :  { %v5395_v59 = vpop.xlane.xlu2 %5394  ;;  %5927 = vmatpush.msrb.mxu1 %v6846_v50  ;;  %v6864_v50 = vld [vmem:[%s7609_s20 + $0x230] sm:$0xff] }
0x1848   :  { %v5521_v28 = vsel %vm5520_vm13, %v7331_v9, %v5517_v61  ;;  %v5433_v14 = vsub.f32 1.5, %v5432_v10  ;;  %v5533_v29 = vadd.f32 0.00028619796, %v5532_v1  ;;  %v5544_v53 = vadd.f32 0.001143296, %v5543_v47  ;;  %v6836_v61 = vld [vmem:[%s7609_s20 + $0x168] sm:$0xff] }
0x1849   :  { %v5526_v4 = vsel %vm5523_vm14, %v5525_v38, %v5521_v28  ;;  %v5402_v8 = vmul.f32 %v5395_v59, %v7885_v7  ;;  %v6835_v28 = vld [vmem:[%s7609_s20 + $0x160] sm:$0xff]  ;;  %5895 = vmatpush.msra.mxu2 %v6836_v61  ;;  %5928 = vmatpush.msrb.mxu1 %v6845_v16  ;;  %v6815_v1 = vld [vmem:[%s7609_s20 + $0xd0] sm:$0xff]  ;;  %v6834_v47 = vld [vmem:[%s7609_s20 + $0x158] sm:$0xff] }
0x184a   :  { %v5527_v58 = vmul.f32 %v5526_v4, %v5502_v41  ;;  %v5434_v11 = vmul.f32 %v7333_v6, %v5433_v14  ;;  %v5534_v44 = vmul.f32 %v5533_v29, %v10134_v20  ;;  %v5545_v18 = vmul.f32 %v5544_v53, %v10134_v20  ;;  %v6825_v41 = vld [vmem:[%s7609_s20 + $0x118] sm:$0xff]  ;;  %v6844_v4 = vld [vmem:[%s7609_s20 + $0x1a0] sm:$0xff]  ;;  %v6833_v29 = vld [vmem:[%s7609_s20 + $0x150] sm:$0xff] }
0x184b   :  { %v10149_v34 = vadd.f32 1e-05, %v5402_v8  ;;  %5864 = vmatpush.msra.mxu0 %v6825_v41  ;;  %5896 = vmatpush.msra.mxu2 %v6835_v28  ;;  %v6843_v14 = vld [vmem:[%s7609_s20 + $0x198] sm:$0xff]  ;;  %v6814_v8 = vld [vmem:[%s7609_s20 + $0xc8] sm:$0xff]  ;;  %v6853_v41 = vld [vmem:[%s7609_s20 + $0x1e0] sm:$0xff] }
0x184c   :  { %v6789_v45 = vclamps-f32 %v5527_v58, 1.0  ;;  %v5438_v12 = vsel %vm5437_vm5, %v7333_v6, %v5434_v11  ;;  %v5535_v35 = vadd.f32 0.0036580483, %v5534_v44  ;;  %v5546_v9 = vadd.f32 0.014752088, %v5545_v18  ;;  %v6817_v6 = vld [vmem:[%s7609_s20 + $0xe0] sm:$0xff]  ;;  %5929 = vmatpush.msrb.mxu1 %v6844_v4 }
0x184d   :  { %v5461_v52 = vmul.f32 %v5438_v12, %v10058_v30  ;;  %7334 = vrsqrt.f32 %v10149_v34  ;;  %5865 = vmatpush.msra.mxu0 %v6824_v51  ;;  %5897 = vmatpush.msra.mxu2 %v6834_v47  ;;  %v6832_v12 = vld [vmem:[%s7609_s20 + $0x148] sm:$0xff]  ;;  %vm5445_vm7 = vweird.f32 %v10149_v34  ;;  %v6883_v61 = vld [vmem:[%s7609_s20 + $0x2b8] sm:$0xff]  ;;  %v6882_v28 = vld [vmem:[%s7609_s20 + $0x2b0] sm:$0xff] }
0x184e   :  { %v5690_v33 = vadd.f32 1.0, %v6789_v45  ;;  %v5536_v30 = vmul.f32 %v5535_v35, %v10134_v20  ;;  %v5547_v22 = vmul.f32 %v5546_v9, %v10134_v20  ;;  %v6823_v45 = vld [vmem:[%s7609_s20 + $0x108] sm:$0xff]  ;;  %5930 = vmatpush.msrb.mxu1 %v6843_v14  ;;  %v6856_v9 = vld [vmem:[%s7609_s20 + $0x1f8] sm:$0xff] }
0x184f   :  { %v5469_v43 = vmul.f32 %v10077_v23, %v5461_v52  ;;  %5866 = vmatpush.msra.mxu0 %v6823_v45  ;;  %5898 = vmatpush.msra.mxu2 %v6833_v29  ;;  %v6865_v52 = vld [vmem:[%s7609_s20 + $0x238] sm:$0xff]  ;;  %v6872_v4 = vld [vmem:[%s7609_s20 + $0x268] sm:$0xff] }
0x1850   :  { %v10152_v19 = vmul.f32 %v5690_v33, %v5480_v0  ;;  %v5548_v42 = vadd.f32 0.112945676, %v5547_v22  ;;  %v5537_v57 = vadd.f32 0.05243302, %v5536_v30  ;;  %v6842_v0 = vld [vmem:[%s7609_s20 + $0x190] sm:$0xff]  ;;  %v6852_v51 = vld [vmem:[%s7609_s20 + $0x1d8] sm:$0xff] }
0x1851   :  { %v10176_v2 = vadd.f32 %v10080_v15, %v5469_v43  ;;  %5931 = vmatpush.msrb.mxu1 %v6842_v0  ;;  %5867 = vmatpush.msra.mxu0 %v6822_v17  ;;  %v6855_v43 = vld [vmem:[%s7609_s20 + $0x1f0] sm:$0xff] }
0x1852   :  { %5700 = vst.msk [vmem:[%s7624_s30] sm:$0xff] %vm239_vm2, %v10152_v19  ;;  %6794 = vmatmul.msk.f32.vlgmr.msra.gmra.mxu3 %vm239_vm2, %v10152_v19  ;;  %v5783_v27 = vrot.slane %v10152_v19, 4  ;;  %v5549_v38 = vmul.f32 %v5548_v42, %v10134_v20  ;;  %v5750_v62 = vrot.slane %v10152_v19, 2  ;;  %v5538_v59 = vmul.f32 %v5537_v57, %v10134_v20  ;;  %5899 = vmatpush.msra.mxu2 %v6832_v12  ;;  %v6863_v57 = vld [vmem:[%s7609_s20 + $0x228] sm:$0xff] }
0x1853   :  { %5827 = vmatpush.msra.mxu3 %v6820_v26  ;;  %v10182_v49 = vpop.eup %7334  ;;  %v10186_v56 = vmul.f32 0.70710677, %v10176_v2  ;;  %v6841_v26 = vld [vmem:[%s7609_s20 + $0x188] sm:$0xff]  ;;  %v5816_v22 = vrot.slane %v10152_v19, 6  ;;  %5992 = vmatpush.msrb.mxu0 %v6865_v52 }
0x1854   :  { %6812 = vmatmul.msk.f32.vlgmr.msrb.gmra.mxu2 %vm239_vm2, %v5783_v27  ;;  %v5440_v3 = vmul.f32 %v10182_v49, %v10149_v34  ;;  %v5550_v58 = vadd.f32 0.4994258, %v5549_v38  ;;  %vm5446_vm6 = vweird.f32 %v10182_v49  ;;  %v5539_v35 = vadd.f32 0.18741608, %v5538_v59  ;;  %5932 = vmatpush.msrb.mxu1 %v6841_v26  ;;  %v6873_v38 = vld [vmem:[%s7609_s20 + $0x270] sm:$0xff]  ;;  %v6861_v59 = vld [vmem:[%s7609_s20 + $0x218] sm:$0xff] }
0x1855   :  { %5828 = vmatpush.msra.mxu3 %v6819_v13  ;;  %v5570_v10 = vmul.f32 %v10186_v56, %v10186_v56  ;;  %vm5447_vm0 = vmor %vm5445_vm7, %vm5446_vm6  ;;  %5900 = vmatpush.msra.mxu2 %v6831_v63  ;;  %v6850_v26 = vld [vmem:[%s7609_s20 + $0x1c8] sm:$0xff] }
0x1856   :  { %v5441_v46 = vmul.f32 %v10182_v49, %v5440_v3  ;;  %v5551_v37 = vmul.f32 %v5550_v58, %v10134_v20  ;;  %v5540_v42 = vmul.f32 %v5539_v35, %v10134_v20  ;;  %5933 = vmatpush.msrb.mxu1 %v6840_v21  ;;  %5993 = vmatpush.msrb.mxu0 %v6864_v50 }
0x1857   :  { %5829 = vmatpush.msra.mxu3 %v6818_v40  ;;  %v10205_v25 = vmin.f32 %v5570_v10, 16.0 }
0x1858   :  { %v5442_v53 = vmul.f32 0.5, %v5441_v46  ;;  %v10211_v11 = vadd.f32 1.0, %v5551_v37  ;;  %6058 = vmatpush.msra.mxu1 %v6883_v61  ;;  %v5541_v58 = vadd.f32 1.1283791, %v5540_v42  ;;  %5994 = vmatpush.msrb.mxu0 %v6863_v57  ;;  %v6881_v46 = vld [vmem:[%s7609_s20 + $0x2a8] sm:$0xff]  ;;  %v6871_v37 = vld [vmem:[%s7609_s20 + $0x260] sm:$0xff] }
0x1859   :  { %5830 = vmatpush.msra.mxu3 %v6817_v6  ;;  %v5572_v33 = vmul.f32 2.1237322e-06, %v10205_v25  ;;  %v5583_v44 = vmul.f32 3.8918573e-05, %v10205_v25  ;;  %v6854_v6 = vld [vmem:[%s7609_s20 + $0x1e8] sm:$0xff]  ;;  %v6858_v42 = vld [vmem:[%s7609_s20 + $0x200] sm:$0xff] }
0x185a   :  { %6803 = vmatmul.msk.f32.vlgmr.msrb.gmra.mxu3 %vm239_vm2, %v5750_v62  ;;  %v5443_v18 = vsub.f32 1.5, %v5442_v53  ;;  %7336 = vrcp.f32 %v10211_v11  ;;  %6059 = vmatpush.msra.mxu1 %v6882_v28  ;;  %v5564_v45 = vand.u32 2147483648, %v10211_v11  ;;  %v6851_v53 = vld [vmem:[%s7609_s20 + $0x1d0] sm:$0xff]  ;;  %vm5558_vm8 = vweird.f32 %v10211_v11  ;;  %v6877_v57 = vld [vmem:[%s7609_s20 + $0x288] sm:$0xff]  ;;  %v6876_v28 = vld [vmem:[%s7609_s20 + $0x280] sm:$0xff] }
0x185b   :  { %5831 = vmatpush.msra.mxu3 %v6816_v5  ;;  %v5573_v55 = vadd.f32 0.00028619796, %v5572_v33  ;;  %v5584_v27 = vadd.f32 0.001143296, %v5583_v44  ;;  %v6862_v5 = vld [vmem:[%s7609_s20 + $0x220] sm:$0xff]  ;;  %v6860_v44 = vld [vmem:[%s7609_s20 + $0x210] sm:$0xff] }
0x185c   :  { %v5444_v13 = vmul.f32 %v10182_v49, %v5443_v18  ;;  %5995 = vmatpush.msrb.mxu0 %v6862_v5  ;;  %v5562_v33 = vand.u32 2147483647, %v10211_v11  ;;  %6060 = vmatpush.msra.mxu1 %v6881_v46  ;;  %v6870_v18 = vld [vmem:[%s7609_s20 + $0x258] sm:$0xff]  ;;  %v6889_v46 = vld [vmem:[%s7609_s20 + $0x2e0] sm:$0xff] }
0x185d   :  { %5832 = vmatpush.msra.mxu3 %v6815_v1  ;;  %v5398_v31 = vpop.xlane.xlu1 %5397  ;;  %v5574_v34 = vmul.f32 %v5573_v55, %v10205_v25  ;;  %v5585_v36 = vmul.f32 %v5584_v27, %v10205_v25  ;;  %v6879_v27 = vld [vmem:[%s7609_s20 + $0x298] sm:$0xff] }
0x185e   :  { %v5403_v30 = vmul.f32 %v5398_v31, %v7885_v7  ;;  %v5448_v40 = vsel %vm5447_vm0, %v10182_v49, %v5444_v13  ;;  %v6874_v7 = vld [vmem:[%s7609_s20 + $0x278] sm:$0xff]  ;;  %5996 = vmatpush.msrb.mxu0 %v6861_v59  ;;  %v5542_v13 = vmul.f32 %v5541_v58, %v10123_v48  ;;  %v5565_v31 = vor.u32 1.1754944e-38, %v5564_v45  ;;  %v6878_v48 = vld [vmem:[%s7609_s20 + $0x290] sm:$0xff] }
0x185f   :  { %5833 = vmatpush.msra.mxu3 %v6814_v8  ;;  %v5462_v19 = vmul.f32 %v5448_v40, %v10064_v60  ;;  %v5575_v16 = vadd.f32 0.0036580483, %v5574_v34  ;;  %v5586_v49 = vadd.f32 0.014752088, %v5585_v36  ;;  %6025 = vmatpush.msrb.mxu2 %v6874_v7  ;;  %v6880_v8 = vld [vmem:[%s7609_s20 + $0x2a0] sm:$0xff]  ;;  %vm5563_vm10 = vcmp.eq.f32.partialorder %v5562_v33, 8.507059e+37 }
0x1860   :  { %v10239_v39 = vadd.f32 1e-05, %v5403_v30  ;;  %v10246_v20 = vpop.eup %7336  ;;  %6061 = vmatpush.msra.mxu1 %v6880_v8  ;;  %5997 = vmatpush.msrb.mxu0 %v6860_v44  ;;  %v6849_v30 = vld [vmem:[%s7609_s20 + $0x1c0] sm:$0xff]  ;;  %v6892_v36 = vld [vmem:[%s7609_s20 + $0x2f8] sm:$0xff]  ;;  %v5481_v59 = vmul.f32 0.5, %v10117_v32  ;;  %v6887_v32 = vld [vmem:[%s7609_s20 + $0x2d0] sm:$0xff] }
0x1861   :  { %5834 = vmatpush.msra.mxu3 %v6813_v24  ;;  %v5470_v60 = vmul.f32 %v10077_v23, %v5462_v19  ;;  %v5554_v3 = vmul.f32 %v10246_v20, %v10211_v11  ;;  %v5587_v62 = vmul.f32 %v5586_v49, %v10205_v25  ;;  %6026 = vmatpush.msrb.mxu2 %v6873_v38  ;;  %vm5559_vm3 = vweird.f32 %v10246_v20  ;;  %v6859_v11 = vld [vmem:[%s7609_s20 + $0x208] sm:$0xff]  ;;  %v6891_v38 = vld [vmem:[%s7609_s20 + $0x2f0] sm:$0xff]  ;;  %v6888_v45 = vld [vmem:[%s7609_s20 + $0x2d8] sm:$0xff] }
0x1862   :  { %6821 = vmatmul.msk.f32.vlgmr.msra.gmra.mxu3 %vm239_vm2, %v5816_v22  ;;  %7338 = vrsqrt.f32 %v10239_v39  ;;  %v5576_v47 = vmul.f32 %v5575_v16, %v10205_v25  ;;  %vm5560_vm9 = vmor %vm5558_vm8, %vm5559_vm3  ;;  %v6869_v22 = vld [vmem:[%s7609_s20 + $0x250] sm:$0xff]  ;;  %6062 = vmatpush.msra.mxu1 %v6879_v27  ;;  %v6868_v19 = vld [vmem:[%s7609_s20 + $0x248] sm:$0xff]  ;;  %vm5455_vm12 = vweird.f32 %v10239_v39 }
0x1863   :  { %5959 = vmatpush.msrb.mxu3 %v6856_v9  ;;  %v10258_v10 = vadd.f32 %v10080_v15, %v5470_v60  ;;  %v5555_v1 = vsub.f32 1.0, %v5554_v3  ;;  %v5588_v14 = vadd.f32 0.112945676, %v5587_v62  ;;  %6027 = vmatpush.msrb.mxu2 %v6872_v4  ;;  %v6890_v3 = vld [vmem:[%s7609_s20 + $0x2e8] sm:$0xff]  ;;  %v6901_v44 = vld [vmem:[%s7609_s20 + $0x338] sm:$0xff] }
0x1864   :  { %v5577_v9 = vadd.f32 0.05243302, %v5576_v47  ;;  %5998 = vmatpush.msrb.mxu0 %v6859_v11  ;;  %6063 = vmatpush.msra.mxu1 %v6878_v48  ;;  %v6910_v27 = vld [vmem:[%s7609_s20 + $0x378] sm:$0xff]  ;;  %v6918_v48 = vld [vmem:[%s7609_s20 + $0x3b0] sm:$0xff] }
0x1865   :  { %5960 = vmatpush.msrb.mxu3 %v6855_v43  ;;  %v10267_v29 = vmul.f32 0.70710677, %v10258_v10  ;;  %v5556_v0 = vmul.f32 %v10246_v20, %v5555_v1  ;;  %v5589_v17 = vmul.f32 %v5588_v14, %v10205_v25  ;;  %6028 = vmatpush.msrb.mxu2 %v6871_v37  ;;  %v6919_v11 = vld [vmem:[%s7609_s20 + $0x3b8] sm:$0xff] }
0x1866   :  { %v5578_v61 = vmul.f32 %v5577_v9, %v10205_v25  ;;  %5999 = vmatpush.msrb.mxu0 %v6858_v42  ;;  %6064 = vmatpush.msra.mxu1 %v6877_v57  ;;  %v6900_v9 = vld [vmem:[%s7609_s20 + $0x330] sm:$0xff] }
0x1867   :  { %5961 = vmatpush.msrb.mxu3 %v6854_v6  ;;  %v5610_v12 = vmul.f32 %v10267_v29, %v10267_v29  ;;  %v5557_v35 = vadd.f32 %v10246_v20, %v5556_v0  ;;  %v5590_v52 = vadd.f32 0.4994258, %v5589_v17  ;;  %6029 = vmatpush.msrb.mxu2 %v6870_v18 }
0x1868   :  { %v10277_v24 = vpop.eup %7338  ;;  %v5579_v58 = vadd.f32 0.18741608, %v5578_v61  ;;  %6065 = vmatpush.msra.mxu1 %v6876_v28  ;;  %v6917_v61 = vld [vmem:[%s7609_s20 + $0x3a8] sm:$0xff] }
0x1869   :  { %5962 = vmatpush.msrb.mxu3 %v6853_v41  ;;  %v5450_v55 = vmul.f32 %v10277_v24, %v10239_v39  ;;  %v10291_v63 = vmin.f32 %v5610_v12, 16.0  ;;  %v5561_v43 = vsel %vm5560_vm9, %v10246_v20, %v5557_v35  ;;  %v5591_v21 = vmul.f32 %v5590_v52, %v10205_v25  ;;  %6030 = vmatpush.msrb.mxu2 %v6869_v22  ;;  %v6867_v41 = vld [vmem:[%s7609_s20 + $0x240] sm:$0xff]  ;;  %v6886_v22 = vld [vmem:[%s7609_s20 + $0x2c8] sm:$0xff] }
0x186a   :  { %v5566_v40 = vsel %vm5563_vm10, %v5565_v31, %v5561_v43  ;;  %vm5456_vm11 = vweird.f32 %v10277_v24  ;;  %v5580_v33 = vmul.f32 %v5579_v58, %v10205_v25 }
0x186b   :  { %5963 = vmatpush.msrb.mxu3 %v6852_v51  ;;  %v5451_v34 = vmul.f32 %v10277_v24, %v5450_v55  ;;  %v5612_v50 = vmul.f32 2.1237322e-06, %v10291_v63  ;;  %v5623_v7 = vmul.f32 3.8918573e-05, %v10291_v63  ;;  %v5567_v6 = vmul.f32 %v5566_v40, %v5542_v13  ;;  %6031 = vmatpush.msrb.mxu2 %v6868_v19  ;;  %vm5457_vm13 = vmor %vm5455_vm12, %vm5456_vm11 }
0x186c   :  { %v10305_v16 = vadd.f32 1.0, %v5591_v21 }
0x186d   :  { %5964 = vmatpush.msrb.mxu3 %v6851_v53  ;;  %v5452_v49 = vmul.f32 0.5, %v5451_v34  ;;  %v5613_v20 = vadd.f32 0.00028619796, %v5612_v50  ;;  %v5624_v60 = vadd.f32 0.001143296, %v5623_v7  ;;  %v6790_v51 = vclamps-f32 %v5567_v6, 1.0  ;;  %6032 = vmatpush.msrb.mxu2 %v6867_v41 }
0x186e   :  { %7340 = vrcp.f32 %v10305_v16  ;;  %v5604_v13 = vand.u32 2147483648, %v10305_v16  ;;  %v5602_v21 = vand.u32 2147483647, %v10305_v16  ;;  %v6898_v50 = vld [vmem:[%s7609_s20 + $0x320] sm:$0xff]  ;;  %vm5598_vm15 = vweird.f32 %v10305_v16  ;;  %v6908_v6 = vld [vmem:[%s7609_s20 + $0x368] sm:$0xff] }
0x186f   :  { %5965 = vmatpush.msrb.mxu3 %v6850_v26  ;;  %v5614_v62 = vmul.f32 %v5613_v20, %v10291_v63  ;;  %v5625_v5 = vmul.f32 %v5624_v60, %v10291_v63  ;;  %v5453_v4 = vsub.f32 1.5, %v5452_v49  ;;  %v5691_v37 = vadd.f32 1.0, %v6790_v51  ;;  %v6885_v7 = vld [vmem:[%s7609_s20 + $0x2c0] sm:$0xff]  ;;  %v6928_v20 = vld [vmem:[%s7609_s20 + $0x3f8] sm:$0xff]  ;;  %v6927_v51 = vld [vmem:[%s7609_s20 + $0x3f0] sm:$0xff] }
0x1870   :  { %v5605_v57 = vor.u32 1.1754944e-38, %v5604_v13  ;;  %vm5603_vm5 = vcmp.eq.f32.partialorder %v5602_v21, 8.507059e+37 }
0x1871   :  { %5966 = vmatpush.msrb.mxu3 %v6849_v30  ;;  %v5615_v1 = vadd.f32 0.0036580483, %v5614_v62  ;;  %v5626_v47 = vadd.f32 0.014752088, %v5625_v5  ;;  %v5454_v14 = vmul.f32 %v10277_v24, %v5453_v4  ;;  %v5696_v17 = vmul.f32 %v5691_v37, %v5481_v59  ;;  %v6899_v30 = vld [vmem:[%s7609_s20 + $0x328] sm:$0xff]  ;;  %v6916_v62 = vld [vmem:[%s7609_s20 + $0x3a0] sm:$0xff] }
0x1872   :  { %v6895_v59 = vld [vmem:[%s7609_s20 + $0x308] sm:$0xff] }
0x1873   :  { %6091 = vmatpush.msra.mxu3 %v6892_v36  ;;  %v5627_v53 = vmul.f32 %v5626_v47, %v10291_v63  ;;  %v5458_v8 = vsel %vm5457_vm13, %v10277_v24, %v5454_v14  ;;  %v5616_v12 = vmul.f32 %v5615_v1, %v10291_v63  ;;  %5701 = vst.msk [vmem:[%s7624_s30 + $0x8] sm:$0xff] %vm239_vm2, %v5696_v17  ;;  %v5915_v25 = vrot.slane %v5696_v17, 4  ;;  %v6906_v1 = vld [vmem:[%s7609_s20 + $0x358] sm:$0xff]  ;;  %v6926_v37 = vld [vmem:[%s7609_s20 + $0x3e8] sm:$0xff] }
0x1874   :  { %v10323_v0 = vpop.eup %7340  ;;  %v5463_v39 = vmul.f32 %v5458_v8, %v10070_v54  ;;  %6830 = vmatmul.msk.f32.vlgmr.msra.gmra.mxu0 %vm239_vm2, %v5696_v17  ;;  %v5882_v54 = vrot.slane %v5696_v17, 2  ;;  %v5948_v35 = vrot.slane %v5696_v17, 6  ;;  %v6915_v47 = vld [vmem:[%s7609_s20 + $0x398] sm:$0xff]  ;;  %v6905_v8 = vld [vmem:[%s7609_s20 + $0x350] sm:$0xff]  ;;  %v6894_v17 = vld [vmem:[%s7609_s20 + $0x300] sm:$0xff] }
0x1875   :  { %6092 = vmatpush.msra.mxu3 %v6891_v38  ;;  %v5594_v18 = vmul.f32 %v10323_v0, %v10305_v16  ;;  %v5628_v26 = vadd.f32 0.112945676, %v5627_v53  ;;  %6124 = vmatpush.msra.mxu0 %v6901_v44  ;;  %vm5599_vm14 = vweird.f32 %v10323_v0  ;;  %v5617_v36 = vadd.f32 0.05243302, %v5616_v12  ;;  %v6897_v16 = vld [vmem:[%s7609_s20 + $0x318] sm:$0xff]  ;;  %v6925_v44 = vld [vmem:[%s7609_s20 + $0x3e0] sm:$0xff] }
0x1876   :  { %v5471_v24 = vmul.f32 %v10077_v23, %v5463_v39  ;;  %v5581_v23 = vadd.f32 1.1283791, %v5580_v33  ;;  %6839 = vmatmul.msk.f32.vlgmr.msra.gmra.mxu2 %vm239_vm2, %v5882_v54  ;;  %6848 = vmatmul.msk.f32.vlgmr.msrb.gmra.mxu1 %vm239_vm2, %v5915_v25  ;;  %vm10366_vm4 = vmor %vm5598_vm15, %vm5599_vm14  ;;  %v6924_v25 = vld [vmem:[%s7609_s20 + $0x3d8] sm:$0xff] }
0x1877   :  { %6093 = vmatpush.msra.mxu3 %v6890_v3  ;;  %v5595_v52 = vsub.f32 1.0, %v5594_v18  ;;  %v5629_v55 = vmul.f32 %v5628_v26, %v10291_v63  ;;  %6125 = vmatpush.msra.mxu0 %v6900_v9  ;;  %v6907_v3 = vld [vmem:[%s7609_s20 + $0x360] sm:$0xff]  ;;  %v5618_v4 = vmul.f32 %v5617_v36, %v10291_v63  ;;  %v6904_v26 = vld [vmem:[%s7609_s20 + $0x348] sm:$0xff]  ;;  %v6936_v36 = vld [vmem:[%s7609_s20 + $0x430] sm:$0xff] }
0x1878   :  { %v10342_v31 = vadd.f32 %v10080_v15, %v5471_v24  ;;  %6857 = vmatmul.msk.f32.vlgmr.msrb.gmra.mxu3 %vm239_vm2, %v5948_v35  ;;  %v6909_v15 = vld [vmem:[%s7609_s20 + $0x370] sm:$0xff]  ;;  %6157 = vmatpush.msra.mxu2 %v6910_v27  ;;  %v5582_v60 = vmul.f32 %v5581_v23, %v10186_v56  ;;  %v6913_v24 = vld [vmem:[%s7609_s20 + $0x388] sm:$0xff] }
0x1879   :  { %6094 = vmatpush.msra.mxu3 %v6889_v46  ;;  %v5596_v43 = vmul.f32 %v10323_v0, %v5595_v52  ;;  %v5630_v34 = vadd.f32 0.4994258, %v5629_v55  ;;  %6190 = vmatpush.msrb.mxu1 %v6919_v11  ;;  %v6896_v56 = vld [vmem:[%s7609_s20 + $0x310] sm:$0xff]  ;;  %v5619_v33 = vadd.f32 0.18741608, %v5618_v4  ;;  %v6912_v55 = vld [vmem:[%s7609_s20 + $0x380] sm:$0xff] }
0x187a   :  { %v10355_v40 = vmul.f32 0.70710677, %v10342_v31  ;;  %6126 = vmatpush.msra.mxu0 %v6899_v30  ;;  %6158 = vmatpush.msra.mxu2 %v6909_v15 }
0x187b   :  { %6095 = vmatpush.msra.mxu3 %v6888_v45  ;;  %v5597_v42 = vadd.f32 %v10323_v0, %v5596_v43  ;;  %v5631_v19 = vmul.f32 %v5630_v34, %v10291_v63  ;;  %6191 = vmatpush.msrb.mxu1 %v6918_v48  ;;  %v5620_v27 = vmul.f32 %v5619_v33, %v10291_v63  ;;  %v6923_v63 = vld [vmem:[%s7609_s20 + $0x3d0] sm:$0xff] }
0x187c   :  { %v5650_v38 = vmul.f32 %v10355_v40, %v10355_v40  ;;  %6127 = vmatpush.msra.mxu0 %v6898_v50  ;;  %6159 = vmatpush.msra.mxu2 %v6908_v6 }
0x187d   :  { %6096 = vmatpush.msra.mxu3 %v6887_v32  ;;  %v5601_v41 = vsel %vm10366_vm4, %v10323_v0, %v5597_v42  ;;  %v10378_v28 = vadd.f32 1.0, %v5631_v19  ;;  %6192 = vmatpush.msrb.mxu1 %v6917_v61  ;;  %v6914_v0 = vld [vmem:[%s7609_s20 + $0x390] sm:$0xff]  ;;  %v5482_v32 = vmul.f32 0.5, %v10176_v2  ;;  %v6903_v2 = vld [vmem:[%s7609_s20 + $0x340] sm:$0xff]  ;;  %v5621_v50 = vadd.f32 1.1283791, %v5620_v27 }
0x187e   :  { %v5606_v5 = vsel %vm5603_vm5, %v5605_v57, %v5601_v41  ;;  %v10383_v58 = vmin.f32 %v5650_v38, 16.0  ;;  %6128 = vmatpush.msra.mxu0 %v6897_v16  ;;  %6160 = vmatpush.msra.mxu2 %v6907_v3  ;;  %v6922_v19 = vld [vmem:[%s7609_s20 + $0x3c8] sm:$0xff]  ;;  %v6921_v38 = vld [vmem:[%s7609_s20 + $0x3c0] sm:$0xff] }
0x187f   :  { %6097 = vmatpush.msra.mxu3 %v6886_v22  ;;  %v5607_v46 = vmul.f32 %v5606_v5, %v5582_v60  ;;  %7342 = vrcp.f32 %v10378_v28  ;;  %6193 = vmatpush.msrb.mxu1 %v6916_v62  ;;  %v6937_v22 = vld [vmem:[%s7609_s20 + $0x438] sm:$0xff]  ;;  %v5644_v15 = vand.u32 2147483648, %v10378_v28  ;;  %v5642_v42 = vand.u32 2147483647, %v10378_v28  ;;  %v6935_v61 = vld [vmem:[%s7609_s20 + $0x428] sm:$0xff]  ;;  %v6934_v60 = vld [vmem:[%s7609_s20 + $0x420] sm:$0xff] }
0x1880   :  { %v5652_v14 = vmul.f32 2.1237322e-06, %v10383_v58  ;;  %v5663_v45 = vmul.f32 3.8918573e-05, %v10383_v58  ;;  %6129 = vmatpush.msra.mxu0 %v6896_v56  ;;  %6161 = vmatpush.msra.mxu2 %v6906_v1  ;;  %vm5638_vm7 = vweird.f32 %v10378_v28  ;;  %v5622_v41 = vmul.f32 %v5621_v50, %v10267_v29  ;;  %v6933_v5 = vld [vmem:[%s7609_s20 + $0x418] sm:$0xff]  ;;  %v6931_v29 = vld [vmem:[%s7609_s20 + $0x408] sm:$0xff] }
0x1881   :  { %6098 = vmatpush.msra.mxu3 %v6885_v7  ;;  %v6791_v53 = vclamps-f32 %v5607_v46, 1.0  ;;  %6194 = vmatpush.msrb.mxu1 %v6915_v47  ;;  %v5645_v16 = vor.u32 1.1754944e-38, %v5644_v15  ;;  %vm5643_vm3 = vcmp.eq.f32.partialorder %v5642_v42, 8.507059e+37  ;;  %v6932_v46 = vld [vmem:[%s7609_s20 + $0x410] sm:$0xff] }
0x1882   :  { %v5653_v39 = vadd.f32 0.00028619796, %v5652_v14  ;;  %v5664_v18 = vadd.f32 0.001143296, %v5663_v45  ;;  %6130 = vmatpush.msra.mxu0 %v6895_v59  ;;  %6162 = vmatpush.msra.mxu2 %v6905_v8  ;;  %v5483_v14 = vmul.f32 0.5, %v10258_v10 }
0x1883   :  { %6223 = vmatpush.msrb.mxu3 %v6928_v20  ;;  %v5692_v12 = vadd.f32 1.0, %v6791_v53  ;;  %6195 = vmatpush.msrb.mxu1 %v6914_v0  ;;  %v6930_v53 = vld [vmem:[%s7609_s20 + $0x400] sm:$0xff]  ;;  %s6277_s20 = sshll.u32 %s7619_s6, 4  ;;  %s6278_s20 = int_to_ptr.hbm [resolvable:$true] %s6277_s20 }
0x1884   :  { %v5654_v54 = vmul.f32 %v5653_v39, %v10383_v58  ;;  %v5665_v9 = vmul.f32 %v5664_v18, %v10383_v58  ;;  %6131 = vmatpush.msra.mxu0 %v6894_v17  ;;  %6163 = vmatpush.msra.mxu2 %v6904_v26  ;;  %s7363_s16 = sshra.s32 %s6278_s20, 4  ;;  %s7364_s16 = int_to_ptr.hbm [resolvable:$true] %s7363_s16 }
0x1885   :  { %6224 = vmatpush.msrb.mxu3 %v6927_v51  ;;  %v7343_v35 = vpop.eup %7342  ;;  %v5697_v52 = vmul.f32 %v5692_v12, %v5482_v32  ;;  %6196 = vmatpush.msrb.mxu1 %v6913_v24  ;;  %s7365_s18 = scalar_lea.hbm %s7364_s16, 2  ;;  %p7368_p1 = scmp.lt.s32.totalorder %s7364_s16, %s7619_s6 }
0x1886   :  { %v5634_v11 = vmul.f32 %v7343_v35, %v10378_v28  ;;  %v5666_v23 = vadd.f32 0.014752088, %v5665_v9  ;;  %v5655_v21 = vadd.f32 0.0036580483, %v5654_v54  ;;  %6164 = vmatpush.msra.mxu2 %v6903_v2  ;;  %vm5639_vm6 = vweird.f32 %v7343_v35  ;;  %p7366_p0 = scmp.ne.s32.totalorder %s7364_s16, %s7365_s18  ;;  %p7369_p2 = scmp.lt.s32.totalorder %s7367_s0, %s7365_s18 }
0x1887   :  { %6225 = vmatpush.msrb.mxu3 %v6926_v37  ;;  %5702 = vst.msk [vmem:[%s7624_s30 + $0x10] sm:$0xff] %vm239_vm2, %v5697_v52  ;;  %6866 = vmatmul.msk.f32.vlgmr.msrb.gmra.mxu0 %vm239_vm2, %v5697_v52  ;;  %v6014_v13 = vrot.slane %v5697_v52, 2  ;;  %v6047_v30 = vrot.slane %v5697_v52, 4  ;;  %v6080_v34 = vrot.slane %v5697_v52, 6  ;;  %vm5640_vm0 = vmor %vm5638_vm7, %vm5639_vm6 }
0x1888   :  { %v5635_v43 = vsub.f32 1.0, %v5634_v11  ;;  %6197 = vmatpush.msrb.mxu1 %v6912_v55  ;;  %v5667_v48 = vmul.f32 %v5666_v23, %v10383_v58  ;;  %6256 = vmatpush.msrb.mxu0 %v6937_v22  ;;  %v5656_v57 = vmul.f32 %v5655_v21, %v10383_v58  ;;  %v5484_v55 = vmul.f32 0.5, %v10342_v31  ;;  %p7370_p3 = por %p7369_p2, %p7368_p1 }
0x1889   :  { %6226 = vmatpush.msrb.mxu3 %v6925_v44  ;;  %6875 = vmatmul.msk.f32.vlgmr.msrb.gmra.mxu2 %vm239_vm2, %v6014_v13 }
0x188a   :  { %6884 = vmatmul.msk.f32.vlgmr.msra.gmra.mxu1 %vm239_vm2, %v6047_v30  ;;  %v5636_v7 = vmul.f32 %v7343_v35, %v5635_v43  ;;  %6893 = vmatmul.msk.f32.vlgmr.msra.gmra.mxu3 %vm239_vm2, %v6080_v34  ;;  %v5668_v6 = vadd.f32 0.112945676, %v5667_v48  ;;  %v5657_v56 = vadd.f32 0.05243302, %v5656_v57  ;;  %v7071_v30 = vld [vmem:[%s7614_s12] ss:$0 sm:$0xff]  ;;  %p7371_p4 = pnand %p7370_p3, %p7366_p0 }
0x188b   :  { %6227 = vmatpush.msrb.mxu3 %v6924_v25  ;;  %6257 = vmatpush.msrb.mxu0 %v6936_v36 }
0x188c   :  { %v5637_v49 = vadd.f32 %v7343_v35, %v5636_v7  ;;  %v5669_v20 = vmul.f32 %v5668_v6, %v10383_v58  ;;  %v5658_v59 = vmul.f32 %v5657_v56, %v10383_v58 }
0x188d   :  { %6228 = vmatpush.msrb.mxu3 %v6923_v63  ;;  %6258 = vmatpush.msrb.mxu0 %v6935_v61 }
0x188e   :  { %v5641_v3 = vsel %vm5640_vm0, %v7343_v35, %v5637_v49  ;;  %v5670_v28 = vadd.f32 0.4994258, %v5669_v20  ;;  %v5659_v8 = vadd.f32 0.18741608, %v5658_v59 }
0x188f   :  { %6229 = vmatpush.msrb.mxu3 %v6922_v19  ;;  %v5646_v62 = vsel %vm5643_vm3, %v5645_v16, %v5641_v3  ;;  %6259 = vmatpush.msrb.mxu0 %v6934_v60 }
0x1890   :  { %v5647_v4 = vmul.f32 %v5646_v62, %v5622_v41  ;;  %v5671_v51 = vmul.f32 %v5670_v28, %v10383_v58  ;;  %v5660_v17 = vmul.f32 %v5659_v8, %v10383_v58 }
0x1891   :  { %6230 = vmatpush.msrb.mxu3 %v6921_v38  ;;  %6260 = vmatpush.msrb.mxu0 %v6933_v5 }
0x1892   :  { %v6792_v1 = vclamps-f32 %v5647_v4, 1.0  ;;  %v5672_v47 = vadd.f32 1.0, %v5671_v51  ;;  %v5661_v12 = vadd.f32 1.1283791, %v5660_v17 }
0x1893   :  { %6261 = vmatpush.msrb.mxu0 %v6932_v46 }
0x1894   :  { %v5693_v37 = vadd.f32 1.0, %v6792_v1  ;;  %7344 = vrcp.f32 %v5672_v47  ;;  %v5684_v18 = vand.u32 2147483648, %v5672_v47  ;;  %v5682_v24 = vand.u32 2147483647, %v5672_v47 }
0x1895   :  { %6262 = vmatpush.msrb.mxu0 %v6931_v29  ;;  %vm5678_vm9 = vweird.f32 %v5672_v47  ;;  %v5662_v35 = vmul.f32 %v5661_v12, %v10355_v40 }
0x1896   :  { %v5698_v45 = vmul.f32 %v5693_v37, %v5483_v14  ;;  %v5685_v25 = vor.u32 1.1754944e-38, %v5684_v18  ;;  %vm5683_vm11 = vcmp.eq.f32.partialorder %v5682_v24, 8.507059e+37 }
0x1897   :  { %6263 = vmatpush.msrb.mxu0 %v6930_v53 }
0x1898   :  { %5703 = vst.msk [vmem:[%s7624_s30 + $0x18] sm:$0xff] %vm239_vm2, %v5698_v45  ;;  %6902 = vmatmul.msk.f32.vlgmr.msra.gmra.mxu0 %vm239_vm2, %v5698_v45  ;;  %v6146_v0 = vrot.slane %v5698_v45, 2  ;;  %v6179_v33 = vrot.slane %v5698_v45, 4  ;;  %v6212_v39 = vrot.slane %v5698_v45, 6 }
0x189a   :  { %6911 = vmatmul.msk.f32.vlgmr.msra.gmra.mxu2 %vm239_vm2, %v6146_v0  ;;  %6920 = vmatmul.msk.f32.vlgmr.msrb.gmra.mxu1 %vm239_vm2, %v6179_v33  ;;  %v7345_v10 = vpop.eup %7344 }
0x189b   :  { %6929 = vmatmul.msk.f32.vlgmr.msrb.gmra.mxu3 %vm239_vm2, %v6212_v39  ;;  %v5674_v44 = vmul.f32 %v7345_v10, %v5672_v47  ;;  %vm5679_vm8 = vweird.f32 %v7345_v10 }
0x189c   :  { %vm5680_vm10 = vmor %vm5678_vm9, %vm5679_vm8 }
0x189d   :  { %v5675_v32 = vsub.f32 1.0, %v5674_v44 }
0x189f   :  { %v5676_v26 = vmul.f32 %v7345_v10, %v5675_v32 }
0x18a1   :  { %v5677_v54 = vadd.f32 %v7345_v10, %v5676_v26 }
0x18a3   :  { %v5681_v9 = vsel %vm5680_vm10, %v7345_v10, %v5677_v54 }
0x18a4   :  { %v5686_v52 = vsel %vm5683_vm11, %v5685_v25, %v5681_v9 }
0x18a5   :  { %v5687_v2 = vmul.f32 %v5686_v52, %v5662_v35 }
0x18a7   :  { %v6793_v58 = vclamps-f32 %v5687_v2, 1.0 }
0x18a9   :  { %v5694_v27 = vadd.f32 1.0, %v6793_v58 }
0x18ab   :  { %v5699_v11 = vmul.f32 %v5694_v27, %v5484_v55 }
0x18ad   :  { %5704 = vst.msk [vmem:[%s7624_s30 + $0x20] sm:$0x3] %vm876_vm1, %v5699_v11  ;;  %6938 = vmatmul.msk.f32.vlgmr.msrb.gmra.mxu0 %vm239_vm2, %v5699_v11  ;;  %s7420_s30 = smov [#allocation2]  }
0x18ae   :  { %s6275_s12 = sshll.u32 %s7420_s30, 4  ;;  %s6276_s12 = int_to_ptr.vmem [resolvable:$true] %s6275_s12 }
0x18d5   :  { %v5734_v23 = vpop.f32.mrf.mxu3 }
0x18d6   :  { %v5740_v22 = vadd.f32 %v7071_v30, %v5734_v23 }
0x18d7   :  { %v5803_v43 = vpop.f32.mrf.mxu2 }
0x18dd   :  { %v5770_v13 = vpop.f32.mrf.mxu3 }
0x18de   :  { %v5773_v21 = vadd.f32 %v5770_v13, %v5740_v22 }
0x18e0   :  { %v5806_v34 = vadd.f32 %v5803_v43, %v5773_v21 }
0x18e5   :  { %v5836_v40 = vpop.f32.mrf.mxu3 }
0x18e6   :  { %v5839_v15 = vadd.f32 %v5836_v40, %v5806_v34 }
0x18f1   :  { %v5869_v63 = vpop.f32.mrf.mxu0 }
0x18f2   :  { %v5872_v36 = vadd.f32 %v5869_v63, %v5839_v15 }
0x18f3   :  { %v5935_v31 = vpop.f32.mrf.mxu1 }
0x18f9   :  { %v5902_v48 = vpop.f32.mrf.mxu2 }
0x18fa   :  { %v5905_v50 = vadd.f32 %v5902_v48, %v5872_v36 }
0x18fb   :  { %v5968_v42 = vpop.f32.mrf.mxu3 }
0x18fc   :  { %v5938_v7 = vadd.f32 %v5935_v31, %v5905_v50 }
0x18fe   :  { %v5971_v19 = vadd.f32 %v5968_v42, %v5938_v7 }
0x1904   :  { %v6001_v6 = vpop.f32.mrf.mxu0 }
0x1905   :  { %v6004_v61 = vadd.f32 %v6001_v6, %v5971_v19 }
0x1907   :  { %v6067_v38 = vpop.f32.mrf.mxu1 }
0x190c   :  { %v6034_v49 = vpop.f32.mrf.mxu2 }
0x190d   :  { %v6037_v57 = vadd.f32 %v6034_v49, %v6004_v61  ;;  %v6100_v20 = vpop.f32.mrf.mxu3 }
0x190f   :  { %v6070_v16 = vadd.f32 %v6067_v38, %v6037_v57 }
0x1911   :  { %v6103_v60 = vadd.f32 %v6100_v20, %v6070_v16 }
0x1915   :  { %v6133_v41 = vpop.f32.mrf.mxu0 }
0x1916   :  { %v6136_v3 = vadd.f32 %v6133_v41, %v6103_v60 }
0x1917   :  { %v6199_v5 = vpop.f32.mrf.mxu1 }
0x191d   :  { %v6166_v62 = vpop.f32.mrf.mxu2 }
0x191e   :  { %v6169_v28 = vadd.f32 %v6166_v62, %v6136_v3  ;;  %v6232_v4 = vpop.f32.mrf.mxu3 }
0x1920   :  { %v6202_v56 = vadd.f32 %v6199_v5, %v6169_v28 }
0x1922   :  { %v6235_v51 = vadd.f32 %v6232_v4, %v6202_v56 }
0x192a   :  { %v6265_v46 = vpop.f32.mrf.mxu0 }
0x192b   :  { %v6268_v1 = vadd.f32 %v6265_v46, %v6235_v51 }
0x192d   :  { %6269 = vst [vmem:[#allocation2] sm:$0x3] %v6268_v1 }
0x192e   :  { %7374 = shalt.err (!%p7371_p4)
}
0x192f   :  { %6280 = dma.vmem_to_hbm [thread:$0]  %s6276_s12, 32, %s6278_s20, [#allocation3]  }
0x1930   :  { %7375 = dma.done.wait [#allocation3], 32  }
0x1931   :  { %7376 = vsyncadd [#allocation3], 4294967264 }
0x1932   :  { %6289 = vsyncpa [#allocation3], 1 }

</bundles_post_ra>
